<compile_context>
chip_gen: v5e
topology: v5e:2x2
jax: 0.10.0
libtpu: 0.0.40
codegen_flags: <defaults>
</compile_context>

<pallas_src>
import jax
import jax.numpy as jnp
from jax import lax
from jax.experimental import pallas as pl
from jax.experimental.pallas import tpu as pltpu

# ---------------- small, module-consistent hyperparameters -------------------
VOCAB = 64
EMB_DIM = 32            # embedding dim (embedding.size(1))
INT_DIM = 4
INT_LAYERS = (128, 256)
TEXT_DIM = 2            # number of text channels
LSTM_HIDDEN = 128       # module default is 200; kept lane-friendly (see TODO)
NUM_LSTM_LAYERS = 2     # baked into the fused 2-layer LSTM recurrence below
TEXT_LAYERS = (128, 32)
CONCAT_LAYERS = (128, 32)
BATCH = 8
SEQ = 8
BN_EPS = 1e-5


# ----------------------------- fused kernel ----------------------------------
def _fused_forward_kernel(
    ids_ref, int_ref, emb_ref,
    int_w0_ref, int_b0_ref, int_w1_ref, int_b1_ref,
    wih1_ref, whh1_ref, b1_ref, wih2_ref, whh2_ref, b2_ref,
    text_w0_ref, text_b0_ref, text_w1_ref, text_b1_ref,
    cat_w0_ref, cat_b0_ref, cat_w1_ref, cat_b1_ref, cat_w2_ref, cat_b2_ref,
    o_ref,
    g1_scratch,
):
    B = int_ref.shape[0]
    TB = TEXT_DIM * B                       # channels stacked into batch
    H = whh1_ref.shape[0]
    n_ids = ids_ref.shape[0]                # SEQ * TB
    T = n_ids // TB
    V = emb_ref.shape[0]
    f32 = jnp.float32

    # --- embedding lookup (exact one-hot matmul) fused with the hoisted
    #     layer-1 input projection for ALL timesteps / channels at once. ------
    ids = ids_ref[...]                                         # (T*TB, 1) i32
    iota = lax.broadcasted_iota(jnp.int32, (n_ids, V), 1)
    onehot = (ids == iota).astype(f32)                         # (T*TB, V)
    emb = jnp.dot(onehot, emb_ref[...], preferred_element_type=f32)   # (T*TB, E)
    g1_scratch[...] = (jnp.dot(emb, wih1_ref[...], preferred_element_type=f32)
                       + b1_ref[...])                          # (T*TB, 4H)

    # --- int path: two fused linears (BN affine folded into weights) ---------
    xi = jnp.dot(int_ref[...], int_w0_ref[...], preferred_element_type=f32) \
        + int_b0_ref[...]
    x_int = jnp.dot(xi, int_w1_ref[...], preferred_element_type=f32) \
        + int_b1_ref[...]                                      # (B, 256)

    # --- 2-layer LSTM recurrence over the stacked batch of size TB -----------
    whh1 = whh1_ref[...]
    wih2 = wih2_ref[...]
    whh2 = whh2_ref[...]
    b2 = b2_ref[...]

    def gates(g, c):
        i_g = jax.nn.sigmoid(g[:, 0 * H:1 * H])
        f_g = jax.nn.sigmoid(g[:, 1 * H:2 * H])
        g_g = jnp.tanh(g[:, 2 * H:3 * H])
        o_g = jax.nn.sigmoid(g[:, 3 * H:4 * H])
        c_new = f_g * c + i_g * g_g
        return o_g * jnp.tanh(c_new), c_new

    def body(t, carry):
        h1, c1, h2, c2 = carry
        g1 = (g1_scratch[pl.ds(t * TB, TB), :]
              + jnp.dot(h1, whh1, preferred_element_type=f32))
        h1, c1 = gates(g1, c1)
        g2 = (jnp.dot(h1, wih2, preferred_element_type=f32)
              + jnp.dot(h2, whh2, preferred_element_type=f32)
              + b2)
        h2, c2 = gates(g2, c2)
        return (h1, c1, h2, c2)

    z = jnp.zeros((TB, H), f32)
    _, _, h2, _ = lax.fori_loop(0, T, body, (z, z, z, z), unroll=True)

    # --- text MLP on the stacked last hidden state ----------------------------
    t0 = jnp.dot(h2, text_w0_ref[...], preferred_element_type=f32) \
        + text_b0_ref[...]
    t1 = jnp.dot(t0, text_w1_ref[...], preferred_element_type=f32) \
        + text_b1_ref[...]                                     # (TB, 32)

    # --- concat path: first matmul split along the contraction dim so no
    #     lane-concatenate is needed ([x_int | text_ch0 | text_ch1]) ----------
    n_int = int_w1_ref.shape[1]
    n_txt = text_w1_ref.shape[1]
    y0 = jnp.dot(x_int, cat_w0_ref[:n_int, :], preferred_element_type=f32) \
        + cat_b0_ref[...]
    for c in range(TEXT_DIM):
        lo = n_int + c * n_txt
        y0 = y0 + jnp.dot(t1[c * B:(c + 1) * B, :],
                          cat_w0_ref[lo:lo + n_txt, :],
                          preferred_element_type=f32)

    y1 = jnp.dot(y0, cat_w1_ref[...], preferred_element_type=f32) + cat_b1_ref[...]
    y2 = jnp.dot(y1, cat_w2_ref[...], preferred_element_type=f32) + cat_b2_ref[...]
    o_ref[...] = jax.nn.sigmoid(y2)                            # (B, 1)


def model_forward(params, int_array, class_array, text_ids):
    """Fused forward: int_array (B, INT_DIM) f32, text_ids (B, TEXT_DIM, SEQ) i32."""
    del class_array  # unused by the reference module's forward
    B, C, T = text_ids.shape
    H = params["lstm_whh1"].shape[0]

    # Row ordering (t, c, b): timestep-major so the kernel slices one
    # contiguous (TB, 4H) slab of the hoisted projection per step.
    ids_flat = jnp.transpose(text_ids, (2, 1, 0)).reshape(T * C * B, 1)

    operands = (
        ids_flat, int_array, params["embedding"],
        params["int_w0"], params["int_b0"], params["int_w1"], params["int_b1"],
        params["lstm_wih1"], params["lstm_whh1"], params["lstm_b1"],
        params["lstm_wih2"], params["lstm_whh2"], params["lstm_b2"],
        params["text_w0"], params["text_b0"], params["text_w1"], params["text_b1"],
        params["cat_w0"], params["cat_b0"], params["cat_w1"], params["cat_b1"],
        params["cat_w2"], params["cat_b2"],
    )
    vmem = pl.BlockSpec(memory_space=pltpu.MemorySpace.VMEM)
    return pl.pallas_call(
        _fused_forward_kernel,
        out_shape=jax.ShapeDtypeStruct((B, 1), jnp.float32),
        in_specs=[vmem] * len(operands),
        out_specs=vmem,
        scratch_shapes=[pltpu.VMEM((T * C * B, 4 * H), jnp.float32)],
    )(*operands)


# ------------------------------ parameters -----------------------------------
def init_params(key):
    keys = iter(jax.random.split(key, 16))
    p = {}
    p["embedding"] = jax.random.normal(next(keys), (VOCAB, EMB_DIM), jnp.float32)

    def linear(k, fan_in, fan_out):
        k1, k2 = jax.random.split(k)
        bound = 1.0 / float(fan_in) ** 0.5
        w = jax.random.uniform(k1, (fan_in, fan_out), jnp.float32, -bound, bound)
        b = jax.random.uniform(k2, (fan_out,), jnp.float32, -bound, bound)
        return w, b

    def bn_fold(w, b, n):
        # Eval-mode BatchNorm1d (default gamma/beta/running stats) folded into
        # the preceding Linear: W' = W*scale, b' = b*scale + shift.
        gamma = jnp.ones((n,), jnp.float32)
        beta = jnp.zeros((n,), jnp.float32)
        mean = jnp.zeros((n,), jnp.float32)
        var = jnp.ones((n,), jnp.float32)
        scale = gamma / jnp.sqrt(var + BN_EPS)
        shift = beta - mean * scale
        return w * scale[None, :], b * scale + shift

    H = LSTM_HIDDEN

    def lstm_layer(k, in_dim):
        k1, k2, k3, k4 = jax.random.split(k, 4)
        bound = 1.0 / float(H) ** 0.5
        wih = jax.random.uniform(k1, (in_dim, 4 * H), jnp.float32, -bound, bound)
        whh = jax.random.uniform(k2, (H, 4 * H), jnp.float32, -bound, bound)
        bih = jax.random.uniform(k3, (4 * H,), jnp.float32, -bound, bound)
        bhh = jax.random.uniform(k4, (4 * H,), jnp.float32, -bound, bound)
        return wih, whh, (bih + bhh).reshape(1, 4 * H)

    # int path: Linear(4,128)+BN, Linear(128,256)+BN (BN folded)
    w, b = bn_fold(*linear(next(keys), INT_DIM, INT_LAYERS[0]), INT_LAYERS[0])
    p["int_w0"], p["int_b0"] = w, b.reshape(1, -1)
    w, b = bn_fold(*linear(next(keys), INT_LAYERS[0], INT_LAYERS[1]), INT_LAYERS[1])
    p["int_w1"], p["int_b1"] = w, b.reshape(1, -1)

    # 2-layer LSTM (gate order i, f, g, o; bias = bih + bhh)
    p["lstm_wih1"], p["lstm_whh1"], p["lstm_b1"] = lstm_layer(next(keys), EMB_DIM)
    p["lstm_wih2"], p["lstm_whh2"], p["lstm_b2"] = lstm_layer(next(keys), H)

    # text path: Linear(H,128)+BN, Linear(128,32)+BN (BN folded)
    w, b = bn_fold(*linear(next(keys), H, TEXT_LAYERS[0]), TEXT_LAYERS[0])
    p["text_w0"], p["text_b0"] = w, b.reshape(1, -1)
    w, b = bn_fold(*linear(next(keys), TEXT_LAYERS[0], TEXT_LAYERS[1]), TEXT_LAYERS[1])
    p["text_w1"], p["text_b1"] = w, b.reshape(1, -1)

    # concat path: Linear(256 + 2*32, 128), Linear(128, 32), Linear(32, 1), Sigmoid
    cat_in = INT_LAYERS[-1] + TEXT_DIM * TEXT_LAYERS[-1]
    w, b = linear(next(keys), cat_in, CONCAT_LAYERS[0])
    p["cat_w0"], p["cat_b0"] = w, b.reshape(1, -1)
    w, b = linear(next(keys), CONCAT_LAYERS[0], CONCAT_LAYERS[1])
    p["cat_w1"], p["cat_b1"] = w, b.reshape(1, -1)
    w, b = linear(next(keys), CONCAT_LAYERS[1], 1)
    p["cat_w2"], p["cat_b2"] = w, b.reshape(1, -1)
    return p


# --------------------------- pure-JAX reference -------------------------------
def reference_forward(params, int_array, class_array, text_ids):
    del class_array
    prec = lax.Precision.HIGHEST
    H = LSTM_HIDDEN

    def lin(x, w, b, sig=False):
        y = jnp.dot(x, w, precision=prec) + b
        return jax.nn.sigmoid(y) if sig else y

    def cell(x_t, h, c, wih, whh, b):
        g = jnp.dot(x_t, wih, precision=prec) + jnp.dot(h, whh, precision=prec) + b
        i = jax.nn.sigmoid(g[:, :H])
        f = jax.nn.sigmoid(g[:, H:2 * H])
        gg = jnp.tanh(g[:, 2 * H:3 * H])
        o = jax.nn.sigmoid(g[:, 3 * H:])
        c = f * c + i * gg
        return o * jnp.tanh(c), c

    emb = jnp.take(params["embedding"], text_ids, axis=0)      # (B, C, S, E)
    x_int = lin(int_array, params["int_w0"], params["int_b0"])
    x_int = lin(x_int, params["int_w1"], params["int_b1"])

    texts = []
    for ci in range(TEXT_DIM):
        xi = emb[:, ci]
        B = xi.shape[0]
        h1 = c1 = h2 = c2 = jnp.zeros((B, H), jnp.float32)
        for t in range(SEQ):
            h1, c1 = cell(xi[:, t], h1, c1,
                          params["lstm_wih1"], params["lstm_whh1"], params["lstm_b1"])
            h2, c2 = cell(h1, h2, c2,
                          params["lstm_wih2"], params["lstm_whh2"], params["lstm_b2"])
        y = lin(h2, params["text_w0"], params["text_b0"])
        y = lin(y, params["text_w1"], params["text_b1"])
        texts.append(y)
    x_texts = jnp.concatenate(texts, axis=-1)
    x_cat = jnp.concatenate([x_int, x_texts], axis=-1)
    y = lin(x_cat, params["cat_w0"], params["cat_b0"])
    y = lin(y, params["cat_w1"], params["cat_b1"])
    y = lin(y, params["cat_w2"], params["cat_b2"], sig=True)
    return y


# --------------------------------- main ---------------------------------------
if __name__ == "__main__":
    key = jax.random.PRNGKey(0)
    kp, k1, k2, k3 = jax.random.split(key, 4)
    params = init_params(kp)

    int_array = jax.random.normal(k1, (BATCH, INT_DIM), jnp.float32)
    class_array = jax.random.randint(k2, (BATCH,), 0, 5, jnp.int32)
    text_ids = jax.random.randint(k3, (BATCH, TEXT_DIM, SEQ), 0, VOCAB, jnp.int32)

    out = jax.jit(model_forward)(params, int_array, class_array, text_ids)
    out = jax.block_until_ready(out)

    ref = jax.block_until_ready(
        reference_forward(params, int_array, class_array, text_ids))

    assert out.shape == (BATCH, 1), out.shape
    assert bool(jnp.all(jnp.isfinite(out)))
    max_err = float(jnp.max(jnp.abs(out - ref)))
    assert max_err < 1e-3, f"max abs err vs reference = {max_err}"
    print("KERNEL_OK")
</pallas_src>

<mosaic_0001>
module attributes {stable_mosaic.version = 11 : i64} {
  func.func @_fused_forward_kernel(%arg0: memref<128x1xi32, #tpu.memory_space<vmem>>, %arg1: memref<8x4xf32, #tpu.memory_space<vmem>>, %arg2: memref<64x32xf32, #tpu.memory_space<vmem>>, %arg3: memref<4x128xf32, #tpu.memory_space<vmem>>, %arg4: memref<1x128xf32, #tpu.memory_space<vmem>>, %arg5: memref<128x256xf32, #tpu.memory_space<vmem>>, %arg6: memref<1x256xf32, #tpu.memory_space<vmem>>, %arg7: memref<32x512xf32, #tpu.memory_space<vmem>>, %arg8: memref<128x512xf32, #tpu.memory_space<vmem>>, %arg9: memref<1x512xf32, #tpu.memory_space<vmem>>, %arg10: memref<128x512xf32, #tpu.memory_space<vmem>>, %arg11: memref<128x512xf32, #tpu.memory_space<vmem>>, %arg12: memref<1x512xf32, #tpu.memory_space<vmem>>, %arg13: memref<128x128xf32, #tpu.memory_space<vmem>>, %arg14: memref<1x128xf32, #tpu.memory_space<vmem>>, %arg15: memref<128x32xf32, #tpu.memory_space<vmem>>, %arg16: memref<1x32xf32, #tpu.memory_space<vmem>>, %arg17: memref<320x128xf32, #tpu.memory_space<vmem>>, %arg18: memref<1x128xf32, #tpu.memory_space<vmem>>, %arg19: memref<128x32xf32, #tpu.memory_space<vmem>>, %arg20: memref<1x32xf32, #tpu.memory_space<vmem>>, %arg21: memref<32x1xf32, #tpu.memory_space<vmem>>, %arg22: memref<1x1xf32, #tpu.memory_space<vmem>>, %arg23: memref<8x1xf32, #tpu.memory_space<vmem>>, %arg24: memref<128x512xf32, #tpu.memory_space<vmem>>) attributes {dimension_semantics = [], scalar_prefetch = 0 : i64, scratch_operands = 1 : i64, tpu.core_type = #tpu.core_type<tc>} {
    %c0 = arith.constant 0 : index
    %c0_0 = arith.constant 0 : index
    %0 = vector.load %arg0[%c0, %c0_0] : memref<128x1xi32, #tpu.memory_space<vmem>>, vector<128x1xi32>
    %1 = tpu.iota {dimensions = array<i32: 1>} : vector<128x64xi32>
    %2 = vector.broadcast %0 : vector<128x1xi32> to vector<128x64xi32>
    %3 = arith.cmpi eq, %2, %1 : vector<128x64xi32>
    %4 = arith.extui %3 : vector<128x64xi1> to vector<128x64xi32>
    %5 = arith.sitofp %4 : vector<128x64xi32> to vector<128x64xf32>
    %c0_1 = arith.constant 0 : index
    %c0_2 = arith.constant 0 : index
    %6 = vector.load %arg2[%c0_1, %c0_2] : memref<64x32xf32, #tpu.memory_space<vmem>>, vector<64x32xf32>
    %cst = arith.constant dense<0.000000e+00> : vector<128x32xf32>
    %7 = tpu.matmul %5, %6, %cst {dimension_numbers = #tpu.dot_dimension_numbers<[1], [0], [0], [1], [0, 0, 1, 1], [], []>} : vector<128x64xf32>, vector<64x32xf32>, vector<128x32xf32> -> vector<128x32xf32>
    %c0_3 = arith.constant 0 : index
    %c0_4 = arith.constant 0 : index
    %8 = vector.load %arg7[%c0_3, %c0_4] : memref<32x512xf32, #tpu.memory_space<vmem>>, vector<32x512xf32>
    %cst_5 = arith.constant dense<0.000000e+00> : vector<128x512xf32>
    %9 = tpu.matmul %7, %8, %cst_5 {dimension_numbers = #tpu.dot_dimension_numbers<[1], [0], [0], [1], [0, 0, 1, 1], [], []>} : vector<128x32xf32>, vector<32x512xf32>, vector<128x512xf32> -> vector<128x512xf32>
    %c0_6 = arith.constant 0 : index
    %c0_7 = arith.constant 0 : index
    %10 = vector.load %arg9[%c0_6, %c0_7] : memref<1x512xf32, #tpu.memory_space<vmem>>, vector<1x512xf32>
    %11 = vector.broadcast %10 : vector<1x512xf32> to vector<128x512xf32>
    %12 = arith.addf %9, %11 : vector<128x512xf32>
    %c0_8 = arith.constant 0 : index
    %c0_9 = arith.constant 0 : index
    %13 = vector.load %arg24[%c0_8, %c0_9] : memref<128x512xf32, #tpu.memory_space<vmem>>, vector<128x512xf32>
    tpu.vector_store %arg24[%c0_8, %c0_9], %12 {strides = array<i32>} : memref<128x512xf32, #tpu.memory_space<vmem>>, vector<128x512xf32>,
    %c0_10 = arith.constant 0 : index
    %c0_11 = arith.constant 0 : index
    %14 = vector.load %arg1[%c0_10, %c0_11] : memref<8x4xf32, #tpu.memory_space<vmem>>, vector<8x4xf32>
    %c0_12 = arith.constant 0 : index
    %c0_13 = arith.constant 0 : index
    %15 = vector.load %arg3[%c0_12, %c0_13] : memref<4x128xf32, #tpu.memory_space<vmem>>, vector<4x128xf32>
    %cst_14 = arith.constant dense<0.000000e+00> : vector<8x128xf32>
    %16 = tpu.matmul %14, %15, %cst_14 {dimension_numbers = #tpu.dot_dimension_numbers<[1], [0], [0], [1], [0, 0, 1, 1], [], []>} : vector<8x4xf32>, vector<4x128xf32>, vector<8x128xf32> -> vector<8x128xf32>
    %c0_15 = arith.constant 0 : index
    %c0_16 = arith.constant 0 : index
    %17 = vector.load %arg4[%c0_15, %c0_16] : memref<1x128xf32, #tpu.memory_space<vmem>>, vector<1x128xf32>
    %18 = vector.broadcast %17 : vector<1x128xf32> to vector<8x128xf32>
    %19 = arith.addf %16, %18 : vector<8x128xf32>
    %c0_17 = arith.constant 0 : index
    %c0_18 = arith.constant 0 : index
    %20 = vector.load %arg5[%c0_17, %c0_18] : memref<128x256xf32, #tpu.memory_space<vmem>>, vector<128x256xf32>
    %cst_19 = arith.constant dense<0.000000e+00> : vector<8x256xf32>
    %21 = tpu.matmul %19, %20, %cst_19 {dimension_numbers = #tpu.dot_dimension_numbers<[1], [0], [0], [1], [0, 0, 1, 1], [], []>} : vector<8x128xf32>, vector<128x256xf32>, vector<8x256xf32> -> vector<8x256xf32>
    %c0_20 = arith.constant 0 : index
    %c0_21 = arith.constant 0 : index
    %22 = vector.load %arg6[%c0_20, %c0_21] : memref<1x256xf32, #tpu.memory_space<vmem>>, vector<1x256xf32>
    %23 = vector.broadcast %22 : vector<1x256xf32> to vector<8x256xf32>
    %24 = arith.addf %21, %23 : vector<8x256xf32>
    %c0_22 = arith.constant 0 : index
    %c0_23 = arith.constant 0 : index
    %25 = vector.load %arg8[%c0_22, %c0_23] : memref<128x512xf32, #tpu.memory_space<vmem>>, vector<128x512xf32>
    %c0_24 = arith.constant 0 : index
    %c0_25 = arith.constant 0 : index
    %26 = vector.load %arg10[%c0_24, %c0_25] : memref<128x512xf32, #tpu.memory_space<vmem>>, vector<128x512xf32>
    %c0_26 = arith.constant 0 : index
    %c0_27 = arith.constant 0 : index
    %27 = vector.load %arg11[%c0_26, %c0_27] : memref<128x512xf32, #tpu.memory_space<vmem>>, vector<128x512xf32>
    %c0_28 = arith.constant 0 : index
    %c0_29 = arith.constant 0 : index
    %28 = vector.load %arg12[%c0_28, %c0_29] : memref<1x512xf32, #tpu.memory_space<vmem>>, vector<1x512xf32>
    %cst_30 = arith.constant 0.000000e+00 : f32
    %29 = vector.broadcast %cst_30 : f32 to vector<16x128xf32>
    %c0_i32 = arith.constant 0 : i32
    %c16_i32 = arith.constant 16 : i32
    %30 = arith.muli %c0_i32, %c16_i32 : i32
    %31 = arith.index_cast %30 : i32 to index
    %c0_31 = arith.constant 0 : index
    %32 = vector.load %arg24[%31, %c0_31] : memref<128x512xf32, #tpu.memory_space<vmem>>, vector<16x512xf32>
    %cst_32 = arith.constant dense<0.000000e+00> : vector<16x512xf32>
    %33 = tpu.matmul %29, %25, %cst_32 {dimension_numbers = #tpu.dot_dimension_numbers<[1], [0], [0], [1], [0, 0, 1, 1], [], []>} : vector<16x128xf32>, vector<128x512xf32>, vector<16x512xf32> -> vector<16x512xf32>
    %34 = arith.addf %32, %33 : vector<16x512xf32>
    %35 = vector.extract_strided_slice %34 {offsets = [0, 0], sizes = [16, 128], strides = [1, 1]} : vector<16x512xf32> to vector<16x128xf32>
    %36 = arith.negf %35 : vector<16x128xf32>
    %37 = math.exp %36 : vector<16x128xf32>
    %cst_33 = arith.constant 1.000000e+00 : f32
    %38 = vector.broadcast %cst_33 : f32 to vector<16x128xf32>
    %39 = arith.addf %38, %37 : vector<16x128xf32>
    %40 = arith.divf %38, %39 : vector<16x128xf32>
    %41 = vector.extract_strided_slice %34 {offsets = [0, 128], sizes = [16, 128], strides = [1, 1]} : vector<16x512xf32> to vector<16x128xf32>
    %42 = arith.negf %41 : vector<16x128xf32>
    %43 = math.exp %42 : vector<16x128xf32>
    %cst_34 = arith.constant 1.000000e+00 : f32
    %44 = vector.broadcast %cst_34 : f32 to vector<16x128xf32>
    %45 = arith.addf %44, %43 : vector<16x128xf32>
    %46 = arith.divf %44, %45 : vector<16x128xf32>
    %47 = vector.extract_strided_slice %34 {offsets = [0, 256], sizes = [16, 128], strides = [1, 1]} : vector<16x512xf32> to vector<16x128xf32>
    %48 = math.tanh %47 : vector<16x128xf32>
    %49 = vector.extract_strided_slice %34 {offsets = [0, 384], sizes = [16, 128], strides = [1, 1]} : vector<16x512xf32> to vector<16x128xf32>
    %50 = arith.negf %49 : vector<16x128xf32>
    %51 = math.exp %50 : vector<16x128xf32>
    %cst_35 = arith.constant 1.000000e+00 : f32
    %52 = vector.broadcast %cst_35 : f32 to vector<16x128xf32>
    %53 = arith.addf %52, %51 : vector<16x128xf32>
    %54 = arith.divf %52, %53 : vector<16x128xf32>
    %55 = arith.mulf %46, %29 : vector<16x128xf32>
    %56 = arith.mulf %40, %48 : vector<16x128xf32>
    %57 = arith.addf %55, %56 : vector<16x128xf32>
    %58 = math.tanh %57 : vector<16x128xf32>
    %59 = arith.mulf %54, %58 : vector<16x128xf32>
    %cst_36 = arith.constant dense<0.000000e+00> : vector<16x512xf32>
    %60 = tpu.matmul %59, %26, %cst_36 {dimension_numbers = #tpu.dot_dimension_numbers<[1], [0], [0], [1], [0, 0, 1, 1], [], []>} : vector<16x128xf32>, vector<128x512xf32>, vector<16x512xf32> -> vector<16x512xf32>
    %cst_37 = arith.constant dense<0.000000e+00> : vector<16x512xf32>
    %61 = tpu.matmul %29, %27, %cst_37 {dimension_numbers = #tpu.dot_dimension_numbers<[1], [0], [0], [1], [0, 0, 1, 1], [], []>} : vector<16x128xf32>, vector<128x512xf32>, vector<16x512xf32> -> vector<16x512xf32>
    %62 = arith.addf %60, %61 : vector<16x512xf32>
    %63 = vector.broadcast %28 : vector<1x512xf32> to vector<16x512xf32>
    %64 = arith.addf %62, %63 : vector<16x512xf32>
    %65 = vector.extract_strided_slice %64 {offsets = [0, 0], sizes = [16, 128], strides = [1, 1]} : vector<16x512xf32> to vector<16x128xf32>
    %66 = arith.negf %65 : vector<16x128xf32>
    %67 = math.exp %66 : vector<16x128xf32>
    %cst_38 = arith.constant 1.000000e+00 : f32
    %68 = vector.broadcast %cst_38 : f32 to vector<16x128xf32>
    %69 = arith.addf %68, %67 : vector<16x128xf32>
    %70 = arith.divf %68, %69 : vector<16x128xf32>
    %71 = vector.extract_strided_slice %64 {offsets = [0, 128], sizes = [16, 128], strides = [1, 1]} : vector<16x512xf32> to vector<16x128xf32>
    %72 = arith.negf %71 : vector<16x128xf32>
    %73 = math.exp %72 : vector<16x128xf32>
    %cst_39 = arith.constant 1.000000e+00 : f32
    %74 = vector.broadcast %cst_39 : f32 to vector<16x128xf32>
    %75 = arith.addf %74, %73 : vector<16x128xf32>
    %76 = arith.divf %74, %75 : vector<16x128xf32>
    %77 = vector.extract_strided_slice %64 {offsets = [0, 256], sizes = [16, 128], strides = [1, 1]} : vector<16x512xf32> to vector<16x128xf32>
    %78 = math.tanh %77 : vector<16x128xf32>
    %79 = vector.extract_strided_slice %64 {offsets = [0, 384], sizes = [16, 128], strides = [1, 1]} : vector<16x512xf32> to vector<16x128xf32>
    %80 = arith.negf %79 : vector<16x128xf32>
    %81 = math.exp %80 : vector<16x128xf32>
    %cst_40 = arith.constant 1.000000e+00 : f32
    %82 = vector.broadcast %cst_40 : f32 to vector<16x128xf32>
    %83 = arith.addf %82, %81 : vector<16x128xf32>
    %84 = arith.divf %82, %83 : vector<16x128xf32>
    %85 = arith.mulf %76, %29 : vector<16x128xf32>
    %86 = arith.mulf %70, %78 : vector<16x128xf32>
    %87 = arith.addf %85, %86 : vector<16x128xf32>
    %88 = math.tanh %87 : vector<16x128xf32>
    %89 = arith.mulf %84, %88 : vector<16x128xf32>
    %c1_i32 = arith.constant 1 : i32
    %c16_i32_41 = arith.constant 16 : i32
    %90 = arith.muli %c1_i32, %c16_i32_41 : i32
    %91 = arith.index_cast %90 : i32 to index
    %c0_42 = arith.constant 0 : index
    %92 = vector.load %arg24[%91, %c0_42] : memref<128x512xf32, #tpu.memory_space<vmem>>, vector<16x512xf32>
    %cst_43 = arith.constant dense<0.000000e+00> : vector<16x512xf32>
    %93 = tpu.matmul %59, %25, %cst_43 {dimension_numbers = #tpu.dot_dimension_numbers<[1], [0], [0], [1], [0, 0, 1, 1], [], []>} : vector<16x128xf32>, vector<128x512xf32>, vector<16x512xf32> -> vector<16x512xf32>
    %94 = arith.addf %92, %93 : vector<16x512xf32>
    %95 = vector.extract_strided_slice %94 {offsets = [0, 0], sizes = [16, 128], strides = [1, 1]} : vector<16x512xf32> to vector<16x128xf32>
    %96 = arith.negf %95 : vector<16x128xf32>
    %97 = math.exp %96 : vector<16x128xf32>
    %cst_44 = arith.constant 1.000000e+00 : f32
    %98 = vector.broadcast %cst_44 : f32 to vector<16x128xf32>
    %99 = arith.addf %98, %97 : vector<16x128xf32>
    %100 = arith.divf %98, %99 : vector<16x128xf32>
    %101 = vector.extract_strided_slice %94 {offsets = [0, 128], sizes = [16, 128], strides = [1, 1]} : vector<16x512xf32> to vector<16x128xf32>
    %102 = arith.negf %101 : vector<16x128xf32>
    %103 = math.exp %102 : vector<16x128xf32>
    %cst_45 = arith.constant 1.000000e+00 : f32
    %104 = vector.broadcast %cst_45 : f32 to vector<16x128xf32>
    %105 = arith.addf %104, %103 : vector<16x128xf32>
    %106 = arith.divf %104, %105 : vector<16x128xf32>
    %107 = vector.extract_strided_slice %94 {offsets = [0, 256], sizes = [16, 128], strides = [1, 1]} : vector<16x512xf32> to vector<16x128xf32>
    %108 = math.tanh %107 : vector<16x128xf32>
    %109 = vector.extract_strided_slice %94 {offsets = [0, 384], sizes = [16, 128], strides = [1, 1]} : vector<16x512xf32> to vector<16x128xf32>
    %110 = arith.negf %109 : vector<16x128xf32>
    %111 = math.exp %110 : vector<16x128xf32>
    %cst_46 = arith.constant 1.000000e+00 : f32
    %112 = vector.broadcast %cst_46 : f32 to vector<16x128xf32>
    %113 = arith.addf %112, %111 : vector<16x128xf32>
    %114 = arith.divf %112, %113 : vector<16x128xf32>
    %115 = arith.mulf %106, %57 : vector<16x128xf32>
    %116 = arith.mulf %100, %108 : vector<16x128xf32>
    %117 = arith.addf %115, %116 : vector<16x128xf32>
    %118 = math.tanh %117 : vector<16x128xf32>
    %119 = arith.mulf %114, %118 : vector<16x128xf32>
    %cst_47 = arith.constant dense<0.000000e+00> : vector<16x512xf32>
    %120 = tpu.matmul %119, %26, %cst_47 {dimension_numbers = #tpu.dot_dimension_numbers<[1], [0], [0], [1], [0, 0, 1, 1], [], []>} : vector<16x128xf32>, vector<128x512xf32>, vector<16x512xf32> -> vector<16x512xf32>
    %cst_48 = arith.constant dense<0.000000e+00> : vector<16x512xf32>
    %121 = tpu.matmul %89, %27, %cst_48 {dimension_numbers = #tpu.dot_dimension_numbers<[1], [0], [0], [1], [0, 0, 1, 1], [], []>} : vector<16x128xf32>, vector<128x512xf32>, vector<16x512xf32> -> vector<16x512xf32>
    %122 = arith.addf %120, %121 : vector<16x512xf32>
    %123 = vector.broadcast %28 : vector<1x512xf32> to vector<16x512xf32>
    %124 = arith.addf %122, %123 : vector<16x512xf32>
    %125 = vector.extract_strided_slice %124 {offsets = [0, 0], sizes = [16, 128], strides = [1, 1]} : vector<16x512xf32> to vector<16x128xf32>
    %126 = arith.negf %125 : vector<16x128xf32>
    %127 = math.exp %126 : vector<16x128xf32>
    %cst_49 = arith.constant 1.000000e+00 : f32
    %128 = vector.broadcast %cst_49 : f32 to vector<16x128xf32>
    %129 = arith.addf %128, %127 : vector<16x128xf32>
    %130 = arith.divf %128, %129 : vector<16x128xf32>
    %131 = vector.extract_strided_slice %124 {offsets = [0, 128], sizes = [16, 128], strides = [1, 1]} : vector<16x512xf32> to vector<16x128xf32>
    %132 = arith.negf %131 : vector<16x128xf32>
    %133 = math.exp %132 : vector<16x128xf32>
    %cst_50 = arith.constant 1.000000e+00 : f32
    %134 = vector.broadcast %cst_50 : f32 to vector<16x128xf32>
    %135 = arith.addf %134, %133 : vector<16x128xf32>
    %136 = arith.divf %134, %135 : vector<16x128xf32>
    %137 = vector.extract_strided_slice %124 {offsets = [0, 256], sizes = [16, 128], strides = [1, 1]} : vector<16x512xf32> to vector<16x128xf32>
    %138 = math.tanh %137 : vector<16x128xf32>
    %139 = vector.extract_strided_slice %124 {offsets = [0, 384], sizes = [16, 128], strides = [1, 1]} : vector<16x512xf32> to vector<16x128xf32>
    %140 = arith.negf %139 : vector<16x128xf32>
    %141 = math.exp %140 : vector<16x128xf32>
    %cst_51 = arith.constant 1.000000e+00 : f32
    %142 = vector.broadcast %cst_51 : f32 to vector<16x128xf32>
    %143 = arith.addf %142, %141 : vector<16x128xf32>
    %144 = arith.divf %142, %143 : vector<16x128xf32>
    %145 = arith.mulf %136, %87 : vector<16x128xf32>
    %146 = arith.mulf %130, %138 : vector<16x128xf32>
    %147 = arith.addf %145, %146 : vector<16x128xf32>
    %148 = math.tanh %147 : vector<16x128xf32>
    %149 = arith.mulf %144, %148 : vector<16x128xf32>
    %c2_i32 = arith.constant 2 : i32
    %c16_i32_52 = arith.constant 16 : i32
    %150 = arith.muli %c2_i32, %c16_i32_52 : i32
    %151 = arith.index_cast %150 : i32 to index
    %c0_53 = arith.constant 0 : index
    %152 = vector.load %arg24[%151, %c0_53] : memref<128x512xf32, #tpu.memory_space<vmem>>, vector<16x512xf32>
    %cst_54 = arith.constant dense<0.000000e+00> : vector<16x512xf32>
    %153 = tpu.matmul %119, %25, %cst_54 {dimension_numbers = #tpu.dot_dimension_numbers<[1], [0], [0], [1], [0, 0, 1, 1], [], []>} : vector<16x128xf32>, vector<128x512xf32>, vector<16x512xf32> -> vector<16x512xf32>
    %154 = arith.addf %152, %153 : vector<16x512xf32>
    %155 = vector.extract_strided_slice %154 {offsets = [0, 0], sizes = [16, 128], strides = [1, 1]} : vector<16x512xf32> to vector<16x128xf32>
    %156 = arith.negf %155 : vector<16x128xf32>
    %157 = math.exp %156 : vector<16x128xf32>
    %cst_55 = arith.constant 1.000000e+00 : f32
    %158 = vector.broadcast %cst_55 : f32 to vector<16x128xf32>
    %159 = arith.addf %158, %157 : vector<16x128xf32>
    %160 = arith.divf %158, %159 : vector<16x128xf32>
    %161 = vector.extract_strided_slice %154 {offsets = [0, 128], sizes = [16, 128], strides = [1, 1]} : vector<16x512xf32> to vector<16x128xf32>
    %162 = arith.negf %161 : vector<16x128xf32>
    %163 = math.exp %162 : vector<16x128xf32>
    %cst_56 = arith.constant 1.000000e+00 : f32
    %164 = vector.broadcast %cst_56 : f32 to vector<16x128xf32>
    %165 = arith.addf %164, %163 : vector<16x128xf32>
    %166 = arith.divf %164, %165 : vector<16x128xf32>
    %167 = vector.extract_strided_slice %154 {offsets = [0, 256], sizes = [16, 128], strides = [1, 1]} : vector<16x512xf32> to vector<16x128xf32>
    %168 = math.tanh %167 : vector<16x128xf32>
    %169 = vector.extract_strided_slice %154 {offsets = [0, 384], sizes = [16, 128], strides = [1, 1]} : vector<16x512xf32> to vector<16x128xf32>
    %170 = arith.negf %169 : vector<16x128xf32>
    %171 = math.exp %170 : vector<16x128xf32>
    %cst_57 = arith.constant 1.000000e+00 : f32
    %172 = vector.broadcast %cst_57 : f32 to vector<16x128xf32>
    %173 = arith.addf %172, %171 : vector<16x128xf32>
    %174 = arith.divf %172, %173 : vector<16x128xf32>
    %175 = arith.mulf %166, %117 : vector<16x128xf32>
    %176 = arith.mulf %160, %168 : vector<16x128xf32>
    %177 = arith.addf %175, %176 : vector<16x128xf32>
    %178 = math.tanh %177 : vector<16x128xf32>
    %179 = arith.mulf %174, %178 : vector<16x128xf32>
    %cst_58 = arith.constant dense<0.000000e+00> : vector<16x512xf32>
    %180 = tpu.matmul %179, %26, %cst_58 {dimension_numbers = #tpu.dot_dimension_numbers<[1], [0], [0], [1], [0, 0, 1, 1], [], []>} : vector<16x128xf32>, vector<128x512xf32>, vector<16x512xf32> -> vector<16x512xf32>
    %cst_59 = arith.constant dense<0.000000e+00> : vector<16x512xf32>
    %181 = tpu.matmul %149, %27, %cst_59 {dimension_numbers = #tpu.dot_dimension_numbers<[1], [0], [0], [1], [0, 0, 1, 1], [], []>} : vector<16x128xf32>, vector<128x512xf32>, vector<16x512xf32> -> vector<16x512xf32>
    %182 = arith.addf %180, %181 : vector<16x512xf32>
    %183 = vector.broadcast %28 : vector<1x512xf32> to vector<16x512xf32>
    %184 = arith.addf %182, %183 : vector<16x512xf32>
    %185 = vector.extract_strided_slice %184 {offsets = [0, 0], sizes = [16, 128], strides = [1, 1]} : vector<16x512xf32> to vector<16x128xf32>
    %186 = arith.negf %185 : vector<16x128xf32>
    %187 = math.exp %186 : vector<16x128xf32>
    %cst_60 = arith.constant 1.000000e+00 : f32
    %188 = vector.broadcast %cst_60 : f32 to vector<16x128xf32>
    %189 = arith.addf %188, %187 : vector<16x128xf32>
    %190 = arith.divf %188, %189 : vector<16x128xf32>
    %191 = vector.extract_strided_slice %184 {offsets = [0, 128], sizes = [16, 128], strides = [1, 1]} : vector<16x512xf32> to vector<16x128xf32>
    %192 = arith.negf %191 : vector<16x128xf32>
    %193 = math.exp %192 : vector<16x128xf32>
    %cst_61 = arith.constant 1.000000e+00 : f32
    %194 = vector.broadcast %cst_61 : f32 to vector<16x128xf32>
    %195 = arith.addf %194, %193 : vector<16x128xf32>
    %196 = arith.divf %194, %195 : vector<16x128xf32>
    %197 = vector.extract_strided_slice %184 {offsets = [0, 256], sizes = [16, 128], strides = [1, 1]} : vector<16x512xf32> to vector<16x128xf32>
    %198 = math.tanh %197 : vector<16x128xf32>
    %199 = vector.extract_strided_slice %184 {offsets = [0, 384], sizes = [16, 128], strides = [1, 1]} : vector<16x512xf32> to vector<16x128xf32>
    %200 = arith.negf %199 : vector<16x128xf32>
    %201 = math.exp %200 : vector<16x128xf32>
    %cst_62 = arith.constant 1.000000e+00 : f32
    %202 = vector.broadcast %cst_62 : f32 to vector<16x128xf32>
    %203 = arith.addf %202, %201 : vector<16x128xf32>
    %204 = arith.divf %202, %203 : vector<16x128xf32>
    %205 = arith.mulf %196, %147 : vector<16x128xf32>
    %206 = arith.mulf %190, %198 : vector<16x128xf32>
    %207 = arith.addf %205, %206 : vector<16x128xf32>
    %208 = math.tanh %207 : vector<16x128xf32>
    %209 = arith.mulf %204, %208 : vector<16x128xf32>
    %c3_i32 = arith.constant 3 : i32
    %c16_i32_63 = arith.constant 16 : i32
    %210 = arith.muli %c3_i32, %c16_i32_63 : i32
    %211 = arith.index_cast %210 : i32 to index
    %c0_64 = arith.constant 0 : index
    %212 = vector.load %arg24[%211, %c0_64] : memref<128x512xf32, #tpu.memory_space<vmem>>, vector<16x512xf32>
    %cst_65 = arith.constant dense<0.000000e+00> : vector<16x512xf32>
    %213 = tpu.matmul %179, %25, %cst_65 {dimension_numbers = #tpu.dot_dimension_numbers<[1], [0], [0], [1], [0, 0, 1, 1], [], []>} : vector<16x128xf32>, vector<128x512xf32>, vector<16x512xf32> -> vector<16x512xf32>
    %214 = arith.addf %212, %213 : vector<16x512xf32>
    %215 = vector.extract_strided_slice %214 {offsets = [0, 0], sizes = [16, 128], strides = [1, 1]} : vector<16x512xf32> to vector<16x128xf32>
    %216 = arith.negf %215 : vector<16x128xf32>
    %217 = math.exp %216 : vector<16x128xf32>
    %cst_66 = arith.constant 1.000000e+00 : f32
    %218 = vector.broadcast %cst_66 : f32 to vector<16x128xf32>
    %219 = arith.addf %218, %217 : vector<16x128xf32>
    %220 = arith.divf %218, %219 : vector<16x128xf32>
    %221 = vector.extract_strided_slice %214 {offsets = [0, 128], sizes = [16, 128], strides = [1, 1]} : vector<16x512xf32> to vector<16x128xf32>
    %222 = arith.negf %221 : vector<16x128xf32>
    %223 = math.exp %222 : vector<16x128xf32>
    %cst_67 = arith.constant 1.000000e+00 : f32
    %224 = vector.broadcast %cst_67 : f32 to vector<16x128xf32>
    %225 = arith.addf %224, %223 : vector<16x128xf32>
    %226 = arith.divf %224, %225 : vector<16x128xf32>
    %227 = vector.extract_strided_slice %214 {offsets = [0, 256], sizes = [16, 128], strides = [1, 1]} : vector<16x512xf32> to vector<16x128xf32>
    %228 = math.tanh %227 : vector<16x128xf32>
    %229 = vector.extract_strided_slice %214 {offsets = [0, 384], sizes = [16, 128], strides = [1, 1]} : vector<16x512xf32> to vector<16x128xf32>
    %230 = arith.negf %229 : vector<16x128xf32>
    %231 = math.exp %230 : vector<16x128xf32>
    %cst_68 = arith.constant 1.000000e+00 : f32
    %232 = vector.broadcast %cst_68 : f32 to vector<16x128xf32>
    %233 = arith.addf %232, %231 : vector<16x128xf32>
    %234 = arith.divf %232, %233 : vector<16x128xf32>
    %235 = arith.mulf %226, %177 : vector<16x128xf32>
    %236 = arith.mulf %220, %228 : vector<16x128xf32>
    %237 = arith.addf %235, %236 : vector<16x128xf32>
    %238 = math.tanh %237 : vector<16x128xf32>
    %239 = arith.mulf %234, %238 : vector<16x128xf32>
    %cst_69 = arith.constant dense<0.000000e+00> : vector<16x512xf32>
    %240 = tpu.matmul %239, %26, %cst_69 {dimension_numbers = #tpu.dot_dimension_numbers<[1], [0], [0], [1], [0, 0, 1, 1], [], []>} : vector<16x128xf32>, vector<128x512xf32>, vector<16x512xf32> -> vector<16x512xf32>
    %cst_70 = arith.constant dense<0.000000e+00> : vector<16x512xf32>
    %241 = tpu.matmul %209, %27, %cst_70 {dimension_numbers = #tpu.dot_dimension_numbers<[1], [0], [0], [1], [0, 0, 1, 1], [], []>} : vector<16x128xf32>, vector<128x512xf32>, vector<16x512xf32> -> vector<16x512xf32>
    %242 = arith.addf %240, %241 : vector<16x512xf32>
    %243 = vector.broadcast %28 : vector<1x512xf32> to vector<16x512xf32>
    %244 = arith.addf %242, %243 : vector<16x512xf32>
    %245 = vector.extract_strided_slice %244 {offsets = [0, 0], sizes = [16, 128], strides = [1, 1]} : vector<16x512xf32> to vector<16x128xf32>
    %246 = arith.negf %245 : vector<16x128xf32>
    %247 = math.exp %246 : vector<16x128xf32>
    %cst_71 = arith.constant 1.000000e+00 : f32
    %248 = vector.broadcast %cst_71 : f32 to vector<16x128xf32>
    %249 = arith.addf %248, %247 : vector<16x128xf32>
    %250 = arith.divf %248, %249 : vector<16x128xf32>
    %251 = vector.extract_strided_slice %244 {offsets = [0, 128], sizes = [16, 128], strides = [1, 1]} : vector<16x512xf32> to vector<16x128xf32>
    %252 = arith.negf %251 : vector<16x128xf32>
    %253 = math.exp %252 : vector<16x128xf32>
    %cst_72 = arith.constant 1.000000e+00 : f32
    %254 = vector.broadcast %cst_72 : f32 to vector<16x128xf32>
    %255 = arith.addf %254, %253 : vector<16x128xf32>
    %256 = arith.divf %254, %255 : vector<16x128xf32>
    %257 = vector.extract_strided_slice %244 {offsets = [0, 256], sizes = [16, 128], strides = [1, 1]} : vector<16x512xf32> to vector<16x128xf32>
    %258 = math.tanh %257 : vector<16x128xf32>
    %259 = vector.extract_strided_slice %244 {offsets = [0, 384], sizes = [16, 128], strides = [1, 1]} : vector<16x512xf32> to vector<16x128xf32>
    %260 = arith.negf %259 : vector<16x128xf32>
    %261 = math.exp %260 : vector<16x128xf32>
    %cst_73 = arith.constant 1.000000e+00 : f32
    %262 = vector.broadcast %cst_73 : f32 to vector<16x128xf32>
    %263 = arith.addf %262, %261 : vector<16x128xf32>
    %264 = arith.divf %262, %263 : vector<16x128xf32>
    %265 = arith.mulf %256, %207 : vector<16x128xf32>
    %266 = arith.mulf %250, %258 : vector<16x128xf32>
    %267 = arith.addf %265, %266 : vector<16x128xf32>
    %268 = math.tanh %267 : vector<16x128xf32>
    %269 = arith.mulf %264, %268 : vector<16x128xf32>
    %c4_i32 = arith.constant 4 : i32
    %c16_i32_74 = arith.constant 16 : i32
    %270 = arith.muli %c4_i32, %c16_i32_74 : i32
    %271 = arith.index_cast %270 : i32 to index
    %c0_75 = arith.constant 0 : index
    %272 = vector.load %arg24[%271, %c0_75] : memref<128x512xf32, #tpu.memory_space<vmem>>, vector<16x512xf32>
    %cst_76 = arith.constant dense<0.000000e+00> : vector<16x512xf32>
    %273 = tpu.matmul %239, %25, %cst_76 {dimension_numbers = #tpu.dot_dimension_numbers<[1], [0], [0], [1], [0, 0, 1, 1], [], []>} : vector<16x128xf32>, vector<128x512xf32>, vector<16x512xf32> -> vector<16x512xf32>
    %274 = arith.addf %272, %273 : vector<16x512xf32>
    %275 = vector.extract_strided_slice %274 {offsets = [0, 0], sizes = [16, 128], strides = [1, 1]} : vector<16x512xf32> to vector<16x128xf32>
    %276 = arith.negf %275 : vector<16x128xf32>
    %277 = math.exp %276 : vector<16x128xf32>
    %cst_77 = arith.constant 1.000000e+00 : f32
    %278 = vector.broadcast %cst_77 : f32 to vector<16x128xf32>
    %279 = arith.addf %278, %277 : vector<16x128xf32>
    %280 = arith.divf %278, %279 : vector<16x128xf32>
    %281 = vector.extract_strided_slice %274 {offsets = [0, 128], sizes = [16, 128], strides = [1, 1]} : vector<16x512xf32> to vector<16x128xf32>
    %282 = arith.negf %281 : vector<16x128xf32>
    %283 = math.exp %282 : vector<16x128xf32>
    %cst_78 = arith.constant 1.000000e+00 : f32
    %284 = vector.broadcast %cst_78 : f32 to vector<16x128xf32>
    %285 = arith.addf %284, %283 : vector<16x128xf32>
    %286 = arith.divf %284, %285 : vector<16x128xf32>
    %287 = vector.extract_strided_slice %274 {offsets = [0, 256], sizes = [16, 128], strides = [1, 1]} : vector<16x512xf32> to vector<16x128xf32>
    %288 = math.tanh %287 : vector<16x128xf32>
    %289 = vector.extract_strided_slice %274 {offsets = [0, 384], sizes = [16, 128], strides = [1, 1]} : vector<16x512xf32> to vector<16x128xf32>
    %290 = arith.negf %289 : vector<16x128xf32>
    %291 = math.exp %290 : vector<16x128xf32>
    %cst_79 = arith.constant 1.000000e+00 : f32
    %292 = vector.broadcast %cst_79 : f32 to vector<16x128xf32>
    %293 = arith.addf %292, %291 : vector<16x128xf32>
    %294 = arith.divf %292, %293 : vector<16x128xf32>
    %295 = arith.mulf %286, %237 : vector<16x128xf32>
    %296 = arith.mulf %280, %288 : vector<16x128xf32>
    %297 = arith.addf %295, %296 : vector<16x128xf32>
    %298 = math.tanh %297 : vector<16x128xf32>
    %299 = arith.mulf %294, %298 : vector<16x128xf32>
    %cst_80 = arith.constant dense<0.000000e+00> : vector<16x512xf32>
    %300 = tpu.matmul %299, %26, %cst_80 {dimension_numbers = #tpu.dot_dimension_numbers<[1], [0], [0], [1], [0, 0, 1, 1], [], []>} : vector<16x128xf32>, vector<128x512xf32>, vector<16x512xf32> -> vector<16x512xf32>
    %cst_81 = arith.constant dense<0.000000e+00> : vector<16x512xf32>
    %301 = tpu.matmul %269, %27, %cst_81 {dimension_numbers = #tpu.dot_dimension_numbers<[1], [0], [0], [1], [0, 0, 1, 1], [], []>} : vector<16x128xf32>, vector<128x512xf32>, vector<16x512xf32> -> vector<16x512xf32>
    %302 = arith.addf %300, %301 : vector<16x512xf32>
    %303 = vector.broadcast %28 : vector<1x512xf32> to vector<16x512xf32>
    %304 = arith.addf %302, %303 : vector<16x512xf32>
    %305 = vector.extract_strided_slice %304 {offsets = [0, 0], sizes = [16, 128], strides = [1, 1]} : vector<16x512xf32> to vector<16x128xf32>
    %306 = arith.negf %305 : vector<16x128xf32>
    %307 = math.exp %306 : vector<16x128xf32>
    %cst_82 = arith.constant 1.000000e+00 : f32
    %308 = vector.broadcast %cst_82 : f32 to vector<16x128xf32>
    %309 = arith.addf %308, %307 : vector<16x128xf32>
    %310 = arith.divf %308, %309 : vector<16x128xf32>
    %311 = vector.extract_strided_slice %304 {offsets = [0, 128], sizes = [16, 128], strides = [1, 1]} : vector<16x512xf32> to vector<16x128xf32>
    %312 = arith.negf %311 : vector<16x128xf32>
    %313 = math.exp %312 : vector<16x128xf32>
    %cst_83 = arith.constant 1.000000e+00 : f32
    %314 = vector.broadcast %cst_83 : f32 to vector<16x128xf32>
    %315 = arith.addf %314, %313 : vector<16x128xf32>
    %316 = arith.divf %314, %315 : vector<16x128xf32>
    %317 = vector.extract_strided_slice %304 {offsets = [0, 256], sizes = [16, 128], strides = [1, 1]} : vector<16x512xf32> to vector<16x128xf32>
    %318 = math.tanh %317 : vector<16x128xf32>
    %319 = vector.extract_strided_slice %304 {offsets = [0, 384], sizes = [16, 128], strides = [1, 1]} : vector<16x512xf32> to vector<16x128xf32>
    %320 = arith.negf %319 : vector<16x128xf32>
    %321 = math.exp %320 : vector<16x128xf32>
    %cst_84 = arith.constant 1.000000e+00 : f32
    %322 = vector.broadcast %cst_84 : f32 to vector<16x128xf32>
    %323 = arith.addf %322, %321 : vector<16x128xf32>
    %324 = arith.divf %322, %323 : vector<16x128xf32>
    %325 = arith.mulf %316, %267 : vector<16x128xf32>
    %326 = arith.mulf %310, %318 : vector<16x128xf32>
    %327 = arith.addf %325, %326 : vector<16x128xf32>
    %328 = math.tanh %327 : vector<16x128xf32>
    %329 = arith.mulf %324, %328 : vector<16x128xf32>
    %c5_i32 = arith.constant 5 : i32
    %c16_i32_85 = arith.constant 16 : i32
    %330 = arith.muli %c5_i32, %c16_i32_85 : i32
    %331 = arith.index_cast %330 : i32 to index
    %c0_86 = arith.constant 0 : index
    %332 = vector.load %arg24[%331, %c0_86] : memref<128x512xf32, #tpu.memory_space<vmem>>, vector<16x512xf32>
    %cst_87 = arith.constant dense<0.000000e+00> : vector<16x512xf32>
    %333 = tpu.matmul %299, %25, %cst_87 {dimension_numbers = #tpu.dot_dimension_numbers<[1], [0], [0], [1], [0, 0, 1, 1], [], []>} : vector<16x128xf32>, vector<128x512xf32>, vector<16x512xf32> -> vector<16x512xf32>
    %334 = arith.addf %332, %333 : vector<16x512xf32>
    %335 = vector.extract_strided_slice %334 {offsets = [0, 0], sizes = [16, 128], strides = [1, 1]} : vector<16x512xf32> to vector<16x128xf32>
    %336 = arith.negf %335 : vector<16x128xf32>
    %337 = math.exp %336 : vector<16x128xf32>
    %cst_88 = arith.constant 1.000000e+00 : f32
    %338 = vector.broadcast %cst_88 : f32 to vector<16x128xf32>
    %339 = arith.addf %338, %337 : vector<16x128xf32>
    %340 = arith.divf %338, %339 : vector<16x128xf32>
    %341 = vector.extract_strided_slice %334 {offsets = [0, 128], sizes = [16, 128], strides = [1, 1]} : vector<16x512xf32> to vector<16x128xf32>
    %342 = arith.negf %341 : vector<16x128xf32>
    %343 = math.exp %342 : vector<16x128xf32>
    %cst_89 = arith.constant 1.000000e+00 : f32
    %344 = vector.broadcast %cst_89 : f32 to vector<16x128xf32>
    %345 = arith.addf %344, %343 : vector<16x128xf32>
    %346 = arith.divf %344, %345 : vector<16x128xf32>
    %347 = vector.extract_strided_slice %334 {offsets = [0, 256], sizes = [16, 128], strides = [1, 1]} : vector<16x512xf32> to vector<16x128xf32>
    %348 = math.tanh %347 : vector<16x128xf32>
    %349 = vector.extract_strided_slice %334 {offsets = [0, 384], sizes = [16, 128], strides = [1, 1]} : vector<16x512xf32> to vector<16x128xf32>
    %350 = arith.negf %349 : vector<16x128xf32>
    %351 = math.exp %350 : vector<16x128xf32>
    %cst_90 = arith.constant 1.000000e+00 : f32
    %352 = vector.broadcast %cst_90 : f32 to vector<16x128xf32>
    %353 = arith.addf %352, %351 : vector<16x128xf32>
    %354 = arith.divf %352, %353 : vector<16x128xf32>
    %355 = arith.mulf %346, %297 : vector<16x128xf32>
    %356 = arith.mulf %340, %348 : vector<16x128xf32>
    %357 = arith.addf %355, %356 : vector<16x128xf32>
    %358 = math.tanh %357 : vector<16x128xf32>
    %359 = arith.mulf %354, %358 : vector<16x128xf32>
    %cst_91 = arith.constant dense<0.000000e+00> : vector<16x512xf32>
    %360 = tpu.matmul %359, %26, %cst_91 {dimension_numbers = #tpu.dot_dimension_numbers<[1], [0], [0], [1], [0, 0, 1, 1], [], []>} : vector<16x128xf32>, vector<128x512xf32>, vector<16x512xf32> -> vector<16x512xf32>
    %cst_92 = arith.constant dense<0.000000e+00> : vector<16x512xf32>
    %361 = tpu.matmul %329, %27, %cst_92 {dimension_numbers = #tpu.dot_dimension_numbers<[1], [0], [0], [1], [0, 0, 1, 1], [], []>} : vector<16x128xf32>, vector<128x512xf32>, vector<16x512xf32> -> vector<16x512xf32>
    %362 = arith.addf %360, %361 : vector<16x512xf32>
    %363 = vector.broadcast %28 : vector<1x512xf32> to vector<16x512xf32>
    %364 = arith.addf %362, %363 : vector<16x512xf32>
    %365 = vector.extract_strided_slice %364 {offsets = [0, 0], sizes = [16, 128], strides = [1, 1]} : vector<16x512xf32> to vector<16x128xf32>
    %366 = arith.negf %365 : vector<16x128xf32>
    %367 = math.exp %366 : vector<16x128xf32>
    %cst_93 = arith.constant 1.000000e+00 : f32
    %368 = vector.broadcast %cst_93 : f32 to vector<16x128xf32>
    %369 = arith.addf %368, %367 : vector<16x128xf32>
    %370 = arith.divf %368, %369 : vector<16x128xf32>
    %371 = vector.extract_strided_slice %364 {offsets = [0, 128], sizes = [16, 128], strides = [1, 1]} : vector<16x512xf32> to vector<16x128xf32>
    %372 = arith.negf %371 : vector<16x128xf32>
    %373 = math.exp %372 : vector<16x128xf32>
    %cst_94 = arith.constant 1.000000e+00 : f32
    %374 = vector.broadcast %cst_94 : f32 to vector<16x128xf32>
    %375 = arith.addf %374, %373 : vector<16x128xf32>
    %376 = arith.divf %374, %375 : vector<16x128xf32>
    %377 = vector.extract_strided_slice %364 {offsets = [0, 256], sizes = [16, 128], strides = [1, 1]} : vector<16x512xf32> to vector<16x128xf32>
    %378 = math.tanh %377 : vector<16x128xf32>
    %379 = vector.extract_strided_slice %364 {offsets = [0, 384], sizes = [16, 128], strides = [1, 1]} : vector<16x512xf32> to vector<16x128xf32>
    %380 = arith.negf %379 : vector<16x128xf32>
    %381 = math.exp %380 : vector<16x128xf32>
    %cst_95 = arith.constant 1.000000e+00 : f32
    %382 = vector.broadcast %cst_95 : f32 to vector<16x128xf32>
    %383 = arith.addf %382, %381 : vector<16x128xf32>
    %384 = arith.divf %382, %383 : vector<16x128xf32>
    %385 = arith.mulf %376, %327 : vector<16x128xf32>
    %386 = arith.mulf %370, %378 : vector<16x128xf32>
    %387 = arith.addf %385, %386 : vector<16x128xf32>
    %388 = math.tanh %387 : vector<16x128xf32>
    %389 = arith.mulf %384, %388 : vector<16x128xf32>
    %c6_i32 = arith.constant 6 : i32
    %c16_i32_96 = arith.constant 16 : i32
    %390 = arith.muli %c6_i32, %c16_i32_96 : i32
    %391 = arith.index_cast %390 : i32 to index
    %c0_97 = arith.constant 0 : index
    %392 = vector.load %arg24[%391, %c0_97] : memref<128x512xf32, #tpu.memory_space<vmem>>, vector<16x512xf32>
    %cst_98 = arith.constant dense<0.000000e+00> : vector<16x512xf32>
    %393 = tpu.matmul %359, %25, %cst_98 {dimension_numbers = #tpu.dot_dimension_numbers<[1], [0], [0], [1], [0, 0, 1, 1], [], []>} : vector<16x128xf32>, vector<128x512xf32>, vector<16x512xf32> -> vector<16x512xf32>
    %394 = arith.addf %392, %393 : vector<16x512xf32>
    %395 = vector.extract_strided_slice %394 {offsets = [0, 0], sizes = [16, 128], strides = [1, 1]} : vector<16x512xf32> to vector<16x128xf32>
    %396 = arith.negf %395 : vector<16x128xf32>
    %397 = math.exp %396 : vector<16x128xf32>
    %cst_99 = arith.constant 1.000000e+00 : f32
    %398 = vector.broadcast %cst_99 : f32 to vector<16x128xf32>
    %399 = arith.addf %398, %397 : vector<16x128xf32>
    %400 = arith.divf %398, %399 : vector<16x128xf32>
    %401 = vector.extract_strided_slice %394 {offsets = [0, 128], sizes = [16, 128], strides = [1, 1]} : vector<16x512xf32> to vector<16x128xf32>
    %402 = arith.negf %401 : vector<16x128xf32>
    %403 = math.exp %402 : vector<16x128xf32>
    %cst_100 = arith.constant 1.000000e+00 : f32
    %404 = vector.broadcast %cst_100 : f32 to vector<16x128xf32>
    %405 = arith.addf %404, %403 : vector<16x128xf32>
    %406 = arith.divf %404, %405 : vector<16x128xf32>
    %407 = vector.extract_strided_slice %394 {offsets = [0, 256], sizes = [16, 128], strides = [1, 1]} : vector<16x512xf32> to vector<16x128xf32>
    %408 = math.tanh %407 : vector<16x128xf32>
    %409 = vector.extract_strided_slice %394 {offsets = [0, 384], sizes = [16, 128], strides = [1, 1]} : vector<16x512xf32> to vector<16x128xf32>
    %410 = arith.negf %409 : vector<16x128xf32>
    %411 = math.exp %410 : vector<16x128xf32>
    %cst_101 = arith.constant 1.000000e+00 : f32
    %412 = vector.broadcast %cst_101 : f32 to vector<16x128xf32>
    %413 = arith.addf %412, %411 : vector<16x128xf32>
    %414 = arith.divf %412, %413 : vector<16x128xf32>
    %415 = arith.mulf %406, %357 : vector<16x128xf32>
    %416 = arith.mulf %400, %408 : vector<16x128xf32>
    %417 = arith.addf %415, %416 : vector<16x128xf32>
    %418 = math.tanh %417 : vector<16x128xf32>
    %419 = arith.mulf %414, %418 : vector<16x128xf32>
    %cst_102 = arith.constant dense<0.000000e+00> : vector<16x512xf32>
    %420 = tpu.matmul %419, %26, %cst_102 {dimension_numbers = #tpu.dot_dimension_numbers<[1], [0], [0], [1], [0, 0, 1, 1], [], []>} : vector<16x128xf32>, vector<128x512xf32>, vector<16x512xf32> -> vector<16x512xf32>
    %cst_103 = arith.constant dense<0.000000e+00> : vector<16x512xf32>
    %421 = tpu.matmul %389, %27, %cst_103 {dimension_numbers = #tpu.dot_dimension_numbers<[1], [0], [0], [1], [0, 0, 1, 1], [], []>} : vector<16x128xf32>, vector<128x512xf32>, vector<16x512xf32> -> vector<16x512xf32>
    %422 = arith.addf %420, %421 : vector<16x512xf32>
    %423 = vector.broadcast %28 : vector<1x512xf32> to vector<16x512xf32>
    %424 = arith.addf %422, %423 : vector<16x512xf32>
    %425 = vector.extract_strided_slice %424 {offsets = [0, 0], sizes = [16, 128], strides = [1, 1]} : vector<16x512xf32> to vector<16x128xf32>
    %426 = arith.negf %425 : vector<16x128xf32>
    %427 = math.exp %426 : vector<16x128xf32>
    %cst_104 = arith.constant 1.000000e+00 : f32
    %428 = vector.broadcast %cst_104 : f32 to vector<16x128xf32>
    %429 = arith.addf %428, %427 : vector<16x128xf32>
    %430 = arith.divf %428, %429 : vector<16x128xf32>
    %431 = vector.extract_strided_slice %424 {offsets = [0, 128], sizes = [16, 128], strides = [1, 1]} : vector<16x512xf32> to vector<16x128xf32>
    %432 = arith.negf %431 : vector<16x128xf32>
    %433 = math.exp %432 : vector<16x128xf32>
    %cst_105 = arith.constant 1.000000e+00 : f32
    %434 = vector.broadcast %cst_105 : f32 to vector<16x128xf32>
    %435 = arith.addf %434, %433 : vector<16x128xf32>
    %436 = arith.divf %434, %435 : vector<16x128xf32>
    %437 = vector.extract_strided_slice %424 {offsets = [0, 256], sizes = [16, 128], strides = [1, 1]} : vector<16x512xf32> to vector<16x128xf32>
    %438 = math.tanh %437 : vector<16x128xf32>
    %439 = vector.extract_strided_slice %424 {offsets = [0, 384], sizes = [16, 128], strides = [1, 1]} : vector<16x512xf32> to vector<16x128xf32>
    %440 = arith.negf %439 : vector<16x128xf32>
    %441 = math.exp %440 : vector<16x128xf32>
    %cst_106 = arith.constant 1.000000e+00 : f32
    %442 = vector.broadcast %cst_106 : f32 to vector<16x128xf32>
    %443 = arith.addf %442, %441 : vector<16x128xf32>
    %444 = arith.divf %442, %443 : vector<16x128xf32>
    %445 = arith.mulf %436, %387 : vector<16x128xf32>
    %446 = arith.mulf %430, %438 : vector<16x128xf32>
    %447 = arith.addf %445, %446 : vector<16x128xf32>
    %448 = math.tanh %447 : vector<16x128xf32>
    %449 = arith.mulf %444, %448 : vector<16x128xf32>
    %c7_i32 = arith.constant 7 : i32
    %c16_i32_107 = arith.constant 16 : i32
    %450 = arith.muli %c7_i32, %c16_i32_107 : i32
    %451 = arith.index_cast %450 : i32 to index
    %c0_108 = arith.constant 0 : index
    %452 = vector.load %arg24[%451, %c0_108] : memref<128x512xf32, #tpu.memory_space<vmem>>, vector<16x512xf32>
    %cst_109 = arith.constant dense<0.000000e+00> : vector<16x512xf32>
    %453 = tpu.matmul %419, %25, %cst_109 {dimension_numbers = #tpu.dot_dimension_numbers<[1], [0], [0], [1], [0, 0, 1, 1], [], []>} : vector<16x128xf32>, vector<128x512xf32>, vector<16x512xf32> -> vector<16x512xf32>
    %454 = arith.addf %452, %453 : vector<16x512xf32>
    %455 = vector.extract_strided_slice %454 {offsets = [0, 0], sizes = [16, 128], strides = [1, 1]} : vector<16x512xf32> to vector<16x128xf32>
    %456 = arith.negf %455 : vector<16x128xf32>
    %457 = math.exp %456 : vector<16x128xf32>
    %cst_110 = arith.constant 1.000000e+00 : f32
    %458 = vector.broadcast %cst_110 : f32 to vector<16x128xf32>
    %459 = arith.addf %458, %457 : vector<16x128xf32>
    %460 = arith.divf %458, %459 : vector<16x128xf32>
    %461 = vector.extract_strided_slice %454 {offsets = [0, 128], sizes = [16, 128], strides = [1, 1]} : vector<16x512xf32> to vector<16x128xf32>
    %462 = arith.negf %461 : vector<16x128xf32>
    %463 = math.exp %462 : vector<16x128xf32>
    %cst_111 = arith.constant 1.000000e+00 : f32
    %464 = vector.broadcast %cst_111 : f32 to vector<16x128xf32>
    %465 = arith.addf %464, %463 : vector<16x128xf32>
    %466 = arith.divf %464, %465 : vector<16x128xf32>
    %467 = vector.extract_strided_slice %454 {offsets = [0, 256], sizes = [16, 128], strides = [1, 1]} : vector<16x512xf32> to vector<16x128xf32>
    %468 = math.tanh %467 : vector<16x128xf32>
    %469 = vector.extract_strided_slice %454 {offsets = [0, 384], sizes = [16, 128], strides = [1, 1]} : vector<16x512xf32> to vector<16x128xf32>
    %470 = arith.negf %469 : vector<16x128xf32>
    %471 = math.exp %470 : vector<16x128xf32>
    %cst_112 = arith.constant 1.000000e+00 : f32
    %472 = vector.broadcast %cst_112 : f32 to vector<16x128xf32>
    %473 = arith.addf %472, %471 : vector<16x128xf32>
    %474 = arith.divf %472, %473 : vector<16x128xf32>
    %475 = arith.mulf %466, %417 : vector<16x128xf32>
    %476 = arith.mulf %460, %468 : vector<16x128xf32>
    %477 = arith.addf %475, %476 : vector<16x128xf32>
    %478 = math.tanh %477 : vector<16x128xf32>
    %479 = arith.mulf %474, %478 : vector<16x128xf32>
    %cst_113 = arith.constant dense<0.000000e+00> : vector<16x512xf32>
    %480 = tpu.matmul %479, %26, %cst_113 {dimension_numbers = #tpu.dot_dimension_numbers<[1], [0], [0], [1], [0, 0, 1, 1], [], []>} : vector<16x128xf32>, vector<128x512xf32>, vector<16x512xf32> -> vector<16x512xf32>
    %cst_114 = arith.constant dense<0.000000e+00> : vector<16x512xf32>
    %481 = tpu.matmul %449, %27, %cst_114 {dimension_numbers = #tpu.dot_dimension_numbers<[1], [0], [0], [1], [0, 0, 1, 1], [], []>} : vector<16x128xf32>, vector<128x512xf32>, vector<16x512xf32> -> vector<16x512xf32>
    %482 = arith.addf %480, %481 : vector<16x512xf32>
    %483 = vector.broadcast %28 : vector<1x512xf32> to vector<16x512xf32>
    %484 = arith.addf %482, %483 : vector<16x512xf32>
    %485 = vector.extract_strided_slice %484 {offsets = [0, 0], sizes = [16, 128], strides = [1, 1]} : vector<16x512xf32> to vector<16x128xf32>
    %486 = arith.negf %485 : vector<16x128xf32>
    %487 = math.exp %486 : vector<16x128xf32>
    %cst_115 = arith.constant 1.000000e+00 : f32
    %488 = vector.broadcast %cst_115 : f32 to vector<16x128xf32>
    %489 = arith.addf %488, %487 : vector<16x128xf32>
    %490 = arith.divf %488, %489 : vector<16x128xf32>
    %491 = vector.extract_strided_slice %484 {offsets = [0, 128], sizes = [16, 128], strides = [1, 1]} : vector<16x512xf32> to vector<16x128xf32>
    %492 = arith.negf %491 : vector<16x128xf32>
    %493 = math.exp %492 : vector<16x128xf32>
    %cst_116 = arith.constant 1.000000e+00 : f32
    %494 = vector.broadcast %cst_116 : f32 to vector<16x128xf32>
    %495 = arith.addf %494, %493 : vector<16x128xf32>
    %496 = arith.divf %494, %495 : vector<16x128xf32>
    %497 = vector.extract_strided_slice %484 {offsets = [0, 256], sizes = [16, 128], strides = [1, 1]} : vector<16x512xf32> to vector<16x128xf32>
    %498 = math.tanh %497 : vector<16x128xf32>
    %499 = vector.extract_strided_slice %484 {offsets = [0, 384], sizes = [16, 128], strides = [1, 1]} : vector<16x512xf32> to vector<16x128xf32>
    %500 = arith.negf %499 : vector<16x128xf32>
    %501 = math.exp %500 : vector<16x128xf32>
    %cst_117 = arith.constant 1.000000e+00 : f32
    %502 = vector.broadcast %cst_117 : f32 to vector<16x128xf32>
    %503 = arith.addf %502, %501 : vector<16x128xf32>
    %504 = arith.divf %502, %503 : vector<16x128xf32>
    %505 = arith.mulf %496, %447 : vector<16x128xf32>
    %506 = arith.mulf %490, %498 : vector<16x128xf32>
    %507 = arith.addf %505, %506 : vector<16x128xf32>
    %508 = math.tanh %507 : vector<16x128xf32>
    %509 = arith.mulf %504, %508 : vector<16x128xf32>
    %c8_i32 = arith.constant 8 : i32
    %c0_118 = arith.constant 0 : index
    %c0_119 = arith.constant 0 : index
    %510 = vector.load %arg13[%c0_118, %c0_119] : memref<128x128xf32, #tpu.memory_space<vmem>>, vector<128x128xf32>
    %cst_120 = arith.constant dense<0.000000e+00> : vector<16x128xf32>
    %511 = tpu.matmul %509, %510, %cst_120 {dimension_numbers = #tpu.dot_dimension_numbers<[1], [0], [0], [1], [0, 0, 1, 1], [], []>} : vector<16x128xf32>, vector<128x128xf32>, vector<16x128xf32> -> vector<16x128xf32>
    %c0_121 = arith.constant 0 : index
    %c0_122 = arith.constant 0 : index
    %512 = vector.load %arg14[%c0_121, %c0_122] : memref<1x128xf32, #tpu.memory_space<vmem>>, vector<1x128xf32>
    %513 = vector.broadcast %512 : vector<1x128xf32> to vector<16x128xf32>
    %514 = arith.addf %511, %513 : vector<16x128xf32>
    %c0_123 = arith.constant 0 : index
    %c0_124 = arith.constant 0 : index
    %515 = vector.load %arg15[%c0_123, %c0_124] : memref<128x32xf32, #tpu.memory_space<vmem>>, vector<128x32xf32>
    %cst_125 = arith.constant dense<0.000000e+00> : vector<16x32xf32>
    %516 = tpu.matmul %514, %515, %cst_125 {dimension_numbers = #tpu.dot_dimension_numbers<[1], [0], [0], [1], [0, 0, 1, 1], [], []>} : vector<16x128xf32>, vector<128x32xf32>, vector<16x32xf32> -> vector<16x32xf32>
    %c0_126 = arith.constant 0 : index
    %c0_127 = arith.constant 0 : index
    %517 = vector.load %arg16[%c0_126, %c0_127] : memref<1x32xf32, #tpu.memory_space<vmem>>, vector<1x32xf32>
    %518 = vector.broadcast %517 : vector<1x32xf32> to vector<16x32xf32>
    %519 = arith.addf %516, %518 : vector<16x32xf32>
    %c0_128 = arith.constant 0 : index
    %c0_129 = arith.constant 0 : index
    %520 = vector.load %arg17[%c0_128, %c0_129] : memref<320x128xf32, #tpu.memory_space<vmem>>, vector<256x128xf32>
    %cst_130 = arith.constant dense<0.000000e+00> : vector<8x128xf32>
    %521 = tpu.matmul %24, %520, %cst_130 {dimension_numbers = #tpu.dot_dimension_numbers<[1], [0], [0], [1], [0, 0, 1, 1], [], []>} : vector<8x256xf32>, vector<256x128xf32>, vector<8x128xf32> -> vector<8x128xf32>
    %c0_131 = arith.constant 0 : index
    %c0_132 = arith.constant 0 : index
    %522 = vector.load %arg18[%c0_131, %c0_132] : memref<1x128xf32, #tpu.memory_space<vmem>>, vector<1x128xf32>
    %523 = vector.broadcast %522 : vector<1x128xf32> to vector<8x128xf32>
    %524 = arith.addf %521, %523 : vector<8x128xf32>
    %525 = vector.extract_strided_slice %519 {offsets = [0, 0], sizes = [8, 32], strides = [1, 1]} : vector<16x32xf32> to vector<8x32xf32>
    %c256 = arith.constant 256 : index
    %c0_133 = arith.constant 0 : index
    %526 = vector.load %arg17[%c256, %c0_133] : memref<320x128xf32, #tpu.memory_space<vmem>>, vector<32x128xf32>
    %cst_134 = arith.constant dense<0.000000e+00> : vector<8x128xf32>
    %527 = tpu.matmul %525, %526, %cst_134 {dimension_numbers = #tpu.dot_dimension_numbers<[1], [0], [0], [1], [0, 0, 1, 1], [], []>} : vector<8x32xf32>, vector<32x128xf32>, vector<8x128xf32> -> vector<8x128xf32>
    %528 = arith.addf %524, %527 : vector<8x128xf32>
    %529 = vector.extract_strided_slice %519 {offsets = [8, 0], sizes = [8, 32], strides = [1, 1]} : vector<16x32xf32> to vector<8x32xf32>
    %c288 = arith.constant 288 : index
    %c0_135 = arith.constant 0 : index
    %530 = vector.load %arg17[%c288, %c0_135] : memref<320x128xf32, #tpu.memory_space<vmem>>, vector<32x128xf32>
    %cst_136 = arith.constant dense<0.000000e+00> : vector<8x128xf32>
    %531 = tpu.matmul %529, %530, %cst_136 {dimension_numbers = #tpu.dot_dimension_numbers<[1], [0], [0], [1], [0, 0, 1, 1], [], []>} : vector<8x32xf32>, vector<32x128xf32>, vector<8x128xf32> -> vector<8x128xf32>
    %532 = arith.addf %528, %531 : vector<8x128xf32>
    %c0_137 = arith.constant 0 : index
    %c0_138 = arith.constant 0 : index
    %533 = vector.load %arg19[%c0_137, %c0_138] : memref<128x32xf32, #tpu.memory_space<vmem>>, vector<128x32xf32>
    %cst_139 = arith.constant dense<0.000000e+00> : vector<8x32xf32>
    %534 = tpu.matmul %532, %533, %cst_139 {dimension_numbers = #tpu.dot_dimension_numbers<[1], [0], [0], [1], [0, 0, 1, 1], [], []>} : vector<8x128xf32>, vector<128x32xf32>, vector<8x32xf32> -> vector<8x32xf32>
    %c0_140 = arith.constant 0 : index
    %c0_141 = arith.constant 0 : index
    %535 = vector.load %arg20[%c0_140, %c0_141] : memref<1x32xf32, #tpu.memory_space<vmem>>, vector<1x32xf32>
    %536 = vector.broadcast %535 : vector<1x32xf32> to vector<8x32xf32>
    %537 = arith.addf %534, %536 : vector<8x32xf32>
    %c0_142 = arith.constant 0 : index
    %c0_143 = arith.constant 0 : index
    %538 = vector.load %arg21[%c0_142, %c0_143] : memref<32x1xf32, #tpu.memory_space<vmem>>, vector<32x1xf32>
    %cst_144 = arith.constant dense<0.000000e+00> : vector<8x1xf32>
    %539 = tpu.matmul %537, %538, %cst_144 {dimension_numbers = #tpu.dot_dimension_numbers<[1], [0], [0], [1], [0, 0, 1, 1], [], []>} : vector<8x32xf32>, vector<32x1xf32>, vector<8x1xf32> -> vector<8x1xf32>
    %c0_145 = arith.constant 0 : index
    %c0_146 = arith.constant 0 : index
    %540 = vector.load %arg22[%c0_145, %c0_146] : memref<1x1xf32, #tpu.memory_space<vmem>>, vector<1x1xf32>
    %541 = vector.broadcast %540 : vector<1x1xf32> to vector<8x1xf32>
    %542 = arith.addf %539, %541 : vector<8x1xf32>
    %543 = arith.negf %542 : vector<8x1xf32>
    %544 = math.exp %543 : vector<8x1xf32>
    %cst_147 = arith.constant 1.000000e+00 : f32
    %545 = vector.broadcast %cst_147 : f32 to vector<8x1xf32>
    %546 = arith.addf %545, %544 : vector<8x1xf32>
    %547 = arith.divf %545, %546 : vector<8x1xf32>
    %c0_148 = arith.constant 0 : index
    %c0_149 = arith.constant 0 : index
    %548 = vector.load %arg23[%c0_148, %c0_149] : memref<8x1xf32, #tpu.memory_space<vmem>>, vector<8x1xf32>
    tpu.vector_store %arg23[%c0_148, %c0_149], %547 {strides = array<i32>} : memref<8x1xf32, #tpu.memory_space<vmem>>, vector<8x1xf32>,
    return
  }
}

</mosaic_0001>

<bundles_post_ra>
// kernel: model_forward.1
= control target key start
LH: loop header
LB: loop body
LE: loop exit
PB: predicated region body
PF: predicated region fallthrough
CT: control target
= control target key end

     0   :  { %s11961_s0 = inlined_call_operand.vmem [shape: s32[128,1], index: 0, kind: input, shape index: {}]   ;;  %s11962_s1 = inlined_call_operand.vmem [shape: f32[8,4], index: 1, kind: input, shape index: {}]   ;;  %s11963_s2 = inlined_call_operand.vmem [shape: f32[64,32], index: 2, kind: input, shape index: {}]   ;;  %s11964_s3 = inlined_call_operand.vmem [shape: f32[4,128], index: 3, kind: input, shape index: {}]   ;;  %s11965_s4 = inlined_call_operand.vmem [shape: f32[1,128], index: 4, kind: input, shape index: {}]   ;;  %s11966_s5 = inlined_call_operand.vmem [shape: f32[128,256], index: 5, kind: input, shape index: {}]   ;;  %s11967_s6 = inlined_call_operand.vmem [shape: f32[1,256], index: 6, kind: input, shape index: {}]   ;;  %s11968_s7 = inlined_call_operand.vmem [shape: f32[32,512], index: 7, kind: input, shape index: {}]   ;;  %s11969_s8 = inlined_call_operand.hbm [shape: f32[128,512], index: 8, kind: input, shape index: {}]   ;;  %s11970_s9 = inlined_call_operand.vmem [shape: f32[1,512], index: 9, kind: input, shape index: {}]   ;;  %s11971_s10 = inlined_call_operand.hbm [shape: f32[128,512], index: 10, kind: input, shape index: {}]   ;;  %s11972_s11 = inlined_call_operand.hbm [shape: f32[128,512], index: 11, kind: input, shape index: {}]   ;;  %s11973_s12 = inlined_call_operand.vmem [shape: f32[1,512], index: 12, kind: input, shape index: {}]   ;;  %s11974_s13 = inlined_call_operand.vmem [shape: f32[128,128], index: 13, kind: input, shape index: {}]   ;;  %s11975_s14 = inlined_call_operand.vmem [shape: f32[1,128], index: 14, kind: input, shape index: {}]   ;;  %s11976_s15 = inlined_call_operand.vmem [shape: f32[128,32], index: 15, kind: input, shape index: {}]   ;;  %s11977_s16 = inlined_call_operand.vmem [shape: f32[1,32], index: 16, kind: input, shape index: {}]   ;;  %s11978_s17 = inlined_call_operand.hbm [shape: f32[320,128], index: 17, kind: input, shape index: {}]   ;;  %s11979_s18 = inlined_call_operand.vmem [shape: f32[1,128], index: 18, kind: input, shape index: {}]   ;;  %s11980_s19 = inlined_call_operand.vmem [shape: f32[128,32], index: 19, kind: input, shape index: {}]   ;;  %s11981_s20 = inlined_call_operand.vmem [shape: f32[1,32], index: 20, kind: input, shape index: {}]   ;;  %s11982_s21 = inlined_call_operand.vmem [shape: f32[32,1], index: 21, kind: input, shape index: {}]   ;;  %s11983_s22 = inlined_call_operand.<no memory space> [shape: f32[1,1], index: 22, kind: input, shape index: {}]   ;;  %s11984_s23 = inlined_call_operand.vmem [shape: f32[8,1], index: 23, kind: output, shape index: {}]  }
   0x1   :  { %12088 = sst [smem:[#allocation152_spill]] %s11961_s0  ;;  %v28_v0 = vstv %s11983_s22 }
   0x2   :  { %12089 = sst [smem:[#allocation153_spill]] %s11962_s1  ;;  %29 = vst [vmem:[#allocation3] sm:$0x1] %v28_v0 }
   0x3   :  { %12090 = sst [smem:[#allocation154_spill]] %s11963_s2 }
   0x4   :  { %12091 = sst [smem:[#allocation155_spill]] %s11964_s3 }
   0x5   :  { %12092 = sst [smem:[#allocation156_spill]] %s11965_s4 }
   0x6   :  { %12093 = sst [smem:[#allocation157_spill]] %s11966_s5 }
   0x7   :  { %12094 = sst [smem:[#allocation158_spill]] %s11967_s6 }
   0x8   :  { %12095 = sst [smem:[#allocation159_spill]] %s11968_s7 }
   0x9   :  { %30 = vsyncpa [#allocation5], 0 }
   0xa   :  { %31 = vsyncpa [#allocation7], 0 }
   0xb   :  { %32 = vsyncpa [#allocation10], 0  ;;  %s68_s5 = sshll.u32 %s11971_s10, 4  ;;  %s7874_s1 = smov [#allocation6]   ;;  %s69_s5 = int_to_ptr.hbm [resolvable:$true] %s68_s5 }
   0xc   :  { %s70_s26 = sshll.u32 %s7874_s1, 4  ;;  %s53_s27 = sshll.u32 %s11969_s8, 4  ;;  %s71_s26 = int_to_ptr.vmem [resolvable:$true] %s70_s26  ;;  %s54_s27 = int_to_ptr.hbm [resolvable:$true] %s53_s27 }
   0xd   :  { %s7875_s7 = smov 512   ;;  %s7876_s28 = smov 32  }
   0xe   :  { %76 = dma.hbm_to_vmem [thread:$0]  %s69_s5, 8192, %s71_s26, [#allocation7], %s7875_s7, %s7875_s7, %s7876_s28  }
   0xf   :  { %s7877_s22 = smov [#allocation4]   ;;  %s81_s4 = sshll.u32 %s11972_s11, 4  ;;  %s82_s4 = int_to_ptr.hbm [resolvable:$true] %s81_s4 }
  0x10   :  { %s55_s29 = sshll.u32 %s7877_s22, 4  ;;  %s104_s24 = sshll.u32 %s11978_s17, 4  ;;  %s56_s29 = int_to_ptr.vmem [resolvable:$true] %s55_s29  ;;  %s105_s24 = int_to_ptr.hbm [resolvable:$true] %s104_s24 }
  0x11   :  { %61 = dma.hbm_to_vmem [thread:$0]  %s54_s27, 8192, %s56_s29, [#allocation5], %s7875_s7, %s7875_s7, %s7876_s28  }
  0x12   :  { %s7878_s25 = smov [#allocation8]   ;;  %s7879_s8 = smov [#allocation9]  }
  0x13   :  { %s83_s1 = sshll.u32 %s7878_s25, 4  ;;  %s106_s5 = sshll.u32 %s7879_s8, 4  ;;  %s84_s1 = int_to_ptr.vmem [resolvable:$true] %s83_s1  ;;  %s107_s5 = int_to_ptr.vmem [resolvable:$true] %s106_s5 }
  0x14   :  { %89 = dma.hbm_to_vmem [thread:$0]  %s82_s4, 8192, %s84_s1, [#allocation7], %s7875_s7, %s7875_s7, %s7876_s28  }
  0x15   :  { %s7880_s26 = smov 128   ;;  %s7881_s2 = smov 8  }
  0x16   :  { %112 = dma.hbm_to_vmem [thread:$0]  %s105_s24, 5120, %s107_s5, [#allocation10], %s7880_s26, %s7880_s26, %s7881_s2  }
  0x17   :  { %7868 = dma.done.wait [#allocation5], 8192  }
  0x18   :  { %7869 = vsyncadd [#allocation5], 4294959104 }
  0x19   :  { %7870 = dma.done.wait [#allocation7], 16384  }
  0x1a   :  { %7871 = vsyncadd [#allocation7], 4294950912 }
  0x1b   :  { %7872 = dma.done.wait [#allocation10], 5120  }
  0x1c   :  { %7873 = vsyncadd [#allocation10], 4294962176  ;;  %v7882_v1 = vmov 0   ;;  %s12096_s6 = sld [smem:[#allocation152_spill]]  ;;  %v155_v28 = vlaneseq  ;;  %vm261_vm1 = vcmask 523264   ;;  %v11989_v32 = vmov 0.0  }
  0x1d   :  { %6042 = vset.pattern.permute.xlu1 %v7882_v1  ;;  %6041 = vset.pattern.permute.xlu0 %v7882_v1  ;;  %s12097_s1 = sld [smem:[#allocation154_spill]] }
  0x1e   :  { %6043 = vset.pattern.permute.xlu2 %v7882_v1  ;;  %v8091_v29 = vand.u32 127, %v155_v28  ;;  %s12098_s24 = sld [smem:[#allocation159_spill]] }
  0x1f   :  { %s12099_s30 = sld [smem:[#allocation155_spill]] }
  0x20   :  { %s12101_s8 = sld [smem:[#allocation153_spill]] }
  0x21   :  { %s12124_s17 = sld [smem:[#allocation156_spill]] }
  0x22   :  { %v141_v2 = vld [vmem:[%s12096_s6 + $0x10] sm:$0xff]  ;;  %v139_v3 = vld [vmem:[%s12096_s6] sm:$0xff]  ;;  %v142_v5 = vld [vmem:[%s12096_s6 + $0x18] sm:$0xff]  ;;  %s12583_s29 = sld [smem:[#allocation158_spill]] }
  0x23   :  { %164 = vperm.xlu1 %6042, %v141_v2   ;;  %158 = vperm.xlu0 %6041, %v139_v3   ;;  %v143_v4 = vld [vmem:[%s12096_s6 + $0x20] sm:$0xff]  ;;  %v140_v6 = vld [vmem:[%s12096_s6 + $0x8] sm:$0xff]  ;;  %v260_v8 = vld [vmem:[%s12097_s1 + $0x38] sm:$0xff] }
  0x24   :  { %170 = vperm.xlu2 %6043, %v143_v4   ;;  %v144_v7 = vld [vmem:[%s12096_s6 + $0x28] sm:$0xff]  ;;  %318 = vmatpush.msra.mxu0 %v260_v8  ;;  %v259_v9 = vld [vmem:[%s12097_s1 + $0x30] sm:$0xff]  ;;  %v257_v11 = vld [vmem:[%s12097_s1 + $0x20] sm:$0xff] }
  0x25   :  { %6019 = vmatpush.msra.mxu3 %v260_v8  ;;  %v258_v10 = vld [vmem:[%s12097_s1 + $0x28] sm:$0xff]  ;;  %v146_v12 = vld [vmem:[%s12096_s6 + $0x38] sm:$0xff]  ;;  %v145_v13 = vld [vmem:[%s12096_s6 + $0x30] sm:$0xff] }
  0x26   :  { %319 = vmatpush.msra.mxu0 %v259_v9  ;;  %v256_v14 = vld [vmem:[%s12097_s1 + $0x18] sm:$0xff]  ;;  %v147_v15 = vld [vmem:[%s12096_s6 + $0x40] sm:$0xff]  ;;  %v255_v16 = vld [vmem:[%s12097_s1 + $0x10] sm:$0xff] }
  0x27   :  { %6020 = vmatpush.msra.mxu3 %v259_v9  ;;  %v254_v17 = vld [vmem:[%s12097_s1 + $0x8] sm:$0xff]  ;;  %v149_v18 = vld [vmem:[%s12096_s6 + $0x50] sm:$0xff]  ;;  %v150_v20 = vld [vmem:[%s12096_s6 + $0x58] sm:$0xff] }
  0x28   :  { %320 = vmatpush.msra.mxu0 %v258_v10  ;;  %v148_v19 = vld [vmem:[%s12096_s6 + $0x48] sm:$0xff]  ;;  %v151_v22 = vld [vmem:[%s12096_s6 + $0x60] sm:$0xff]  ;;  %v153_v23 = vld [vmem:[%s12096_s6 + $0x70] sm:$0xff] }
  0x29   :  { %6021 = vmatpush.msra.mxu3 %v258_v10  ;;  %v152_v21 = vld [vmem:[%s12096_s6 + $0x68] sm:$0xff]  ;;  %v154_v24 = vld [vmem:[%s12096_s6 + $0x78] sm:$0xff]  ;;  %v253_v25 = vld [vmem:[%s12097_s1] sm:$0xff] }
  0x2a   :  { %321 = vmatpush.msra.mxu0 %v257_v11  ;;  %v387_v55 = vld [vmem:[%s12098_s24 + $0x60] sm:$0xff]  ;;  %v388_v56 = vld [vmem:[%s12098_s24 + $0x68] sm:$0xff]  ;;  %v389_v3 = vld [vmem:[%s12098_s24 + $0x70] sm:$0xff] }
  0x2b   :  { %167 = vperm.xlu1 %6042, %v142_v5   ;;  %161 = vperm.xlu0 %6041, %v140_v6   ;;  %v383_v57 = vld [vmem:[%s12098_s24 + $0x40] sm:$0xff]  ;;  %v384_v59 = vld [vmem:[%s12098_s24 + $0x48] sm:$0xff]  ;;  %v385_v4 = vld [vmem:[%s12098_s24 + $0x50] sm:$0xff] }
  0x2c   :  { %173 = vperm.xlu2 %6043, %v144_v7   ;;  %6022 = vmatpush.msra.mxu3 %v257_v11  ;;  %v379_v60 = vld [vmem:[%s12098_s24 + $0x20] sm:$0xff]  ;;  %v380_v61 = vld [vmem:[%s12098_s24 + $0x28] sm:$0xff]  ;;  %v381_v6 = vld [vmem:[%s12098_s24 + $0x30] sm:$0xff] }
  0x2d   :  { %322 = vmatpush.msra.mxu0 %v256_v14  ;;  %462 = vmatpush.msra.mxu1 %v387_v55  ;;  %v375_v0 = vld [vmem:[%s12098_s24] sm:$0xff]  ;;  %v376_v1 = vld [vmem:[%s12098_s24 + $0x8] sm:$0xff]  ;;  %v377_v8 = vld [vmem:[%s12098_s24 + $0x10] sm:$0xff] }
  0x2e   :  { %6023 = vmatpush.msra.mxu3 %v256_v14  ;;  %527 = vmatpush.msra.mxu2 %v388_v56  ;;  %v775_v2 = vld [vmem:[%s12099_s30] sm:$0xf]  ;;  %s12100_s30 = sld [smem:[#allocation157_spill]] }
  0x2f   :  { %323 = vmatpush.msra.mxu0 %v255_v16  ;;  %463 = vmatpush.msra.mxu1 %v383_v57  ;;  %v937_v55 = vld [vmem:[#allocation4 + $0x198] sm:$0xff] }
  0x30   :  { %6024 = vmatpush.msra.mxu3 %v255_v16  ;;  %528 = vmatpush.msra.mxu2 %v384_v59  ;;  %v933_v56 = vld [vmem:[#allocation4 + $0x178] sm:$0xff] }
  0x31   :  { %324 = vmatpush.msra.mxu0 %v254_v17  ;;  %464 = vmatpush.msra.mxu1 %v379_v60  ;;  %v925_v59 = vld [vmem:[#allocation4 + $0x138] sm:$0xff] }
  0x32   :  { %6025 = vmatpush.msra.mxu3 %v254_v17  ;;  %529 = vmatpush.msra.mxu2 %v380_v61  ;;  %v921_v61 = vld [vmem:[#allocation4 + $0x118] sm:$0xff] }
  0x33   :  { %179 = vperm.xlu1 %6042, %v146_v12   ;;  %176 = vperm.xlu0 %6041, %v145_v13  }
  0x34   :  { %182 = vperm.xlu2 %6043, %v147_v15   ;;  %325 = vmatpush.msra.mxu0 %v253_v25  ;;  %v832_v57 = vld [vmem:[%s12100_s30 + $0xc0] sm:$0xff] }
  0x35   :  { %6026 = vmatpush.msra.mxu3 %v253_v25  ;;  %465 = vmatpush.msra.mxu1 %v375_v0  ;;  %v926_v25 = vld [vmem:[#allocation4 + $0x140] sm:$0xff]  ;;  %v913_v0 = vld [vmem:[#allocation4 + $0xd8] sm:$0xff] }
  0x36   :  { %530 = vmatpush.msra.mxu2 %v376_v1  ;;  %v839_v1 = vld [vmem:[%s12100_s30 + $0xf8] sm:$0xff] }
  0x37   :  { %6027 = vmatpush.msrb.mxu3 %v389_v3  ;;  %592 = vmatpush.msrb.mxu1 %v389_v3 }
  0x38   :  { %866 = vmatpush.msrb.mxu0 %v839_v1  ;;  %v8504_v1 = vld [vmem:[#allocation4 + $0x170] sm:$0xff] }
  0x39   :  { %6028 = vmatpush.msrb.mxu3 %v385_v4  ;;  %593 = vmatpush.msrb.mxu1 %v385_v4  ;;  %v905_v4 = vld [vmem:[#allocation4 + $0x98] sm:$0xff] }
  0x3b   :  { %188 = vperm.xlu1 %6042, %v149_v18   ;;  %185 = vperm.xlu0 %6041, %v148_v19   ;;  %v946_v19 = vld [vmem:[#allocation4 + $0x1e0] sm:$0xff] }
  0x3c   :  { %191 = vperm.xlu2 %6043, %v150_v20   ;;  %6029 = vmatpush.msrb.mxu3 %v381_v6  ;;  %v942_v20 = vld [vmem:[#allocation4 + $0x1c0] sm:$0xff] }
  0x3d   :  { %594 = vmatpush.msrb.mxu1 %v381_v6  ;;  %v901_v6 = vld [vmem:[#allocation4 + $0x78] sm:$0xff] }
  0x3e   :  { %6030 = vmatpush.msrb.mxu3 %v377_v8 }
  0x3f   :  { %595 = vmatpush.msrb.mxu1 %v377_v8  ;;  %v837_v8 = vld [vmem:[%s12100_s30 + $0xe8] sm:$0xff] }
  0x40   :  { %867 = vmatpush.msrb.mxu0 %v837_v8  ;;  %v8523_v8 = vld [vmem:[#allocation4 + $0x130] sm:$0xff] }
  0x43   :  { %197 = vperm.xlu1 %6042, %v152_v21   ;;  %194 = vperm.xlu0 %6041, %v151_v22   ;;  %v938_v21 = vld [vmem:[#allocation4 + $0x1a0] sm:$0xff] }
  0x44   :  { %200 = vperm.xlu2 %6043, %v153_v23   ;;  %v934_v23 = vld [vmem:[#allocation4 + $0x180] sm:$0xff] }
  0x4b   :  { %203 = vperm.xlu0 %6041, %v154_v24   ;;  %v930_v24 = vld [vmem:[#allocation4 + $0x160] sm:$0xff] }
  0x7e   :  { %v171_v26 = vpop.permute.xlu2 %170 }
  0x7f   :  { %vm209_vm8 = vcmp.eq.s32.totalorder %v171_v26, %v8091_v29  ;;  %v922_v26 = vld [vmem:[#allocation4 + $0x120] sm:$0xff] }
  0x80   :  { %v5825_v45 = vsel %vm209_vm8, 1.0, %v11989_v32 }
  0x86   :  { %v174_v27 = vpop.permute.xlu2 %173 }
  0x87   :  { %vm210_vm10 = vcmp.eq.s32.totalorder %v174_v27, %v8091_v29  ;;  %v918_v27 = vld [vmem:[#allocation4 + $0x100] sm:$0xff] }
  0x88   :  { %v5826_v48 = vsel %vm210_vm10, 1.0, %v11989_v32 }
  0x8e   :  { %v183_v30 = vpop.permute.xlu2 %182 }
  0x8f   :  { %vm213_vm0 = vcmp.eq.s32.totalorder %v183_v30, %v8091_v29  ;;  %v910_v30 = vld [vmem:[#allocation4 + $0xc0] sm:$0xff] }
  0x90   :  { %v5829_v53 = vsel %vm213_vm0, 1.0, %v11989_v32  ;;  %vm784_vm0 = vcmask 1043456  }
  0x91   :  { %5917 = vmatpush.msk.msrb.mxu2 %vm784_vm0, %v775_v2  ;;  %v909_v2 = vld [vmem:[#allocation4 + $0xb8] sm:$0xff] }
  0x95   :  { %v159_v31 = vpop.permute.xlu0 %158  ;;  %v165_v38 = vpop.permute.xlu1 %164 }
  0x96   :  { %vm205_vm2 = vcmp.eq.s32.totalorder %v159_v31, %v8091_v29  ;;  %v192_v34 = vpop.permute.xlu2 %191  ;;  %vm207_vm6 = vcmp.eq.s32.totalorder %v165_v38, %v8091_v29  ;;  %v906_v31 = vld [vmem:[#allocation4 + $0xa0] sm:$0xff] }
  0x97   :  { %v5821_v33 = vsel %vm205_vm2, 1.0, %v11989_v32  ;;  %vm216_vm3 = vcmp.eq.s32.totalorder %v192_v34, %v8091_v29  ;;  %v5823_v40 = vsel %vm207_vm6, 1.0, %v11989_v32  ;;  %v886_v38 = vld [vmem:[#allocation4] sm:$0xff] }
  0x98   :  { %5837 = vmatmul.msk.f32.vlgmr.msra.gmra.mxu0 %vm261_vm1, %v5821_v33  ;;  %v5832_v63 = vsel %vm216_vm3, 1.0, %v11989_v32  ;;  %vm401_vm3 = vcmask 261120   ;;  %v902_v33 = vld [vmem:[#allocation4 + $0x80] sm:$0xff] }
  0x9d   :  { %v162_v35 = vpop.permute.xlu0 %161  ;;  %v168_v42 = vpop.permute.xlu1 %167 }
  0x9e   :  { %vm206_vm4 = vcmp.eq.s32.totalorder %v162_v35, %v8091_v29  ;;  %v201_v37 = vpop.permute.xlu2 %200  ;;  %vm208_vm7 = vcmp.eq.s32.totalorder %v168_v42, %v8091_v29  ;;  %v898_v35 = vld [vmem:[#allocation4 + $0x60] sm:$0xff]  ;;  %v382_v42 = vld [vmem:[%s12098_s24 + $0x38] sm:$0xff] }
  0x9f   :  { %v5822_v36 = vsel %vm206_vm4, 1.0, %v11989_v32  ;;  %vm219_vm5 = vcmp.eq.s32.totalorder %v201_v37, %v8091_v29  ;;  %v5824_v44 = vsel %vm208_vm7, 1.0, %v11989_v32  ;;  %v890_v37 = vld [vmem:[#allocation4 + $0x20] sm:$0xff] }
  0xa0   :  { %5838 = vmatmul.msk.f32.gmra.mxu0 %vm261_vm1, %v5822_v36  ;;  %v5835_v39 = vsel %vm219_vm5, 1.0, %v11989_v32  ;;  %v894_v36 = vld [vmem:[#allocation4 + $0x40] sm:$0xff] }
  0xa1   :  { %5851 = vmatmul.msk.f32.vlgmr.msra.gmra.mxu3 %vm261_vm1, %v5835_v39 }
  0xa5   :  { %v177_v41 = vpop.permute.xlu0 %176  ;;  %v180_v51 = vpop.permute.xlu1 %179 }
  0xa6   :  { %vm211_vm12 = vcmp.eq.s32.totalorder %v177_v41, %v8091_v29  ;;  %vm212_vm13 = vcmp.eq.s32.totalorder %v180_v51, %v8091_v29  ;;  %v386_v41 = vld [vmem:[%s12098_s24 + $0x58] sm:$0xff]  ;;  %v834_v51 = vld [vmem:[%s12100_s30 + $0xd0] sm:$0xff] }
  0xa7   :  { %v5827_v50 = vsel %vm211_vm12, 1.0, %v11989_v32  ;;  %v5828_v52 = vsel %vm212_vm13, 1.0, %v11989_v32 }
  0xa8   :  { %5839 = vmatmul.msk.f32.gmra.mxu0 %vm261_vm1, %v5823_v40  ;;  %v390_v40 = vld [vmem:[%s12098_s24 + $0x78] sm:$0xff] }
  0xad   :  { %v186_v43 = vpop.permute.xlu0 %185  ;;  %v189_v58 = vpop.permute.xlu1 %188 }
  0xae   :  { %vm214_vm14 = vcmp.eq.s32.totalorder %v186_v43, %v8091_v29  ;;  %vm215_vm15 = vcmp.eq.s32.totalorder %v189_v58, %v8091_v29  ;;  %v929_v58 = vld [vmem:[#allocation4 + $0x158] sm:$0xff] }
  0xaf   :  { %v5830_v54 = vsel %vm214_vm14, 1.0, %v11989_v32  ;;  %v5831_v62 = vsel %vm215_vm15, 1.0, %v11989_v32 }
  0xb0   :  { %5840 = vmatmul.msk.f32.gmra.mxu0 %vm261_vm1, %v5824_v44  ;;  %v378_v44 = vld [vmem:[%s12098_s24 + $0x18] sm:$0xff] }
  0xb5   :  { %v195_v46 = vpop.permute.xlu0 %194  ;;  %v198_v7 = vpop.permute.xlu1 %197 }
  0xb6   :  { %vm217_vm9 = vcmp.eq.s32.totalorder %v195_v46, %v8091_v29  ;;  %vm218_vm2 = vcmp.eq.s32.totalorder %v198_v7, %v8091_v29  ;;  %v838_v46 = vld [vmem:[%s12100_s30 + $0xf0] sm:$0xff]  ;;  %v897_v7 = vld [vmem:[#allocation4 + $0x58] sm:$0xff] }
  0xb7   :  { %v5833_v5 = vsel %vm217_vm9, 1.0, %v11989_v32  ;;  %v5834_v9 = vsel %vm218_vm2, 1.0, %v11989_v32  ;;  %846 = vmatpush.msra.mxu3 %v838_v46  ;;  %v812_v46 = vld [vmem:[%s12100_s30 + $0x20] sm:$0xff] }
  0xb8   :  { %5841 = vmatmul.msk.f32.gmra.mxu0 %vm261_vm1, %v5825_v45 }
  0xbd   :  { %v204_v47 = vpop.permute.xlu0 %203 }
  0xbe   :  { %vm220_vm11 = vcmp.eq.s32.totalorder %v204_v47, %v8091_v29  ;;  %v914_v29 = vld [vmem:[#allocation4 + $0xe0] sm:$0xff] }
  0xbf   :  { %v5836_v49 = vsel %vm220_vm11, 1.0, %v11989_v32  ;;  %v836_v47 = vld [vmem:[%s12100_s30 + $0xe0] sm:$0xff] }
  0xc0   :  { %5842 = vmatmul.msk.f32.gmra.mxu0 %vm261_vm1, %v5826_v48  ;;  %5852 = vmatmul.msk.f32.gmra.mxu3 %vm261_vm1, %v5836_v49  ;;  %v774_v49 = vld [vmem:[%s12101_s8] sm:$0xff] }
  0xc1   :  { %847 = vmatpush.msra.mxu3 %v836_v47  ;;  %v813_v47 = vld [vmem:[%s12100_s30 + $0x28] sm:$0xff] }
  0xc3   :  { %848 = vmatpush.msra.mxu3 %v834_v51 }
  0xc5   :  { %849 = vmatpush.msra.mxu3 %v832_v57  ;;  %v8482_v57 = vld [vmem:[#allocation4 + $0x1c8] sm:$0xff] }
  0xc8   :  { %5843 = vmatmul.msk.f32.gmra.mxu0 %vm261_vm1, %v5827_v50  ;;  %v949_v50 = vld [vmem:[#allocation4 + $0x1f8] sm:$0xff] }
  0xd0   :  { %5844 = vmatmul.msk.f32.gmra.mxu0 %vm261_vm1, %v5828_v52  ;;  %v945_v52 = vld [vmem:[#allocation4 + $0x1d8] sm:$0xff] }
  0xd8   :  { %5845 = vmatmul.msk.f32.gmra.mxu0 %vm261_vm1, %v5829_v53  ;;  %v941_v53 = vld [vmem:[#allocation4 + $0x1b8] sm:$0xff] }
  0xe0   :  { %5846 = vmatmul.msk.f32.gmra.mxu0 %vm261_vm1, %v5830_v54 }
  0xe8   :  { %5847 = vmatmul.msk.f32.gmra.mxu0 %vm261_vm1, %v5831_v62  ;;  %v830_v62 = vld [vmem:[%s12100_s30 + $0xb0] sm:$0xff] }
  0xe9   :  { %850 = vmatpush.msra.mxu3 %v830_v62  ;;  %v8493_v62 = vld [vmem:[#allocation4 + $0x1b0] sm:$0xff] }
  0xf0   :  { %5848 = vmatmul.msk.f32.gmra.mxu0 %vm261_vm1, %v5832_v63  ;;  %v917_v63 = vld [vmem:[#allocation4 + $0xf8] sm:$0xff] }
  0xf8   :  { %5849 = vmatmul.msk.f32.gmra.mxu0 %vm261_vm1, %v5833_v5  ;;  %v828_v5 = vld [vmem:[%s12100_s30 + $0xa0] sm:$0xff] }
  0xf9   :  { %851 = vmatpush.msra.mxu3 %v828_v5  ;;  %v8514_v5 = vld [vmem:[#allocation4 + $0x150] sm:$0xff] }
 0x100   :  { %5850 = vmatmul.msk.f32.gmra.mxu0 %vm261_vm1, %v5834_v9  ;;  %vm780_vm1 = vcmask 31744   ;;  %v893_v9 = vld [vmem:[#allocation4 + $0x38] sm:$0xff] }
 0x115   :  { %v8186_v10 = vpop.f32.mrf.mxu0 }
 0x116   :  { %5853 = vmatmul.msk.f32.vlgmr.msra.gmra.mxu1 %vm401_vm3, %v8186_v10  ;;  %5869 = vmatmul.msk.f32.vlgmr.msra.gmra.mxu2 %vm401_vm3, %v8186_v10 }
 0x117   :  { %1087 = vmatpush.msra.mxu2 %v946_v19  ;;  %657 = vmatpush.msra.mxu1 %v390_v40  ;;  %v826_v19 = vld [vmem:[%s12100_s30 + $0x90] sm:$0xff] }
 0x118   :  { %852 = vmatpush.msra.mxu3 %v826_v19  ;;  %v8534_v19 = vld [vmem:[#allocation4 + $0xf0] sm:$0xff] }
 0x119   :  { %1088 = vmatpush.msra.mxu2 %v942_v20  ;;  %658 = vmatpush.msra.mxu1 %v386_v41  ;;  %v817_v41 = vld [vmem:[%s12100_s30 + $0x48] sm:$0xff] }
 0x11b   :  { %1089 = vmatpush.msra.mxu2 %v938_v21  ;;  %659 = vmatpush.msra.mxu1 %v382_v42  ;;  %v824_v21 = vld [vmem:[%s12100_s30 + $0x80] sm:$0xff]  ;;  %v814_v42 = vld [vmem:[%s12100_s30 + $0x30] sm:$0xff] }
 0x11c   :  { %853 = vmatpush.msra.mxu3 %v824_v21  ;;  %v8542_v21 = vld [vmem:[#allocation4 + $0xd0] sm:$0xff] }
 0x11d   :  { %v8192_v11 = vpop.f32.mrf.mxu0  ;;  %1090 = vmatpush.msra.mxu2 %v934_v23  ;;  %660 = vmatpush.msra.mxu1 %v378_v44  ;;  %v833_v23 = vld [vmem:[%s12100_s30 + $0xc8] sm:$0xff]  ;;  %v815_v44 = vld [vmem:[%s12100_s30 + $0x38] sm:$0xff] }
 0x11e   :  { %5854 = vmatmul.msk.f32.gmra.mxu1 %vm401_vm3, %v8192_v11  ;;  %5870 = vmatmul.msk.f32.gmra.mxu2 %vm401_vm3, %v8192_v11 }
 0x11f   :  { %5886 = vmatmul.msk.f32.vlgmr.msrb.gmra.mxu3 %vm401_vm3, %v8192_v11  ;;  %1091 = vmatpush.msra.mxu2 %v930_v24 }
 0x121   :  { %1092 = vmatpush.msra.mxu2 %v926_v25  ;;  %v831_v25 = vld [vmem:[%s12100_s30 + $0xb8] sm:$0xff] }
 0x123   :  { %1093 = vmatpush.msra.mxu2 %v922_v26 }
 0x124   :  { %v8308_v45 = vpop.f32.mrf.mxu3 }
 0x125   :  { %v8200_v12 = vpop.f32.mrf.mxu0  ;;  %1094 = vmatpush.msra.mxu2 %v918_v27 }
 0x126   :  { %5855 = vmatmul.msk.f32.gmra.mxu1 %vm401_vm3, %v8200_v12  ;;  %5871 = vmatmul.msk.f32.gmra.mxu2 %vm401_vm3, %v8200_v12 }
 0x127   :  { %5887 = vmatmul.msk.f32.gmra.mxu3 %vm401_vm3, %v8200_v12  ;;  %1095 = vmatpush.msra.mxu2 %v914_v29  ;;  %v829_v29 = vld [vmem:[%s12100_s30 + $0xa8] sm:$0xff] }
 0x129   :  { %1096 = vmatpush.msra.mxu2 %v910_v30  ;;  %v818_v30 = vld [vmem:[%s12100_s30 + $0x50] sm:$0xff] }
 0x12b   :  { %1097 = vmatpush.msra.mxu2 %v906_v31 }
 0x12d   :  { %v8208_v13 = vpop.f32.mrf.mxu0  ;;  %1098 = vmatpush.msra.mxu2 %v902_v33  ;;  %v827_v33 = vld [vmem:[%s12100_s30 + $0x98] sm:$0xff] }
 0x12e   :  { %5856 = vmatmul.msk.f32.gmra.mxu1 %vm401_vm3, %v8208_v13  ;;  %5872 = vmatmul.msk.f32.gmra.mxu2 %vm401_vm3, %v8208_v13 }
 0x12f   :  { %5888 = vmatmul.msk.f32.gmra.mxu3 %vm401_vm3, %v8208_v13  ;;  %1099 = vmatpush.msra.mxu2 %v898_v35  ;;  %v825_v35 = vld [vmem:[%s12100_s30 + $0x88] sm:$0xff] }
 0x131   :  { %1100 = vmatpush.msra.mxu2 %v894_v36  ;;  %v816_v36 = vld [vmem:[%s12100_s30 + $0x40] sm:$0xff] }
 0x133   :  { %1101 = vmatpush.msra.mxu2 %v890_v37  ;;  %v821_v37 = vld [vmem:[%s12100_s30 + $0x68] sm:$0xff] }
 0x135   :  { %v8216_v14 = vpop.f32.mrf.mxu0  ;;  %1102 = vmatpush.msra.mxu2 %v886_v38 }
 0x136   :  { %5857 = vmatmul.msk.f32.gmra.mxu1 %vm401_vm3, %v8216_v14  ;;  %5873 = vmatmul.msk.f32.gmra.mxu2 %vm401_vm3, %v8216_v14 }
 0x137   :  { %5889 = vmatmul.msk.f32.gmra.mxu3 %vm401_vm3, %v8216_v14 }
 0x13d   :  { %v8224_v15 = vpop.f32.mrf.mxu0 }
 0x13e   :  { %5858 = vmatmul.msk.f32.gmra.mxu1 %vm401_vm3, %v8224_v15  ;;  %5874 = vmatmul.msk.f32.gmra.mxu2 %vm401_vm3, %v8224_v15 }
 0x13f   :  { %5890 = vmatmul.msk.f32.gmra.mxu3 %vm401_vm3, %v8224_v15 }
 0x143   :  { %v8322_v48 = vpop.f32.mrf.mxu3 }
 0x145   :  { %v8232_v16 = vpop.f32.mrf.mxu0 }
 0x146   :  { %5859 = vmatmul.msk.f32.gmra.mxu1 %vm401_vm3, %v8232_v16  ;;  %5875 = vmatmul.msk.f32.gmra.mxu2 %vm401_vm3, %v8232_v16 }
 0x147   :  { %5891 = vmatmul.msk.f32.gmra.mxu3 %vm401_vm3, %v8232_v16 }
 0x14d   :  { %v8240_v17 = vpop.f32.mrf.mxu0 }
 0x14e   :  { %5860 = vmatmul.msk.f32.gmra.mxu1 %vm401_vm3, %v8240_v17  ;;  %5876 = vmatmul.msk.f32.gmra.mxu2 %vm401_vm3, %v8240_v17 }
 0x14f   :  { %5892 = vmatmul.msk.f32.gmra.mxu3 %vm401_vm3, %v8240_v17 }
 0x155   :  { %v8248_v18 = vpop.f32.mrf.mxu0 }
 0x156   :  { %5861 = vmatmul.msk.f32.gmra.mxu1 %vm401_vm3, %v8248_v18  ;;  %5877 = vmatmul.msk.f32.gmra.mxu2 %vm401_vm3, %v8248_v18 }
 0x157   :  { %5893 = vmatmul.msk.f32.gmra.mxu3 %vm401_vm3, %v8248_v18 }
 0x15d   :  { %v8256_v22 = vpop.f32.mrf.mxu0 }
 0x15e   :  { %5862 = vmatmul.msk.f32.gmra.mxu1 %vm401_vm3, %v8256_v22  ;;  %5878 = vmatmul.msk.f32.gmra.mxu2 %vm401_vm3, %v8256_v22 }
 0x15f   :  { %5894 = vmatmul.msk.f32.gmra.mxu3 %vm401_vm3, %v8256_v22 }
 0x165   :  { %v8264_v28 = vpop.f32.mrf.mxu0 }
 0x166   :  { %5863 = vmatmul.msk.f32.gmra.mxu1 %vm401_vm3, %v8264_v28  ;;  %5879 = vmatmul.msk.f32.gmra.mxu2 %vm401_vm3, %v8264_v28 }
 0x167   :  { %5895 = vmatmul.msk.f32.gmra.mxu3 %vm401_vm3, %v8264_v28 }
 0x16d   :  { %v8272_v34 = vpop.f32.mrf.mxu0 }
 0x16e   :  { %5864 = vmatmul.msk.f32.gmra.mxu1 %vm401_vm3, %v8272_v34  ;;  %5880 = vmatmul.msk.f32.gmra.mxu2 %vm401_vm3, %v8272_v34 }
 0x16f   :  { %5896 = vmatmul.msk.f32.gmra.mxu3 %vm401_vm3, %v8272_v34 }
 0x175   :  { %v8280_v39 = vpop.f32.mrf.mxu0 }
 0x176   :  { %5865 = vmatmul.msk.f32.gmra.mxu1 %vm401_vm3, %v8280_v39  ;;  %5881 = vmatmul.msk.f32.gmra.mxu2 %vm401_vm3, %v8280_v39 }
 0x177   :  { %5897 = vmatmul.msk.f32.gmra.mxu3 %vm401_vm3, %v8280_v39 }
 0x17d   :  { %v8297_v43 = vpop.f32.mrf.mxu0 }
 0x17e   :  { %5866 = vmatmul.msk.f32.gmra.mxu1 %vm401_vm3, %v8297_v43  ;;  %5882 = vmatmul.msk.f32.gmra.mxu2 %vm401_vm3, %v8297_v43 }
 0x17f   :  { %5898 = vmatmul.msk.f32.gmra.mxu3 %vm401_vm3, %v8297_v43 }
 0x186   :  { %5867 = vmatmul.msk.f32.gmra.mxu1 %vm401_vm3, %v8308_v45  ;;  %5883 = vmatmul.msk.f32.gmra.mxu2 %vm401_vm3, %v8308_v45 }
 0x187   :  { %5899 = vmatmul.msk.f32.gmra.mxu3 %vm401_vm3, %v8308_v45 }
 0x18e   :  { %5868 = vmatmul.msk.f32.gmra.mxu1 %vm401_vm3, %v8322_v48  ;;  %5884 = vmatmul.msk.f32.gmra.mxu2 %vm401_vm3, %v8322_v48 }
 0x18f   :  { %5900 = vmatmul.msk.f32.gmra.mxu3 %vm401_vm3, %v8322_v48 }
 0x193   :  { %v8397_v26 = vpop.f32.mrf.mxu1 }
 0x196   :  { %5885 = vmatmul.msk.f32.vlgmr.msrb.gmra.mxu1 %vm401_vm3, %v8186_v10  ;;  %5918 = vmatmul.msk.f32.vlgmr.msrb.gmra.mxu2 %vm780_vm1, %v774_v49 }
 0x197   :  { %1156 = vmatpush.msrb.mxu2 %v949_v50  ;;  %v811_v50 = vld [vmem:[%s12100_s30 + $0x18] sm:$0xff] }
 0x199   :  { %1157 = vmatpush.msrb.mxu2 %v945_v52  ;;  %v8338_v54 = vpop.f32.mrf.mxu2  ;;  %v808_v52 = vld [vmem:[%s12100_s30] sm:$0xff] }
 0x19b   :  { %1158 = vmatpush.msrb.mxu2 %v941_v53  ;;  %v809_v53 = vld [vmem:[%s12100_s30 + $0x8] sm:$0xff] }
 0x19d   :  { %1159 = vmatpush.msrb.mxu2 %v937_v55  ;;  %v8475_v55 = vld [vmem:[#allocation4 + $0x1e8] sm:$0xff] }
 0x19e   :  { %5901 = vmatmul.msk.f32.vlgmr.msra.gmra.mxu1 %vm401_vm3, %v8186_v10  ;;  %1103 = vmatmul.f32.vlgmr.msra.gmra.mxu2 %v11989_v32 }
 0x19f   :  { %1160 = vmatpush.msrb.mxu2 %v933_v56  ;;  %v8477_v56 = vld [vmem:[#allocation4 + $0x1f0] sm:$0xff] }
 0x1a1   :  { %1161 = vmatpush.msrb.mxu2 %v929_v58  ;;  %v8346_v60 = vpop.f32.mrf.mxu2  ;;  %v8484_v58 = vld [vmem:[#allocation4 + $0x1d0] sm:$0xff] }
 0x1a3   :  { %1162 = vmatpush.msrb.mxu2 %v925_v59 }
 0x1a5   :  { %1163 = vmatpush.msrb.mxu2 %v921_v61  ;;  %v8491_v61 = vld [vmem:[#allocation4 + $0x1a8] sm:$0xff] }
 0x1a6   :  { %5902 = vmatmul.msk.f32.gmra.mxu1 %vm401_vm3, %v8192_v11  ;;  %1106 = vmatmul.f32.gmra.mxu2 %v11989_v32  ;;  %v889_v11 = vld [vmem:[#allocation4 + $0x18] sm:$0xff] }
 0x1a7   :  { %1164 = vmatpush.msrb.mxu2 %v917_v63  ;;  %v8499_v63 = vld [vmem:[#allocation4 + $0x190] sm:$0xff] }
 0x1a9   :  { %1165 = vmatpush.msrb.mxu2 %v913_v0  ;;  %v8357_v3 = vpop.f32.mrf.mxu2  ;;  %v8502_v0 = vld [vmem:[#allocation4 + $0x168] sm:$0xff] }
 0x1aa   :  { %12102 = vst [vmem:[#allocation14_spill] sm:$0xff] %v8357_v3  ;;  %v8710_v3 = vld [vmem:[#allocation8 + $0x130] sm:$0xff] }
 0x1ab   :  { %1166 = vmatpush.msrb.mxu2 %v909_v2  ;;  %12152 = vst [vmem:[#allocation62_spill] sm:$0xff] %v8710_v3 }
 0x1ad   :  { %1167 = vmatpush.msrb.mxu2 %v905_v4  ;;  %v8512_v4 = vld [vmem:[#allocation4 + $0x148] sm:$0xff] }
 0x1ae   :  { %5903 = vmatmul.msk.f32.gmra.mxu1 %vm401_vm3, %v8200_v12  ;;  %v835_v12 = vld [vmem:[%s12100_s30 + $0xd8] sm:$0xff] }
 0x1af   :  { %1168 = vmatpush.msrb.mxu2 %v901_v6  ;;  %868 = vmatpush.msrb.mxu0 %v835_v12  ;;  %v8540_v12 = vld [vmem:[#allocation4 + $0xc8] sm:$0xff] }
 0x1b1   :  { %1169 = vmatpush.msrb.mxu2 %v897_v7  ;;  %v8367_v10 = vpop.f32.mrf.mxu2  ;;  %869 = vmatpush.msrb.mxu0 %v833_v23  ;;  %v8521_v7 = vld [vmem:[#allocation4 + $0x128] sm:$0xff] }
 0x1b2   :  { %12103 = vst [vmem:[#allocation15_spill] sm:$0xff] %v8367_v10 }
 0x1b3   :  { %1170 = vmatpush.msrb.mxu2 %v893_v9  ;;  %870 = vmatpush.msrb.mxu0 %v831_v25  ;;  %v8529_v9 = vld [vmem:[#allocation4 + $0x110] sm:$0xff]  ;;  %v8551_v25 = vld [vmem:[#allocation4 + $0xa8] sm:$0xff] }
 0x1b5   :  { %1171 = vmatpush.msrb.mxu2 %v889_v11  ;;  %871 = vmatpush.msrb.mxu0 %v829_v29  ;;  %v8532_v11 = vld [vmem:[#allocation4 + $0xe8] sm:$0xff]  ;;  %v8559_v29 = vld [vmem:[#allocation4 + $0x90] sm:$0xff] }
 0x1b6   :  { %1172 = vmatmul.f32.vlgmr.msrb.gmra.mxu2 %v11989_v32  ;;  %5904 = vmatmul.msk.f32.gmra.mxu1 %vm401_vm3, %v8208_v13  ;;  %v822_v13 = vld [vmem:[%s12100_s30 + $0x70] sm:$0xff] }
 0x1b7   :  { %854 = vmatpush.msra.mxu3 %v822_v13  ;;  %872 = vmatpush.msrb.mxu0 %v827_v33  ;;  %v8564_v33 = vld [vmem:[#allocation4 + $0x70] sm:$0xff] }
 0x1b9   :  { %v8378_v20 = vpop.f32.mrf.mxu2  ;;  %873 = vmatpush.msrb.mxu0 %v825_v35  ;;  %v8567_v35 = vld [vmem:[#allocation4 + $0x48] sm:$0xff] }
 0x1ba   :  { %12104 = vst [vmem:[#allocation16_spill] sm:$0xff] %v8378_v20  ;;  %v8692_v20 = vld [vmem:[#allocation8 + $0x178] sm:$0xff] }
 0x1bb   :  { %12145 = vst [vmem:[#allocation55_spill] sm:$0xff] %v8692_v20 }
 0x1be   :  { %1175 = vmatmul.f32.gmra.mxu2 %v11989_v32  ;;  %5905 = vmatmul.msk.f32.gmra.mxu1 %vm401_vm3, %v8216_v14  ;;  %v820_v14 = vld [vmem:[%s12100_s30 + $0x60] sm:$0xff] }
 0x1bf   :  { %855 = vmatpush.msra.mxu3 %v820_v14  ;;  %v8553_v14 = vld [vmem:[#allocation4 + $0xb0] sm:$0xff] }
 0x1c1   :  { %v8392_v24 = vpop.f32.mrf.mxu2  ;;  %856 = vmatpush.msra.mxu3 %v818_v30  ;;  %v8562_v30 = vld [vmem:[#allocation4 + $0x68] sm:$0xff] }
 0x1c2   :  { %12105 = vst [vmem:[#allocation17_spill] sm:$0xff] %v8392_v24  ;;  %v8684_v24 = vld [vmem:[#allocation8 + $0x198] sm:$0xff] }
 0x1c3   :  { %857 = vmatpush.msra.mxu3 %v816_v36  ;;  %12142 = vst [vmem:[#allocation52_spill] sm:$0xff] %v8684_v24 }
 0x1c5   :  { %858 = vmatpush.msra.mxu3 %v814_v42  ;;  %v8589_v42 = vld [vmem:[#allocation4 + $0x10] sm:$0xff] }
 0x1c6   :  { %5906 = vmatmul.msk.f32.gmra.mxu1 %vm401_vm3, %v8224_v15  ;;  %v8414_v15 = vpop.f32.mrf.mxu1 }
 0x1c7   :  { %859 = vmatpush.msra.mxu3 %v812_v46  ;;  %v8597_v46 = vpop.f32.mrf.mxu3 }
 0x1c9   :  { %v8404_v27 = vpop.f32.mrf.mxu2 }
 0x1ca   :  { %12106 = vst [vmem:[#allocation18_spill] sm:$0xff] %v8404_v27  ;;  %v1042_v27 = vld [vmem:[#allocation8 + $0xe0] sm:$0xff] }
 0x1ce   :  { %5907 = vmatmul.msk.f32.gmra.mxu1 %vm401_vm3, %v8232_v16  ;;  %v823_v16 = vld [vmem:[%s12100_s30 + $0x78] sm:$0xff]  ;;  %v8437_v40 = vpop.f32.mrf.mxu1 }
 0x1cf   :  { %874 = vmatpush.msrb.mxu0 %v823_v16  ;;  %12109 = vst [vmem:[#allocation21_spill] sm:$0xff] %v8437_v40  ;;  %v8572_v16 = vld [vmem:[#allocation4 + $0x50] sm:$0xff]  ;;  %v8712_v40 = vld [vmem:[#allocation8 + $0x138] sm:$0xff] }
 0x1d0   :  { %12153 = vst [vmem:[#allocation63_spill] sm:$0xff] %v8712_v40 }
 0x1d1   :  { %v8416_v31 = vpop.f32.mrf.mxu2  ;;  %875 = vmatpush.msrb.mxu0 %v821_v37  ;;  %v8579_v37 = vld [vmem:[#allocation4 + $0x28] sm:$0xff] }
 0x1d2   :  { %12107 = vst [vmem:[#allocation19_spill] sm:$0xff] %v8416_v31 }
 0x1d6   :  { %5908 = vmatmul.msk.f32.gmra.mxu1 %vm401_vm3, %v8240_v17  ;;  %v819_v17 = vld [vmem:[%s12100_s30 + $0x58] sm:$0xff]  ;;  %v8467_v51 = vpop.f32.mrf.mxu1 }
 0x1d7   :  { %876 = vmatpush.msrb.mxu0 %v819_v17  ;;  %12111 = vst [vmem:[#allocation23_spill] sm:$0xff] %v8467_v51  ;;  %v8581_v17 = vld [vmem:[#allocation4 + $0x30] sm:$0xff]  ;;  %v8703_v51 = vld [vmem:[#allocation8 + $0x158] sm:$0xff] }
 0x1d8   :  { %12150 = vst [vmem:[#allocation60_spill] sm:$0xff] %v8703_v51 }
 0x1d9   :  { %v8435_v38 = vpop.f32.mrf.mxu2  ;;  %877 = vmatpush.msrb.mxu0 %v817_v41 }
 0x1da   :  { %12108 = vst [vmem:[#allocation20_spill] sm:$0xff] %v8435_v38  ;;  %v8636_v38 = vld [vmem:[#allocation8 + $0x1a0] sm:$0xff] }
 0x1db   :  { %878 = vmatpush.msrb.mxu0 %v815_v44 }
 0x1dd   :  { %879 = vmatpush.msrb.mxu0 %v813_v47 }
 0x1de   :  { %5909 = vmatmul.msk.f32.gmra.mxu1 %vm401_vm3, %v8248_v18  ;;  %v810_v18 = vld [vmem:[%s12100_s30 + $0x10] sm:$0xff]  ;;  %v8507_v2 = vpop.f32.mrf.mxu1 }
 0x1df   :  { %860 = vmatpush.msra.mxu3 %v810_v18  ;;  %880 = vmatpush.msrb.mxu0 %v811_v50  ;;  %12113 = vst [vmem:[#allocation25_spill] sm:$0xff] %v8507_v2  ;;  %v8605_v50 = vpop.f32.mrf.mxu3  ;;  %v8694_v2 = vld [vmem:[#allocation8 + $0x148] sm:$0xff] }
 0x1e0   :  { %12122 = vst [vmem:[#allocation34_spill] sm:$0xff] %v8605_v50  ;;  %v8707_v50 = vld [vmem:[#allocation8 + $0x128] sm:$0xff] }
 0x1e1   :  { %v8459_v49 = vpop.f32.mrf.mxu2  ;;  %861 = vmatpush.msra.mxu3 %v808_v52  ;;  %881 = vmatpush.msrb.mxu0 %v809_v53  ;;  %12146 = vst [vmem:[#allocation56_spill] sm:$0xff] %v8694_v2 }
 0x1e2   :  { %12110 = vst [vmem:[#allocation22_spill] sm:$0xff] %v8459_v49 }
 0x1e3   :  { %1110 = vmatpush.msrb.mxu3 %v8475_v55  ;;  %1133 = vmatpush.msra.mxu0 %v8477_v56  ;;  %12151 = vst [vmem:[#allocation61_spill] sm:$0xff] %v8707_v50 }
 0x1e5   :  { %1111 = vmatpush.msrb.mxu3 %v8482_v57  ;;  %1134 = vmatpush.msra.mxu0 %v8484_v58 }
 0x1e6   :  { %5910 = vmatmul.msk.f32.gmra.mxu1 %vm401_vm3, %v8256_v22  ;;  %v8497_v22 = vld [vmem:[#allocation4 + $0x188] sm:$0xff]  ;;  %v8545_v23 = vpop.f32.mrf.mxu1 }
 0x1e7   :  { %1112 = vmatpush.msrb.mxu3 %v8491_v61  ;;  %1135 = vmatpush.msra.mxu0 %v8493_v62  ;;  %12115 = vst [vmem:[#allocation27_spill] sm:$0xff] %v8545_v23  ;;  %v8686_v23 = vld [vmem:[#allocation8 + $0x168] sm:$0xff] }
 0x1e8   :  { %12143 = vst [vmem:[#allocation53_spill] sm:$0xff] %v8686_v23 }
 0x1e9   :  { %v8488_v59 = vpop.f32.mrf.mxu2  ;;  %1113 = vmatpush.msrb.mxu3 %v8497_v22  ;;  %1136 = vmatpush.msra.mxu0 %v8499_v63 }
 0x1ea   :  { %12112 = vst [vmem:[#allocation24_spill] sm:$0xff] %v8488_v59 }
 0x1eb   :  { %1114 = vmatpush.msrb.mxu3 %v8502_v0  ;;  %1137 = vmatpush.msra.mxu0 %v8504_v1 }
 0x1ed   :  { %1115 = vmatpush.msrb.mxu3 %v8512_v4  ;;  %1138 = vmatpush.msra.mxu0 %v8514_v5 }
 0x1ee   :  { %5911 = vmatmul.msk.f32.gmra.mxu1 %vm401_vm3, %v8264_v28  ;;  %v8527_v28 = vld [vmem:[#allocation4 + $0x108] sm:$0xff]  ;;  %v8583_v41 = vpop.f32.mrf.mxu1 }
 0x1ef   :  { %1116 = vmatpush.msrb.mxu3 %v8521_v7  ;;  %1139 = vmatpush.msra.mxu0 %v8523_v8  ;;  %12118 = vst [vmem:[#allocation30_spill] sm:$0xff] %v8583_v41  ;;  %v1038_v41 = vld [vmem:[#allocation8 + $0xc0] sm:$0xff] }
 0x1f1   :  { %v8518_v6 = vpop.f32.mrf.mxu2  ;;  %1117 = vmatpush.msrb.mxu3 %v8527_v28  ;;  %1140 = vmatpush.msra.mxu0 %v8529_v9 }
 0x1f2   :  { %12114 = vst [vmem:[#allocation26_spill] sm:$0xff] %v8518_v6  ;;  %v8628_v6 = vld [vmem:[#allocation8 + $0x1c0] sm:$0xff] }
 0x1f3   :  { %1118 = vmatpush.msrb.mxu3 %v8532_v11  ;;  %1141 = vmatpush.msra.mxu0 %v8534_v19 }
 0x1f5   :  { %1119 = vmatpush.msrb.mxu3 %v8540_v12  ;;  %1142 = vmatpush.msra.mxu0 %v8542_v21 }
 0x1f6   :  { %5912 = vmatmul.msk.f32.gmra.mxu1 %vm401_vm3, %v8272_v34  ;;  %v8557_v34 = vld [vmem:[#allocation4 + $0x88] sm:$0xff]  ;;  %v8599_v47 = vpop.f32.mrf.mxu1 }
 0x1f7   :  { %1120 = vmatpush.msrb.mxu3 %v8551_v25  ;;  %1143 = vmatpush.msra.mxu0 %v8553_v14  ;;  %12120 = vst [vmem:[#allocation32_spill] sm:$0xff] %v8599_v47  ;;  %v1046_v47 = vld [vmem:[#allocation8 + $0x100] sm:$0xff] }
 0x1f9   :  { %v8548_v13 = vpop.f32.mrf.mxu2  ;;  %1121 = vmatpush.msrb.mxu3 %v8557_v34  ;;  %1144 = vmatpush.msra.mxu0 %v8559_v29 }
 0x1fa   :  { %12116 = vst [vmem:[#allocation28_spill] sm:$0xff] %v8548_v13  ;;  %v1011_v13 = vld [vmem:[#allocation6 + $0x1e8] sm:$0xff] }
 0x1fb   :  { %1122 = vmatpush.msrb.mxu3 %v8562_v30  ;;  %1145 = vmatpush.msra.mxu0 %v8564_v33 }
 0x1fc   :  { %1428 = vmatpush.msrb.mxu1 %v1011_v13  ;;  %v999_v13 = vld [vmem:[#allocation6 + $0x188] sm:$0xff] }
 0x1fd   :  { %1123 = vmatpush.msrb.mxu3 %v8567_v35  ;;  %1146 = vmatpush.msra.mxu0 %v8572_v16 }
 0x1fe   :  { %5913 = vmatmul.msk.f32.gmra.mxu1 %vm401_vm3, %v8280_v39  ;;  %v8587_v39 = vld [vmem:[#allocation4 + $0x8] sm:$0xff]  ;;  %v8607_v52 = vpop.f32.mrf.mxu1 }
 0x1ff   :  { %1124 = vmatpush.msrb.mxu3 %v8579_v37  ;;  %1147 = vmatpush.msra.mxu0 %v8581_v17  ;;  %12123 = vst [vmem:[#allocation35_spill] sm:$0xff] %v8607_v52  ;;  %v1058_v52 = vld [vmem:[#allocation8 + $0x160] sm:$0xff] }
 0x201   :  { %v8576_v36 = vpop.f32.mrf.mxu2  ;;  %1125 = vmatpush.msrb.mxu3 %v8587_v39  ;;  %1148 = vmatpush.msra.mxu0 %v8589_v42 }
 0x202   :  { %12117 = vst [vmem:[#allocation29_spill] sm:$0xff] %v8576_v36 }
 0x206   :  { %5914 = vmatmul.msk.f32.gmra.mxu1 %vm401_vm3, %v8297_v43  ;;  %v6044_v43 = vld [vmem:[%s12124_s17] ss:$0 sm:$0xff]  ;;  %v8633_v49 = vpop.f32.mrf.mxu1 }
 0x207   :  { %12131 = vst [vmem:[#allocation41_spill] sm:$0xff] %v8633_v49  ;;  %v995_v49 = vld [vmem:[#allocation6 + $0x168] sm:$0xff] }
 0x209   :  { %v8595_v44 = vpop.f32.mrf.mxu2 }
 0x20a   :  { %12119 = vst [vmem:[#allocation31_spill] sm:$0xff] %v8595_v44  ;;  %v8614_v44 = vpop.f32.mrf.mxu3 }
 0x20b   :  { %12125 = vst [vmem:[#allocation36_spill] sm:$0xff] %v8614_v44 }
 0x20e   :  { %5915 = vmatmul.msk.f32.gmra.mxu1 %vm401_vm3, %v8308_v45  ;;  %v12126_v45 = vmov 0.0   ;;  %v8641_v31 = vpop.f32.mrf.mxu1 }
 0x20f   :  { %12133 = vst [vmem:[#allocation43_spill] sm:$0xff] %v8641_v31  ;;  %v1014_v31 = vld [vmem:[#allocation8] sm:$0xff] }
 0x211   :  { %v8603_v18 = vpop.f32.mrf.mxu2 }
 0x212   :  { %12121 = vst [vmem:[#allocation33_spill] sm:$0xff] %v8603_v18  ;;  %v8618_v18 = vpop.f32.mrf.mxu3 }
 0x213   :  { %12127 = vst [vmem:[#allocation37_spill] sm:$0xff] %v8618_v18  ;;  %v8688_v18 = vld [vmem:[#allocation8 + $0x170] sm:$0xff] }
 0x214   :  { %12144 = vst [vmem:[#allocation54_spill] sm:$0xff] %v8688_v18 }
 0x216   :  { %5916 = vmatmul.msk.f32.gmra.mxu1 %vm401_vm3, %v8322_v48 }
 0x219   :  { %v805_v53 = vpop.f32.mrf.mxu2 }
 0x21a   :  { %v806_v32 = vadd.f32 %v6044_v43, %v805_v53  ;;  %v8622_v48 = vpop.f32.mrf.mxu3  ;;  %v1007_v43 = vld [vmem:[#allocation6 + $0x1c8] sm:$0xff]  ;;  %v8626_v53 = vld [vmem:[#allocation8 + $0x1e0] sm:$0xff] }
 0x21b   :  { %12128 = vst [vmem:[#allocation38_spill] sm:$0xff] %v8622_v48  ;;  %1429 = vmatpush.msrb.mxu1 %v1007_v43  ;;  %v1062_v43 = vld [vmem:[#allocation8 + $0x180] sm:$0xff] }
 0x21c   :  { %862 = vmatmul.f32.vlgmr.msra.gmra.mxu3 %v806_v32  ;;  %882 = vmatmul.f32.vlgmr.msrb.gmra.mxu0 %v806_v32  ;;  %v1003_v32 = vld [vmem:[#allocation6 + $0x1a8] sm:$0xff]  ;;  %v1030_v48 = vld [vmem:[#allocation8 + $0x80] sm:$0xff] }
 0x21d   :  { %1430 = vmatpush.msrb.mxu1 %v1003_v32  ;;  %1313 = vmatpush.msra.mxu3 %v8626_v53 }
 0x21f   :  { %1314 = vmatpush.msra.mxu3 %v8628_v6  ;;  %1431 = vmatpush.msrb.mxu1 %v999_v13 }
 0x221   :  { %1315 = vmatpush.msra.mxu3 %v8636_v38  ;;  %1432 = vmatpush.msrb.mxu1 %v995_v49  ;;  %v1018_v49 = vld [vmem:[#allocation8 + $0x20] sm:$0xff] }
 0x222   :  { %v8624_v36 = vpop.f32.mrf.mxu3 }
 0x223   :  { %12129 = vst [vmem:[#allocation39_spill] sm:$0xff] %v8624_v36  ;;  %1316 = vmatpush.msra.mxu3 %v1062_v43  ;;  %v1054_v36 = vld [vmem:[#allocation8 + $0x140] sm:$0xff]  ;;  %v8645_v43 = vpop.f32.mrf.mxu1 }
 0x224   :  { %1126 = vmatmul.f32.vlgmr.msrb.gmra.mxu3 %v12126_v45  ;;  %1149 = vmatmul.f32.vlgmr.msra.gmra.mxu0 %v12126_v45  ;;  %12135 = vst [vmem:[#allocation45_spill] sm:$0xff] %v8645_v43  ;;  %v8679_v43 = vld [vmem:[#allocation8 + $0x188] sm:$0xff] }
 0x225   :  { %1317 = vmatpush.msra.mxu3 %v1058_v52  ;;  %v1034_v52 = vld [vmem:[#allocation8 + $0xa0] sm:$0xff]  ;;  %12140 = vst [vmem:[#allocation50_spill] sm:$0xff] %v8679_v43 }
 0x227   :  { %1318 = vmatpush.msra.mxu3 %v1054_v36  ;;  %v1026_v36 = vld [vmem:[#allocation8 + $0x60] sm:$0xff] }
 0x22a   :  { %v8631_v59 = vpop.f32.mrf.mxu3 }
 0x22b   :  { %12130 = vst [vmem:[#allocation40_spill] sm:$0xff] %v8631_v59  ;;  %v1050_v59 = vld [vmem:[#allocation8 + $0x120] sm:$0xff] }
 0x22c   :  { %1129 = vmatmul.f32.gmra.mxu3 %v12126_v45  ;;  %1152 = vmatmul.f32.gmra.mxu0 %v12126_v45 }
 0x22d   :  { %1319 = vmatpush.msra.mxu3 %v1050_v59  ;;  %v1022_v59 = vld [vmem:[#allocation8 + $0x40] sm:$0xff] }
 0x22f   :  { %1320 = vmatpush.msra.mxu3 %v1046_v47  ;;  %v987_v47 = vld [vmem:[#allocation6 + $0x128] sm:$0xff] }
 0x231   :  { %1321 = vmatpush.msra.mxu3 %v1042_v27  ;;  %v8647_v27 = vld [vmem:[#allocation8 + $0x1e8] sm:$0xff] }
 0x232   :  { %v8639_v32 = vpop.f32.mrf.mxu3  ;;  %1336 = vmatpush.msrb.mxu0 %v8647_v27 }
 0x233   :  { %12132 = vst [vmem:[#allocation42_spill] sm:$0xff] %v8639_v32  ;;  %1322 = vmatpush.msra.mxu3 %v1038_v41  ;;  %v991_v32 = vld [vmem:[#allocation6 + $0x148] sm:$0xff] }
 0x234   :  { %1433 = vmatpush.msrb.mxu1 %v991_v32  ;;  %v8656_v32 = vld [vmem:[#allocation8 + $0x1f8] sm:$0xff] }
 0x235   :  { %1323 = vmatpush.msra.mxu3 %v1034_v52  ;;  %v8654_v52 = vld [vmem:[#allocation8 + $0x1f0] sm:$0xff] }
 0x236   :  { %1434 = vmatpush.msrb.mxu1 %v987_v47  ;;  %1359 = vmatpush.msra.mxu2 %v8654_v52  ;;  %v8669_v47 = vld [vmem:[#allocation8 + $0x1b0] sm:$0xff] }
 0x237   :  { %1324 = vmatpush.msra.mxu3 %v1030_v48  ;;  %v8658_v48 = vld [vmem:[#allocation8 + $0x1c8] sm:$0xff]  ;;  %12138 = vst [vmem:[#allocation48_spill] sm:$0xff] %v8669_v47 }
 0x238   :  { %1337 = vmatpush.msrb.mxu0 %v8658_v48 }
 0x239   :  { %1325 = vmatpush.msra.mxu3 %v1026_v36  ;;  %v8661_v36 = vld [vmem:[#allocation8 + $0x1d0] sm:$0xff] }
 0x23a   :  { %v8643_v13 = vpop.f32.mrf.mxu3  ;;  %1360 = vmatpush.msra.mxu2 %v8661_v36 }
 0x23b   :  { %12134 = vst [vmem:[#allocation44_spill] sm:$0xff] %v8643_v13  ;;  %1326 = vmatpush.msra.mxu3 %v1022_v59  ;;  %v8651_v13 = vpop.f32.mrf.mxu1  ;;  %v8663_v59 = vld [vmem:[#allocation8 + $0x1d8] sm:$0xff] }
 0x23c   :  { %12137 = vst [vmem:[#allocation47_spill] sm:$0xff] %v8651_v13  ;;  %v8672_v13 = vld [vmem:[#allocation8 + $0x1b8] sm:$0xff]  ;;  %1361 = vmatpush.msra.mxu2 %v8669_v47 }
 0x23d   :  { %1327 = vmatpush.msra.mxu3 %v1018_v49  ;;  %v8665_v49 = vld [vmem:[#allocation8 + $0x1a8] sm:$0xff]  ;;  %12139 = vst [vmem:[#allocation49_spill] sm:$0xff] %v8672_v13 }
 0x23e   :  { %1338 = vmatpush.msrb.mxu0 %v8665_v49 }
 0x23f   :  { %1328 = vmatpush.msra.mxu3 %v1014_v31  ;;  %v983_v31 = vld [vmem:[#allocation6 + $0x108] sm:$0xff] }
 0x240   :  { %1329 = vmatmul.f32.vlgmr.msra.gmra.mxu3 %v12126_v45  ;;  %1435 = vmatpush.msrb.mxu1 %v983_v31  ;;  %v8701_v31 = vld [vmem:[#allocation8 + $0x150] sm:$0xff] }
 0x241   :  { %1382 = vmatpush.msrb.mxu3 %v8656_v32  ;;  %1339 = vmatpush.msrb.mxu0 %v8679_v43  ;;  %12149 = vst [vmem:[#allocation59_spill] sm:$0xff] %v8701_v31 }
 0x242   :  { %v8649_v41 = vpop.f32.mrf.mxu3 }
 0x243   :  { %12136 = vst [vmem:[#allocation46_spill] sm:$0xff] %v8649_v41  ;;  %1383 = vmatpush.msrb.mxu3 %v8663_v59  ;;  %v8681_v41 = vld [vmem:[#allocation8 + $0x190] sm:$0xff]  ;;  %v8698_v10 = vpop.f32.mrf.mxu1  ;;  %1340 = vmatpush.msrb.mxu0 %v8686_v23  ;;  %v8856_v23 = vld [vmem:[#allocation6 + $0x198] sm:$0xff] }
 0x244   :  { %12141 = vst [vmem:[#allocation51_spill] sm:$0xff] %v8681_v41  ;;  %1362 = vmatpush.msra.mxu2 %v8681_v41  ;;  %v8868_v41 = vld [vmem:[#allocation6 + $0x178] sm:$0xff] }
 0x245   :  { %1384 = vmatpush.msrb.mxu3 %v8672_v13  ;;  %12148 = vst [vmem:[#allocation58_spill] sm:$0xff] %v8698_v10  ;;  %1341 = vmatpush.msrb.mxu0 %v8694_v2  ;;  %v979_v10 = vld [vmem:[#allocation6 + $0xe8] sm:$0xff]  ;;  %v8722_v2 = vld [vmem:[#allocation8 + $0x110] sm:$0xff] }
 0x246   :  { %1363 = vmatpush.msra.mxu2 %v8688_v18  ;;  %12155 = vst [vmem:[#allocation65_spill] sm:$0xff] %v8722_v2  ;;  %1436 = vmatpush.msrb.mxu1 %v979_v10  ;;  %v8727_v18 = vld [vmem:[#allocation8 + $0xe8] sm:$0xff]  ;;  %v8740_v10 = vld [vmem:[#allocation8 + $0xd8] sm:$0xff] }
 0x247   :  { %1385 = vmatpush.msrb.mxu3 %v8684_v24  ;;  %1342 = vmatpush.msrb.mxu0 %v8707_v50  ;;  %12157 = vst [vmem:[#allocation67_spill] sm:$0xff] %v8727_v18  ;;  %v8738_v50 = vld [vmem:[#allocation8 + $0xd0] sm:$0xff] }
 0x248   :  { %1332 = vmatmul.f32.gmra.mxu3 %v12126_v45  ;;  %1364 = vmatpush.msra.mxu2 %v8701_v31  ;;  %v8729_v31 = vld [vmem:[#allocation8 + $0xf0] sm:$0xff]  ;;  %12161 = vst [vmem:[#allocation71_spill] sm:$0xff] %v8738_v50 }
 0x249   :  { %1386 = vmatpush.msrb.mxu3 %v8692_v20  ;;  %v8725_v20 = vld [vmem:[#allocation8 + $0x118] sm:$0xff]  ;;  %12158 = vst [vmem:[#allocation68_spill] sm:$0xff] %v8729_v31 }
 0x24a   :  { %v8696_v44 = vpop.f32.mrf.mxu3  ;;  %1365 = vmatpush.msra.mxu2 %v8710_v3  ;;  %12156 = vst [vmem:[#allocation66_spill] sm:$0xff] %v8725_v20  ;;  %v8733_v3 = vld [vmem:[#allocation8 + $0xf8] sm:$0xff] }
 0x24b   :  { %12147 = vst [vmem:[#allocation57_spill] sm:$0xff] %v8696_v44  ;;  %1387 = vmatpush.msrb.mxu3 %v8703_v51  ;;  %v8720_v44 = vld [vmem:[#allocation8 + $0x108] sm:$0xff]  ;;  %v8746_v51 = vpop.f32.mrf.mxu1 }
 0x24c   :  { %12154 = vst [vmem:[#allocation64_spill] sm:$0xff] %v8720_v44  ;;  %1343 = vmatpush.msrb.mxu0 %v8720_v44  ;;  %1366 = vmatpush.msra.mxu2 %v8722_v2  ;;  %v8755_v2 = vld [vmem:[#allocation8 + $0xb8] sm:$0xff] }
 0x24d   :  { %1388 = vmatpush.msrb.mxu3 %v8712_v40  ;;  %12159 = vst [vmem:[#allocation69_spill] sm:$0xff] %v8733_v3  ;;  %v8735_v40 = vld [vmem:[#allocation8 + $0xc8] sm:$0xff] }
 0x24e   :  { %12160 = vst [vmem:[#allocation70_spill] sm:$0xff] %v8735_v40  ;;  %1344 = vmatpush.msrb.mxu0 %v8727_v18  ;;  %1367 = vmatpush.msra.mxu2 %v8729_v31  ;;  %v8753_v18 = vld [vmem:[#allocation8 + $0xb0] sm:$0xff]  ;;  %v8758_v31 = vld [vmem:[#allocation6 + $0xc8] sm:$0xff] }
 0x24f   :  { %1389 = vmatpush.msrb.mxu3 %v8725_v20  ;;  %12162 = vst [vmem:[#allocation72_spill] sm:$0xff] %v8740_v10  ;;  %v8751_v20 = vld [vmem:[#allocation8 + $0xa8] sm:$0xff]  ;;  %1437 = vmatpush.msrb.mxu1 %v8758_v31 }
 0x250   :  { %12164 = vst [vmem:[#allocation74_spill] sm:$0xff] %v8746_v51  ;;  %1345 = vmatpush.msrb.mxu0 %v8735_v40  ;;  %1368 = vmatpush.msra.mxu2 %v8738_v50  ;;  %v8766_v51 = vld [vmem:[#allocation8 + $0x98] sm:$0xff]  ;;  %v8772_v50 = vld [vmem:[#allocation8 + $0x70] sm:$0xff] }
 0x251   :  { %1390 = vmatpush.msrb.mxu3 %v8733_v3  ;;  %12165 = vst [vmem:[#allocation75_spill] sm:$0xff] %v8751_v20  ;;  %v8760_v3 = vld [vmem:[#allocation8 + $0x88] sm:$0xff]  ;;  %v8812_v40 = vld [vmem:[#allocation6 + $0x1f0] sm:$0xff] }
 0x252   :  { %v8744_v44 = vpop.f32.mrf.mxu3  ;;  %12166 = vst [vmem:[#allocation76_spill] sm:$0xff] %v8753_v18  ;;  %1346 = vmatpush.msrb.mxu0 %v8751_v20  ;;  %1369 = vmatpush.msra.mxu2 %v8753_v18  ;;  %v8774_v20 = vld [vmem:[#allocation8 + $0x78] sm:$0xff]  ;;  %v8783_v18 = vld [vmem:[#allocation8 + $0x50] sm:$0xff] }
 0x253   :  { %12163 = vst [vmem:[#allocation73_spill] sm:$0xff] %v8744_v44  ;;  %1391 = vmatpush.msrb.mxu3 %v8740_v10  ;;  %v8762_v44 = vld [vmem:[#allocation8 + $0x90] sm:$0xff]  ;;  %v8768_v10 = vld [vmem:[#allocation8 + $0x68] sm:$0xff] }
 0x254   :  { %12167 = vst [vmem:[#allocation77_spill] sm:$0xff] %v8755_v2  ;;  %1347 = vmatpush.msrb.mxu0 %v8760_v3  ;;  %1370 = vmatpush.msra.mxu2 %v8762_v44 }
 0x255   :  { %12168 = vst [vmem:[#allocation78_spill] sm:$0xff] %v8758_v31  ;;  %1392 = vmatpush.msrb.mxu3 %v8755_v2  ;;  %v8781_v2 = vld [vmem:[#allocation8 + $0x48] sm:$0xff]  ;;  %v8785_v31 = vld [vmem:[#allocation8 + $0x58] sm:$0xff] }
 0x256   :  { %12169 = vst [vmem:[#allocation79_spill] sm:$0xff] %v8760_v3  ;;  %1348 = vmatpush.msrb.mxu0 %v8768_v10  ;;  %1371 = vmatpush.msra.mxu2 %v8772_v50  ;;  %v8810_v3 = vld [vmem:[#allocation6 + $0x1e0] sm:$0xff] }
 0x257   :  { %12170 = vst [vmem:[#allocation80_spill] sm:$0xff] %v8762_v44  ;;  %1393 = vmatpush.msrb.mxu3 %v8766_v51  ;;  %v8790_v44 = vld [vmem:[#allocation8 + $0x28] sm:$0xff] }
 0x258   :  { %12171 = vst [vmem:[#allocation81_spill] sm:$0xff] %v8766_v51  ;;  %1349 = vmatpush.msrb.mxu0 %v8781_v2  ;;  %1372 = vmatpush.msra.mxu2 %v8783_v18  ;;  %v8792_v51 = vld [vmem:[#allocation8 + $0x30] sm:$0xff] }
 0x259   :  { %12172 = vst [vmem:[#allocation82_spill] sm:$0xff] %v8768_v10  ;;  %1394 = vmatpush.msrb.mxu3 %v8774_v20  ;;  %v8794_v10 = vld [vmem:[#allocation8 + $0x38] sm:$0xff] }
 0x25a   :  { %12173 = vst [vmem:[#allocation83_spill] sm:$0xff] %v8772_v50  ;;  %v8796_v50 = vpop.f32.mrf.mxu3  ;;  %1350 = vmatpush.msrb.mxu0 %v8790_v44  ;;  %1373 = vmatpush.msra.mxu2 %v8792_v51 }
 0x25b   :  { %12174 = vst [vmem:[#allocation84_spill] sm:$0xff] %v8774_v20  ;;  %1395 = vmatpush.msrb.mxu3 %v8785_v31  ;;  %v8798_v20 = vpop.f32.mrf.mxu1 }
 0x25c   :  { %12175 = vst [vmem:[#allocation85_spill] sm:$0xff] %v8781_v2  ;;  %v8803_v2 = vld [vmem:[#allocation8 + $0x8] sm:$0xff] }
 0x25d   :  { %12176 = vst [vmem:[#allocation86_spill] sm:$0xff] %v8783_v18  ;;  %1396 = vmatpush.msrb.mxu3 %v8794_v10  ;;  %v8805_v18 = vld [vmem:[#allocation8 + $0x10] sm:$0xff]  ;;  %1351 = vmatpush.msrb.mxu0 %v8803_v2 }
 0x25e   :  { %12177 = vst [vmem:[#allocation87_spill] sm:$0xff] %v8785_v31  ;;  %v8807_v31 = vld [vmem:[#allocation8 + $0x18] sm:$0xff]  ;;  %1374 = vmatpush.msra.mxu2 %v8805_v18  ;;  %1352 = vmatmul.f32.vlgmr.msrb.gmra.mxu0 %v12126_v45 }
 0x25f   :  { %12178 = vst [vmem:[#allocation88_spill] sm:$0xff] %v8790_v44  ;;  %1397 = vmatpush.msrb.mxu3 %v8807_v31  ;;  %1405 = vmatpush.msra.mxu0 %v8810_v3  ;;  %v8829_v44 = vld [vmem:[#allocation6 + $0x1d8] sm:$0xff] }
 0x260   :  { %12179 = vst [vmem:[#allocation89_spill] sm:$0xff] %v8792_v51  ;;  %1451 = vmatpush.msrb.mxu2 %v8812_v40  ;;  %v8827_v51 = vld [vmem:[#allocation6 + $0x1d0] sm:$0xff]  ;;  %1398 = vmatmul.f32.vlgmr.msrb.gmra.mxu3 %v12126_v45 }
 0x261   :  { %12180 = vst [vmem:[#allocation90_spill] sm:$0xff] %v8794_v10  ;;  %v1104_v10 = vpop.f32.mrf.mxu2  ;;  %1375 = vmatmul.f32.vlgmr.msra.gmra.mxu2 %v12126_v45 }
 0x262   :  { %12181 = vst [vmem:[#allocation91_spill] sm:$0xff] %v8796_v50  ;;  %v8814_v50 = vld [vmem:[#allocation6 + $0x1f8] sm:$0xff]  ;;  %1452 = vmatpush.msrb.mxu2 %v8827_v51  ;;  %v8858_v24 = vpop.f32.mrf.mxu3 }
 0x263   :  { %12182 = vst [vmem:[#allocation92_spill] sm:$0xff] %v8798_v20  ;;  %v8819_v20 = vld [vmem:[%s11970_s9] sm:$0xf]  ;;  %1474 = vmatpush.msra.mxu3 %v8814_v50 }
 0x264   :  { %12183 = vst [vmem:[#allocation93_spill] sm:$0xff] %v8803_v2  ;;  %v8825_v2 = vld [vmem:[#allocation6 + $0x1c0] sm:$0xff]  ;;  %v8924_v13 = vperm.slane %v8819_v20, 3 }
 0x265   :  { %12184 = vst [vmem:[#allocation94_spill] sm:$0xff] %v8805_v18  ;;  %1406 = vmatpush.msra.mxu0 %v8825_v2  ;;  %v8837_v18 = vld [vmem:[#allocation6 + $0x1b0] sm:$0xff]  ;;  %1475 = vmatpush.msra.mxu3 %v8829_v44 }
 0x266   :  { %12185 = vst [vmem:[#allocation95_spill] sm:$0xff] %v8807_v31  ;;  %v8835_v31 = vld [vmem:[#allocation6 + $0x1a0] sm:$0xff]  ;;  %1453 = vmatpush.msrb.mxu2 %v8837_v18  ;;  %1355 = vmatmul.f32.gmra.mxu0 %v12126_v45 }
 0x267   :  { %12186 = vst [vmem:[#allocation96_spill] sm:$0xff] %v8810_v3  ;;  %v8839_v3 = vld [vmem:[#allocation6 + $0x1b8] sm:$0xff]  ;;  %1407 = vmatpush.msra.mxu0 %v8835_v31 }
 0x268   :  { %12187 = vst [vmem:[#allocation97_spill] sm:$0xff] %v8812_v40  ;;  %v8842_v40 = vperm.slane %v8819_v20, 0  ;;  %1476 = vmatpush.msra.mxu3 %v8839_v3 }
 0x269   :  { %12188 = vst [vmem:[#allocation98_spill] sm:$0xff] %v8814_v50  ;;  %v8846_v50 = vld [vmem:[#allocation6 + $0xa8] sm:$0xff]  ;;  %v1107_v43 = vpop.f32.mrf.mxu2  ;;  %1378 = vmatmul.f32.gmra.mxu2 %v12126_v45  ;;  %1401 = vmatmul.f32.gmra.mxu3 %v12126_v45 }
 0x26a   :  { %12189 = vst [vmem:[#allocation99_spill] sm:$0xff] %v8825_v2  ;;  %v8852_v2 = vld [vmem:[#allocation6 + $0x190] sm:$0xff]  ;;  %1438 = vmatpush.msrb.mxu1 %v8846_v50  ;;  %1477 = vmatpush.msra.mxu3 %v8856_v23 }
 0x26b   :  { %12190 = vst [vmem:[#allocation100_spill] sm:$0xff] %v8827_v51  ;;  %v8850_v51 = vld [vmem:[#allocation6 + $0x180] sm:$0xff]  ;;  %1454 = vmatpush.msrb.mxu2 %v8852_v2 }
 0x26c   :  { %12191 = vst [vmem:[#allocation101_spill] sm:$0xff] %v8829_v44  ;;  %v8860_v44 = vpop.f32.mrf.mxu1  ;;  %1408 = vmatpush.msra.mxu0 %v8850_v51  ;;  %1478 = vmatpush.msra.mxu3 %v8868_v41 }
 0x26d   :  { %12192 = vst [vmem:[#allocation102_spill] sm:$0xff] %v8835_v31  ;;  %v8864_v31 = vld [vmem:[#allocation6 + $0x160] sm:$0xff] }
 0x26e   :  { %12193 = vst [vmem:[#allocation103_spill] sm:$0xff] %v8837_v18  ;;  %v8866_v18 = vld [vmem:[#allocation6 + $0x170] sm:$0xff]  ;;  %1409 = vmatpush.msra.mxu0 %v8864_v31 }
 0x26f   :  { %12194 = vst [vmem:[#allocation104_spill] sm:$0xff] %v8839_v3  ;;  %1455 = vmatpush.msrb.mxu2 %v8866_v18 }
 0x270   :  { %12195 = vst [vmem:[#allocation105_spill] sm:$0xff] %v8842_v40 }
 0x271   :  { %12196 = vst [vmem:[#allocation106_spill] sm:$0xff] %v8846_v50  ;;  %v468_v50 = vadd.f32 %v8397_v26, %v8842_v40  ;;  %v8885_v26 = vld [vmem:[#allocation6 + $0x120] sm:$0xff] }
 0x272   :  { %12197 = vst [vmem:[#allocation107_spill] sm:$0xff] %v8850_v51  ;;  %v8877_v51 = vld [vmem:[#allocation6 + $0x150] sm:$0xff] }
 0x273   :  { %12198 = vst [vmem:[#allocation108_spill] sm:$0xff] %v8852_v2  ;;  %v8879_v2 = vld [vmem:[#allocation6 + $0x158] sm:$0xff]  ;;  %v1179_v3 = vadd.f32 %v1104_v10, %v468_v50  ;;  %1456 = vmatpush.msrb.mxu2 %v8877_v51  ;;  %v8895_v50 = vld [vmem:[#allocation6 + $0x100] sm:$0xff]  ;;  %v8897_v10 = vld [vmem:[#allocation6 + $0x110] sm:$0xff] }
 0x274   :  { %12199 = vst [vmem:[#allocation109_spill] sm:$0xff] %v8856_v23  ;;  %1479 = vmatpush.msra.mxu3 %v8879_v2  ;;  %v662_v23 = vpop.f32.mrf.mxu1 }
 0x275   :  { %12200 = vst [vmem:[#allocation110_spill] sm:$0xff] %v8858_v24  ;;  %v8875_v24 = vld [vmem:[#allocation6 + $0x140] sm:$0xff] }
 0x276   :  { %12201 = vst [vmem:[#allocation111_spill] sm:$0xff] %v8864_v31  ;;  %1410 = vmatpush.msra.mxu0 %v8875_v24  ;;  %v8887_v31 = vld [vmem:[#allocation6 + $0x130] sm:$0xff] }
 0x277   :  { %12202 = vst [vmem:[#allocation112_spill] sm:$0xff] %v8866_v18  ;;  %v8889_v18 = vld [vmem:[#allocation6 + $0x138] sm:$0xff]  ;;  %1457 = vmatpush.msrb.mxu2 %v8887_v31 }
 0x278   :  { %12203 = vst [vmem:[#allocation113_spill] sm:$0xff] %v8868_v41  ;;  %1411 = vmatpush.msra.mxu0 %v8885_v26  ;;  %1480 = vmatpush.msra.mxu3 %v8889_v18  ;;  %v8906_v41 = vld [vmem:[#allocation6 + $0xf0] sm:$0xff] }
 0x279   :  { %12204 = vst [vmem:[#allocation114_spill] sm:$0xff] %v8875_v24  ;;  %v8899_v24 = vld [vmem:[#allocation6 + $0x118] sm:$0xff]  ;;  %1458 = vmatpush.msrb.mxu2 %v8897_v10 }
 0x27a   :  { %12205 = vst [vmem:[#allocation115_spill] sm:$0xff] %v8877_v51  ;;  %v5919_v51 = vmul.f32 -1.442695, %v1179_v3  ;;  %1412 = vmatpush.msra.mxu0 %v8895_v50  ;;  %1481 = vmatpush.msra.mxu3 %v8899_v24  ;;  %v8915_v3 = vld [vmem:[#allocation6 + $0xc0] sm:$0xff] }
 0x27b   :  { %12206 = vst [vmem:[#allocation116_spill] sm:$0xff] %v8879_v2  ;;  %v8904_v2 = vld [vmem:[#allocation6 + $0xe0] sm:$0xff]  ;;  %1459 = vmatpush.msrb.mxu2 %v8906_v41 }
 0x27c   :  { %12207 = vst [vmem:[#allocation117_spill] sm:$0xff] %v8885_v26  ;;  %v8908_v26 = vld [vmem:[#allocation6 + $0xf8] sm:$0xff]  ;;  %1413 = vmatpush.msra.mxu0 %v8904_v2  ;;  %6050 = vpow2.f32 %v5919_v51  ;;  %v8940_v51 = vld [vmem:[#allocation6 + $0x80] sm:$0xff] }
 0x27d   :  { %12208 = vst [vmem:[#allocation118_spill] sm:$0xff] %v8887_v31  ;;  %v8911_v31 = vpop.f32.mrf.mxu3  ;;  %1482 = vmatpush.msra.mxu3 %v8908_v26 }
 0x27e   :  { %12209 = vst [vmem:[#allocation119_spill] sm:$0xff] %v8889_v18  ;;  %v471_v18 = vadd.f32 %v8414_v15, %v8842_v40  ;;  %1414 = vmatpush.msra.mxu0 %v8915_v3  ;;  %v8936_v15 = vld [vmem:[#allocation6 + $0x88] sm:$0xff]  ;;  %v8942_v40 = vld [vmem:[#allocation6 + $0x90] sm:$0xff] }
 0x27f   :  { %12210 = vst [vmem:[#allocation120_spill] sm:$0xff] %v8895_v50  ;;  %v8917_v50 = vld [vmem:[#allocation6 + $0xd0] sm:$0xff]  ;;  %1439 = vmatpush.msrb.mxu1 %v8936_v15 }
 0x280   :  { %12211 = vst [vmem:[#allocation121_spill] sm:$0xff] %v8897_v10  ;;  %v8919_v10 = vld [vmem:[#allocation6 + $0xd8] sm:$0xff]  ;;  %1460 = vmatpush.msrb.mxu2 %v8917_v50  ;;  %v1183_v47 = vadd.f32 %v1107_v43, %v471_v18  ;;  %v8949_v18 = vld [vmem:[#allocation6 + $0x68] sm:$0xff]  ;;  %v8953_v43 = vld [vmem:[#allocation6 + $0x60] sm:$0xff] }
 0x281   :  { %12212 = vst [vmem:[#allocation122_spill] sm:$0xff] %v8899_v24  ;;  %v8933_v24 = vld [vmem:[#allocation6 + $0xb8] sm:$0xff]  ;;  %1483 = vmatpush.msra.mxu3 %v8919_v10  ;;  %1440 = vmatpush.msrb.mxu1 %v8949_v18 }
 0x282   :  { %12213 = vst [vmem:[#allocation123_spill] sm:$0xff] %v8904_v2  ;;  %v8931_v2 = vld [vmem:[#allocation6 + $0xb0] sm:$0xff] }
 0x283   :  { %12214 = vst [vmem:[#allocation124_spill] sm:$0xff] %v8906_v41  ;;  %v8929_v41 = vld [vmem:[#allocation6 + $0xa0] sm:$0xff]  ;;  %1461 = vmatpush.msrb.mxu2 %v8931_v2  ;;  %1484 = vmatpush.msra.mxu3 %v8933_v24 }
 0x284   :  { %12215 = vst [vmem:[#allocation125_spill] sm:$0xff] %v8908_v26  ;;  %1415 = vmatpush.msra.mxu0 %v8929_v41 }
 0x285   :  { %12216 = vst [vmem:[#allocation126_spill] sm:$0xff] %v8911_v31  ;;  %v1173_v31 = vpop.f32.mrf.mxu2  ;;  %1462 = vmatpush.msrb.mxu2 %v8942_v40 }
 0x286   :  { %12217 = vst [vmem:[#allocation127_spill] sm:$0xff] %v8915_v3  ;;  %v8947_v3 = vld [vmem:[#allocation6 + $0x98] sm:$0xff]  ;;  %1416 = vmatpush.msra.mxu0 %v8940_v51 }
 0x287   :  { %12218 = vst [vmem:[#allocation128_spill] sm:$0xff] %v8917_v50  ;;  %v663_v50 = vadd.f32 %v662_v23, %v8924_v13  ;;  %1485 = vmatpush.msra.mxu3 %v8947_v3  ;;  %v8959_v23 = vld [vmem:[#allocation6 + $0x78] sm:$0xff] }
 0x288   :  { %12219 = vst [vmem:[#allocation129_spill] sm:$0xff] %v8919_v10  ;;  %v5920_v10 = vmul.f32 -1.442695, %v1183_v47  ;;  %1417 = vmatpush.msra.mxu0 %v8953_v43  ;;  %v8973_v47 = vld [vmem:[#allocation6 + $0x58] sm:$0xff] }
 0x289   :  { %12220 = vst [vmem:[#allocation130_spill] sm:$0xff] %v8924_v13  ;;  %v1182_v26 = vadd.f32 %v1173_v31, %v663_v50  ;;  %1486 = vmatpush.msra.mxu3 %v8959_v23  ;;  %v665_v50 = vpop.f32.mrf.mxu1 }
 0x28a   :  { %12221 = vst [vmem:[#allocation131_spill] sm:$0xff] %v8929_v41  ;;  %v6051_v41 = vpop.eup %6050  ;;  %6052 = vpow2.f32 %v5920_v10  ;;  %v666_v10 = vadd.f32 %v665_v50, %v8924_v13  ;;  %v6566_v13 = vld [vmem:[#allocation4 + $0x1e0] sm:$0xff] }
 0x28b   :  { %12222 = vst [vmem:[#allocation132_spill] sm:$0xff] %v8931_v2  ;;  %v8955_v2 = vld [vmem:[#allocation6 + $0x70] sm:$0xff]  ;;  %v8975_v31 = vadd.f32 1.0, %v6051_v41  ;;  %1487 = vmatpush.msra.mxu3 %v8973_v47  ;;  %v8990_v41 = vld [vmem:[#allocation6 + $0x38] sm:$0xff] }
 0x28c   :  { %12223 = vst [vmem:[#allocation133_spill] sm:$0xff] %v8933_v24  ;;  %v8963_v24 = vld [vmem:[#allocation6 + $0x48] sm:$0xff]  ;;  %1463 = vmatpush.msrb.mxu2 %v8955_v2 }
 0x28d   :  { %12224 = vst [vmem:[#allocation134_spill] sm:$0xff] %v8936_v15  ;;  %1441 = vmatpush.msrb.mxu1 %v8963_v24  ;;  %1488 = vmatpush.msra.mxu3 %v8990_v41  ;;  %6054 = vrcp.f32 %v8975_v31  ;;  %vm1200_vm5 = vweird.f32 %v8975_v31 }
 0x28e   :  { %12225 = vst [vmem:[#allocation135_spill] sm:$0xff] %v8940_v51  ;;  %v8969_v51 = vld [vmem:[#allocation6 + $0x50] sm:$0xff] }
 0x28f   :  { %12226 = vst [vmem:[#allocation136_spill] sm:$0xff] %v8942_v40  ;;  %v8967_v40 = vld [vmem:[#allocation6 + $0x40] sm:$0xff]  ;;  %1464 = vmatpush.msrb.mxu2 %v8969_v51 }
 0x290   :  { %12227 = vst [vmem:[#allocation137_spill] sm:$0xff] %v8947_v3  ;;  %1418 = vmatpush.msra.mxu0 %v8967_v40  ;;  %v8998_v3 = vld [vmem:[#allocation6 + $0x10] sm:$0xff] }
 0x291   :  { %12228 = vst [vmem:[#allocation138_spill] sm:$0xff] %v8949_v18  ;;  %v8983_v18 = vld [vmem:[#allocation6 + $0x30] sm:$0xff] }
 0x292   :  { %12229 = vst [vmem:[#allocation139_spill] sm:$0xff] %v8953_v43  ;;  %v8986_v43 = vperm.slane %v8819_v20, 1  ;;  %1465 = vmatpush.msrb.mxu2 %v8983_v18 }
 0x293   :  { %12230 = vst [vmem:[#allocation140_spill] sm:$0xff] %v8955_v2  ;;  %v8981_v2 = vld [vmem:[#allocation6 + $0x28] sm:$0xff] }
 0x294   :  { %12231 = vst [vmem:[#allocation141_spill] sm:$0xff] %v8959_v23  ;;  %1442 = vmatpush.msrb.mxu1 %v8981_v2  ;;  %v8996_v23 = vld [vmem:[#allocation6 + $0x8] sm:$0xff]  ;;  %1466 = vmatpush.msrb.mxu2 %v8998_v3 }
 0x295   :  { %12233 = vst [vmem:[#allocation143_spill] sm:$0xff] %v8963_v24  ;;  %v5923_v24 = vmul.f32 -1.442695, %v1182_v26  ;;  %v9003_v26 = vld [vmem:[#allocation6 + $0x18] sm:$0xff] }
 0x296   :  { %12234 = vst [vmem:[#allocation144_spill] sm:$0xff] %v8967_v40  ;;  %v1176_v40 = vpop.f32.mrf.mxu2  ;;  %1443 = vmatpush.msrb.mxu1 %v8996_v23  ;;  %1489 = vmatpush.msra.mxu3 %v9003_v26 }
 0x297   :  { %12235 = vst [vmem:[#allocation145_spill] sm:$0xff] %v8969_v51  ;;  %v8994_v51 = vld [vmem:[#allocation6] sm:$0xff]  ;;  %6056 = vpow2.f32 %v5923_v24  ;;  %1694 = vmatpush.msra.mxu2 %v8477_v56 }
 0x298   :  { %12237 = vst [vmem:[#allocation147_spill] sm:$0xff] %v8981_v2  ;;  %v1186_v2 = vadd.f32 %v1176_v40, %v666_v10  ;;  %1671 = vmatpush.msra.mxu1 %v8475_v55  ;;  %v6569_v10 = vld [vmem:[#allocation4 + $0x1d8] sm:$0xff] }
 0x299   :  { %12238 = vst [vmem:[#allocation148_spill] sm:$0xff] %v8983_v18  ;;  %v533_v18 = vadd.f32 %v8338_v54, %v8986_v43  ;;  %v9015_v24 = vpop.f32.mrf.mxu0  ;;  %1695 = vmatpush.msra.mxu2 %v8484_v58  ;;  %v536_v58 = vadd.f32 %v8346_v60, %v8986_v43  ;;  %v6575_v60 = vld [vmem:[#allocation4 + $0x178] sm:$0xff] }
 0x29a   :  { %12239 = vst [vmem:[#allocation149_spill] sm:$0xff] %v8990_v41  ;;  %1672 = vmatpush.msra.mxu1 %v8482_v57  ;;  %v5924_v54 = vmul.f32 -1.442695, %v1186_v2  ;;  %v6571_v57 = vld [vmem:[#allocation4 + $0x1b8] sm:$0xff]  ;;  %v6572_v2 = vld [vmem:[#allocation4 + $0x180] sm:$0xff] }
 0x29b   :  { %12240 = vst [vmem:[#allocation150_spill] sm:$0xff] %v8994_v51  ;;  %1696 = vmatpush.msra.mxu2 %v8493_v62 }
 0x29c   :  { %12241 = vst [vmem:[#allocation151_spill] sm:$0xff] %v8996_v23  ;;  %v6053_v23 = vpop.eup %6052  ;;  %1673 = vmatpush.msra.mxu1 %v8491_v61 }
 0x29d   :  { %v9020_v55 = vadd.f32 1.0, %v6053_v23  ;;  %1697 = vmatpush.msra.mxu2 %v8499_v63  ;;  %v6574_v23 = vld [vmem:[#allocation4 + $0x160] sm:$0xff] }
 0x29e   :  { %1674 = vmatpush.msra.mxu1 %v8497_v22  ;;  %v6576_v63 = vld [vmem:[#allocation4 + $0x140] sm:$0xff] }
 0x29f   :  { %v8961_v15 = vpop.f32.mrf.mxu3  ;;  %1698 = vmatpush.msra.mxu2 %v8504_v1  ;;  %vm1215_vm13 = vweird.f32 %v9020_v55 }
 0x2a0   :  { %12232 = vst [vmem:[#allocation142_spill] sm:$0xff] %v8961_v15  ;;  %v8979_v15 = vld [vmem:[#allocation6 + $0x20] sm:$0xff]  ;;  %1675 = vmatpush.msra.mxu1 %v8502_v0 }
 0x2a1   :  { %12236 = vst [vmem:[#allocation146_spill] sm:$0xff] %v8979_v15  ;;  %1419 = vmatpush.msra.mxu0 %v8979_v15  ;;  %v6567_v15 = vld [vmem:[#allocation4 + $0x1f8] sm:$0xff]  ;;  %1699 = vmatpush.msra.mxu2 %v8514_v5  ;;  %v6578_v0 = vld [vmem:[#allocation4 + $0x120] sm:$0xff] }
 0x2a2   :  { %1717 = vmatpush.msrb.mxu3 %v6567_v15  ;;  %v6573_v15 = vld [vmem:[#allocation4 + $0x198] sm:$0xff]  ;;  %1676 = vmatpush.msra.mxu1 %v8512_v4 }
 0x2a3   :  { %1420 = vmatpush.msra.mxu0 %v8994_v51  ;;  %v6568_v51 = vld [vmem:[#allocation4 + $0x1c0] sm:$0xff]  ;;  %1700 = vmatpush.msra.mxu2 %v8523_v8  ;;  %v6579_v5 = vld [vmem:[#allocation4 + $0x138] sm:$0xff] }
 0x2a4   :  { %1718 = vmatpush.msrb.mxu3 %v6569_v10  ;;  %v9042_v10 = vperm.slane %v8819_v20, 2  ;;  %1677 = vmatpush.msra.mxu1 %v8521_v7  ;;  %v6581_v8 = vld [vmem:[#allocation4 + $0x118] sm:$0xff] }
 0x2a5   :  { %1648 = vmatpush.msrb.mxu0 %v6566_v13  ;;  %v9018_v13 = vpop.eup %6054  ;;  %1701 = vmatpush.msra.mxu2 %v8529_v9  ;;  %v6584_v9 = vld [vmem:[#allocation4 + $0xc0] sm:$0xff] }
 0x2a6   :  { %v6057_v56 = vpop.eup %6056  ;;  %1719 = vmatpush.msrb.mxu3 %v6571_v57  ;;  %v1196_v61 = vmul.f32 %v9018_v13, %v8975_v31  ;;  %v598_v57 = vadd.f32 %v8860_v44, %v9042_v10  ;;  %1678 = vmatpush.msra.mxu1 %v8527_v28  ;;  %v6583_v28 = vld [vmem:[#allocation4 + $0xf8] sm:$0xff]  ;;  %vm1201_vm4 = vweird.f32 %v9018_v13 }
 0x2a7   :  { %v1127_v50 = vpop.f32.mrf.mxu3  ;;  %1649 = vmatpush.msrb.mxu0 %v6568_v51  ;;  %v9031_v62 = vadd.f32 1.0, %v6057_v56  ;;  %v6580_v56 = vld [vmem:[#allocation4 + $0x100] sm:$0xff]  ;;  %1702 = vmatpush.msra.mxu2 %v8534_v19  ;;  %v6585_v19 = vld [vmem:[#allocation4 + $0xd8] sm:$0xff]  ;;  %vm9082_vm6 = vmor %vm1200_vm5, %vm1201_vm4 }
 0x2a8   :  { %v1180_v41 = vadd.f32 %v1127_v50, %v533_v18  ;;  %v6570_v18 = vld [vmem:[#allocation4 + $0x1a0] sm:$0xff]  ;;  %1720 = vmatpush.msrb.mxu3 %v6573_v15  ;;  %1679 = vmatpush.msra.mxu1 %v8532_v11 }
 0x2a9   :  { %1650 = vmatpush.msrb.mxu0 %v6570_v18  ;;  %v1150_v18 = vpop.f32.mrf.mxu0  ;;  %1703 = vmatpush.msra.mxu2 %v8542_v21  ;;  %vm1278_vm1 = vweird.f32 %v9031_v62 }
 0x2aa   :  { %v5921_v40 = vmul.f32 -1.442695, %v1180_v41  ;;  %1721 = vmatpush.msrb.mxu3 %v6575_v60  ;;  %v1181_v15 = vadd.f32 %v1150_v18, %v598_v57  ;;  %1680 = vmatpush.msra.mxu1 %v8540_v12 }
 0x2ab   :  { %1651 = vmatpush.msrb.mxu0 %v6572_v2  ;;  %v6582_v2 = vld [vmem:[#allocation4 + $0xe0] sm:$0xff]  ;;  %1704 = vmatpush.msra.mxu2 %v8553_v14 }
 0x2ac   :  { %6058 = vpow2.f32 %v5921_v40  ;;  %v6577_v40 = vld [vmem:[#allocation4 + $0x158] sm:$0xff]  ;;  %1681 = vmatpush.msra.mxu1 %v8551_v25  ;;  %v1204_v25 = vand.u32 2147483647, %v8975_v31 }
 0x2ad   :  { %6060 = vpow2.f32 %v5924_v54  ;;  %1652 = vmatpush.msrb.mxu0 %v6574_v23  ;;  %v1197_v54 = vsub.f32 1.0, %v1196_v61  ;;  %1722 = vmatpush.msrb.mxu3 %v6577_v40 }
 0x2ae   :  { %6062 = vrcp.f32 %v9020_v55  ;;  %1682 = vmatpush.msra.mxu1 %v8557_v34  ;;  %1705 = vmatpush.msra.mxu2 %v8559_v29  ;;  %vm1205_vm8 = vcmp.eq.f32.partialorder %v1204_v25, 8.507059e+37  ;;  %v6597_v25 = vld [vmem:[#allocation4 + $0x18] sm:$0xff] }
 0x2af   :  { %v1130_v51 = vpop.f32.mrf.mxu3  ;;  %1653 = vmatpush.msrb.mxu0 %v6576_v63  ;;  %6064 = vrcp.f32 %v9031_v62  ;;  %1723 = vmatpush.msrb.mxu3 %v6579_v5  ;;  %v1198_v7 = vmul.f32 %v9018_v13, %v1197_v54  ;;  %v1206_v63 = vand.u32 2147483648, %v8975_v31  ;;  %v6589_v5 = vld [vmem:[#allocation4 + $0x98] sm:$0xff] }
 0x2b0   :  { %v1184_v22 = vadd.f32 %v1130_v51, %v536_v58  ;;  %1683 = vmatpush.msra.mxu1 %v8562_v30  ;;  %1706 = vmatpush.msra.mxu2 %v8564_v33 }
 0x2b1   :  { %1654 = vmatpush.msrb.mxu0 %v6578_v0  ;;  %1724 = vmatpush.msrb.mxu3 %v6581_v8  ;;  %v1199_v23 = vadd.f32 %v9018_v13, %v1198_v7  ;;  %v1153_v40 = vpop.f32.mrf.mxu0  ;;  %v601_v0 = vadd.f32 %v8597_v46, %v9042_v10  ;;  %v1207_v57 = vor.u32 1.1754944e-38, %v1206_v63  ;;  %v6591_v8 = vld [vmem:[#allocation4 + $0x78] sm:$0xff] }
 0x2b2   :  { %v6059_v41 = vpop.eup %6058  ;;  %v5922_v50 = vmul.f32 -1.442695, %v1184_v22  ;;  %v6586_v22 = vld [vmem:[#allocation4 + $0xa0] sm:$0xff]  ;;  %1684 = vmatpush.msra.mxu1 %v8567_v35  ;;  %1707 = vmatpush.msra.mxu2 %v8572_v16 }
 0x2b3   :  { %v9039_v45 = vadd.f32 1.0, %v6059_v41  ;;  %v6061_v1 = vpop.eup %6060  ;;  %1655 = vmatpush.msrb.mxu0 %v6580_v56  ;;  %1725 = vmatpush.msrb.mxu3 %v6583_v28  ;;  %v6587_v41 = vld [vmem:[#allocation4 + $0xb8] sm:$0xff]  ;;  %v6590_v56 = vld [vmem:[#allocation4 + $0x60] sm:$0xff]  ;;  %v1185_v7 = vadd.f32 %v1153_v40, %v601_v0 }
 0x2b4   :  { %6066 = vpow2.f32 %v5922_v50  ;;  %v9046_v4 = vpop.eup %6062  ;;  %v9053_v20 = vadd.f32 1.0, %v6061_v1  ;;  %v6588_v50 = vld [vmem:[#allocation4 + $0x80] sm:$0xff]  ;;  %v1203_v1 = vsel %vm9082_vm6, %v9018_v13, %v1199_v23  ;;  %1685 = vmatpush.msra.mxu1 %v8579_v37  ;;  %1708 = vmatpush.msra.mxu2 %v8581_v17  ;;  %v1219_v37 = vand.u32 2147483647, %v9020_v55 }
 0x2b5   :  { %6068 = vrcp.f32 %v9039_v45  ;;  %1656 = vmatpush.msrb.mxu0 %v6582_v2  ;;  %v1211_v58 = vmul.f32 %v9046_v4, %v9020_v55  ;;  %v9060_v44 = vpop.eup %6064  ;;  %1726 = vmatpush.msrb.mxu3 %v6585_v19  ;;  %v1244_v18 = vand.u32 2147483648, %v9039_v45  ;;  %v1242_v34 = vand.u32 2147483647, %v9039_v45  ;;  %v6592_v2 = vld [vmem:[#allocation4 + $0x40] sm:$0xff] }
 0x2b6   :  { %6070 = vrcp.f32 %v9053_v20  ;;  %v1274_v21 = vmul.f32 %v9060_v44, %v9031_v62  ;;  %vm1238_vm9 = vweird.f32 %v9039_v45  ;;  %v1208_v33 = vsel %vm1205_vm8, %v1207_v57, %v1203_v1  ;;  %v6594_v23 = vld [vmem:[#allocation4 + $0x20] sm:$0xff]  ;;  %1686 = vmatpush.msra.mxu1 %v8587_v39  ;;  %1709 = vmatpush.msra.mxu2 %v8589_v42 }
 0x2b7   :  { %1657 = vmatpush.msrb.mxu0 %v6584_v9  ;;  %v1212_v60 = vsub.f32 1.0, %v1211_v58  ;;  %6072 = vtanh.f32 %v1181_v15  ;;  %1727 = vmatpush.msrb.mxu3 %v6587_v41  ;;  %v1245_v9 = vor.u32 1.1754944e-38, %v1244_v18  ;;  %vm1216_vm11 = vweird.f32 %v9046_v4  ;;  %v12264_v40 = vld [vmem:[#allocation66_spill] sm:$0xff] }
 0x2b8   :  { %v1275_v13 = vsub.f32 1.0, %v1274_v21  ;;  %vm1243_vm12 = vcmp.eq.f32.partialorder %v1242_v34, 8.507059e+37  ;;  %v9127_v21 = vpop.f32.mrf.mxu1  ;;  %v1221_v17 = vand.u32 2147483648, %v9020_v55  ;;  %vm9139_vm14 = vmor %vm1215_vm13, %vm1216_vm11  ;;  %vm1279_vm0 = vweird.f32 %v9060_v44 }
 0x2b9   :  { %1658 = vmatpush.msrb.mxu0 %v6586_v22  ;;  %1728 = vmatpush.msrb.mxu3 %v6589_v5  ;;  %v1213_v29 = vmul.f32 %v9046_v4, %v1212_v60  ;;  %v1284_v18 = vand.u32 2147483648, %v9031_v62  ;;  %vm1280_vm5 = vmor %vm1278_vm1, %vm1279_vm0  ;;  %vm1220_vm6 = vcmp.eq.f32.partialorder %v1219_v37, 8.507059e+37  ;;  %v12261_v37 = vld [vmem:[#allocation63_spill] sm:$0xff] }
 0x2ba   :  { %v6067_v61 = vpop.eup %6066  ;;  %v1276_v19 = vmul.f32 %v9060_v44, %v1275_v13  ;;  %v1222_v34 = vor.u32 1.1754944e-38, %v1221_v17  ;;  %v6602_v17 = vld [vmem:[#allocation8 + $0x100] sm:$0xff] }
 0x2bb   :  { %v9064_v51 = vpop.eup %6068  ;;  %v9069_v11 = vadd.f32 1.0, %v6067_v61  ;;  %1659 = vmatpush.msrb.mxu0 %v6588_v50  ;;  %1729 = vmatpush.msrb.mxu3 %v6591_v8  ;;  %v6593_v61 = vld [vmem:[#allocation4 + $0x58] sm:$0xff]  ;;  %v1214_v16 = vadd.f32 %v9046_v4, %v1213_v29 }
 0x2bc   :  { %v1234_v12 = vmul.f32 %v9064_v51, %v9039_v45  ;;  %vm1239_vm7 = vweird.f32 %v9064_v51  ;;  %v9101_v46 = vpop.eup %6070  ;;  %v1277_v55 = vadd.f32 %v9060_v44, %v1276_v19  ;;  %v6600_v19 = vld [vmem:[#allocation8 + $0x140] sm:$0xff] }
 0x2bd   :  { %6074 = vrcp.f32 %v9069_v11  ;;  %1660 = vmatpush.msrb.mxu0 %v6590_v56  ;;  %v6073_v58 = vpop.eup %6072  ;;  %vm9111_vm10 = vmor %vm1238_vm9, %vm1239_vm7  ;;  %1730 = vmatpush.msrb.mxu3 %v6593_v61  ;;  %v1289_v22 = vmul.f32 %v9101_v46, %v9053_v20  ;;  %v1259_v54 = vand.u32 2147483648, %v9069_v11  ;;  %v1257_v42 = vand.u32 2147483647, %v9069_v11 }
 0x2be   :  { %v1235_v14 = vsub.f32 1.0, %v1234_v12  ;;  %6076 = vtanh.f32 %v1185_v7  ;;  %v6595_v12 = vld [vmem:[#allocation4 + $0x38] sm:$0xff]  ;;  %v1305_v63 = vmul.f32 %v6073_v58, %v1208_v33  ;;  %v1218_v1 = vsel %vm9139_vm14, %v9046_v4, %v1214_v16 }
 0x2bf   :  { %1661 = vmatpush.msrb.mxu0 %v6592_v2  ;;  %1731 = vmatpush.msrb.mxu3 %v6595_v12  ;;  %v1290_v0 = vsub.f32 1.0, %v1289_v22  ;;  %vm1253_vm2 = vweird.f32 %v9069_v11  ;;  %v1260_v29 = vor.u32 1.1754944e-38, %v1259_v54  ;;  %vm1258_vm7 = vcmp.eq.f32.partialorder %v1257_v42, 8.507059e+37  ;;  %v12256_v22 = vld [vmem:[#allocation56_spill] sm:$0xff]  ;;  %v12265_v42 = vld [vmem:[#allocation67_spill] sm:$0xff] }
 0x2c0   :  { %v1236_v31 = vmul.f32 %v9064_v51, %v1235_v14  ;;  %v1281_v13 = vsel %vm1280_vm5, %v9060_v44, %v1277_v55  ;;  %v1223_v7 = vsel %vm1220_vm6, %v1222_v34, %v1218_v1  ;;  %vm1294_vm9 = vweird.f32 %v9101_v46  ;;  %v12258_v12 = vld [vmem:[#allocation60_spill] sm:$0xff]  ;;  %v6604_v1 = vld [vmem:[#allocation8 + $0xc0] sm:$0xff] }
 0x2c1   :  { %1662 = vmatpush.msrb.mxu0 %v6594_v23  ;;  %1732 = vmatpush.msrb.mxu3 %v6597_v25  ;;  %v1291_v57 = vmul.f32 %v9101_v46, %v1290_v0  ;;  %v1299_v44 = vand.u32 2147483648, %v9053_v20  ;;  %v1297_v61 = vand.u32 2147483647, %v9053_v20  ;;  %v12262_v54 = vld [vmem:[#allocation64_spill] sm:$0xff]  ;;  %v12263_v25 = vld [vmem:[#allocation65_spill] sm:$0xff]  ;;  %v6605_v34 = vld [vmem:[#allocation8 + $0xa0] sm:$0xff] }
 0x2c2   :  { %v1237_v15 = vadd.f32 %v9064_v51, %v1236_v31  ;;  %v1282_v31 = vand.u32 2147483647, %v9031_v62  ;;  %v9160_v62 = vpop.f32.mrf.mxu1  ;;  %v12266_v55 = vld [vmem:[#allocation68_spill] sm:$0xff]  ;;  %v12267_v0 = vld [vmem:[#allocation69_spill] sm:$0xff] }
 0x2c3   :  { %v9107_v30 = vpop.eup %6074 }
 0x2c4   :  { %v1241_v35 = vsel %vm9111_vm10, %v9064_v51, %v1237_v15  ;;  %v1249_v45 = vmul.f32 %v9107_v30, %v9069_v11  ;;  %v6596_v51 = vld [vmem:[#allocation4] sm:$0xff]  ;;  %vm1254_vm15 = vweird.f32 %v9107_v30  ;;  %v6077_v56 = vpop.eup %6076  ;;  %v1285_v11 = vor.u32 1.1754944e-38, %v1284_v18 }
 0x2c5   :  { %v1246_v60 = vsel %vm1243_vm12, %v1245_v9, %v1241_v35  ;;  %1663 = vmatpush.msrb.mxu0 %v6596_v51  ;;  %vm1255_vm4 = vmor %vm1253_vm2, %vm1254_vm15  ;;  %v1306_v2 = vmul.f32 %v6077_v56, %v1223_v7  ;;  %vm1283_vm8 = vcmp.eq.f32.partialorder %v1282_v31, 8.507059e+37  ;;  %v1292_v9 = vadd.f32 %v9101_v46, %v1291_v57  ;;  %v12268_v18 = vld [vmem:[#allocation70_spill] sm:$0xff]  ;;  %v12269_v56 = vld [vmem:[#allocation71_spill] sm:$0xff] }
 0x2c6   :  { %v1303_v41 = vmul.f32 0.0, %v1246_v60  ;;  %v1250_v50 = vsub.f32 1.0, %v1249_v45  ;;  %v1286_v33 = vsel %vm1283_vm8, %v1285_v11, %v1281_v13  ;;  %vm1293_vm10 = vweird.f32 %v9053_v20  ;;  %v12255_v45 = vld [vmem:[#allocation55_spill] sm:$0xff]  ;;  %v12270_v31 = vld [vmem:[#allocation72_spill] sm:$0xff]  ;;  %v12273_v13 = vld [vmem:[#allocation77_spill] sm:$0xff] }
 0x2c7   :  { %vm1295_vm11 = vmor %vm1293_vm10, %vm1294_vm9  ;;  %v1300_v35 = vor.u32 1.1754944e-38, %v1299_v44  ;;  %vm1298_vm12 = vcmp.eq.f32.partialorder %v1297_v61, 8.507059e+37  ;;  %v12257_v60 = vld [vmem:[#allocation59_spill] sm:$0xff]  ;;  %v6606_v57 = vld [vmem:[#allocation8 + $0x80] sm:$0xff] }
 0x2c8   :  { %v9135_v14 = vadd.f32 %v1305_v63, %v1303_v41  ;;  %v1251_v39 = vmul.f32 %v9107_v30, %v1250_v50  ;;  %v1296_v23 = vsel %vm1295_vm11, %v9101_v46, %v1292_v9  ;;  %v6601_v63 = vld [vmem:[#allocation8 + $0x120] sm:$0xff]  ;;  %v12259_v41 = vld [vmem:[#allocation61_spill] sm:$0xff]  ;;  %v12274_v7 = vld [vmem:[#allocation79_spill] sm:$0xff] }
 0x2c9   :  { %v1301_v16 = vsel %vm1298_vm12, %v1300_v35, %v1296_v23  ;;  %v12260_v50 = vld [vmem:[#allocation62_spill] sm:$0xff]  ;;  %v12276_v11 = vld [vmem:[#allocation81_spill] sm:$0xff]  ;;  %v12282_v61 = vld [vmem:[#allocation87_spill] sm:$0xff] }
 0x2ca   :  { %6078 = vtanh.f32 %v9135_v14  ;;  %v1252_v5 = vadd.f32 %v9107_v30, %v1251_v39  ;;  %v6603_v39 = vld [vmem:[#allocation8 + $0xe0] sm:$0xff]  ;;  %v12283_v35 = vld [vmem:[#allocation88_spill] sm:$0xff] }
 0x2cb   :  { %v6608_v9 = vld [vmem:[#allocation8 + $0x40] sm:$0xff] }
 0x2cc   :  { %v1256_v4 = vsel %vm1255_vm4, %v9107_v30, %v1252_v5  ;;  %v12281_v44 = vld [vmem:[#allocation86_spill] sm:$0xff] }
 0x2cd   :  { %v1261_v8 = vsel %vm1258_vm7, %v1260_v29, %v1256_v4  ;;  %v12271_v29 = vld [vmem:[#allocation75_spill] sm:$0xff]  ;;  %v12272_v4 = vld [vmem:[#allocation76_spill] sm:$0xff]  ;;  %v6609_v23 = vld [vmem:[#allocation8 + $0x20] sm:$0xff] }
 0x2ce   :  { %v1304_v58 = vmul.f32 0.0, %v1261_v8  ;;  %v12275_v8 = vld [vmem:[#allocation80_spill] sm:$0xff] }
 0x2d0   :  { %v6079_v15 = vpop.eup %6078  ;;  %v9162_v28 = vadd.f32 %v1306_v2, %v1304_v58  ;;  %v6607_v2 = vld [vmem:[#allocation8 + $0x60] sm:$0xff] }
 0x2d1   :  { %v1311_v30 = vmul.f32 %v6079_v15, %v1286_v33  ;;  %v12277_v58 = vld [vmem:[#allocation82_spill] sm:$0xff]  ;;  %v12278_v15 = vld [vmem:[#allocation83_spill] sm:$0xff]  ;;  %v12279_v33 = vld [vmem:[#allocation84_spill] sm:$0xff] }
 0x2d2   :  { %6080 = vtanh.f32 %v9162_v28 }
 0x2d3   :  { %1421 = vmatmul.f32.vlgmr.msra.gmra.mxu0 %v1311_v30  ;;  %1444 = vmatmul.f32.vlgmr.msrb.gmra.mxu1 %v1311_v30 }
 0x2d4   :  { %1467 = vmatmul.f32.vlgmr.msrb.gmra.mxu2 %v1311_v30  ;;  %1490 = vmatmul.f32.vlgmr.msra.gmra.mxu3 %v1311_v30 }
 0x2d5   :  { %1874 = vmatpush.msra.mxu0 %v8626_v53  ;;  %1897 = vmatpush.msrb.mxu1 %v8647_v27  ;;  %v9181_v53 = vpop.f32.mrf.mxu1  ;;  %v12248_v27 = vld [vmem:[#allocation48_spill] sm:$0xff] }
 0x2d6   :  { %1920 = vmatpush.msrb.mxu2 %v8654_v52  ;;  %1943 = vmatpush.msra.mxu3 %v8656_v32  ;;  %v12249_v52 = vld [vmem:[#allocation49_spill] sm:$0xff]  ;;  %v12250_v32 = vld [vmem:[#allocation50_spill] sm:$0xff] }
 0x2d7   :  { %1875 = vmatpush.msra.mxu0 %v8628_v6  ;;  %1898 = vmatpush.msrb.mxu1 %v8658_v48  ;;  %v6598_v6 = vld [vmem:[#allocation8 + $0x180] sm:$0xff]  ;;  %v12251_v48 = vld [vmem:[#allocation51_spill] sm:$0xff] }
 0x2d8   :  { %v6081_v20 = vpop.eup %6080  ;;  %1921 = vmatpush.msrb.mxu2 %v8661_v36  ;;  %1944 = vmatpush.msra.mxu3 %v8663_v59  ;;  %v12252_v36 = vld [vmem:[#allocation52_spill] sm:$0xff]  ;;  %v12253_v59 = vld [vmem:[#allocation53_spill] sm:$0xff] }
 0x2d9   :  { %v1312_v46 = vmul.f32 %v6081_v20, %v1301_v16  ;;  %1876 = vmatpush.msra.mxu0 %v8636_v38  ;;  %1899 = vmatpush.msrb.mxu1 %v8665_v49  ;;  %v6599_v38 = vld [vmem:[#allocation8 + $0x160] sm:$0xff]  ;;  %v12284_v16 = vld [vmem:[#allocation89_spill] sm:$0xff] }
 0x2da   :  { %1922 = vmatpush.msrb.mxu2 %v12248_v27  ;;  %1945 = vmatpush.msra.mxu3 %v12249_v52  ;;  %v12254_v49 = vld [vmem:[#allocation54_spill] sm:$0xff]  ;;  %v12286_v52 = vld [vmem:[#allocation93_spill] sm:$0xff] }
 0x2db   :  { %1424 = vmatmul.f32.gmra.mxu0 %v1312_v46  ;;  %1447 = vmatmul.f32.gmra.mxu1 %v1312_v46  ;;  %v6610_v27 = vld [vmem:[#allocation8] sm:$0xff] }
 0x2dc   :  { %1470 = vmatmul.f32.gmra.mxu2 %v1312_v46  ;;  %1493 = vmatmul.f32.gmra.mxu3 %v1312_v46 }
 0x2dd   :  { %1877 = vmatpush.msra.mxu0 %v6598_v6  ;;  %1900 = vmatpush.msrb.mxu1 %v12250_v32  ;;  %v9194_v51 = vpop.f32.mrf.mxu1  ;;  %v12287_v6 = vld [vmem:[#allocation94_spill] sm:$0xff]  ;;  %v12288_v32 = vld [vmem:[#allocation95_spill] sm:$0xff] }
 0x2de   :  { %1923 = vmatpush.msrb.mxu2 %v12251_v48  ;;  %1946 = vmatpush.msra.mxu3 %v12252_v36  ;;  %v12289_v48 = vld [vmem:[#allocation96_spill] sm:$0xff]  ;;  %v6611_v36 = vld [vmem:[#allocation6 + $0x1e8] sm:$0xff] }
 0x2df   :  { %1878 = vmatpush.msra.mxu0 %v6599_v38  ;;  %1901 = vmatpush.msrb.mxu1 %v12253_v59  ;;  %v12290_v38 = vld [vmem:[#allocation97_spill] sm:$0xff]  ;;  %v12291_v59 = vld [vmem:[#allocation98_spill] sm:$0xff] }
 0x2e0   :  { %1924 = vmatpush.msrb.mxu2 %v12254_v49  ;;  %1947 = vmatpush.msra.mxu3 %v12255_v45  ;;  %v12292_v49 = vld [vmem:[#allocation99_spill] sm:$0xff] }
 0x2e1   :  { %1879 = vmatpush.msra.mxu0 %v6600_v19  ;;  %1902 = vmatpush.msrb.mxu1 %v12256_v22  ;;  %v6612_v45 = vld [vmem:[#allocation6 + $0x1c8] sm:$0xff]  ;;  %v12293_v19 = vld [vmem:[#allocation100_spill] sm:$0xff]  ;;  %v12294_v22 = vld [vmem:[#allocation101_spill] sm:$0xff] }
 0x2e2   :  { %1925 = vmatpush.msrb.mxu2 %v12257_v60  ;;  %1948 = vmatpush.msra.mxu3 %v12258_v12  ;;  %v12295_v60 = vld [vmem:[#allocation102_spill] sm:$0xff]  ;;  %v6613_v12 = vld [vmem:[#allocation6 + $0x1a8] sm:$0xff] }
 0x2e3   :  { %1664 = vmatmul.f32.vlgmr.msrb.gmra.mxu0 %v1311_v30  ;;  %1687 = vmatmul.f32.vlgmr.msra.gmra.mxu1 %v1311_v30 }
 0x2e4   :  { %1710 = vmatmul.f32.vlgmr.msra.gmra.mxu2 %v1311_v30  ;;  %1733 = vmatmul.f32.vlgmr.msrb.gmra.mxu3 %v1311_v30  ;;  %v12280_v30 = vld [vmem:[#allocation85_spill] sm:$0xff] }
 0x2e5   :  { %1880 = vmatpush.msra.mxu0 %v6601_v63  ;;  %1903 = vmatpush.msrb.mxu1 %v12259_v41  ;;  %v9206_v5 = vpop.f32.mrf.mxu1  ;;  %v12296_v63 = vld [vmem:[#allocation103_spill] sm:$0xff]  ;;  %v12297_v41 = vld [vmem:[#allocation104_spill] sm:$0xff] }
 0x2e6   :  { %1926 = vmatpush.msrb.mxu2 %v12260_v50  ;;  %1949 = vmatpush.msra.mxu3 %v12261_v37  ;;  %v12298_v50 = vld [vmem:[#allocation107_spill] sm:$0xff] }
 0x2e7   :  { %1881 = vmatpush.msra.mxu0 %v6602_v17  ;;  %1904 = vmatpush.msrb.mxu1 %v12262_v54  ;;  %v6614_v37 = vld [vmem:[#allocation6 + $0x188] sm:$0xff]  ;;  %v12299_v54 = vld [vmem:[#allocation108_spill] sm:$0xff] }
 0x2e8   :  { %1927 = vmatpush.msrb.mxu2 %v12263_v25  ;;  %1950 = vmatpush.msra.mxu3 %v12264_v40  ;;  %v12300_v25 = vld [vmem:[#allocation109_spill] sm:$0xff]  ;;  %v12301_v40 = vld [vmem:[#allocation111_spill] sm:$0xff] }
 0x2e9   :  { %1882 = vmatpush.msra.mxu0 %v6603_v39  ;;  %1905 = vmatpush.msrb.mxu1 %v12265_v42  ;;  %v6615_v39 = vld [vmem:[#allocation6 + $0x168] sm:$0xff]  ;;  %v12302_v42 = vld [vmem:[#allocation112_spill] sm:$0xff] }
 0x2ea   :  { %1928 = vmatpush.msrb.mxu2 %v12266_v55  ;;  %1951 = vmatpush.msra.mxu3 %v12267_v0  ;;  %v12303_v55 = vld [vmem:[#allocation113_spill] sm:$0xff]  ;;  %v12304_v0 = vld [vmem:[#allocation114_spill] sm:$0xff] }
 0x2eb   :  { %1667 = vmatmul.f32.gmra.mxu0 %v1312_v46  ;;  %1690 = vmatmul.f32.gmra.mxu1 %v1312_v46 }
 0x2ec   :  { %1713 = vmatmul.f32.gmra.mxu2 %v1312_v46  ;;  %1736 = vmatmul.f32.gmra.mxu3 %v1312_v46  ;;  %v12285_v46 = vld [vmem:[#allocation90_spill] sm:$0xff] }
 0x2ed   :  { %1883 = vmatpush.msra.mxu0 %v6604_v1  ;;  %1906 = vmatpush.msrb.mxu1 %v12268_v18  ;;  %v9223_v20 = vpop.f32.mrf.mxu1  ;;  %v6616_v1 = vld [vmem:[#allocation6 + $0x148] sm:$0xff] }
 0x2ee   :  { %1929 = vmatpush.msrb.mxu2 %v12269_v56  ;;  %1952 = vmatpush.msra.mxu3 %v12270_v31  ;;  %v12305_v18 = vld [vmem:[#allocation115_spill] sm:$0xff]  ;;  %v12306_v56 = vld [vmem:[#allocation116_spill] sm:$0xff]  ;;  %v12307_v31 = vld [vmem:[#allocation117_spill] sm:$0xff] }
 0x2ef   :  { %1884 = vmatpush.msra.mxu0 %v6605_v34  ;;  %1907 = vmatpush.msrb.mxu1 %v12271_v29  ;;  %v6617_v34 = vld [vmem:[#allocation6 + $0x128] sm:$0xff]  ;;  %v12308_v29 = vld [vmem:[#allocation118_spill] sm:$0xff] }
 0x2f0   :  { %1930 = vmatpush.msrb.mxu2 %v12272_v4  ;;  %1953 = vmatpush.msra.mxu3 %v12273_v13  ;;  %v12309_v4 = vld [vmem:[#allocation119_spill] sm:$0xff]  ;;  %v12310_v13 = vld [vmem:[#allocation120_spill] sm:$0xff] }
 0x2f1   :  { %1885 = vmatpush.msra.mxu0 %v6606_v57  ;;  %1908 = vmatpush.msrb.mxu1 %v12274_v7  ;;  %v6618_v57 = vld [vmem:[#allocation6 + $0x108] sm:$0xff]  ;;  %v12311_v7 = vld [vmem:[#allocation121_spill] sm:$0xff] }
 0x2f2   :  { %1931 = vmatpush.msrb.mxu2 %v12275_v8  ;;  %1954 = vmatpush.msra.mxu3 %v12276_v11  ;;  %v12312_v8 = vld [vmem:[#allocation122_spill] sm:$0xff]  ;;  %v12313_v11 = vld [vmem:[#allocation123_spill] sm:$0xff] }
 0x2f3   :  { %1886 = vmatpush.msra.mxu0 %v6607_v2  ;;  %1909 = vmatpush.msrb.mxu1 %v12277_v58  ;;  %v6619_v2 = vld [vmem:[#allocation6 + $0xe8] sm:$0xff] }
 0x2f4   :  { %1932 = vmatpush.msrb.mxu2 %v12278_v15  ;;  %1955 = vmatpush.msra.mxu3 %v12279_v33  ;;  %v12314_v15 = vld [vmem:[#allocation124_spill] sm:$0xff]  ;;  %v12315_v33 = vld [vmem:[#allocation125_spill] sm:$0xff] }
 0x2f5   :  { %1887 = vmatpush.msra.mxu0 %v6608_v9  ;;  %1910 = vmatpush.msrb.mxu1 %v12280_v30  ;;  %v9240_v17 = vpop.f32.mrf.mxu1  ;;  %v12316_v9 = vld [vmem:[#allocation127_spill] sm:$0xff]  ;;  %v12317_v30 = vld [vmem:[#allocation78_spill] sm:$0xff] }
 0x2f6   :  { %1933 = vmatpush.msrb.mxu2 %v12281_v44  ;;  %1956 = vmatpush.msra.mxu3 %v12282_v61  ;;  %v12318_v44 = vld [vmem:[#allocation128_spill] sm:$0xff]  ;;  %v12319_v61 = vld [vmem:[#allocation129_spill] sm:$0xff] }
 0x2f7   :  { %1888 = vmatpush.msra.mxu0 %v6609_v23  ;;  %1911 = vmatpush.msrb.mxu1 %v12283_v35  ;;  %v12320_v23 = vld [vmem:[#allocation131_spill] sm:$0xff]  ;;  %v12321_v35 = vld [vmem:[#allocation106_spill] sm:$0xff] }
 0x2f8   :  { %1934 = vmatpush.msrb.mxu2 %v12284_v16  ;;  %1957 = vmatpush.msra.mxu3 %v12285_v46  ;;  %v12322_v16 = vld [vmem:[#allocation132_spill] sm:$0xff]  ;;  %v12323_v46 = vld [vmem:[#allocation133_spill] sm:$0xff] }
 0x2f9   :  { %1889 = vmatpush.msra.mxu0 %v6610_v27  ;;  %1912 = vmatpush.msrb.mxu1 %v12286_v52  ;;  %v12324_v27 = vld [vmem:[#allocation135_spill] sm:$0xff]  ;;  %v12325_v52 = vld [vmem:[#allocation134_spill] sm:$0xff] }
 0x2fa   :  { %1935 = vmatpush.msrb.mxu2 %v12287_v6  ;;  %1958 = vmatpush.msra.mxu3 %v12288_v32  ;;  %v12326_v6 = vld [vmem:[#allocation136_spill] sm:$0xff]  ;;  %v12327_v32 = vld [vmem:[#allocation137_spill] sm:$0xff] }
 0x2fb   :  { %1966 = vmatpush.msrb.mxu0 %v12289_v48  ;;  %1989 = vmatpush.msra.mxu1 %v6611_v36  ;;  %v12328_v48 = vld [vmem:[#allocation139_spill] sm:$0xff]  ;;  %v12329_v36 = vld [vmem:[#allocation138_spill] sm:$0xff] }
 0x2fc   :  { %2012 = vmatpush.msra.mxu2 %v12290_v38  ;;  %2035 = vmatpush.msrb.mxu3 %v12291_v59  ;;  %v12330_v38 = vld [vmem:[#allocation140_spill] sm:$0xff]  ;;  %v12331_v59 = vld [vmem:[#allocation141_spill] sm:$0xff] }
 0x2fd   :  { %1967 = vmatpush.msrb.mxu0 %v12292_v49  ;;  %1990 = vmatpush.msra.mxu1 %v6612_v45  ;;  %v9257_v58 = vpop.f32.mrf.mxu1  ;;  %v12332_v49 = vld [vmem:[#allocation144_spill] sm:$0xff]  ;;  %v12333_v45 = vld [vmem:[#allocation143_spill] sm:$0xff] }
 0x2fe   :  { %2013 = vmatpush.msra.mxu2 %v12293_v19  ;;  %2036 = vmatpush.msrb.mxu3 %v12294_v22  ;;  %v12334_v22 = vld [vmem:[#allocation145_spill] sm:$0xff] }
 0x2ff   :  { %1968 = vmatpush.msrb.mxu0 %v12295_v60  ;;  %1991 = vmatpush.msra.mxu1 %v6613_v12  ;;  %v12335_v60 = vld [vmem:[#allocation146_spill] sm:$0xff]  ;;  %v12336_v12 = vld [vmem:[#allocation147_spill] sm:$0xff] }
 0x300   :  { %2014 = vmatpush.msra.mxu2 %v12296_v63  ;;  %2037 = vmatpush.msrb.mxu3 %v12297_v41  ;;  %v12337_v63 = vld [vmem:[#allocation148_spill] sm:$0xff]  ;;  %v12338_v41 = vld [vmem:[#allocation149_spill] sm:$0xff] }
 0x301   :  { %1969 = vmatpush.msrb.mxu0 %v12298_v50  ;;  %1992 = vmatpush.msra.mxu1 %v6614_v37  ;;  %v12339_v50 = vld [vmem:[#allocation150_spill] sm:$0xff]  ;;  %v12340_v37 = vld [vmem:[#allocation151_spill] sm:$0xff] }
 0x302   :  { %2015 = vmatpush.msra.mxu2 %v12299_v54  ;;  %2038 = vmatpush.msrb.mxu3 %v12300_v25 }
 0x303   :  { %1970 = vmatpush.msrb.mxu0 %v12301_v40  ;;  %1993 = vmatpush.msra.mxu1 %v6615_v39 }
 0x304   :  { %2016 = vmatpush.msra.mxu2 %v12302_v42  ;;  %2039 = vmatpush.msrb.mxu3 %v12303_v55  ;;  %v1353_v42 = vpop.f32.mrf.mxu0 }
 0x305   :  { %1971 = vmatpush.msrb.mxu0 %v12304_v0  ;;  %1994 = vmatpush.msra.mxu1 %v6616_v1  ;;  %v9279_v19 = vpop.f32.mrf.mxu1 }
 0x306   :  { %2017 = vmatpush.msra.mxu2 %v12305_v18  ;;  %2040 = vmatpush.msrb.mxu3 %v12306_v56 }
 0x307   :  { %1972 = vmatpush.msrb.mxu0 %v12307_v31  ;;  %1995 = vmatpush.msra.mxu1 %v6617_v34 }
 0x308   :  { %2018 = vmatpush.msra.mxu2 %v12308_v29  ;;  %2041 = vmatpush.msrb.mxu3 %v12309_v4 }
 0x309   :  { %1973 = vmatpush.msrb.mxu0 %v12310_v13  ;;  %1996 = vmatpush.msra.mxu1 %v6618_v57 }
 0x30a   :  { %2019 = vmatpush.msra.mxu2 %v12311_v7  ;;  %2042 = vmatpush.msrb.mxu3 %v12312_v8 }
 0x30b   :  { %1974 = vmatpush.msrb.mxu0 %v12313_v11  ;;  %1997 = vmatpush.msra.mxu1 %v6619_v2 }
 0x30c   :  { %2020 = vmatpush.msra.mxu2 %v12314_v15  ;;  %2043 = vmatpush.msrb.mxu3 %v12315_v33  ;;  %v1356_v1 = vpop.f32.mrf.mxu0 }
 0x30d   :  { %1975 = vmatpush.msrb.mxu0 %v12316_v9  ;;  %1998 = vmatpush.msra.mxu1 %v12317_v30  ;;  %v9291_v54 = vpop.f32.mrf.mxu1 }
 0x30e   :  { %2021 = vmatpush.msra.mxu2 %v12318_v44  ;;  %2044 = vmatpush.msrb.mxu3 %v12319_v61 }
 0x30f   :  { %1976 = vmatpush.msrb.mxu0 %v12320_v23  ;;  %1999 = vmatpush.msra.mxu1 %v12321_v35 }
 0x310   :  { %2022 = vmatpush.msra.mxu2 %v12322_v16  ;;  %2045 = vmatpush.msrb.mxu3 %v12323_v46 }
 0x311   :  { %1977 = vmatpush.msrb.mxu0 %v12324_v27  ;;  %2000 = vmatpush.msra.mxu1 %v12325_v52 }
 0x312   :  { %2023 = vmatpush.msra.mxu2 %v12326_v6  ;;  %2046 = vmatpush.msrb.mxu3 %v12327_v32 }
 0x313   :  { %1978 = vmatpush.msrb.mxu0 %v12328_v48  ;;  %2001 = vmatpush.msra.mxu1 %v12329_v36 }
 0x314   :  { %2024 = vmatpush.msra.mxu2 %v12330_v38  ;;  %2047 = vmatpush.msrb.mxu3 %v12331_v59 }
 0x315   :  { %1979 = vmatpush.msrb.mxu0 %v12332_v49  ;;  %2002 = vmatpush.msra.mxu1 %v12333_v45  ;;  %v9293_v25 = vpop.f32.mrf.mxu1 }
 0x316   :  { %2025 = vmatpush.msra.mxu2 %v12334_v22  ;;  %2048 = vmatpush.msrb.mxu3 %v8973_v47  ;;  %v1330_v47 = vpop.f32.mrf.mxu3 }
 0x317   :  { %1980 = vmatpush.msrb.mxu0 %v12335_v60  ;;  %2003 = vmatpush.msra.mxu1 %v12336_v12  ;;  %v12341_v60 = vld [vmem:[#allocation105_spill] sm:$0xff] }
 0x318   :  { %2026 = vmatpush.msra.mxu2 %v12337_v63  ;;  %2049 = vmatpush.msrb.mxu3 %v12338_v41  ;;  %v12342_v12 = vld [vmem:[#allocation21_spill] sm:$0xff] }
 0x319   :  { %1981 = vmatpush.msrb.mxu0 %v12339_v50  ;;  %2004 = vmatpush.msra.mxu1 %v12340_v37  ;;  %v474_v63 = vadd.f32 %v12342_v12, %v12341_v60  ;;  %v12343_v37 = vld [vmem:[#allocation14_spill] sm:$0xff] }
 0x31a   :  { %2027 = vmatpush.msra.mxu2 %v8998_v3  ;;  %2050 = vmatpush.msrb.mxu3 %v9003_v26  ;;  %v1078_v3 = vld [vmem:[%s11973_s12] sm:$0xf]  ;;  %v1376_v26 = vpop.f32.mrf.mxu2 }
 0x31b   :  { %v9304_v31 = vperm.slane %v1078_v3, 0  ;;  %v9306_v34 = vperm.slane %v1078_v3, 1  ;;  %v9310_v35 = vperm.slane %v1078_v3, 3 }
 0x31d   :  { %v9295_v40 = vpop.f32.mrf.mxu1 }
 0x31e   :  { %v1333_v39 = vpop.f32.mrf.mxu3 }
 0x322   :  { %v1379_v15 = vpop.f32.mrf.mxu2 }
 0x325   :  { %v9297_v55 = vpop.f32.mrf.mxu1 }
 0x326   :  { %v1399_v0 = vpop.f32.mrf.mxu3 }
 0x32d   :  { %v9299_v18 = vpop.f32.mrf.mxu1 }
 0x32e   :  { %v1402_v56 = vpop.f32.mrf.mxu3 }
 0x350   :  { %v1422_v29 = vpop.f32.mrf.mxu0  ;;  %v1445_v4 = vpop.f32.mrf.mxu1 }
 0x351   :  { %v1423_v13 = vadd.f32 %v1422_v29, %v1330_v47  ;;  %v1446_v57 = vadd.f32 %v1445_v4, %v1353_v42  ;;  %v539_v47 = vadd.f32 %v12343_v37, %v8986_v43  ;;  %v9325_v42 = vperm.slane %v1078_v3, 2 }
 0x353   :  { %v1506_v7 = vadd.f32 %v9304_v31, %v1423_v13  ;;  %v1507_v8 = vadd.f32 %v9306_v34, %v1446_v57 }
 0x355   :  { %v5925_v11 = vmul.f32 -1.442695, %v1506_v7  ;;  %v5927_v2 = vmul.f32 -1.442695, %v1507_v8 }
 0x357   :  { %6082 = vpow2.f32 %v5925_v11  ;;  %v1491_v33 = vpop.f32.mrf.mxu3  ;;  %v1468_v49 = vpop.f32.mrf.mxu2 }
 0x358   :  { %6084 = vpow2.f32 %v5927_v2  ;;  %v1425_v9 = vpop.f32.mrf.mxu0  ;;  %v1448_v30 = vpop.f32.mrf.mxu1  ;;  %v1492_v23 = vadd.f32 %v1491_v33, %v1399_v0 }
 0x359   :  { %v1426_v44 = vadd.f32 %v1425_v9, %v1333_v39  ;;  %v1449_v61 = vadd.f32 %v1448_v30, %v1356_v1  ;;  %v1469_v39 = vadd.f32 %v1468_v49, %v1376_v26 }
 0x35a   :  { %v1509_v48 = vadd.f32 %v9310_v35, %v1492_v23 }
 0x35b   :  { %v1510_v16 = vadd.f32 %v9304_v31, %v1426_v44  ;;  %v1511_v46 = vadd.f32 %v9306_v34, %v1449_v61  ;;  %v1508_v26 = vadd.f32 %v9325_v42, %v1469_v39 }
 0x35c   :  { %v5929_v45 = vmul.f32 -1.442695, %v1509_v48 }
 0x35d   :  { %v6083_v27 = vpop.eup %6082  ;;  %v5926_v52 = vmul.f32 -1.442695, %v1510_v16  ;;  %v5928_v36 = vmul.f32 -1.442695, %v1511_v46  ;;  %v12344_v16 = vld [vmem:[#allocation34_spill] sm:$0xff] }
 0x35e   :  { %v6085_v6 = vpop.eup %6084  ;;  %v9314_v32 = vadd.f32 1.0, %v6083_v27  ;;  %v9345_v46 = vadd.f32 %v12344_v16, %v9042_v10 }
 0x35f   :  { %v9317_v38 = vadd.f32 1.0, %v6085_v6  ;;  %6086 = vpow2.f32 %v5926_v52  ;;  %v1494_v59 = vpop.f32.mrf.mxu3  ;;  %v1471_v9 = vpop.f32.mrf.mxu2  ;;  %v12345_v6 = vld [vmem:[#allocation23_spill] sm:$0xff] }
 0x360   :  { %6088 = vrcp.f32 %v9314_v32  ;;  %v1665_v22 = vpop.f32.mrf.mxu0  ;;  %v1495_v41 = vadd.f32 %v1494_v59, %v1402_v56  ;;  %v1688_v50 = vpop.f32.mrf.mxu1  ;;  %v477_v48 = vadd.f32 %v12345_v6, %v12341_v60  ;;  %v1472_v49 = vadd.f32 %v1471_v9, %v1379_v15 }
 0x361   :  { %6090 = vrcp.f32 %v9317_v38  ;;  %v1740_v1 = vadd.f32 %v1665_v22, %v474_v63  ;;  %v1741_v13 = vadd.f32 %v1688_v50, %v539_v47  ;;  %v12347_v22 = vld [vmem:[#allocation130_spill] sm:$0xff]  ;;  %vm1527_vm13 = vweird.f32 %v9314_v32 }
 0x362   :  { %6092 = vpow2.f32 %v5928_v36  ;;  %v1513_v7 = vadd.f32 %v9310_v35, %v1495_v41  ;;  %v12346_v36 = vld [vmem:[#allocation15_spill] sm:$0xff]  ;;  %v669_v12 = vadd.f32 %v9127_v21, %v12347_v22  ;;  %v9357_v63 = vadd.f32 %v9160_v62, %v12347_v22 }
 0x363   :  { %6094 = vpow2.f32 %v5929_v45  ;;  %v5931_v2 = vmul.f32 -1.442695, %v1740_v1  ;;  %v5933_v33 = vmul.f32 -1.442695, %v1741_v13  ;;  %v542_v59 = vadd.f32 %v12346_v36, %v8986_v43 }
 0x364   :  { %v5930_v30 = vmul.f32 -1.442695, %v1513_v7  ;;  %v1533_v21 = vand.u32 2147483648, %v9314_v32  ;;  %v1571_v7 = vand.u32 2147483648, %v9317_v38  ;;  %vm1565_vm0 = vweird.f32 %v9317_v38 }
 0x365   :  { %v6087_v0 = vpop.eup %6086 }
 0x366   :  { %v9327_v29 = vpop.eup %6088  ;;  %v9329_v4 = vadd.f32 1.0, %v6087_v0  ;;  %v1531_v0 = vand.u32 2147483647, %v9314_v32 }
 0x367   :  { %v9331_v57 = vpop.eup %6090  ;;  %v1523_v8 = vmul.f32 %v9327_v29, %v9314_v32  ;;  %v1734_v45 = vpop.f32.mrf.mxu3  ;;  %vm1528_vm14 = vweird.f32 %v9327_v29 }
 0x368   :  { %v6093_v56 = vpop.eup %6092  ;;  %v1561_v3 = vmul.f32 %v9331_v57, %v9317_v38  ;;  %6096 = vrcp.f32 %v9329_v4  ;;  %v1668_v27 = vpop.f32.mrf.mxu0  ;;  %v1743_v1 = vadd.f32 %v1734_v45, %v669_v12  ;;  %vm1566_vm15 = vweird.f32 %v9331_v57  ;;  %vm9389_vm2 = vmor %vm1527_vm13, %vm1528_vm14 }
 0x369   :  { %v9340_v11 = vadd.f32 1.0, %v6093_v56  ;;  %v6095_v44 = vpop.eup %6094  ;;  %v1524_v61 = vsub.f32 1.0, %v1523_v8  ;;  %v1744_v47 = vadd.f32 %v1668_v27, %v477_v48  ;;  %v1691_v15 = vpop.f32.mrf.mxu1  ;;  %v1512_v56 = vadd.f32 %v9325_v42, %v1472_v49  ;;  %vm9400_vm4 = vmor %vm1565_vm0, %vm1566_vm15 }
 0x36a   :  { %v1562_v23 = vsub.f32 1.0, %v1561_v3  ;;  %v9359_v41 = vadd.f32 1.0, %v6095_v44  ;;  %v5935_v6 = vmul.f32 -1.442695, %v1743_v1  ;;  %vm9393_vm1 = vcmp.eq.f32.partialorder %v1531_v0, 8.507059e+37  ;;  %v1711_v12 = vpop.f32.mrf.mxu2 }
 0x36b   :  { %6098 = vrcp.f32 %v9340_v11  ;;  %v1525_v37 = vmul.f32 %v9327_v29, %v1524_v61  ;;  %v5932_v8 = vmul.f32 -1.442695, %v1744_v47  ;;  %v1572_v49 = vor.u32 1.1754944e-38, %v1571_v7 }
 0x36c   :  { %6100 = vtanh.f32 %v1508_v26  ;;  %v1563_v50 = vmul.f32 %v9331_v57, %v1562_v23  ;;  %v1569_v23 = vand.u32 2147483647, %v9317_v38  ;;  %v1534_v45 = vor.u32 1.1754944e-38, %v1533_v21 }
 0x36d   :  { %6102 = vpow2.f32 %v5931_v2  ;;  %v1745_v2 = vadd.f32 %v1691_v15, %v542_v59  ;;  %v1526_v9 = vadd.f32 %v9327_v29, %v1525_v37  ;;  %vm1542_vm6 = vweird.f32 %v9329_v4 }
 0x36e   :  { %v9347_v52 = vpop.eup %6096  ;;  %6104 = vpow2.f32 %v5933_v33  ;;  %vm1570_vm5 = vcmp.eq.f32.partialorder %v1569_v23, 8.507059e+37  ;;  %v1742_v1 = vadd.f32 %v1711_v12, %v9345_v46  ;;  %vm1580_vm7 = vweird.f32 %v9340_v11 }
 0x36f   :  { %6106 = vpow2.f32 %v5930_v30  ;;  %v1538_v62 = vmul.f32 %v9347_v52, %v9329_v4  ;;  %v1564_v30 = vadd.f32 %v9331_v57, %v1563_v50  ;;  %v5934_v59 = vmul.f32 -1.442695, %v1745_v2 }
 0x370   :  { %6108 = vrcp.f32 %v9359_v41  ;;  %v1530_v50 = vsel %vm9389_vm2, %v9327_v29, %v1526_v9  ;;  %v1548_v29 = vand.u32 2147483648, %v9329_v4  ;;  %v1586_v2 = vand.u32 2147483648, %v9340_v11 }
 0x371   :  { %v9364_v39 = vpop.eup %6098  ;;  %6110 = vpow2.f32 %v5932_v8  ;;  %v1539_v16 = vsub.f32 1.0, %v1538_v62  ;;  %v1568_v37 = vsel %vm9400_vm4, %v9331_v57, %v1564_v30  ;;  %v1546_v62 = vand.u32 2147483647, %v9329_v4  ;;  %v1737_v57 = vpop.f32.mrf.mxu3 }
 0x372   :  { %v6101_v13 = vpop.eup %6100  ;;  %v1576_v26 = vmul.f32 %v9364_v39, %v9340_v11  ;;  %v1535_v7 = vsel %vm9393_vm1, %v1534_v45, %v1530_v50  ;;  %vm1543_vm8 = vweird.f32 %v9347_v52  ;;  %v1584_v48 = vand.u32 2147483647, %v9340_v11 }
 0x373   :  { %v6103_v3 = vpop.eup %6102  ;;  %v1540_v0 = vmul.f32 %v9347_v52, %v1539_v16  ;;  %vm1581_vm9 = vweird.f32 %v9364_v39  ;;  %vm9447_vm10 = vmor %vm1542_vm6, %vm1543_vm8  ;;  %vm9451_vm11 = vcmp.eq.f32.partialorder %v1546_v62, 8.507059e+37  ;;  %vm1605_vm6 = vweird.f32 %v9359_v41 }
 0x374   :  { %v6105_v33 = vpop.eup %6104  ;;  %v9379_v44 = vadd.f32 1.0, %v6103_v3  ;;  %v1577_v32 = vsub.f32 1.0, %v1576_v26  ;;  %vm9468_vm12 = vmor %vm1580_vm7, %vm1581_vm9  ;;  %vm9472_vm13 = vcmp.eq.f32.partialorder %v1584_v48, 8.507059e+37 }
 0x375   :  { %v6107_v61 = vpop.eup %6106  ;;  %v9382_v27 = vadd.f32 1.0, %v6105_v33  ;;  %v1541_v9 = vadd.f32 %v9347_v52, %v1540_v0 }
 0x376   :  { %6112 = vrcp.f32 %v9379_v44  ;;  %v9411_v47 = vadd.f32 1.0, %v6107_v61  ;;  %v9413_v15 = vpop.eup %6108  ;;  %v1578_v8 = vmul.f32 %v9364_v39, %v1577_v32  ;;  %v1747_v61 = vadd.f32 %v1737_v57, %v9357_v63 }
 0x377   :  { %6114 = vrcp.f32 %v9382_v27  ;;  %v6111_v21 = vpop.eup %6110  ;;  %v1601_v26 = vmul.f32 %v9413_v15, %v9359_v41  ;;  %v1549_v32 = vor.u32 1.1754944e-38, %v1548_v29  ;;  %v1545_v0 = vsel %vm9447_vm10, %v9347_v52, %v1541_v9 }
 0x378   :  { %6116 = vtanh.f32 %v1512_v56  ;;  %v1573_v56 = vsel %vm1570_vm5, %v1572_v49, %v1568_v37  ;;  %v9430_v46 = vadd.f32 1.0, %v6111_v21  ;;  %v1579_v49 = vadd.f32 %v9364_v39, %v1578_v8 }
 0x379   :  { %6118 = vpow2.f32 %v5935_v6  ;;  %v1630_v16 = vmul.f32 0.0, %v1573_v56  ;;  %v1632_v6 = vmul.f32 %v6101_v13, %v1535_v7  ;;  %v1602_v50 = vsub.f32 1.0, %v1601_v26 }
 0x37a   :  { %6120 = vpow2.f32 %v5934_v59  ;;  %v1587_v37 = vor.u32 1.1754944e-38, %v1586_v2  ;;  %v5936_v57 = vmul.f32 -1.442695, %v1747_v61  ;;  %v1583_v56 = vsel %vm9468_vm12, %v9364_v39, %v1579_v49 }
 0x37b   :  { %6122 = vrcp.f32 %v9411_v47  ;;  %v9462_v7 = vadd.f32 %v1632_v6, %v1630_v16  ;;  %vm1761_vm14 = vweird.f32 %v9379_v44  ;;  %v1550_v11 = vsel %vm9451_vm11, %v1549_v32, %v1545_v0 }
 0x37c   :  { %v9424_v3 = vpop.eup %6112  ;;  %6124 = vrcp.f32 %v9430_v46  ;;  %v1765_v2 = vand.u32 2147483647, %v9379_v44  ;;  %v1603_v9 = vmul.f32 %v9413_v15, %v1602_v50  ;;  %vm1799_vm15 = vweird.f32 %v9382_v27 }
 0x37d   :  { %v9432_v33 = vpop.eup %6114  ;;  %v1757_v30 = vmul.f32 %v9424_v3, %v9379_v44  ;;  %6126 = vtanh.f32 %v1742_v1  ;;  %v1588_v61 = vsel %vm9472_vm13, %v1587_v37, %v1583_v56  ;;  %vm1762_vm0 = vweird.f32 %v9424_v3 }
 0x37e   :  { %v6117_v23 = vpop.eup %6116  ;;  %v1795_v36 = vmul.f32 %v9432_v33, %v9382_v27  ;;  %v1767_v6 = vand.u32 2147483648, %v9379_v44  ;;  %vm1800_vm2 = vweird.f32 %v9432_v33  ;;  %vm1606_vm1 = vweird.f32 %v9413_v15  ;;  %vm9512_vm4 = vmor %vm1761_vm14, %vm1762_vm0 }
 0x37f   :  { %v6119_v59 = vpop.eup %6118  ;;  %v1758_v45 = vsub.f32 1.0, %v1757_v30  ;;  %v1805_v30 = vand.u32 2147483648, %v9382_v27  ;;  %v1633_v48 = vmul.f32 %v6117_v23, %v1550_v11  ;;  %v1631_v13 = vmul.f32 0.0, %v1588_v61  ;;  %vm9520_vm5 = vmor %vm1799_vm15, %vm1800_vm2 }
 0x380   :  { %v6121_v38 = vpop.eup %6120  ;;  %v1796_v12 = vsub.f32 1.0, %v1795_v36  ;;  %v9481_v8 = vadd.f32 1.0, %v6119_v59  ;;  %v1611_v32 = vand.u32 2147483648, %v9359_v41  ;;  %v1609_v0 = vand.u32 2147483647, %v9359_v41  ;;  %vm9533_vm8 = vmor %vm1605_vm6, %vm1606_vm1 }
 0x381   :  { %v9458_v21 = vadd.f32 1.0, %v6121_v38  ;;  %v9460_v4 = vpop.eup %6122  ;;  %v1759_v52 = vmul.f32 %v9424_v3, %v1758_v45  ;;  %v1803_v45 = vand.u32 2147483647, %v9382_v27  ;;  %v1604_v38 = vadd.f32 %v9413_v15, %v1603_v9 }
 0x382   :  { %v1797_v26 = vmul.f32 %v9432_v33, %v1796_v12  ;;  %v9489_v1 = vpop.eup %6124  ;;  %v1616_v39 = vmul.f32 %v9460_v4, %v9411_v47  ;;  %vm1766_vm7 = vcmp.eq.f32.partialorder %v1765_v2, 8.507059e+37  ;;  %v1768_v62 = vor.u32 1.1754944e-38, %v1767_v6  ;;  %v1714_v2 = vpop.f32.mrf.mxu2 }
 0x383   :  { %6128 = vrcp.f32 %v9458_v21  ;;  %v1760_v16 = vadd.f32 %v9424_v3, %v1759_v52  ;;  %v1772_v36 = vmul.f32 %v9489_v1, %v9430_v46  ;;  %v6127_v59 = vpop.eup %6126  ;;  %v1806_v52 = vor.u32 1.1754944e-38, %v1805_v30  ;;  %v12368_v30 = vld [vmem:[#allocation36_spill] sm:$0xff] }
 0x384   :  { %6130 = vpow2.f32 %v5936_v57  ;;  %v1798_v49 = vadd.f32 %v9432_v33, %v1797_v26  ;;  %v1617_v12 = vsub.f32 1.0, %v1616_v39  ;;  %v1608_v41 = vsel %vm9533_vm8, %v9413_v15, %v1604_v38 }
 0x385   :  { %6132 = vrcp.f32 %v9481_v8  ;;  %v1764_v37 = vsel %vm9512_vm4, %v9424_v3, %v1760_v16  ;;  %v1773_v29 = vsub.f32 1.0, %v1772_v36  ;;  %v1612_v39 = vor.u32 1.1754944e-38, %v1611_v32 }
 0x386   :  { %6134 = vtanh.f32 %v9462_v7  ;;  %v1802_v3 = vsel %vm9520_vm5, %v9432_v33, %v1798_v49  ;;  %v1769_v26 = vsel %vm1766_vm7, %v1768_v62, %v1764_v37  ;;  %v1618_v61 = vmul.f32 %v9460_v4, %v1617_v12  ;;  %v6620_v62 = vld [vmem:[#allocation4 + $0x1e0] sm:$0xff] }
 0x387   :  { %v607_v16 = vadd.f32 %v12368_v30, %v9042_v10  ;;  %v9550_v6 = vadd.f32 %v1633_v48, %v1631_v13  ;;  %vm1804_vm9 = vcmp.eq.f32.partialorder %v1803_v45, 8.507059e+37  ;;  %vm1610_vm10 = vcmp.eq.f32.partialorder %v1609_v0, 8.507059e+37 }
 0x388   :  { %v1807_v36 = vsel %vm1804_vm9, %v1806_v52, %v1802_v3  ;;  %v1774_v49 = vmul.f32 %v9489_v1, %v1773_v29  ;;  %v1613_v38 = vsel %vm1610_vm10, %v1612_v39, %v1608_v41  ;;  %v1866_v23 = vmul.f32 %v6127_v59, %v1769_v26  ;;  %v6621_v29 = vld [vmem:[#allocation4 + $0x1e8] sm:$0xff]  ;;  %v6623_v41 = vld [vmem:[#allocation4 + $0x1f8] sm:$0xff]  ;;  %v6624_v39 = vld [vmem:[#allocation4 + $0x1c0] sm:$0xff] }
 0x389   :  { %v9508_v63 = vpop.eup %6128  ;;  %v1746_v50 = vadd.f32 %v1714_v2, %v607_v16  ;;  %vm1777_vm11 = vweird.f32 %v9489_v1  ;;  %v1619_v48 = vadd.f32 %v9460_v4, %v1618_v61  ;;  %vm1621_vm12 = vweird.f32 %v9460_v4  ;;  %v6638_v2 = vld [vmem:[#allocation4 + $0x170] sm:$0xff] }
 0x38a   :  { %v1810_v44 = vmul.f32 %v9508_v63, %v9458_v21  ;;  %v6131_v57 = vpop.eup %6130  ;;  %v1864_v45 = vmul.f32 %v1807_v36, %v9135_v14  ;;  %vm1815_vm13 = vweird.f32 %v9508_v63  ;;  %v1626_v59 = vand.u32 2147483648, %v9411_v47  ;;  %v6627_v36 = vld [vmem:[#allocation4 + $0x1d8] sm:$0xff] }
 0x38b   :  { %v9543_v11 = vpop.eup %6132  ;;  %v9545_v9 = vadd.f32 1.0, %v6131_v57  ;;  %v1775_v13 = vadd.f32 %v9489_v1, %v1774_v49  ;;  %vm1620_vm14 = vweird.f32 %v9411_v47  ;;  %v1820_v14 = vand.u32 2147483648, %v9458_v21 }
 0x38c   :  { %v1811_v56 = vsub.f32 1.0, %v1810_v44  ;;  %v6135_v33 = vpop.eup %6134  ;;  %v1835_v32 = vmul.f32 %v9543_v11, %v9481_v8  ;;  %v1624_v44 = vand.u32 2147483647, %v9411_v47  ;;  %vm1776_vm15 = vweird.f32 %v9430_v46  ;;  %vm9573_vm0 = vmor %vm1620_vm14, %vm1621_vm12 }
 0x38d   :  { %v1638_v12 = vmul.f32 %v6135_v33, %v1613_v38  ;;  %6136 = vrcp.f32 %v9545_v9  ;;  %v1782_v57 = vand.u32 2147483648, %v9430_v46  ;;  %vm1814_vm2 = vweird.f32 %v9458_v21  ;;  %vm9580_vm1 = vmor %vm1776_vm15, %vm1777_vm11  ;;  %v6626_v33 = vld [vmem:[#allocation4 + $0x1d0] sm:$0xff] }
 0x38e   :  { %v1812_v15 = vmul.f32 %v9508_v63, %v1811_v56  ;;  %6138 = vtanh.f32 %v9550_v6  ;;  %v1836_v0 = vsub.f32 1.0, %v1835_v32  ;;  %v1780_v52 = vand.u32 2147483647, %v9430_v46  ;;  %v6622_v56 = vld [vmem:[#allocation4 + $0x1f0] sm:$0xff]  ;;  %vm9591_vm4 = vmor %vm1814_vm2, %vm1815_vm13  ;;  %v6625_v46 = vld [vmem:[#allocation4 + $0x1c8] sm:$0xff] }
 0x38f   :  { %1890 = vmatmul.f32.vlgmr.msra.gmra.mxu0 %v1638_v12  ;;  %1913 = vmatmul.f32.vlgmr.msrb.gmra.mxu1 %v1638_v12  ;;  %v1818_v3 = vand.u32 2147483647, %v9458_v21  ;;  %v1623_v26 = vsel %vm9573_vm0, %v9460_v4, %v1619_v48  ;;  %6140 = vtanh.f32 %v1746_v50  ;;  %v1627_v21 = vor.u32 1.1754944e-38, %v1626_v59  ;;  %v6629_v50 = vld [vmem:[#allocation4 + $0x1a8] sm:$0xff] }
 0x390   :  { %v1813_v37 = vadd.f32 %v9508_v63, %v1812_v15  ;;  %1936 = vmatmul.f32.vlgmr.msrb.gmra.mxu2 %v1638_v12  ;;  %1959 = vmatmul.f32.vlgmr.msra.gmra.mxu3 %v1638_v12  ;;  %v9597_v30 = vadd.f32 %v1866_v23, %v1864_v45  ;;  %v1779_v4 = vsel %vm9580_vm1, %v9489_v1, %v1775_v13  ;;  %vm1625_vm5 = vcmp.eq.f32.partialorder %v1624_v44, 8.507059e+37  ;;  %v6628_v23 = vld [vmem:[#allocation4 + $0x1a0] sm:$0xff]  ;;  %v6630_v1 = vld [vmem:[#allocation4 + $0x1b0] sm:$0xff]  ;;  %v6633_v44 = vld [vmem:[#allocation4 + $0x188] sm:$0xff] }
 0x391   :  { %2200 = vmatpush.msra.mxu0 %v6620_v62  ;;  %2223 = vmatpush.msrb.mxu1 %v6621_v29  ;;  %v1837_v49 = vmul.f32 %v9543_v11, %v1836_v0  ;;  %v1821_v38 = vor.u32 1.1754944e-38, %v1820_v14  ;;  %v1783_v32 = vor.u32 1.1754944e-38, %v1782_v57  ;;  %v1628_v12 = vsel %vm1625_vm5, %v1627_v21, %v1623_v26  ;;  %v6634_v0 = vld [vmem:[#allocation4 + $0x190] sm:$0xff]  ;;  %v6635_v14 = vld [vmem:[#allocation4 + $0x198] sm:$0xff] }
 0x392   :  { %2246 = vmatpush.msrb.mxu2 %v6622_v56  ;;  %2269 = vmatpush.msra.mxu3 %v6623_v41  ;;  %v1817_v16 = vsel %vm9591_vm4, %v9508_v63, %v1813_v37  ;;  %vm1781_vm6 = vcmp.eq.f32.partialorder %v1780_v52, 8.507059e+37  ;;  %vm1819_vm7 = vcmp.eq.f32.partialorder %v1818_v3, 8.507059e+37  ;;  %v6631_v63 = vld [vmem:[#allocation4 + $0x1b8] sm:$0xff]  ;;  %v6632_v37 = vld [vmem:[#allocation4 + $0x180] sm:$0xff]  ;;  %6142 = vtanh.f32 %v9597_v30  ;;  %v6637_v41 = vld [vmem:[#allocation4 + $0x168] sm:$0xff] }
 0x393   :  { %2201 = vmatpush.msra.mxu0 %v6624_v39  ;;  %2224 = vmatpush.msrb.mxu1 %v6625_v46  ;;  %v9595_v61 = vpop.eup %6136  ;;  %v1784_v45 = vsel %vm1781_vm6, %v1783_v32, %v1779_v4  ;;  %v1822_v59 = vsel %vm1819_vm7, %v1821_v38, %v1817_v16  ;;  %v1838_v62 = vadd.f32 %v9543_v11, %v1837_v49  ;;  %vm1840_vm8 = vweird.f32 %v9543_v11  ;;  %v6636_v56 = vld [vmem:[#allocation4 + $0x160] sm:$0xff]  ;;  %v6641_v46 = vld [vmem:[#allocation4 + $0x148] sm:$0xff]  ;;  %v6646_v32 = vld [vmem:[#allocation4 + $0x130] sm:$0xff] }
 0x394   :  { %2247 = vmatpush.msrb.mxu2 %v6626_v33  ;;  %2270 = vmatpush.msra.mxu3 %v6627_v36  ;;  %v6139_v15 = vpop.eup %6138  ;;  %v1850_v13 = vmul.f32 %v9595_v61, %v9545_v9  ;;  %v1845_v29 = vand.u32 2147483648, %v9481_v8  ;;  %v1865_v27 = vmul.f32 %v1822_v59, %v9162_v28  ;;  %vm1839_vm9 = vweird.f32 %v9481_v8  ;;  %v6639_v28 = vld [vmem:[#allocation4 + $0x178] sm:$0xff]  ;;  %v6642_v33 = vld [vmem:[#allocation4 + $0x150] sm:$0xff]  ;;  %v6644_v49 = vld [vmem:[#allocation4 + $0x120] sm:$0xff] }
 0x395   :  { %2202 = vmatpush.msra.mxu0 %v6628_v23  ;;  %2225 = vmatpush.msrb.mxu1 %v6629_v50  ;;  %v1639_v48 = vmul.f32 %v6139_v15, %v1628_v12  ;;  %v6141_v57 = vpop.eup %6140  ;;  %v1843_v52 = vand.u32 2147483647, %v9481_v8  ;;  %vm9617_vm10 = vmor %vm1839_vm9, %vm1840_vm8  ;;  %v6640_v8 = vld [vmem:[#allocation4 + $0x140] sm:$0xff]  ;;  %v6643_v36 = vld [vmem:[#allocation4 + $0x158] sm:$0xff]  ;;  %vm1855_vm12 = vweird.f32 %v9595_v61  ;;  %v1860_v59 = vand.u32 2147483648, %v9545_v9 }
 0x396   :  { %2248 = vmatpush.msrb.mxu2 %v6630_v1  ;;  %2271 = vmatpush.msra.mxu3 %v6631_v63  ;;  %v1867_v47 = vmul.f32 %v6141_v57, %v1784_v45  ;;  %v1851_v3 = vsub.f32 1.0, %v1850_v13  ;;  %v1842_v39 = vsel %vm9617_vm10, %v9543_v11, %v1838_v62  ;;  %v1846_v4 = vor.u32 1.1754944e-38, %v1845_v29  ;;  %v6645_v38 = vld [vmem:[#allocation4 + $0x128] sm:$0xff]  ;;  %v6647_v23 = vld [vmem:[#allocation4 + $0x138] sm:$0xff]  ;;  %v6648_v12 = vld [vmem:[#allocation4 + $0x100] sm:$0xff] }
 0x397   :  { %2203 = vmatpush.msra.mxu0 %v6632_v37  ;;  %2226 = vmatpush.msrb.mxu1 %v6633_v44  ;;  %vm1844_vm11 = vcmp.eq.f32.partialorder %v1843_v52, 8.507059e+37  ;;  %v6649_v1 = vld [vmem:[#allocation4 + $0x108] sm:$0xff]  ;;  %v6650_v63 = vld [vmem:[#allocation4 + $0x110] sm:$0xff]  ;;  %vm1854_vm13 = vweird.f32 %v9545_v9  ;;  %v1858_v13 = vand.u32 2147483647, %v9545_v9  ;;  %v6652_v37 = vld [vmem:[#allocation4 + $0xe0] sm:$0xff] }
 0x398   :  { %2249 = vmatpush.msrb.mxu2 %v6634_v0  ;;  %2272 = vmatpush.msra.mxu3 %v6635_v14  ;;  %v6143_v21 = vpop.eup %6142  ;;  %v9624_v16 = vadd.f32 %v1867_v47, %v1865_v27  ;;  %v1852_v15 = vmul.f32 %v9595_v61, %v1851_v3  ;;  %v1847_v11 = vsel %vm1844_vm11, %v1846_v4, %v1842_v39  ;;  %v6653_v44 = vld [vmem:[#allocation4 + $0xe8] sm:$0xff]  ;;  %vm9639_vm14 = vmor %vm1854_vm13, %vm1855_vm12  ;;  %v6654_v14 = vld [vmem:[#allocation4 + $0xf0] sm:$0xff]  ;;  %v1861_v47 = vor.u32 1.1754944e-38, %v1860_v59 }
 0x399   :  { %1893 = vmatmul.f32.gmra.mxu0 %v1639_v48  ;;  %1916 = vmatmul.f32.gmra.mxu1 %v1639_v48  ;;  %v9627_v50 = vmul.f32 %v6143_v21, %v1847_v11  ;;  %v6655_v57 = vld [vmem:[#allocation4 + $0xf8] sm:$0xff]  ;;  %v6656_v29 = vld [vmem:[#allocation4 + $0xc0] sm:$0xff]  ;;  %v6657_v27 = vld [vmem:[#allocation4 + $0xc8] sm:$0xff]  ;;  %vm1859_vm15 = vcmp.eq.f32.partialorder %v1858_v13, 8.507059e+37 }
 0x39a   :  { %1939 = vmatmul.f32.gmra.mxu2 %v1639_v48  ;;  %1962 = vmatmul.f32.gmra.mxu3 %v1639_v48  ;;  %6144 = vtanh.f32 %v9624_v16  ;;  %v6651_v48 = vld [vmem:[#allocation4 + $0x118] sm:$0xff]  ;;  %v1853_v45 = vadd.f32 %v9595_v61, %v1852_v15  ;;  %v6658_v52 = vld [vmem:[#allocation4 + $0xd0] sm:$0xff]  ;;  %v6664_v39 = vld [vmem:[#allocation4 + $0x80] sm:$0xff] }
 0x39b   :  { %2204 = vmatpush.msra.mxu0 %v6636_v56  ;;  %2227 = vmatpush.msrb.mxu1 %v6637_v41  ;;  %v6659_v3 = vld [vmem:[#allocation4 + $0xd8] sm:$0xff]  ;;  %v6660_v56 = vld [vmem:[#allocation4 + $0xa0] sm:$0xff]  ;;  %v6661_v41 = vld [vmem:[#allocation4 + $0xa8] sm:$0xff] }
 0x39c   :  { %2250 = vmatpush.msrb.mxu2 %v6638_v2  ;;  %2273 = vmatpush.msra.mxu3 %v6639_v28  ;;  %v1857_v62 = vsel %vm9639_vm14, %v9595_v61, %v1853_v45  ;;  %v6662_v2 = vld [vmem:[#allocation4 + $0xb0] sm:$0xff]  ;;  %v6663_v28 = vld [vmem:[#allocation4 + $0xb8] sm:$0xff]  ;;  %v6668_v4 = vld [vmem:[#allocation4 + $0x60] sm:$0xff] }
 0x39d   :  { %2205 = vmatpush.msra.mxu0 %v6640_v8  ;;  %2228 = vmatpush.msrb.mxu1 %v6641_v46  ;;  %v1862_v26 = vsel %vm1859_vm15, %v1861_v47, %v1857_v62  ;;  %v6665_v8 = vld [vmem:[#allocation4 + $0x88] sm:$0xff]  ;;  %v6666_v46 = vld [vmem:[#allocation4 + $0x90] sm:$0xff]  ;;  %v6667_v21 = vld [vmem:[#allocation4 + $0x98] sm:$0xff] }
 0x39e   :  { %2251 = vmatpush.msrb.mxu2 %v6642_v33  ;;  %2274 = vmatpush.msra.mxu3 %v6643_v36  ;;  %v6669_v33 = vld [vmem:[#allocation4 + $0x68] sm:$0xff]  ;;  %v6670_v36 = vld [vmem:[#allocation4 + $0x70] sm:$0xff]  ;;  %v6671_v15 = vld [vmem:[#allocation4 + $0x78] sm:$0xff] }
 0x39f   :  { %2206 = vmatpush.msra.mxu0 %v6644_v49  ;;  %2229 = vmatpush.msrb.mxu1 %v6645_v38  ;;  %v6672_v49 = vld [vmem:[#allocation4 + $0x40] sm:$0xff]  ;;  %v6673_v38 = vld [vmem:[#allocation4 + $0x48] sm:$0xff]  ;;  %v6674_v11 = vld [vmem:[#allocation4 + $0x50] sm:$0xff] }
 0x3a0   :  { %2252 = vmatpush.msrb.mxu2 %v6646_v32  ;;  %2275 = vmatpush.msra.mxu3 %v6647_v23  ;;  %v6145_v9 = vpop.eup %6144  ;;  %v6675_v32 = vld [vmem:[#allocation4 + $0x58] sm:$0xff]  ;;  %v6676_v23 = vld [vmem:[#allocation4 + $0x20] sm:$0xff]  ;;  %v6681_v45 = vld [vmem:[#allocation4 + $0x8] sm:$0xff] }
 0x3a1   :  { %2207 = vmatpush.msra.mxu0 %v6648_v12  ;;  %2230 = vmatpush.msrb.mxu1 %v6649_v1  ;;  %v9646_v61 = vmul.f32 %v6145_v9, %v1862_v26  ;;  %v6677_v12 = vld [vmem:[#allocation4 + $0x28] sm:$0xff]  ;;  %v6678_v1 = vld [vmem:[#allocation4 + $0x30] sm:$0xff]  ;;  %v6683_v13 = vld [vmem:[#allocation4 + $0x18] sm:$0xff] }
 0x3a2   :  { %2253 = vmatpush.msrb.mxu2 %v6650_v63  ;;  %2276 = vmatpush.msra.mxu3 %v6651_v48  ;;  %v6679_v63 = vld [vmem:[#allocation4 + $0x38] sm:$0xff]  ;;  %v6680_v48 = vld [vmem:[#allocation4] sm:$0xff]  ;;  %v6682_v59 = vld [vmem:[#allocation4 + $0x10] sm:$0xff] }
 0x3a3   :  { %1982 = vmatmul.f32.vlgmr.msrb.gmra.mxu0 %v9627_v50  ;;  %2005 = vmatmul.f32.vlgmr.msra.gmra.mxu1 %v9627_v50  ;;  %v6686_v0 = vld [vmem:[#allocation8 + $0x1f0] sm:$0xff]  ;;  %v6689_v62 = vld [vmem:[#allocation8 + $0x1c8] sm:$0xff]  ;;  %v6692_v9 = vld [vmem:[#allocation8 + $0x1a0] sm:$0xff] }
 0x3a4   :  { %2028 = vmatmul.f32.vlgmr.msra.gmra.mxu2 %v9627_v50  ;;  %2051 = vmatmul.f32.vlgmr.msrb.gmra.mxu3 %v9627_v50  ;;  %v6693_v47 = vld [vmem:[#allocation8 + $0x1a8] sm:$0xff]  ;;  %v6699_v26 = vld [vmem:[#allocation8 + $0x198] sm:$0xff] }
 0x3a5   :  { %2208 = vmatpush.msra.mxu0 %v6652_v37  ;;  %2231 = vmatpush.msrb.mxu1 %v6653_v44  ;;  %v6684_v37 = vld [vmem:[#allocation8 + $0x1e0] sm:$0xff]  ;;  %v6685_v44 = vld [vmem:[#allocation8 + $0x1e8] sm:$0xff] }
 0x3a6   :  { %2254 = vmatpush.msrb.mxu2 %v6654_v14  ;;  %2277 = vmatpush.msra.mxu3 %v6655_v57  ;;  %v6687_v14 = vld [vmem:[#allocation8 + $0x1f8] sm:$0xff]  ;;  %v6688_v57 = vld [vmem:[#allocation8 + $0x1c0] sm:$0xff] }
 0x3a7   :  { %2209 = vmatpush.msra.mxu0 %v6656_v29  ;;  %2232 = vmatpush.msrb.mxu1 %v6657_v27  ;;  %v6690_v29 = vld [vmem:[#allocation8 + $0x1d0] sm:$0xff]  ;;  %v6691_v27 = vld [vmem:[#allocation8 + $0x1d8] sm:$0xff] }
 0x3a8   :  { %2255 = vmatpush.msrb.mxu2 %v6658_v52  ;;  %2278 = vmatpush.msra.mxu3 %v6659_v3  ;;  %v6695_v52 = vld [vmem:[#allocation8 + $0x1b8] sm:$0xff]  ;;  %v6696_v3 = vld [vmem:[#allocation8 + $0x180] sm:$0xff] }
 0x3a9   :  { %2210 = vmatpush.msra.mxu0 %v6660_v56  ;;  %2233 = vmatpush.msrb.mxu1 %v6661_v41  ;;  %v6697_v56 = vld [vmem:[#allocation8 + $0x188] sm:$0xff]  ;;  %v6698_v41 = vld [vmem:[#allocation8 + $0x190] sm:$0xff] }
 0x3aa   :  { %2256 = vmatpush.msrb.mxu2 %v6662_v2  ;;  %2279 = vmatpush.msra.mxu3 %v6663_v28  ;;  %v6700_v2 = vld [vmem:[#allocation8 + $0x160] sm:$0xff]  ;;  %v6701_v28 = vld [vmem:[#allocation8 + $0x168] sm:$0xff] }
 0x3ab   :  { %2211 = vmatpush.msra.mxu0 %v6664_v39  ;;  %2234 = vmatpush.msrb.mxu1 %v6665_v8  ;;  %v6702_v39 = vld [vmem:[#allocation8 + $0x170] sm:$0xff]  ;;  %v6703_v8 = vld [vmem:[#allocation8 + $0x178] sm:$0xff] }
 0x3ac   :  { %2257 = vmatpush.msrb.mxu2 %v6666_v46  ;;  %2280 = vmatpush.msra.mxu3 %v6667_v21  ;;  %v6704_v46 = vld [vmem:[#allocation8 + $0x140] sm:$0xff]  ;;  %v6705_v21 = vld [vmem:[#allocation8 + $0x148] sm:$0xff] }
 0x3ad   :  { %1985 = vmatmul.f32.gmra.mxu0 %v9646_v61  ;;  %2008 = vmatmul.f32.gmra.mxu1 %v9646_v61 }
 0x3ae   :  { %2031 = vmatmul.f32.gmra.mxu2 %v9646_v61  ;;  %2054 = vmatmul.f32.gmra.mxu3 %v9646_v61 }
 0x3af   :  { %2212 = vmatpush.msra.mxu0 %v6668_v4  ;;  %2235 = vmatpush.msrb.mxu1 %v6669_v33  ;;  %v6707_v4 = vld [vmem:[#allocation8 + $0x158] sm:$0xff]  ;;  %v6708_v33 = vld [vmem:[#allocation8 + $0x120] sm:$0xff] }
 0x3b0   :  { %2258 = vmatpush.msrb.mxu2 %v6670_v36  ;;  %2281 = vmatpush.msra.mxu3 %v6671_v15  ;;  %v6709_v36 = vld [vmem:[#allocation8 + $0x128] sm:$0xff]  ;;  %v6710_v15 = vld [vmem:[#allocation8 + $0x130] sm:$0xff] }
 0x3b1   :  { %2213 = vmatpush.msra.mxu0 %v6672_v49  ;;  %2236 = vmatpush.msrb.mxu1 %v6673_v38  ;;  %v6711_v49 = vld [vmem:[#allocation8 + $0x138] sm:$0xff]  ;;  %v6712_v38 = vld [vmem:[#allocation8 + $0x100] sm:$0xff] }
 0x3b2   :  { %2259 = vmatpush.msrb.mxu2 %v6674_v11  ;;  %2282 = vmatpush.msra.mxu3 %v6675_v32  ;;  %v6713_v11 = vld [vmem:[#allocation8 + $0x108] sm:$0xff]  ;;  %v6714_v32 = vld [vmem:[#allocation8 + $0x110] sm:$0xff] }
 0x3b3   :  { %2214 = vmatpush.msra.mxu0 %v6676_v23  ;;  %2237 = vmatpush.msrb.mxu1 %v6677_v12  ;;  %v6715_v23 = vld [vmem:[#allocation8 + $0x118] sm:$0xff]  ;;  %v6716_v12 = vld [vmem:[#allocation8 + $0xe0] sm:$0xff] }
 0x3b4   :  { %2260 = vmatpush.msrb.mxu2 %v6678_v1  ;;  %2283 = vmatpush.msra.mxu3 %v6679_v63  ;;  %v6717_v1 = vld [vmem:[#allocation8 + $0xe8] sm:$0xff]  ;;  %v6718_v63 = vld [vmem:[#allocation8 + $0xf0] sm:$0xff] }
 0x3b5   :  { %2215 = vmatpush.msra.mxu0 %v6680_v48  ;;  %2238 = vmatpush.msrb.mxu1 %v6681_v45  ;;  %v6719_v48 = vld [vmem:[#allocation8 + $0xf8] sm:$0xff]  ;;  %v6720_v45 = vld [vmem:[#allocation8 + $0xc0] sm:$0xff] }
 0x3b6   :  { %2261 = vmatpush.msrb.mxu2 %v6682_v59  ;;  %2284 = vmatpush.msra.mxu3 %v6683_v13  ;;  %v6721_v59 = vld [vmem:[#allocation8 + $0xc8] sm:$0xff]  ;;  %v6722_v13 = vld [vmem:[#allocation8 + $0xd0] sm:$0xff] }
 0x3b7   :  { %2216 = vmatmul.f32.vlgmr.msra.gmra.mxu0 %v9627_v50  ;;  %2239 = vmatmul.f32.vlgmr.msrb.gmra.mxu1 %v9627_v50 }
 0x3b8   :  { %2262 = vmatmul.f32.vlgmr.msrb.gmra.mxu2 %v9627_v50  ;;  %2285 = vmatmul.f32.vlgmr.msra.gmra.mxu3 %v9627_v50  ;;  %v6694_v50 = vld [vmem:[#allocation8 + $0x1b0] sm:$0xff] }
 0x3b9   :  { %2426 = vmatpush.msrb.mxu0 %v6684_v37  ;;  %2449 = vmatpush.msra.mxu1 %v6685_v44  ;;  %v6723_v37 = vld [vmem:[#allocation8 + $0xd8] sm:$0xff]  ;;  %v6724_v44 = vld [vmem:[#allocation8 + $0xa0] sm:$0xff] }
 0x3ba   :  { %2472 = vmatpush.msra.mxu2 %v6686_v0  ;;  %2495 = vmatpush.msrb.mxu3 %v6687_v14  ;;  %v6725_v0 = vld [vmem:[#allocation8 + $0xa8] sm:$0xff]  ;;  %v6726_v14 = vld [vmem:[#allocation8 + $0xb0] sm:$0xff] }
 0x3bb   :  { %2427 = vmatpush.msrb.mxu0 %v6688_v57  ;;  %2450 = vmatpush.msra.mxu1 %v6689_v62  ;;  %v6727_v57 = vld [vmem:[#allocation8 + $0xb8] sm:$0xff]  ;;  %v6728_v62 = vld [vmem:[#allocation8 + $0x80] sm:$0xff] }
 0x3bc   :  { %2473 = vmatpush.msra.mxu2 %v6690_v29  ;;  %2496 = vmatpush.msrb.mxu3 %v6691_v27  ;;  %v6729_v29 = vld [vmem:[#allocation8 + $0x88] sm:$0xff]  ;;  %v6730_v27 = vld [vmem:[#allocation8 + $0x90] sm:$0xff] }
 0x3bd   :  { %2428 = vmatpush.msrb.mxu0 %v6692_v9  ;;  %2451 = vmatpush.msra.mxu1 %v6693_v47  ;;  %v6731_v9 = vld [vmem:[#allocation8 + $0x98] sm:$0xff]  ;;  %v6732_v47 = vld [vmem:[#allocation8 + $0x60] sm:$0xff] }
 0x3be   :  { %2474 = vmatpush.msra.mxu2 %v6694_v50  ;;  %2497 = vmatpush.msrb.mxu3 %v6695_v52  ;;  %v6733_v50 = vld [vmem:[#allocation8 + $0x68] sm:$0xff]  ;;  %v6734_v52 = vld [vmem:[#allocation8 + $0x70] sm:$0xff] }
 0x3bf   :  { %2219 = vmatmul.f32.gmra.mxu0 %v9646_v61  ;;  %2242 = vmatmul.f32.gmra.mxu1 %v9646_v61 }
 0x3c0   :  { %2265 = vmatmul.f32.gmra.mxu2 %v9646_v61  ;;  %2288 = vmatmul.f32.gmra.mxu3 %v9646_v61  ;;  %v6706_v61 = vld [vmem:[#allocation8 + $0x150] sm:$0xff] }
 0x3c1   :  { %2429 = vmatpush.msrb.mxu0 %v6696_v3  ;;  %2452 = vmatpush.msra.mxu1 %v6697_v56  ;;  %v6735_v3 = vld [vmem:[#allocation8 + $0x78] sm:$0xff]  ;;  %v6736_v56 = vld [vmem:[#allocation8 + $0x40] sm:$0xff] }
 0x3c2   :  { %2475 = vmatpush.msra.mxu2 %v6698_v41  ;;  %2498 = vmatpush.msrb.mxu3 %v6699_v26  ;;  %v6737_v41 = vld [vmem:[#allocation8 + $0x48] sm:$0xff]  ;;  %v6738_v26 = vld [vmem:[#allocation8 + $0x50] sm:$0xff] }
 0x3c3   :  { %2430 = vmatpush.msrb.mxu0 %v6700_v2  ;;  %2453 = vmatpush.msra.mxu1 %v6701_v28  ;;  %v6739_v2 = vld [vmem:[#allocation8 + $0x58] sm:$0xff]  ;;  %v6740_v28 = vld [vmem:[#allocation8 + $0x20] sm:$0xff] }
 0x3c4   :  { %2476 = vmatpush.msra.mxu2 %v6702_v39  ;;  %2499 = vmatpush.msrb.mxu3 %v6703_v8  ;;  %v6741_v39 = vld [vmem:[#allocation8 + $0x28] sm:$0xff]  ;;  %v6742_v8 = vld [vmem:[#allocation8 + $0x30] sm:$0xff] }
 0x3c5   :  { %2431 = vmatpush.msrb.mxu0 %v6704_v46  ;;  %2454 = vmatpush.msra.mxu1 %v6705_v21  ;;  %v6743_v46 = vld [vmem:[#allocation8 + $0x38] sm:$0xff]  ;;  %v6744_v21 = vld [vmem:[#allocation8] sm:$0xff] }
 0x3c6   :  { %2477 = vmatpush.msra.mxu2 %v6706_v61  ;;  %2500 = vmatpush.msrb.mxu3 %v6707_v4  ;;  %v6745_v61 = vld [vmem:[#allocation8 + $0x8] sm:$0xff]  ;;  %v6746_v4 = vld [vmem:[#allocation8 + $0x10] sm:$0xff] }
 0x3c7   :  { %2432 = vmatpush.msrb.mxu0 %v6708_v33  ;;  %2455 = vmatpush.msra.mxu1 %v6709_v36  ;;  %v6747_v33 = vld [vmem:[#allocation8 + $0x18] sm:$0xff]  ;;  %v6748_v36 = vld [vmem:[#allocation6 + $0x1e0] sm:$0xff] }
 0x3c8   :  { %2478 = vmatpush.msra.mxu2 %v6710_v15  ;;  %2501 = vmatpush.msrb.mxu3 %v6711_v49  ;;  %v6749_v15 = vld [vmem:[#allocation6 + $0x1e8] sm:$0xff]  ;;  %v6750_v49 = vld [vmem:[#allocation6 + $0x1f0] sm:$0xff] }
 0x3c9   :  { %2433 = vmatpush.msrb.mxu0 %v6712_v38  ;;  %2456 = vmatpush.msra.mxu1 %v6713_v11  ;;  %v6751_v38 = vld [vmem:[#allocation6 + $0x1f8] sm:$0xff]  ;;  %v6752_v11 = vld [vmem:[#allocation6 + $0x1c0] sm:$0xff] }
 0x3ca   :  { %2479 = vmatpush.msra.mxu2 %v6714_v32  ;;  %2502 = vmatpush.msrb.mxu3 %v6715_v23  ;;  %v6753_v32 = vld [vmem:[#allocation6 + $0x1c8] sm:$0xff]  ;;  %v6754_v23 = vld [vmem:[#allocation6 + $0x1d0] sm:$0xff] }
 0x3cb   :  { %2434 = vmatpush.msrb.mxu0 %v6716_v12  ;;  %2457 = vmatpush.msra.mxu1 %v6717_v1  ;;  %v6755_v12 = vld [vmem:[#allocation6 + $0x1d8] sm:$0xff]  ;;  %v6756_v1 = vld [vmem:[#allocation6 + $0x1a0] sm:$0xff] }
 0x3cc   :  { %2480 = vmatpush.msra.mxu2 %v6718_v63  ;;  %2503 = vmatpush.msrb.mxu3 %v6719_v48  ;;  %v6757_v63 = vld [vmem:[#allocation6 + $0x1a8] sm:$0xff]  ;;  %v6758_v48 = vld [vmem:[#allocation6 + $0x1b0] sm:$0xff] }
 0x3cd   :  { %2435 = vmatpush.msrb.mxu0 %v6720_v45  ;;  %2458 = vmatpush.msra.mxu1 %v6721_v59  ;;  %v6759_v45 = vld [vmem:[#allocation6 + $0x1b8] sm:$0xff]  ;;  %v6760_v59 = vld [vmem:[#allocation6 + $0x180] sm:$0xff] }
 0x3ce   :  { %2481 = vmatpush.msra.mxu2 %v6722_v13  ;;  %2504 = vmatpush.msrb.mxu3 %v6723_v37  ;;  %v6761_v13 = vld [vmem:[#allocation6 + $0x188] sm:$0xff]  ;;  %v6762_v37 = vld [vmem:[#allocation6 + $0x190] sm:$0xff] }
 0x3cf   :  { %2436 = vmatpush.msrb.mxu0 %v6724_v44  ;;  %2459 = vmatpush.msra.mxu1 %v6725_v0  ;;  %v6763_v44 = vld [vmem:[#allocation6 + $0x198] sm:$0xff]  ;;  %v6764_v0 = vld [vmem:[#allocation6 + $0x160] sm:$0xff] }
 0x3d0   :  { %2482 = vmatpush.msra.mxu2 %v6726_v14  ;;  %2505 = vmatpush.msrb.mxu3 %v6727_v57  ;;  %v6765_v14 = vld [vmem:[#allocation6 + $0x168] sm:$0xff]  ;;  %v6766_v57 = vld [vmem:[#allocation6 + $0x170] sm:$0xff] }
 0x3d1   :  { %2437 = vmatpush.msrb.mxu0 %v6728_v62  ;;  %2460 = vmatpush.msra.mxu1 %v6729_v29  ;;  %v6767_v62 = vld [vmem:[#allocation6 + $0x178] sm:$0xff]  ;;  %v6768_v29 = vld [vmem:[#allocation6 + $0x140] sm:$0xff] }
 0x3d2   :  { %2483 = vmatpush.msra.mxu2 %v6730_v27  ;;  %2506 = vmatpush.msrb.mxu3 %v6731_v9  ;;  %v6769_v27 = vld [vmem:[#allocation6 + $0x148] sm:$0xff]  ;;  %v6770_v9 = vld [vmem:[#allocation6 + $0x150] sm:$0xff] }
 0x3d3   :  { %2438 = vmatpush.msrb.mxu0 %v6732_v47  ;;  %2461 = vmatpush.msra.mxu1 %v6733_v50  ;;  %v6771_v47 = vld [vmem:[#allocation6 + $0x158] sm:$0xff]  ;;  %v6772_v50 = vld [vmem:[#allocation6 + $0x120] sm:$0xff] }
 0x3d4   :  { %2484 = vmatpush.msra.mxu2 %v6734_v52  ;;  %2507 = vmatpush.msrb.mxu3 %v6735_v3  ;;  %v6773_v52 = vld [vmem:[#allocation6 + $0x128] sm:$0xff]  ;;  %v6774_v3 = vld [vmem:[#allocation6 + $0x130] sm:$0xff] }
 0x3d5   :  { %2439 = vmatpush.msrb.mxu0 %v6736_v56  ;;  %2462 = vmatpush.msra.mxu1 %v6737_v41  ;;  %v6775_v56 = vld [vmem:[#allocation6 + $0x138] sm:$0xff]  ;;  %v6776_v41 = vld [vmem:[#allocation6 + $0x100] sm:$0xff] }
 0x3d6   :  { %2485 = vmatpush.msra.mxu2 %v6738_v26  ;;  %2508 = vmatpush.msrb.mxu3 %v6739_v2  ;;  %v6777_v26 = vld [vmem:[#allocation6 + $0x108] sm:$0xff]  ;;  %v6778_v2 = vld [vmem:[#allocation6 + $0x110] sm:$0xff] }
 0x3d7   :  { %2440 = vmatpush.msrb.mxu0 %v6740_v28  ;;  %2463 = vmatpush.msra.mxu1 %v6741_v39  ;;  %v6779_v28 = vld [vmem:[#allocation6 + $0x118] sm:$0xff]  ;;  %v6780_v39 = vld [vmem:[#allocation6 + $0xe0] sm:$0xff] }
 0x3d8   :  { %2486 = vmatpush.msra.mxu2 %v6742_v8  ;;  %2509 = vmatpush.msrb.mxu3 %v6743_v46  ;;  %v6781_v8 = vld [vmem:[#allocation6 + $0xe8] sm:$0xff]  ;;  %v6782_v46 = vld [vmem:[#allocation6 + $0xf0] sm:$0xff] }
 0x3d9   :  { %2441 = vmatpush.msrb.mxu0 %v6744_v21  ;;  %2464 = vmatpush.msra.mxu1 %v6745_v61  ;;  %v6783_v21 = vld [vmem:[#allocation6 + $0xf8] sm:$0xff]  ;;  %v6784_v61 = vld [vmem:[#allocation6 + $0xc0] sm:$0xff] }
 0x3da   :  { %2487 = vmatpush.msra.mxu2 %v6746_v4  ;;  %2510 = vmatpush.msrb.mxu3 %v6747_v33  ;;  %v6785_v4 = vld [vmem:[#allocation6 + $0xc8] sm:$0xff]  ;;  %v6786_v33 = vld [vmem:[#allocation6 + $0xd0] sm:$0xff] }
 0x3db   :  { %2518 = vmatpush.msra.mxu0 %v6748_v36  ;;  %2541 = vmatpush.msrb.mxu1 %v6749_v15  ;;  %v6787_v36 = vld [vmem:[#allocation6 + $0xd8] sm:$0xff]  ;;  %v6788_v15 = vld [vmem:[#allocation6 + $0xa0] sm:$0xff] }
 0x3dc   :  { %2564 = vmatpush.msrb.mxu2 %v6750_v49  ;;  %2587 = vmatpush.msra.mxu3 %v6751_v38  ;;  %v6789_v49 = vld [vmem:[#allocation6 + $0xa8] sm:$0xff]  ;;  %v6790_v38 = vld [vmem:[#allocation6 + $0xb0] sm:$0xff] }
 0x3dd   :  { %2519 = vmatpush.msra.mxu0 %v6752_v11  ;;  %2542 = vmatpush.msrb.mxu1 %v6753_v32  ;;  %v6791_v11 = vld [vmem:[#allocation6 + $0xb8] sm:$0xff]  ;;  %v6792_v32 = vld [vmem:[#allocation6 + $0x80] sm:$0xff] }
 0x3de   :  { %2565 = vmatpush.msrb.mxu2 %v6754_v23  ;;  %2588 = vmatpush.msra.mxu3 %v6755_v12  ;;  %v6793_v23 = vld [vmem:[#allocation6 + $0x88] sm:$0xff]  ;;  %v6794_v12 = vld [vmem:[#allocation6 + $0x90] sm:$0xff] }
 0x3df   :  { %2520 = vmatpush.msra.mxu0 %v6756_v1  ;;  %2543 = vmatpush.msrb.mxu1 %v6757_v63  ;;  %v6795_v1 = vld [vmem:[#allocation6 + $0x98] sm:$0xff]  ;;  %v6796_v63 = vld [vmem:[#allocation6 + $0x60] sm:$0xff] }
 0x3e0   :  { %2566 = vmatpush.msrb.mxu2 %v6758_v48  ;;  %2589 = vmatpush.msra.mxu3 %v6759_v45  ;;  %v6797_v48 = vld [vmem:[#allocation6 + $0x68] sm:$0xff]  ;;  %v6798_v45 = vld [vmem:[#allocation6 + $0x70] sm:$0xff] }
 0x3e1   :  { %2521 = vmatpush.msra.mxu0 %v6760_v59  ;;  %2544 = vmatpush.msrb.mxu1 %v6761_v13  ;;  %v6799_v59 = vld [vmem:[#allocation6 + $0x78] sm:$0xff]  ;;  %v6800_v13 = vld [vmem:[#allocation6 + $0x40] sm:$0xff] }
 0x3e2   :  { %2567 = vmatpush.msrb.mxu2 %v6762_v37  ;;  %2590 = vmatpush.msra.mxu3 %v6763_v44  ;;  %v6801_v37 = vld [vmem:[#allocation6 + $0x48] sm:$0xff]  ;;  %v6802_v44 = vld [vmem:[#allocation6 + $0x50] sm:$0xff] }
 0x3e3   :  { %2522 = vmatpush.msra.mxu0 %v6764_v0  ;;  %2545 = vmatpush.msrb.mxu1 %v6765_v14  ;;  %v6803_v0 = vld [vmem:[#allocation6 + $0x58] sm:$0xff]  ;;  %v6804_v14 = vld [vmem:[#allocation6 + $0x20] sm:$0xff] }
 0x3e4   :  { %2568 = vmatpush.msrb.mxu2 %v6766_v57  ;;  %2591 = vmatpush.msra.mxu3 %v6767_v62  ;;  %v6805_v57 = vld [vmem:[#allocation6 + $0x28] sm:$0xff]  ;;  %v6806_v62 = vld [vmem:[#allocation6 + $0x30] sm:$0xff] }
 0x3e5   :  { %2523 = vmatpush.msra.mxu0 %v6768_v29  ;;  %2546 = vmatpush.msrb.mxu1 %v6769_v27  ;;  %v6807_v29 = vld [vmem:[#allocation6 + $0x38] sm:$0xff]  ;;  %v6808_v27 = vld [vmem:[#allocation6] sm:$0xff] }
 0x3e6   :  { %2569 = vmatpush.msrb.mxu2 %v6770_v9  ;;  %2592 = vmatpush.msra.mxu3 %v6771_v47  ;;  %v6809_v9 = vld [vmem:[#allocation6 + $0x8] sm:$0xff]  ;;  %v6810_v47 = vld [vmem:[#allocation6 + $0x10] sm:$0xff] }
 0x3e7   :  { %2524 = vmatpush.msra.mxu0 %v6772_v50  ;;  %2547 = vmatpush.msrb.mxu1 %v6773_v52  ;;  %v6811_v50 = vld [vmem:[#allocation6 + $0x18] sm:$0xff] }
 0x3e8   :  { %2570 = vmatpush.msrb.mxu2 %v6774_v3  ;;  %2593 = vmatpush.msra.mxu3 %v6775_v56 }
 0x3e9   :  { %2525 = vmatpush.msra.mxu0 %v6776_v41  ;;  %2548 = vmatpush.msrb.mxu1 %v6777_v26 }
 0x3ea   :  { %2571 = vmatpush.msrb.mxu2 %v6778_v2  ;;  %2594 = vmatpush.msra.mxu3 %v6779_v28 }
 0x3eb   :  { %2526 = vmatpush.msra.mxu0 %v6780_v39  ;;  %2549 = vmatpush.msrb.mxu1 %v6781_v8 }
 0x3ec   :  { %2572 = vmatpush.msrb.mxu2 %v6782_v46  ;;  %2595 = vmatpush.msra.mxu3 %v6783_v21 }
 0x3ed   :  { %2527 = vmatpush.msra.mxu0 %v6784_v61  ;;  %2550 = vmatpush.msrb.mxu1 %v6785_v4 }
 0x3ee   :  { %2573 = vmatpush.msrb.mxu2 %v6786_v33  ;;  %2596 = vmatpush.msra.mxu3 %v6787_v36 }
 0x3ef   :  { %2528 = vmatpush.msra.mxu0 %v6788_v15  ;;  %2551 = vmatpush.msrb.mxu1 %v6789_v49 }
 0x3f0   :  { %2574 = vmatpush.msrb.mxu2 %v6790_v38  ;;  %2597 = vmatpush.msra.mxu3 %v6791_v11 }
 0x3f1   :  { %2529 = vmatpush.msra.mxu0 %v6792_v32  ;;  %2552 = vmatpush.msrb.mxu1 %v6793_v23 }
 0x3f2   :  { %2575 = vmatpush.msrb.mxu2 %v6794_v12  ;;  %2598 = vmatpush.msra.mxu3 %v6795_v1 }
 0x3f3   :  { %2530 = vmatpush.msra.mxu0 %v6796_v63  ;;  %2553 = vmatpush.msrb.mxu1 %v6797_v48 }
 0x3f4   :  { %2576 = vmatpush.msrb.mxu2 %v6798_v45  ;;  %2599 = vmatpush.msra.mxu3 %v6799_v59 }
 0x3f5   :  { %2531 = vmatpush.msra.mxu0 %v6800_v13  ;;  %2554 = vmatpush.msrb.mxu1 %v6801_v37 }
 0x3f6   :  { %2577 = vmatpush.msrb.mxu2 %v6802_v44  ;;  %2600 = vmatpush.msra.mxu3 %v6803_v0 }
 0x3f7   :  { %2532 = vmatpush.msra.mxu0 %v6804_v14  ;;  %2555 = vmatpush.msrb.mxu1 %v6805_v57 }
 0x3f8   :  { %2578 = vmatpush.msrb.mxu2 %v6806_v62  ;;  %2601 = vmatpush.msra.mxu3 %v6807_v29  ;;  %v12379_v29 = vld [vmem:[#allocation25_spill] sm:$0xff] }
 0x3f9   :  { %2533 = vmatpush.msra.mxu0 %v6808_v27  ;;  %2556 = vmatpush.msrb.mxu1 %v6809_v9  ;;  %v480_v27 = vadd.f32 %v12379_v29, %v12341_v60 }
 0x3fa   :  { %2579 = vmatpush.msrb.mxu2 %v6810_v47  ;;  %2602 = vmatpush.msra.mxu3 %v6811_v50  ;;  %v12380_v50 = vld [vmem:[#allocation16_spill] sm:$0xff] }
 0x40c   :  { %v1891_v52 = vpop.f32.mrf.mxu0  ;;  %v1914_v3 = vpop.f32.mrf.mxu1 }
 0x413   :  { %v1960_v56 = vpop.f32.mrf.mxu3  ;;  %v1937_v2 = vpop.f32.mrf.mxu2 }
 0x416   :  { %v1894_v41 = vpop.f32.mrf.mxu0  ;;  %v1917_v26 = vpop.f32.mrf.mxu1 }
 0x41d   :  { %v1963_v28 = vpop.f32.mrf.mxu3  ;;  %v1940_v61 = vpop.f32.mrf.mxu2 }
 0x420   :  { %v1983_v39 = vpop.f32.mrf.mxu0  ;;  %v2006_v8 = vpop.f32.mrf.mxu1 }
 0x421   :  { %v1984_v46 = vadd.f32 %v1983_v39, %v1891_v52  ;;  %v2007_v21 = vadd.f32 %v2006_v8, %v1914_v3  ;;  %v545_v52 = vadd.f32 %v12380_v50, %v8986_v43 }
 0x423   :  { %v2058_v4 = vadd.f32 %v1984_v46, %v9304_v31  ;;  %v2059_v33 = vadd.f32 %v2007_v21, %v9306_v34 }
 0x425   :  { %v5937_v36 = vmul.f32 -1.442695, %v2058_v4  ;;  %v5939_v15 = vmul.f32 -1.442695, %v2059_v33 }
 0x427   :  { %6146 = vpow2.f32 %v5937_v36  ;;  %v2052_v49 = vpop.f32.mrf.mxu3  ;;  %v2029_v63 = vpop.f32.mrf.mxu2 }
 0x428   :  { %6148 = vpow2.f32 %v5939_v15  ;;  %v2053_v38 = vadd.f32 %v2052_v49, %v1960_v56  ;;  %v2030_v33 = vadd.f32 %v2029_v63, %v1937_v2  ;;  %v12381_v49 = vld [vmem:[#allocation37_spill] sm:$0xff] }
 0x42a   :  { %v2061_v11 = vadd.f32 %v2053_v38, %v9310_v35  ;;  %v1986_v32 = vpop.f32.mrf.mxu0  ;;  %v2009_v23 = vpop.f32.mrf.mxu1  ;;  %v9686_v38 = vadd.f32 %v12381_v49, %v9042_v10 }
 0x42b   :  { %v1987_v12 = vadd.f32 %v1986_v32, %v1894_v41  ;;  %v2010_v1 = vadd.f32 %v2009_v23, %v1917_v26 }
 0x42c   :  { %v5941_v48 = vmul.f32 -1.442695, %v2061_v11 }
 0x42d   :  { %v6147_v45 = vpop.eup %6146  ;;  %v2062_v59 = vadd.f32 %v1987_v12, %v9304_v31  ;;  %v2063_v13 = vadd.f32 %v2010_v1, %v9306_v34 }
 0x42e   :  { %v6149_v37 = vpop.eup %6148  ;;  %v9665_v44 = vadd.f32 1.0, %v6147_v45  ;;  %6150 = vpow2.f32 %v5941_v48 }
 0x42f   :  { %v9667_v0 = vadd.f32 1.0, %v6149_v37  ;;  %v5938_v14 = vmul.f32 -1.442695, %v2062_v59  ;;  %v5940_v57 = vmul.f32 -1.442695, %v2063_v13  ;;  %v2060_v59 = vadd.f32 %v2030_v33, %v9325_v42 }
 0x430   :  { %6152 = vrcp.f32 %v9665_v44  ;;  %vm2079_vm0 = vweird.f32 %v9665_v44  ;;  %v675_v33 = vadd.f32 %v9181_v53, %v12347_v22 }
 0x431   :  { %6154 = vrcp.f32 %v9667_v0  ;;  %v2055_v62 = vpop.f32.mrf.mxu3  ;;  %v2032_v46 = vpop.f32.mrf.mxu2  ;;  %vm2117_vm4 = vweird.f32 %v9667_v0 }
 0x432   :  { %6156 = vpow2.f32 %v5938_v14  ;;  %v2056_v9 = vadd.f32 %v2055_v62, %v1963_v28  ;;  %v2033_v48 = vadd.f32 %v2032_v46, %v1940_v61  ;;  %v2083_v61 = vand.u32 2147483647, %v9665_v44 }
 0x433   :  { %6158 = vpow2.f32 %v5940_v57  ;;  %v2123_v14 = vand.u32 2147483648, %v9667_v0  ;;  %v2085_v62 = vand.u32 2147483648, %v9665_v44 }
 0x434   :  { %v6151_v47 = vpop.eup %6150  ;;  %v2217_v3 = vpop.f32.mrf.mxu0  ;;  %v2065_v26 = vadd.f32 %v2056_v9, %v9310_v35  ;;  %v2121_v9 = vand.u32 2147483647, %v9667_v0  ;;  %vm9741_vm7 = vcmp.eq.f32.partialorder %v2083_v61, 8.507059e+37 }
 0x435   :  { %v2240_v56 = vpop.f32.mrf.mxu1  ;;  %v9675_v41 = vadd.f32 1.0, %v6151_v47  ;;  %v2292_v39 = vadd.f32 %v2217_v3, %v480_v27  ;;  %v2064_v47 = vadd.f32 %v2033_v48, %v9325_v42 }
 0x436   :  { %v9678_v8 = vpop.eup %6152  ;;  %v2293_v21 = vadd.f32 %v2240_v56, %v545_v52  ;;  %v5942_v36 = vmul.f32 -1.442695, %v2065_v26  ;;  %v12382_v52 = vld [vmem:[#allocation27_spill] sm:$0xff]  ;;  %v12383_v56 = vld [vmem:[#allocation17_spill] sm:$0xff]  ;;  %vm2122_vm8 = vcmp.eq.f32.partialorder %v2121_v9, 8.507059e+37 }
 0x437   :  { %v9680_v4 = vpop.eup %6154  ;;  %v2075_v28 = vmul.f32 %v9678_v8, %v9665_v44  ;;  %6160 = vrcp.f32 %v9675_v41  ;;  %v5943_v32 = vmul.f32 -1.442695, %v2292_v39  ;;  %vm2080_vm2 = vweird.f32 %v9678_v8  ;;  %v12384_v39 = vld [vmem:[#allocation38_spill] sm:$0xff] }
 0x438   :  { %v6157_v15 = vpop.eup %6156  ;;  %v2113_v11 = vmul.f32 %v9680_v4, %v9667_v0  ;;  %6162 = vpow2.f32 %v5942_v36  ;;  %v5945_v63 = vmul.f32 -1.442695, %v2293_v21  ;;  %vm2118_vm1 = vweird.f32 %v9680_v4  ;;  %vm9725_vm5 = vmor %vm2079_vm0, %vm2080_vm2 }
 0x439   :  { %v6159_v23 = vpop.eup %6158  ;;  %v2076_v12 = vsub.f32 1.0, %v2075_v28  ;;  %v9691_v1 = vadd.f32 1.0, %v6157_v15  ;;  %6164 = vpow2.f32 %v5943_v32  ;;  %v483_v3 = vadd.f32 %v12382_v52, %v12341_v60  ;;  %vm9737_vm6 = vmor %vm2117_vm4, %vm2118_vm1 }
 0x43a   :  { %v2114_v45 = vsub.f32 1.0, %v2113_v11  ;;  %v9693_v2 = vadd.f32 1.0, %v6159_v23  ;;  %v548_v26 = vadd.f32 %v12383_v56, %v8986_v43  ;;  %v9718_v46 = vadd.f32 %v12384_v39, %v9042_v10 }
 0x43b   :  { %v2077_v13 = vmul.f32 %v9678_v8, %v2076_v12  ;;  %6166 = vrcp.f32 %v9691_v1  ;;  %v9733_v36 = vadd.f32 %v9194_v51, %v12347_v22  ;;  %v2286_v15 = vpop.f32.mrf.mxu3  ;;  %v2086_v51 = vor.u32 1.1754944e-38, %v2085_v62  ;;  %v2263_v9 = vpop.f32.mrf.mxu2 }
 0x43c   :  { %v2115_v37 = vmul.f32 %v9680_v4, %v2114_v45  ;;  %6168 = vrcp.f32 %v9693_v2  ;;  %v2124_v12 = vor.u32 1.1754944e-38, %v2123_v14  ;;  %vm2094_vm9 = vweird.f32 %v9691_v1 }
 0x43d   :  { %v2078_v57 = vadd.f32 %v9678_v8, %v2077_v13  ;;  %v9707_v29 = vpop.eup %6160  ;;  %6170 = vpow2.f32 %v5945_v63  ;;  %v2098_v63 = vand.u32 2147483647, %v9691_v1  ;;  %vm2132_vm10 = vweird.f32 %v9693_v2 }
 0x43e   :  { %v2116_v27 = vadd.f32 %v9680_v4, %v2115_v37  ;;  %v6163_v50 = vpop.eup %6162  ;;  %6172 = vtanh.f32 %v2060_v59  ;;  %v2153_v45 = vmul.f32 %v9707_v29, %v9675_v41  ;;  %v2220_v59 = vpop.f32.mrf.mxu0  ;;  %v2138_v56 = vand.u32 2147483648, %v9693_v2 }
 0x43f   :  { %v6165_v28 = vpop.eup %6164  ;;  %v2082_v53 = vsel %vm9725_vm5, %v9678_v8, %v2078_v57  ;;  %6174 = vtanh.f32 %v2064_v47  ;;  %v9769_v62 = vadd.f32 1.0, %v6163_v50  ;;  %v2295_v47 = vadd.f32 %v2286_v15, %v675_v33 }
 0x440   :  { %v2120_v11 = vsel %vm9737_vm6, %v9680_v4, %v2116_v27  ;;  %v9753_v32 = vadd.f32 1.0, %v6165_v28  ;;  %v2161_v4 = vand.u32 2147483647, %v9675_v41  ;;  %v2087_v37 = vsel %vm9741_vm7, %v2086_v51, %v2082_v53  ;;  %v2243_v28 = vpop.f32.mrf.mxu1 }
 0x441   :  { %v9745_v49 = vpop.eup %6166  ;;  %v2125_v61 = vsel %vm2122_vm8, %v2124_v12, %v2120_v11  ;;  %v2100_v39 = vand.u32 2147483648, %v9691_v1  ;;  %v2296_v21 = vadd.f32 %v2220_v59, %v483_v3  ;;  %v2136_v53 = vand.u32 2147483647, %v9693_v2 }
 0x442   :  { %v9755_v23 = vpop.eup %6168  ;;  %v2090_v48 = vmul.f32 %v9745_v49, %v9691_v1  ;;  %6176 = vrcp.f32 %v9753_v32  ;;  %v2182_v0 = vmul.f32 %v2125_v61, %v9462_v7  ;;  %v2294_v51 = vadd.f32 %v2263_v9, %v9686_v38 }
 0x443   :  { %v2128_v8 = vmul.f32 %v9755_v23, %v9693_v2  ;;  %v6171_v13 = vpop.eup %6170  ;;  %v5947_v11 = vmul.f32 -1.442695, %v2295_v47  ;;  %v2154_v12 = vsub.f32 1.0, %v2153_v45  ;;  %v5944_v3 = vmul.f32 -1.442695, %v2296_v21  ;;  %v2266_v1 = vpop.f32.mrf.mxu2 }
 0x444   :  { %v2091_v14 = vsub.f32 1.0, %v2090_v48  ;;  %v9771_v27 = vadd.f32 1.0, %v6171_v13  ;;  %v6173_v52 = vpop.eup %6172  ;;  %v2297_v48 = vadd.f32 %v2243_v28, %v548_v26  ;;  %vm2095_vm11 = vweird.f32 %v9745_v49  ;;  %v2289_v13 = vpop.f32.mrf.mxu3 }
 0x445   :  { %v2129_v57 = vsub.f32 1.0, %v2128_v8  ;;  %v2184_v44 = vmul.f32 %v6173_v52, %v2087_v37  ;;  %v9779_v50 = vpop.eup %6174  ;;  %v2139_v8 = vor.u32 1.1754944e-38, %v2138_v56  ;;  %v2101_v59 = vor.u32 1.1754944e-38, %v2100_v39  ;;  %vm9809_vm15 = vmor %vm2094_vm9, %vm2095_vm11 }
 0x446   :  { %6178 = vrcp.f32 %v9771_v27  ;;  %v2092_v15 = vmul.f32 %v9745_v49, %v2091_v14  ;;  %vm2133_vm12 = vweird.f32 %v9755_v23  ;;  %vm9791_vm13 = vcmp.eq.f32.partialorder %v2098_v63, 8.507059e+37 }
 0x447   :  { %v2130_v33 = vmul.f32 %v9755_v23, %v2129_v57  ;;  %6180 = vrcp.f32 %v9769_v62  ;;  %v9788_v37 = vadd.f32 %v2184_v44, %v2182_v0  ;;  %v2317_v26 = vand.u32 2147483647, %v9753_v32  ;;  %vm9827_vm1 = vmor %vm2132_vm10, %vm2133_vm12 }
 0x448   :  { %v9785_v7 = vpop.eup %6176  ;;  %6182 = vpow2.f32 %v5947_v11  ;;  %vm2157_vm14 = vweird.f32 %v9675_v41  ;;  %v2093_v61 = vadd.f32 %v9745_v49, %v2092_v15  ;;  %v5946_v57 = vmul.f32 -1.442695, %v2297_v48 }
 0x449   :  { %v2309_v45 = vmul.f32 %v9785_v7, %v9753_v32  ;;  %v2131_v14 = vadd.f32 %v9755_v23, %v2130_v33  ;;  %6184 = vpow2.f32 %v5944_v3  ;;  %v2155_v63 = vmul.f32 %v9707_v29, %v2154_v12 }
 0x44a   :  { %6186 = vtanh.f32 %v2294_v51  ;;  %v2299_v52 = vadd.f32 %v2289_v13, %v9733_v36  ;;  %vm9813_vm0 = vcmp.eq.f32.partialorder %v2136_v53, 8.507059e+37  ;;  %vm2313_vm2 = vweird.f32 %v9753_v32 }
 0x44b   :  { %v2310_v47 = vsub.f32 1.0, %v2309_v45  ;;  %6188 = vpow2.f32 %v5946_v57  ;;  %v2319_v0 = vand.u32 2147483648, %v9753_v32  ;;  %v2097_v33 = vsel %vm9809_vm15, %v9745_v49, %v2093_v61 }
 0x44c   :  { %v9801_v9 = vpop.eup %6178  ;;  %6190 = vtanh.f32 %v9788_v37  ;;  %v5948_v44 = vmul.f32 -1.442695, %v2299_v52  ;;  %v2135_v15 = vsel %vm9827_vm1, %v9755_v23, %v2131_v14  ;;  %vm9839_vm4 = vcmp.eq.f32.partialorder %v2317_v26, 8.507059e+37 }
 0x44d   :  { %v2347_v21 = vmul.f32 %v9801_v9, %v9771_v27  ;;  %v9820_v28 = vpop.eup %6180  ;;  %v2311_v36 = vmul.f32 %v9785_v7, %v2310_v47  ;;  %v2156_v12 = vadd.f32 %v9707_v29, %v2155_v63  ;;  %vm2158_vm5 = vweird.f32 %v9707_v29 }
 0x44e   :  { %v6183_v53 = vpop.eup %6182  ;;  %6192 = vpow2.f32 %v5948_v44  ;;  %vm2314_vm6 = vweird.f32 %v9785_v7  ;;  %v2163_v23 = vand.u32 2147483648, %v9675_v41  ;;  %v2168_v45 = vmul.f32 %v9820_v28, %v9769_v62  ;;  %vm9866_vm9 = vmor %vm2157_vm14, %vm2158_vm5 }
 0x44f   :  { %v2348_v51 = vsub.f32 1.0, %v2347_v21  ;;  %v9843_v11 = vadd.f32 1.0, %v6183_v53  ;;  %v6185_v3 = vpop.eup %6184  ;;  %v2312_v49 = vadd.f32 %v9785_v7, %v2311_v36  ;;  %vm2351_vm7 = vweird.f32 %v9771_v27  ;;  %vm9876_vm10 = vmor %vm2313_vm2, %vm2314_vm6 }
 0x450   :  { %v6187_v13 = vpop.eup %6186  ;;  %v2357_v26 = vand.u32 2147483648, %v9771_v27  ;;  %v2102_v14 = vsel %vm9791_vm13, %v2101_v59, %v2097_v33  ;;  %vm2352_vm8 = vweird.f32 %v9801_v9  ;;  %v9860_v63 = vadd.f32 1.0, %v6185_v3 }
 0x451   :  { %v2349_v48 = vmul.f32 %v9801_v9, %v2348_v51  ;;  %6194 = vrcp.f32 %v9843_v11  ;;  %v6189_v61 = vpop.eup %6188  ;;  %v2140_v56 = vsel %vm9813_vm0, %v2139_v8, %v2135_v15  ;;  %v2320_v38 = vor.u32 1.1754944e-38, %v2319_v0  ;;  %vm9895_vm11 = vmor %vm2351_vm7, %vm2352_vm8 }
 0x452   :  { %v6191_v52 = vpop.eup %6190  ;;  %v9880_v21 = vadd.f32 1.0, %v6189_v61  ;;  %v2160_v36 = vsel %vm9866_vm9, %v9707_v29, %v2156_v12  ;;  %v2316_v8 = vsel %vm9876_vm10, %v9785_v7, %v2312_v49  ;;  %v2355_v39 = vand.u32 2147483647, %v9771_v27  ;;  %v6813_v61 = vld [vmem:[#allocation4 + $0x1e8] sm:$0xff] }
 0x453   :  { %v2350_v57 = vadd.f32 %v9801_v9, %v2349_v48  ;;  %6196 = vrcp.f32 %v9860_v63  ;;  %v2164_v32 = vor.u32 1.1754944e-38, %v2163_v23  ;;  %v2185_v53 = vmul.f32 %v9779_v50, %v2102_v14 }
 0x454   :  { %v6193_v44 = vpop.eup %6192  ;;  %6198 = vrcp.f32 %v9880_v21  ;;  %vm2162_vm12 = vcmp.eq.f32.partialorder %v2161_v4, 8.507059e+37  ;;  %v2169_v29 = vsub.f32 1.0, %v2168_v45  ;;  %v2183_v7 = vmul.f32 %v2140_v56, %v9550_v6  ;;  %v6815_v56 = vld [vmem:[#allocation4 + $0x1f8] sm:$0xff] }
 0x455   :  { %v2354_v50 = vsel %vm9895_vm11, %v9801_v9, %v2350_v57  ;;  %v2298_v33 = vadd.f32 %v2266_v1, %v9718_v46  ;;  %v2165_v15 = vsel %vm2162_vm12, %v2164_v32, %v2160_v36  ;;  %v2358_v51 = vor.u32 1.1754944e-38, %v2357_v26  ;;  %v6812_v26 = vld [vmem:[#allocation4 + $0x1e0] sm:$0xff]  ;;  %v6817_v36 = vld [vmem:[#allocation4 + $0x1c8] sm:$0xff]  ;;  %v6818_v32 = vld [vmem:[#allocation4 + $0x1d0] sm:$0xff] }
 0x456   :  { %v2321_v12 = vsel %vm9839_vm4, %v2320_v38, %v2316_v8  ;;  %v9911_v3 = vadd.f32 1.0, %v6193_v44  ;;  %v2190_v41 = vmul.f32 %v6191_v52, %v2165_v15  ;;  %vm2356_vm13 = vcmp.eq.f32.partialorder %v2355_v39, 8.507059e+37  ;;  %v6814_v52 = vld [vmem:[#allocation4 + $0x1f0] sm:$0xff]  ;;  %v6816_v1 = vld [vmem:[#allocation4 + $0x1c0] sm:$0xff]  ;;  %v6819_v44 = vld [vmem:[#allocation4 + $0x1d8] sm:$0xff] }
 0x457   :  { %v9907_v27 = vpop.eup %6194  ;;  %v2359_v4 = vsel %vm2356_vm13, %v2358_v51, %v2354_v50  ;;  %v2170_v46 = vmul.f32 %v9820_v28, %v2169_v29  ;;  %v9919_v48 = vadd.f32 %v2185_v53, %v2183_v7  ;;  %v2418_v2 = vmul.f32 %v6187_v13, %v2321_v12  ;;  %v6820_v50 = vld [vmem:[#allocation4 + $0x1a0] sm:$0xff] }
 0x458   :  { %v2387_v6 = vmul.f32 %v9907_v27, %v9843_v11  ;;  %6200 = vrcp.f32 %v9911_v3  ;;  %2442 = vmatmul.f32.vlgmr.msrb.gmra.mxu0 %v2190_v41  ;;  %2465 = vmatmul.f32.vlgmr.msra.gmra.mxu1 %v2190_v41  ;;  %vm2172_vm14 = vweird.f32 %v9769_v62  ;;  %vm2366_vm15 = vweird.f32 %v9880_v21 }
 0x459   :  { %v9917_v9 = vpop.eup %6196  ;;  %6202 = vtanh.f32 %v2298_v33  ;;  %2488 = vmatmul.f32.vlgmr.msra.gmra.mxu2 %v2190_v41  ;;  %2511 = vmatmul.f32.vlgmr.msrb.gmra.mxu3 %v2190_v41  ;;  %vm2328_vm0 = vweird.f32 %v9860_v63  ;;  %v2416_v13 = vmul.f32 %v2359_v4, %v9597_v30  ;;  %v2372_v57 = vand.u32 2147483648, %v9880_v21  ;;  %v6821_v33 = vld [vmem:[#allocation4 + $0x1a8] sm:$0xff]  ;;  %v6822_v4 = vld [vmem:[#allocation4 + $0x1b0] sm:$0xff] }
 0x45a   :  { %v9922_v49 = vpop.eup %6198  ;;  %v2388_v23 = vsub.f32 1.0, %v2387_v6  ;;  %v2324_v45 = vmul.f32 %v9917_v9, %v9860_v63  ;;  %2752 = vmatpush.msrb.mxu0 %v6812_v26  ;;  %2775 = vmatpush.msra.mxu1 %v6813_v61  ;;  %v2332_v47 = vand.u32 2147483647, %v9860_v63  ;;  %v2334_v38 = vand.u32 2147483648, %v9860_v63  ;;  %v6824_v26 = vld [vmem:[#allocation4 + $0x180] sm:$0xff]  ;;  %v6825_v61 = vld [vmem:[#allocation4 + $0x188] sm:$0xff] }
 0x45b   :  { %v2362_v14 = vmul.f32 %v9922_v49, %v9880_v21  ;;  %2798 = vmatpush.msra.mxu2 %v6814_v52  ;;  %2821 = vmatpush.msrb.mxu3 %v6815_v56  ;;  %v2171_v30 = vadd.f32 %v9820_v28, %v2170_v46  ;;  %vm2173_vm2 = vweird.f32 %v9820_v28  ;;  %v2370_v39 = vand.u32 2147483647, %v9880_v21  ;;  %v6823_v46 = vld [vmem:[#allocation4 + $0x1b8] sm:$0xff]  ;;  %v6826_v56 = vld [vmem:[#allocation4 + $0x190] sm:$0xff] }
 0x45c   :  { %v2325_v59 = vsub.f32 1.0, %v2324_v45  ;;  %2753 = vmatpush.msrb.mxu0 %v6816_v1  ;;  %2776 = vmatpush.msra.mxu1 %v6817_v36  ;;  %v2178_v53 = vand.u32 2147483648, %v9769_v62  ;;  %6204 = vtanh.f32 %v9919_v48  ;;  %v2389_v29 = vmul.f32 %v9907_v27, %v2388_v23  ;;  %vm9953_vm5 = vmor %vm2172_vm14, %vm2173_vm2  ;;  %v6829_v36 = vld [vmem:[#allocation4 + $0x168] sm:$0xff] }
 0x45d   :  { %v2363_v8 = vsub.f32 1.0, %v2362_v14  ;;  %2799 = vmatpush.msra.mxu2 %v6818_v32  ;;  %2822 = vmatpush.msrb.mxu3 %v6819_v44  ;;  %vm2329_vm1 = vweird.f32 %v9917_v9  ;;  %v2176_v15 = vand.u32 2147483647, %v9769_v62  ;;  %v9945_v12 = vadd.f32 %v2418_v2, %v2416_v13  ;;  %v6830_v44 = vld [vmem:[#allocation4 + $0x170] sm:$0xff]  ;;  %v6840_v62 = vld [vmem:[#allocation4 + $0x100] sm:$0xff]  ;;  %v6841_v14 = vld [vmem:[#allocation4 + $0x108] sm:$0xff] }
 0x45e   :  { %v9939_v0 = vpop.eup %6200  ;;  %v2326_v7 = vmul.f32 %v9917_v9, %v2325_v59  ;;  %2754 = vmatpush.msrb.mxu0 %v6820_v50  ;;  %2777 = vmatpush.msra.mxu1 %v6821_v33  ;;  %vm2367_vm4 = vweird.f32 %v9922_v49  ;;  %v2373_v6 = vor.u32 1.1754944e-38, %v2372_v57  ;;  %vm2392_vm6 = vweird.f32 %v9907_v27  ;;  %vm9968_vm7 = vmor %vm2328_vm0, %vm2329_vm1  ;;  %v6827_v59 = vld [vmem:[#allocation4 + $0x198] sm:$0xff]  ;;  %v6832_v50 = vld [vmem:[#allocation4 + $0x140] sm:$0xff] }
 0x45f   :  { %v6203_v51 = vpop.eup %6202  ;;  %v2364_v41 = vmul.f32 %v9922_v49, %v2363_v8  ;;  %2800 = vmatpush.msra.mxu2 %v6822_v4  ;;  %2823 = vmatpush.msrb.mxu3 %v6823_v46  ;;  %v2402_v45 = vmul.f32 %v9939_v0, %v9911_v3  ;;  %v2175_v13 = vsel %vm9953_vm5, %v9820_v28, %v2171_v30  ;;  %vm9972_vm8 = vcmp.eq.f32.partialorder %v2332_v47, 8.507059e+37  ;;  %vm9982_vm9 = vmor %vm2366_vm15, %vm2367_vm4  ;;  %v6833_v33 = vld [vmem:[#allocation4 + $0x148] sm:$0xff]  ;;  %v6834_v4 = vld [vmem:[#allocation4 + $0x150] sm:$0xff] }
 0x460   :  { %v2327_v2 = vadd.f32 %v9917_v9, %v2326_v7  ;;  %2755 = vmatpush.msrb.mxu0 %v6824_v26  ;;  %2778 = vmatpush.msra.mxu1 %v6825_v61  ;;  %v2335_v57 = vor.u32 1.1754944e-38, %v2334_v38  ;;  %v2179_v28 = vor.u32 1.1754944e-38, %v2178_v53  ;;  %v2390_v1 = vadd.f32 %v9907_v27, %v2389_v29  ;;  %v6828_v38 = vld [vmem:[#allocation4 + $0x160] sm:$0xff]  ;;  %v6838_v61 = vld [vmem:[#allocation4 + $0x130] sm:$0xff] }
 0x461   :  { %v2365_v52 = vadd.f32 %v9922_v49, %v2364_v41  ;;  %2801 = vmatpush.msra.mxu2 %v6826_v56  ;;  %2824 = vmatpush.msrb.mxu3 %v6827_v59  ;;  %vm2371_vm10 = vcmp.eq.f32.partialorder %v2370_v39, 8.507059e+37  ;;  %vm2177_vm11 = vcmp.eq.f32.partialorder %v2176_v15, 8.507059e+37  ;;  %6206 = vtanh.f32 %v9945_v12 }
 0x462   :  { %v2331_v47 = vsel %vm9968_vm7, %v9917_v9, %v2327_v2  ;;  %2756 = vmatpush.msrb.mxu0 %v6828_v38  ;;  %2779 = vmatpush.msra.mxu1 %v6829_v36  ;;  %v6205_v30 = vpop.eup %6204  ;;  %v2180_v32 = vsel %vm2177_vm11, %v2179_v28, %v2175_v13  ;;  %v6831_v9 = vld [vmem:[#allocation4 + $0x178] sm:$0xff]  ;;  %v2403_v29 = vsub.f32 1.0, %v2402_v45  ;;  %v2397_v15 = vand.u32 2147483648, %v9843_v11  ;;  %v6836_v2 = vld [vmem:[#allocation4 + $0x120] sm:$0xff] }
 0x463   :  { %v2336_v21 = vsel %vm9972_vm8, %v2335_v57, %v2331_v47  ;;  %v2369_v8 = vsel %vm9982_vm9, %v9922_v49, %v2365_v52  ;;  %2802 = vmatpush.msra.mxu2 %v6830_v44  ;;  %2825 = vmatpush.msrb.mxu3 %v6831_v9  ;;  %v2191_v7 = vmul.f32 %v6205_v30, %v2180_v32  ;;  %v6835_v49 = vld [vmem:[#allocation4 + $0x158] sm:$0xff]  ;;  %vm2391_vm12 = vweird.f32 %v9843_v11  ;;  %v6844_v28 = vld [vmem:[#allocation4 + $0xe0] sm:$0xff]  ;;  %v6846_v47 = vld [vmem:[#allocation4 + $0xf0] sm:$0xff] }
 0x464   :  { %v2374_v39 = vsel %vm2371_vm10, %v2373_v6, %v2369_v8  ;;  %v2419_v53 = vmul.f32 %v6203_v51, %v2336_v21  ;;  %2757 = vmatpush.msrb.mxu0 %v6832_v50  ;;  %2780 = vmatpush.msra.mxu1 %v6833_v33  ;;  %v2395_v46 = vand.u32 2147483647, %v9843_v11  ;;  %vm10001_vm13 = vmor %vm2391_vm12, %vm2392_vm6  ;;  %v2404_v23 = vmul.f32 %v9939_v0, %v2403_v29  ;;  %v6837_v11 = vld [vmem:[#allocation4 + $0x128] sm:$0xff]  ;;  %v6839_v13 = vld [vmem:[#allocation4 + $0x138] sm:$0xff] }
 0x465   :  { %v2417_v41 = vmul.f32 %v2374_v39, %v9624_v16  ;;  %2803 = vmatpush.msra.mxu2 %v6834_v4  ;;  %2826 = vmatpush.msrb.mxu3 %v6835_v49  ;;  %v2394_v16 = vsel %vm10001_vm13, %v9907_v27, %v2390_v1  ;;  %v2398_v26 = vor.u32 1.1754944e-38, %v2397_v15  ;;  %v6842_v27 = vld [vmem:[#allocation4 + $0x110] sm:$0xff]  ;;  %v6843_v52 = vld [vmem:[#allocation4 + $0x118] sm:$0xff]  ;;  %vm2407_vm15 = vweird.f32 %v9939_v0  ;;  %v6845_v1 = vld [vmem:[#allocation4 + $0xe8] sm:$0xff] }
 0x466   :  { %2445 = vmatmul.f32.gmra.mxu0 %v2191_v7  ;;  %2468 = vmatmul.f32.gmra.mxu1 %v2191_v7  ;;  %vm2396_vm14 = vcmp.eq.f32.partialorder %v2395_v46, 8.507059e+37  ;;  %v2405_v59 = vadd.f32 %v9939_v0, %v2404_v23  ;;  %v2412_v63 = vand.u32 2147483648, %v9911_v3  ;;  %v6847_v38 = vld [vmem:[#allocation4 + $0xf8] sm:$0xff]  ;;  %vm2406_vm0 = vweird.f32 %v9911_v3  ;;  %v6848_v8 = vld [vmem:[#allocation4 + $0xc0] sm:$0xff]  ;;  %v6849_v32 = vld [vmem:[#allocation4 + $0xc8] sm:$0xff] }
 0x467   :  { %v10005_v6 = vadd.f32 %v2419_v53, %v2417_v41  ;;  %2491 = vmatmul.f32.gmra.mxu2 %v2191_v7  ;;  %2514 = vmatmul.f32.gmra.mxu3 %v2191_v7  ;;  %v6207_v45 = vpop.eup %6206  ;;  %v2399_v57 = vsel %vm2396_vm14, %v2398_v26, %v2394_v16  ;;  %v2410_v36 = vand.u32 2147483647, %v9911_v3  ;;  %vm10021_vm2 = vmor %vm2406_vm0, %vm2407_vm15  ;;  %v6850_v9 = vld [vmem:[#allocation4 + $0xd0] sm:$0xff]  ;;  %v6851_v39 = vld [vmem:[#allocation4 + $0xd8] sm:$0xff] }
 0x468   :  { %2758 = vmatpush.msrb.mxu0 %v6836_v2  ;;  %2781 = vmatpush.msra.mxu1 %v6837_v11  ;;  %v10012_v56 = vmul.f32 %v6207_v45, %v2399_v57  ;;  %v2409_v21 = vsel %vm10021_vm2, %v9939_v0, %v2405_v59  ;;  %v2413_v44 = vor.u32 1.1754944e-38, %v2412_v63  ;;  %v6852_v53 = vld [vmem:[#allocation4 + $0xa0] sm:$0xff]  ;;  %v6853_v29 = vld [vmem:[#allocation4 + $0xa8] sm:$0xff]  ;;  %v6854_v50 = vld [vmem:[#allocation4 + $0xb0] sm:$0xff] }
 0x469   :  { %2804 = vmatpush.msra.mxu2 %v6838_v61  ;;  %2827 = vmatpush.msrb.mxu3 %v6839_v13  ;;  %6208 = vtanh.f32 %v10005_v6  ;;  %vm2411_vm1 = vcmp.eq.f32.partialorder %v2410_v36, 8.507059e+37  ;;  %v6855_v33 = vld [vmem:[#allocation4 + $0xb8] sm:$0xff]  ;;  %v6856_v15 = vld [vmem:[#allocation4 + $0x80] sm:$0xff]  ;;  %v6857_v41 = vld [vmem:[#allocation4 + $0x88] sm:$0xff] }
 0x46a   :  { %2759 = vmatpush.msrb.mxu0 %v6840_v62  ;;  %2782 = vmatpush.msra.mxu1 %v6841_v14  ;;  %v2414_v7 = vsel %vm2411_vm1, %v2413_v44, %v2409_v21  ;;  %v6858_v4 = vld [vmem:[#allocation4 + $0x90] sm:$0xff]  ;;  %v6859_v49 = vld [vmem:[#allocation4 + $0x98] sm:$0xff]  ;;  %v6860_v46 = vld [vmem:[#allocation4 + $0x60] sm:$0xff] }
 0x46b   :  { %2805 = vmatpush.msra.mxu2 %v6842_v27  ;;  %2828 = vmatpush.msrb.mxu3 %v6843_v52  ;;  %v6861_v51 = vld [vmem:[#allocation4 + $0x68] sm:$0xff]  ;;  %v6862_v16 = vld [vmem:[#allocation4 + $0x70] sm:$0xff]  ;;  %v6863_v23 = vld [vmem:[#allocation4 + $0x78] sm:$0xff] }
 0x46c   :  { %2760 = vmatpush.msrb.mxu0 %v6844_v28  ;;  %2783 = vmatpush.msra.mxu1 %v6845_v1  ;;  %v6864_v2 = vld [vmem:[#allocation4 + $0x40] sm:$0xff]  ;;  %v6865_v11 = vld [vmem:[#allocation4 + $0x48] sm:$0xff]  ;;  %v6866_v45 = vld [vmem:[#allocation4 + $0x50] sm:$0xff] }
 0x46d   :  { %2806 = vmatpush.msra.mxu2 %v6846_v47  ;;  %2829 = vmatpush.msrb.mxu3 %v6847_v38  ;;  %v6867_v26 = vld [vmem:[#allocation4 + $0x58] sm:$0xff]  ;;  %v6868_v61 = vld [vmem:[#allocation4 + $0x20] sm:$0xff]  ;;  %v6869_v13 = vld [vmem:[#allocation4 + $0x28] sm:$0xff] }
 0x46e   :  { %2534 = vmatmul.f32.vlgmr.msra.gmra.mxu0 %v10012_v56  ;;  %2557 = vmatmul.f32.vlgmr.msrb.gmra.mxu1 %v10012_v56  ;;  %v6870_v62 = vld [vmem:[#allocation4 + $0x30] sm:$0xff]  ;;  %v6871_v14 = vld [vmem:[#allocation4 + $0x38] sm:$0xff]  ;;  %v6872_v57 = vld [vmem:[#allocation4] sm:$0xff] }
 0x46f   :  { %2580 = vmatmul.f32.vlgmr.msrb.gmra.mxu2 %v10012_v56  ;;  %2603 = vmatmul.f32.vlgmr.msra.gmra.mxu3 %v10012_v56  ;;  %v6209_v3 = vpop.eup %6208  ;;  %v6873_v27 = vld [vmem:[#allocation4 + $0x8] sm:$0xff]  ;;  %v6874_v52 = vld [vmem:[#allocation4 + $0x10] sm:$0xff]  ;;  %v6875_v59 = vld [vmem:[#allocation4 + $0x18] sm:$0xff] }
 0x470   :  { %2761 = vmatpush.msrb.mxu0 %v6848_v8  ;;  %2784 = vmatpush.msra.mxu1 %v6849_v32  ;;  %v10030_v0 = vmul.f32 %v6209_v3, %v2414_v7  ;;  %v6876_v28 = vld [vmem:[#allocation8 + $0x1e0] sm:$0xff]  ;;  %v6877_v1 = vld [vmem:[#allocation8 + $0x1e8] sm:$0xff]  ;;  %v6878_v63 = vld [vmem:[#allocation8 + $0x1f0] sm:$0xff] }
 0x471   :  { %2807 = vmatpush.msra.mxu2 %v6850_v9  ;;  %2830 = vmatpush.msrb.mxu3 %v6851_v39  ;;  %v6879_v47 = vld [vmem:[#allocation8 + $0x1f8] sm:$0xff]  ;;  %v6880_v38 = vld [vmem:[#allocation8 + $0x1c0] sm:$0xff]  ;;  %v6881_v36 = vld [vmem:[#allocation8 + $0x1c8] sm:$0xff] }
 0x472   :  { %2762 = vmatpush.msrb.mxu0 %v6852_v53  ;;  %2785 = vmatpush.msra.mxu1 %v6853_v29  ;;  %v6882_v30 = vld [vmem:[#allocation8 + $0x1d0] sm:$0xff]  ;;  %v6883_v21 = vld [vmem:[#allocation8 + $0x1d8] sm:$0xff]  ;;  %v6884_v8 = vld [vmem:[#allocation8 + $0x1a0] sm:$0xff] }
 0x473   :  { %2808 = vmatpush.msra.mxu2 %v6854_v50  ;;  %2831 = vmatpush.msrb.mxu3 %v6855_v33  ;;  %v6885_v32 = vld [vmem:[#allocation8 + $0x1a8] sm:$0xff]  ;;  %v6887_v3 = vld [vmem:[#allocation8 + $0x1b8] sm:$0xff]  ;;  %v6888_v44 = vld [vmem:[#allocation8 + $0x180] sm:$0xff] }
 0x474   :  { %2763 = vmatpush.msrb.mxu0 %v6856_v15  ;;  %2786 = vmatpush.msra.mxu1 %v6857_v41  ;;  %v6889_v9 = vld [vmem:[#allocation8 + $0x188] sm:$0xff]  ;;  %v6890_v39 = vld [vmem:[#allocation8 + $0x190] sm:$0xff]  ;;  %v6891_v53 = vld [vmem:[#allocation8 + $0x198] sm:$0xff] }
 0x475   :  { %2809 = vmatpush.msra.mxu2 %v6858_v4  ;;  %2832 = vmatpush.msrb.mxu3 %v6859_v49  ;;  %v6892_v29 = vld [vmem:[#allocation8 + $0x160] sm:$0xff]  ;;  %v6893_v7 = vld [vmem:[#allocation8 + $0x168] sm:$0xff]  ;;  %v6894_v50 = vld [vmem:[#allocation8 + $0x170] sm:$0xff] }
 0x476   :  { %2537 = vmatmul.f32.gmra.mxu0 %v10030_v0  ;;  %2560 = vmatmul.f32.gmra.mxu1 %v10030_v0  ;;  %v6895_v33 = vld [vmem:[#allocation8 + $0x178] sm:$0xff]  ;;  %v6896_v15 = vld [vmem:[#allocation8 + $0x140] sm:$0xff]  ;;  %v6897_v41 = vld [vmem:[#allocation8 + $0x148] sm:$0xff] }
 0x477   :  { %2583 = vmatmul.f32.gmra.mxu2 %v10030_v0  ;;  %2606 = vmatmul.f32.gmra.mxu3 %v10030_v0  ;;  %v6899_v4 = vld [vmem:[#allocation8 + $0x158] sm:$0xff]  ;;  %v6900_v49 = vld [vmem:[#allocation8 + $0x120] sm:$0xff] }
 0x478   :  { %2764 = vmatpush.msrb.mxu0 %v6860_v46  ;;  %2787 = vmatpush.msra.mxu1 %v6861_v51  ;;  %v6901_v46 = vld [vmem:[#allocation8 + $0x128] sm:$0xff]  ;;  %v6902_v51 = vld [vmem:[#allocation8 + $0x130] sm:$0xff] }
 0x479   :  { %2810 = vmatpush.msra.mxu2 %v6862_v16  ;;  %2833 = vmatpush.msrb.mxu3 %v6863_v23  ;;  %v6903_v16 = vld [vmem:[#allocation8 + $0x138] sm:$0xff]  ;;  %v6904_v23 = vld [vmem:[#allocation8 + $0x100] sm:$0xff] }
 0x47a   :  { %2765 = vmatpush.msrb.mxu0 %v6864_v2  ;;  %2788 = vmatpush.msra.mxu1 %v6865_v11  ;;  %v6905_v2 = vld [vmem:[#allocation8 + $0x108] sm:$0xff]  ;;  %v6906_v11 = vld [vmem:[#allocation8 + $0x110] sm:$0xff] }
 0x47b   :  { %2811 = vmatpush.msra.mxu2 %v6866_v45  ;;  %2834 = vmatpush.msrb.mxu3 %v6867_v26  ;;  %v6907_v45 = vld [vmem:[#allocation8 + $0x118] sm:$0xff]  ;;  %v6908_v26 = vld [vmem:[#allocation8 + $0xe0] sm:$0xff] }
 0x47c   :  { %2766 = vmatpush.msrb.mxu0 %v6868_v61  ;;  %2789 = vmatpush.msra.mxu1 %v6869_v13  ;;  %v6909_v61 = vld [vmem:[#allocation8 + $0xe8] sm:$0xff]  ;;  %v6910_v13 = vld [vmem:[#allocation8 + $0xf0] sm:$0xff] }
 0x47d   :  { %2812 = vmatpush.msra.mxu2 %v6870_v62  ;;  %2835 = vmatpush.msrb.mxu3 %v6871_v14  ;;  %v6911_v62 = vld [vmem:[#allocation8 + $0xf8] sm:$0xff]  ;;  %v6912_v14 = vld [vmem:[#allocation8 + $0xc0] sm:$0xff] }
 0x47e   :  { %2767 = vmatpush.msrb.mxu0 %v6872_v57  ;;  %2790 = vmatpush.msra.mxu1 %v6873_v27  ;;  %v6913_v57 = vld [vmem:[#allocation8 + $0xc8] sm:$0xff]  ;;  %v6914_v27 = vld [vmem:[#allocation8 + $0xd0] sm:$0xff] }
 0x47f   :  { %2813 = vmatpush.msra.mxu2 %v6874_v52  ;;  %2836 = vmatpush.msrb.mxu3 %v6875_v59  ;;  %v6915_v52 = vld [vmem:[#allocation8 + $0xd8] sm:$0xff]  ;;  %v6916_v59 = vld [vmem:[#allocation8 + $0xa0] sm:$0xff] }
 0x480   :  { %2768 = vmatmul.f32.vlgmr.msrb.gmra.mxu0 %v10012_v56  ;;  %2791 = vmatmul.f32.vlgmr.msra.gmra.mxu1 %v10012_v56 }
 0x481   :  { %2814 = vmatmul.f32.vlgmr.msra.gmra.mxu2 %v10012_v56  ;;  %2837 = vmatmul.f32.vlgmr.msrb.gmra.mxu3 %v10012_v56  ;;  %v6886_v56 = vld [vmem:[#allocation8 + $0x1b0] sm:$0xff] }
 0x482   :  { %2978 = vmatpush.msra.mxu0 %v6876_v28  ;;  %3001 = vmatpush.msrb.mxu1 %v6877_v1  ;;  %v6917_v28 = vld [vmem:[#allocation8 + $0xa8] sm:$0xff]  ;;  %v6918_v1 = vld [vmem:[#allocation8 + $0xb0] sm:$0xff] }
 0x483   :  { %3024 = vmatpush.msrb.mxu2 %v6878_v63  ;;  %3047 = vmatpush.msra.mxu3 %v6879_v47  ;;  %v6919_v63 = vld [vmem:[#allocation8 + $0xb8] sm:$0xff]  ;;  %v6920_v47 = vld [vmem:[#allocation8 + $0x80] sm:$0xff] }
 0x484   :  { %2979 = vmatpush.msra.mxu0 %v6880_v38  ;;  %3002 = vmatpush.msrb.mxu1 %v6881_v36  ;;  %v6921_v38 = vld [vmem:[#allocation8 + $0x88] sm:$0xff]  ;;  %v6922_v36 = vld [vmem:[#allocation8 + $0x90] sm:$0xff] }
 0x485   :  { %3025 = vmatpush.msrb.mxu2 %v6882_v30  ;;  %3048 = vmatpush.msra.mxu3 %v6883_v21  ;;  %v6923_v30 = vld [vmem:[#allocation8 + $0x98] sm:$0xff]  ;;  %v6924_v21 = vld [vmem:[#allocation8 + $0x60] sm:$0xff] }
 0x486   :  { %2980 = vmatpush.msra.mxu0 %v6884_v8  ;;  %3003 = vmatpush.msrb.mxu1 %v6885_v32  ;;  %v6925_v8 = vld [vmem:[#allocation8 + $0x68] sm:$0xff]  ;;  %v6926_v32 = vld [vmem:[#allocation8 + $0x70] sm:$0xff] }
 0x487   :  { %3026 = vmatpush.msrb.mxu2 %v6886_v56  ;;  %3049 = vmatpush.msra.mxu3 %v6887_v3  ;;  %v6927_v56 = vld [vmem:[#allocation8 + $0x78] sm:$0xff]  ;;  %v6928_v3 = vld [vmem:[#allocation8 + $0x40] sm:$0xff] }
 0x488   :  { %2771 = vmatmul.f32.gmra.mxu0 %v10030_v0  ;;  %2794 = vmatmul.f32.gmra.mxu1 %v10030_v0 }
 0x489   :  { %2817 = vmatmul.f32.gmra.mxu2 %v10030_v0  ;;  %2840 = vmatmul.f32.gmra.mxu3 %v10030_v0  ;;  %v6898_v0 = vld [vmem:[#allocation8 + $0x150] sm:$0xff] }
 0x48a   :  { %2981 = vmatpush.msra.mxu0 %v6888_v44  ;;  %3004 = vmatpush.msrb.mxu1 %v6889_v9  ;;  %v6929_v44 = vld [vmem:[#allocation8 + $0x48] sm:$0xff]  ;;  %v6930_v9 = vld [vmem:[#allocation8 + $0x50] sm:$0xff] }
 0x48b   :  { %3027 = vmatpush.msrb.mxu2 %v6890_v39  ;;  %3050 = vmatpush.msra.mxu3 %v6891_v53  ;;  %v6931_v39 = vld [vmem:[#allocation8 + $0x58] sm:$0xff]  ;;  %v6932_v53 = vld [vmem:[#allocation8 + $0x20] sm:$0xff] }
 0x48c   :  { %2982 = vmatpush.msra.mxu0 %v6892_v29  ;;  %3005 = vmatpush.msrb.mxu1 %v6893_v7  ;;  %v6933_v29 = vld [vmem:[#allocation8 + $0x28] sm:$0xff]  ;;  %v6934_v7 = vld [vmem:[#allocation8 + $0x30] sm:$0xff] }
 0x48d   :  { %3028 = vmatpush.msrb.mxu2 %v6894_v50  ;;  %3051 = vmatpush.msra.mxu3 %v6895_v33  ;;  %v6935_v50 = vld [vmem:[#allocation8 + $0x38] sm:$0xff]  ;;  %v6936_v33 = vld [vmem:[#allocation8] sm:$0xff] }
 0x48e   :  { %2983 = vmatpush.msra.mxu0 %v6896_v15  ;;  %3006 = vmatpush.msrb.mxu1 %v6897_v41  ;;  %v6937_v15 = vld [vmem:[#allocation8 + $0x8] sm:$0xff]  ;;  %v6938_v41 = vld [vmem:[#allocation8 + $0x10] sm:$0xff] }
 0x48f   :  { %3029 = vmatpush.msrb.mxu2 %v6898_v0  ;;  %3052 = vmatpush.msra.mxu3 %v6899_v4  ;;  %v6939_v0 = vld [vmem:[#allocation8 + $0x18] sm:$0xff]  ;;  %v6940_v4 = vld [vmem:[#allocation6 + $0x1e0] sm:$0xff] }
 0x490   :  { %2984 = vmatpush.msra.mxu0 %v6900_v49  ;;  %3007 = vmatpush.msrb.mxu1 %v6901_v46  ;;  %v6941_v49 = vld [vmem:[#allocation6 + $0x1e8] sm:$0xff]  ;;  %v6942_v46 = vld [vmem:[#allocation6 + $0x1f0] sm:$0xff] }
 0x491   :  { %3030 = vmatpush.msrb.mxu2 %v6902_v51  ;;  %3053 = vmatpush.msra.mxu3 %v6903_v16  ;;  %v6943_v51 = vld [vmem:[#allocation6 + $0x1f8] sm:$0xff]  ;;  %v6944_v16 = vld [vmem:[#allocation6 + $0x1c0] sm:$0xff] }
 0x492   :  { %2985 = vmatpush.msra.mxu0 %v6904_v23  ;;  %3008 = vmatpush.msrb.mxu1 %v6905_v2  ;;  %v6945_v23 = vld [vmem:[#allocation6 + $0x1c8] sm:$0xff]  ;;  %v6946_v2 = vld [vmem:[#allocation6 + $0x1d0] sm:$0xff] }
 0x493   :  { %3031 = vmatpush.msrb.mxu2 %v6906_v11  ;;  %3054 = vmatpush.msra.mxu3 %v6907_v45  ;;  %v6947_v11 = vld [vmem:[#allocation6 + $0x1d8] sm:$0xff]  ;;  %v6948_v45 = vld [vmem:[#allocation6 + $0x1a0] sm:$0xff] }
 0x494   :  { %2986 = vmatpush.msra.mxu0 %v6908_v26  ;;  %3009 = vmatpush.msrb.mxu1 %v6909_v61  ;;  %v6949_v26 = vld [vmem:[#allocation6 + $0x1a8] sm:$0xff]  ;;  %v6950_v61 = vld [vmem:[#allocation6 + $0x1b0] sm:$0xff] }
 0x495   :  { %3032 = vmatpush.msrb.mxu2 %v6910_v13  ;;  %3055 = vmatpush.msra.mxu3 %v6911_v62  ;;  %v6951_v13 = vld [vmem:[#allocation6 + $0x1b8] sm:$0xff]  ;;  %v6952_v62 = vld [vmem:[#allocation6 + $0x180] sm:$0xff] }
 0x496   :  { %2987 = vmatpush.msra.mxu0 %v6912_v14  ;;  %3010 = vmatpush.msrb.mxu1 %v6913_v57  ;;  %v6953_v14 = vld [vmem:[#allocation6 + $0x188] sm:$0xff]  ;;  %v6954_v57 = vld [vmem:[#allocation6 + $0x190] sm:$0xff] }
 0x497   :  { %3033 = vmatpush.msrb.mxu2 %v6914_v27  ;;  %3056 = vmatpush.msra.mxu3 %v6915_v52  ;;  %v6955_v27 = vld [vmem:[#allocation6 + $0x198] sm:$0xff]  ;;  %v6956_v52 = vld [vmem:[#allocation6 + $0x160] sm:$0xff] }
 0x498   :  { %2988 = vmatpush.msra.mxu0 %v6916_v59  ;;  %3011 = vmatpush.msrb.mxu1 %v6917_v28  ;;  %v6957_v59 = vld [vmem:[#allocation6 + $0x168] sm:$0xff]  ;;  %v6958_v28 = vld [vmem:[#allocation6 + $0x170] sm:$0xff] }
 0x499   :  { %3034 = vmatpush.msrb.mxu2 %v6918_v1  ;;  %3057 = vmatpush.msra.mxu3 %v6919_v63  ;;  %v6959_v1 = vld [vmem:[#allocation6 + $0x178] sm:$0xff]  ;;  %v6960_v63 = vld [vmem:[#allocation6 + $0x140] sm:$0xff] }
 0x49a   :  { %2989 = vmatpush.msra.mxu0 %v6920_v47  ;;  %3012 = vmatpush.msrb.mxu1 %v6921_v38  ;;  %v6961_v47 = vld [vmem:[#allocation6 + $0x148] sm:$0xff]  ;;  %v6962_v38 = vld [vmem:[#allocation6 + $0x150] sm:$0xff] }
 0x49b   :  { %3035 = vmatpush.msrb.mxu2 %v6922_v36  ;;  %3058 = vmatpush.msra.mxu3 %v6923_v30  ;;  %v6963_v36 = vld [vmem:[#allocation6 + $0x158] sm:$0xff]  ;;  %v6964_v30 = vld [vmem:[#allocation6 + $0x120] sm:$0xff] }
 0x49c   :  { %2990 = vmatpush.msra.mxu0 %v6924_v21  ;;  %3013 = vmatpush.msrb.mxu1 %v6925_v8  ;;  %v6965_v21 = vld [vmem:[#allocation6 + $0x128] sm:$0xff]  ;;  %v6966_v8 = vld [vmem:[#allocation6 + $0x130] sm:$0xff] }
 0x49d   :  { %3036 = vmatpush.msrb.mxu2 %v6926_v32  ;;  %3059 = vmatpush.msra.mxu3 %v6927_v56  ;;  %v6967_v32 = vld [vmem:[#allocation6 + $0x138] sm:$0xff]  ;;  %v6968_v56 = vld [vmem:[#allocation6 + $0x100] sm:$0xff] }
 0x49e   :  { %2991 = vmatpush.msra.mxu0 %v6928_v3  ;;  %3014 = vmatpush.msrb.mxu1 %v6929_v44  ;;  %v6969_v3 = vld [vmem:[#allocation6 + $0x108] sm:$0xff]  ;;  %v6970_v44 = vld [vmem:[#allocation6 + $0x110] sm:$0xff] }
 0x49f   :  { %3037 = vmatpush.msrb.mxu2 %v6930_v9  ;;  %3060 = vmatpush.msra.mxu3 %v6931_v39  ;;  %v6971_v9 = vld [vmem:[#allocation6 + $0x118] sm:$0xff]  ;;  %v6972_v39 = vld [vmem:[#allocation6 + $0xe0] sm:$0xff] }
 0x4a0   :  { %2992 = vmatpush.msra.mxu0 %v6932_v53  ;;  %3015 = vmatpush.msrb.mxu1 %v6933_v29  ;;  %v6973_v53 = vld [vmem:[#allocation6 + $0xe8] sm:$0xff]  ;;  %v6974_v29 = vld [vmem:[#allocation6 + $0xf0] sm:$0xff] }
 0x4a1   :  { %3038 = vmatpush.msrb.mxu2 %v6934_v7  ;;  %3061 = vmatpush.msra.mxu3 %v6935_v50  ;;  %v6975_v7 = vld [vmem:[#allocation6 + $0xf8] sm:$0xff]  ;;  %v6976_v50 = vld [vmem:[#allocation6 + $0xc0] sm:$0xff] }
 0x4a2   :  { %2993 = vmatpush.msra.mxu0 %v6936_v33  ;;  %3016 = vmatpush.msrb.mxu1 %v6937_v15  ;;  %v6977_v33 = vld [vmem:[#allocation6 + $0xc8] sm:$0xff]  ;;  %v6978_v15 = vld [vmem:[#allocation6 + $0xd0] sm:$0xff] }
 0x4a3   :  { %3039 = vmatpush.msrb.mxu2 %v6938_v41  ;;  %3062 = vmatpush.msra.mxu3 %v6939_v0  ;;  %v6979_v41 = vld [vmem:[#allocation6 + $0xd8] sm:$0xff]  ;;  %v6980_v0 = vld [vmem:[#allocation6 + $0xa0] sm:$0xff] }
 0x4a4   :  { %3070 = vmatpush.msrb.mxu0 %v6940_v4  ;;  %3093 = vmatpush.msra.mxu1 %v6941_v49  ;;  %v6981_v4 = vld [vmem:[#allocation6 + $0xa8] sm:$0xff]  ;;  %v6982_v49 = vld [vmem:[#allocation6 + $0xb0] sm:$0xff] }
 0x4a5   :  { %3116 = vmatpush.msra.mxu2 %v6942_v46  ;;  %3139 = vmatpush.msrb.mxu3 %v6943_v51  ;;  %v6983_v46 = vld [vmem:[#allocation6 + $0xb8] sm:$0xff]  ;;  %v6984_v51 = vld [vmem:[#allocation6 + $0x80] sm:$0xff] }
 0x4a6   :  { %3071 = vmatpush.msrb.mxu0 %v6944_v16  ;;  %3094 = vmatpush.msra.mxu1 %v6945_v23  ;;  %v6985_v16 = vld [vmem:[#allocation6 + $0x88] sm:$0xff]  ;;  %v6986_v23 = vld [vmem:[#allocation6 + $0x90] sm:$0xff] }
 0x4a7   :  { %3117 = vmatpush.msra.mxu2 %v6946_v2  ;;  %3140 = vmatpush.msrb.mxu3 %v6947_v11  ;;  %v6987_v2 = vld [vmem:[#allocation6 + $0x98] sm:$0xff]  ;;  %v6988_v11 = vld [vmem:[#allocation6 + $0x60] sm:$0xff] }
 0x4a8   :  { %3072 = vmatpush.msrb.mxu0 %v6948_v45  ;;  %3095 = vmatpush.msra.mxu1 %v6949_v26  ;;  %v6989_v45 = vld [vmem:[#allocation6 + $0x68] sm:$0xff]  ;;  %v6990_v26 = vld [vmem:[#allocation6 + $0x70] sm:$0xff] }
 0x4a9   :  { %3118 = vmatpush.msra.mxu2 %v6950_v61  ;;  %3141 = vmatpush.msrb.mxu3 %v6951_v13  ;;  %v6991_v61 = vld [vmem:[#allocation6 + $0x78] sm:$0xff]  ;;  %v6992_v13 = vld [vmem:[#allocation6 + $0x40] sm:$0xff] }
 0x4aa   :  { %3073 = vmatpush.msrb.mxu0 %v6952_v62  ;;  %3096 = vmatpush.msra.mxu1 %v6953_v14  ;;  %v6993_v62 = vld [vmem:[#allocation6 + $0x48] sm:$0xff]  ;;  %v6994_v14 = vld [vmem:[#allocation6 + $0x50] sm:$0xff] }
 0x4ab   :  { %3119 = vmatpush.msra.mxu2 %v6954_v57  ;;  %3142 = vmatpush.msrb.mxu3 %v6955_v27  ;;  %v6995_v57 = vld [vmem:[#allocation6 + $0x58] sm:$0xff]  ;;  %v6996_v27 = vld [vmem:[#allocation6 + $0x20] sm:$0xff] }
 0x4ac   :  { %3074 = vmatpush.msrb.mxu0 %v6956_v52  ;;  %3097 = vmatpush.msra.mxu1 %v6957_v59  ;;  %v6997_v52 = vld [vmem:[#allocation6 + $0x28] sm:$0xff]  ;;  %v6998_v59 = vld [vmem:[#allocation6 + $0x30] sm:$0xff] }
 0x4ad   :  { %3120 = vmatpush.msra.mxu2 %v6958_v28  ;;  %3143 = vmatpush.msrb.mxu3 %v6959_v1  ;;  %v6999_v28 = vld [vmem:[#allocation6 + $0x38] sm:$0xff]  ;;  %v7000_v1 = vld [vmem:[#allocation6] sm:$0xff] }
 0x4ae   :  { %3075 = vmatpush.msrb.mxu0 %v6960_v63  ;;  %3098 = vmatpush.msra.mxu1 %v6961_v47  ;;  %v7001_v63 = vld [vmem:[#allocation6 + $0x8] sm:$0xff]  ;;  %v7002_v47 = vld [vmem:[#allocation6 + $0x10] sm:$0xff] }
 0x4af   :  { %3121 = vmatpush.msra.mxu2 %v6962_v38  ;;  %3144 = vmatpush.msrb.mxu3 %v6963_v36  ;;  %v7003_v38 = vld [vmem:[#allocation6 + $0x18] sm:$0xff] }
 0x4b0   :  { %3076 = vmatpush.msrb.mxu0 %v6964_v30  ;;  %3099 = vmatpush.msra.mxu1 %v6965_v21 }
 0x4b1   :  { %3122 = vmatpush.msra.mxu2 %v6966_v8  ;;  %3145 = vmatpush.msrb.mxu3 %v6967_v32 }
 0x4b2   :  { %3077 = vmatpush.msrb.mxu0 %v6968_v56  ;;  %3100 = vmatpush.msra.mxu1 %v6969_v3 }
 0x4b3   :  { %3123 = vmatpush.msra.mxu2 %v6970_v44  ;;  %3146 = vmatpush.msrb.mxu3 %v6971_v9 }
 0x4b4   :  { %3078 = vmatpush.msrb.mxu0 %v6972_v39  ;;  %3101 = vmatpush.msra.mxu1 %v6973_v53 }
 0x4b5   :  { %3124 = vmatpush.msra.mxu2 %v6974_v29  ;;  %3147 = vmatpush.msrb.mxu3 %v6975_v7 }
 0x4b6   :  { %3079 = vmatpush.msrb.mxu0 %v6976_v50  ;;  %3102 = vmatpush.msra.mxu1 %v6977_v33 }
 0x4b7   :  { %3125 = vmatpush.msra.mxu2 %v6978_v15  ;;  %3148 = vmatpush.msrb.mxu3 %v6979_v41 }
 0x4b8   :  { %3080 = vmatpush.msrb.mxu0 %v6980_v0  ;;  %3103 = vmatpush.msra.mxu1 %v6981_v4 }
 0x4b9   :  { %3126 = vmatpush.msra.mxu2 %v6982_v49  ;;  %3149 = vmatpush.msrb.mxu3 %v6983_v46 }
 0x4ba   :  { %3081 = vmatpush.msrb.mxu0 %v6984_v51  ;;  %3104 = vmatpush.msra.mxu1 %v6985_v16 }
 0x4bb   :  { %3127 = vmatpush.msra.mxu2 %v6986_v23  ;;  %3150 = vmatpush.msrb.mxu3 %v6987_v2 }
 0x4bc   :  { %3082 = vmatpush.msrb.mxu0 %v6988_v11  ;;  %3105 = vmatpush.msra.mxu1 %v6989_v45 }
 0x4bd   :  { %3128 = vmatpush.msra.mxu2 %v6990_v26  ;;  %3151 = vmatpush.msrb.mxu3 %v6991_v61 }
 0x4be   :  { %3083 = vmatpush.msrb.mxu0 %v6992_v13  ;;  %3106 = vmatpush.msra.mxu1 %v6993_v62 }
 0x4bf   :  { %3129 = vmatpush.msra.mxu2 %v6994_v14  ;;  %3152 = vmatpush.msrb.mxu3 %v6995_v57 }
 0x4c0   :  { %3084 = vmatpush.msrb.mxu0 %v6996_v27  ;;  %3107 = vmatpush.msra.mxu1 %v6997_v52 }
 0x4c1   :  { %3130 = vmatpush.msra.mxu2 %v6998_v59  ;;  %3153 = vmatpush.msrb.mxu3 %v6999_v28  ;;  %v12419_v59 = vld [vmem:[#allocation30_spill] sm:$0xff] }
 0x4c2   :  { %3085 = vmatpush.msrb.mxu0 %v7000_v1  ;;  %3108 = vmatpush.msra.mxu1 %v7001_v63  ;;  %v486_v28 = vadd.f32 %v12419_v59, %v12341_v60 }
 0x4c3   :  { %3131 = vmatpush.msra.mxu2 %v7002_v47  ;;  %3154 = vmatpush.msrb.mxu3 %v7003_v38  ;;  %v12420_v47 = vld [vmem:[#allocation18_spill] sm:$0xff] }
 0x4c4   :  { %v551_v38 = vadd.f32 %v12420_v47, %v8986_v43 }
 0x4d5   :  { %v2443_v36 = vpop.f32.mrf.mxu0  ;;  %v2466_v30 = vpop.f32.mrf.mxu1 }
 0x4dc   :  { %v2512_v21 = vpop.f32.mrf.mxu3  ;;  %v2489_v56 = vpop.f32.mrf.mxu2 }
 0x4e3   :  { %v2446_v8 = vpop.f32.mrf.mxu0  ;;  %v2469_v32 = vpop.f32.mrf.mxu1 }
 0x4ea   :  { %v2515_v3 = vpop.f32.mrf.mxu3  ;;  %v10046_v15 = vpop.f32.mrf.mxu2 }
 0x4eb   :  { %v2535_v44 = vpop.f32.mrf.mxu0  ;;  %v2558_v9 = vpop.f32.mrf.mxu1 }
 0x4ec   :  { %v2536_v39 = vadd.f32 %v2535_v44, %v2443_v36  ;;  %v2559_v53 = vadd.f32 %v2558_v9, %v2466_v30 }
 0x4ee   :  { %v2610_v29 = vadd.f32 %v2536_v39, %v9304_v31  ;;  %v2611_v7 = vadd.f32 %v2559_v53, %v9306_v34 }
 0x4f0   :  { %v5949_v50 = vmul.f32 -1.442695, %v2610_v29  ;;  %v5951_v33 = vmul.f32 -1.442695, %v2611_v7 }
 0x4f2   :  { %6210 = vpow2.f32 %v5949_v50  ;;  %v2604_v41 = vpop.f32.mrf.mxu3  ;;  %v2581_v27 = vpop.f32.mrf.mxu2 }
 0x4f3   :  { %6212 = vpow2.f32 %v5951_v33  ;;  %v2605_v0 = vadd.f32 %v2604_v41, %v2512_v21  ;;  %v2538_v4 = vpop.f32.mrf.mxu0  ;;  %v2561_v49 = vpop.f32.mrf.mxu1  ;;  %v2582_v7 = vadd.f32 %v2581_v27, %v2489_v56 }
 0x4f4   :  { %v2539_v46 = vadd.f32 %v2538_v4, %v2446_v8  ;;  %v2562_v51 = vadd.f32 %v2561_v49, %v2469_v32 }
 0x4f5   :  { %v2613_v2 = vadd.f32 %v2605_v0, %v9310_v35 }
 0x4f6   :  { %v2614_v16 = vadd.f32 %v2539_v46, %v9304_v31  ;;  %v2615_v23 = vadd.f32 %v2562_v51, %v9306_v34 }
 0x4f7   :  { %v5953_v14 = vmul.f32 -1.442695, %v2613_v2  ;;  %v12422_v2 = vld [vmem:[#allocation19_spill] sm:$0xff] }
 0x4f8   :  { %v6211_v11 = vpop.eup %6210  ;;  %v5950_v45 = vmul.f32 -1.442695, %v2614_v16  ;;  %v5952_v13 = vmul.f32 -1.442695, %v2615_v23  ;;  %v12421_v16 = vld [vmem:[#allocation32_spill] sm:$0xff] }
 0x4f9   :  { %v6213_v26 = vpop.eup %6212  ;;  %v10051_v61 = vadd.f32 1.0, %v6211_v11  ;;  %v489_v23 = vadd.f32 %v12421_v16, %v12341_v60  ;;  %v554_v11 = vadd.f32 %v12422_v2, %v8986_v43 }
 0x4fa   :  { %v10053_v62 = vadd.f32 1.0, %v6213_v26  ;;  %6214 = vpow2.f32 %v5950_v45  ;;  %v2607_v57 = vpop.f32.mrf.mxu3  ;;  %v2584_v46 = vpop.f32.mrf.mxu2  ;;  %v681_v45 = vadd.f32 %v9206_v5, %v12347_v22  ;;  %v2612_v26 = vadd.f32 %v2582_v7, %v9325_v42 }
 0x4fb   :  { %6216 = vrcp.f32 %v10051_v61  ;;  %v2608_v1 = vadd.f32 %v2607_v57, %v2515_v3  ;;  %v2585_v27 = vadd.f32 %v2584_v46, %v10046_v15  ;;  %vm2631_vm6 = vweird.f32 %v10051_v61 }
 0x4fc   :  { %6218 = vrcp.f32 %v10053_v62  ;;  %vm2669_vm7 = vweird.f32 %v10053_v62  ;;  %v2675_v59 = vand.u32 2147483648, %v10053_v62 }
 0x4fd   :  { %6220 = vpow2.f32 %v5952_v13  ;;  %v2769_v52 = vpop.f32.mrf.mxu0  ;;  %v2792_v63 = vpop.f32.mrf.mxu1  ;;  %v2617_v39 = vadd.f32 %v2608_v1, %v9310_v35  ;;  %v2637_v1 = vand.u32 2147483648, %v10051_v61 }
 0x4fe   :  { %6222 = vpow2.f32 %v5953_v14  ;;  %v2844_v30 = vadd.f32 %v2769_v52, %v486_v28  ;;  %v2845_v32 = vadd.f32 %v2792_v63, %v551_v38  ;;  %v2635_v28 = vand.u32 2147483647, %v10051_v61 }
 0x4ff   :  { %v5954_v51 = vmul.f32 -1.442695, %v2617_v39  ;;  %v2616_v39 = vadd.f32 %v2585_v27, %v9325_v42  ;;  %v12428_v27 = vld [vmem:[#allocation40_spill] sm:$0xff] }
 0x500   :  { %v6215_v36 = vpop.eup %6214  ;;  %v5955_v33 = vmul.f32 -1.442695, %v2844_v30  ;;  %v5957_v4 = vmul.f32 -1.442695, %v2845_v32  ;;  %vm2636_vm10 = vcmp.eq.f32.partialorder %v2635_v28, 8.507059e+37 }
 0x501   :  { %v10061_v21 = vpop.eup %6216  ;;  %v10063_v8 = vadd.f32 1.0, %v6215_v36  ;;  %v2673_v36 = vand.u32 2147483647, %v10053_v62 }
 0x502   :  { %v10065_v44 = vpop.eup %6218  ;;  %v2627_v9 = vmul.f32 %v10061_v21, %v10051_v61  ;;  %vm2632_vm4 = vweird.f32 %v10061_v21 }
 0x503   :  { %v6221_v3 = vpop.eup %6220  ;;  %v2665_v53 = vmul.f32 %v10065_v44, %v10053_v62  ;;  %6224 = vrcp.f32 %v10063_v8  ;;  %vm2670_vm5 = vweird.f32 %v10065_v44  ;;  %vm10103_vm8 = vmor %vm2631_vm6, %vm2632_vm4  ;;  %vm2674_vm11 = vcmp.eq.f32.partialorder %v2673_v36, 8.507059e+37 }
 0x504   :  { %v2628_v29 = vsub.f32 1.0, %v2627_v9  ;;  %v10073_v50 = vadd.f32 1.0, %v6221_v3  ;;  %v6223_v41 = vpop.eup %6222  ;;  %v2838_v52 = vpop.f32.mrf.mxu3  ;;  %vm10113_vm9 = vmor %vm2669_vm7, %vm2670_vm5  ;;  %v2650_v36 = vand.u32 2147483647, %v10063_v8  ;;  %vm2646_vm12 = vweird.f32 %v10063_v8 }
 0x505   :  { %v2666_v0 = vsub.f32 1.0, %v2665_v53  ;;  %v10085_v13 = vadd.f32 1.0, %v6223_v41  ;;  %v2772_v63 = vpop.f32.mrf.mxu0  ;;  %v2795_v47 = vpop.f32.mrf.mxu1  ;;  %v2847_v32 = vadd.f32 %v2838_v52, %v681_v45  ;;  %v2676_v41 = vor.u32 1.1754944e-38, %v2675_v59 }
 0x506   :  { %v2629_v49 = vmul.f32 %v10061_v21, %v2628_v29  ;;  %6226 = vrcp.f32 %v10073_v50  ;;  %v2848_v29 = vadd.f32 %v2772_v63, %v489_v23  ;;  %v2849_v7 = vadd.f32 %v2795_v47, %v554_v11  ;;  %v12427_v23 = vld [vmem:[#allocation39_spill] sm:$0xff]  ;;  %v2815_v28 = vpop.f32.mrf.mxu2 }
 0x507   :  { %v2667_v56 = vmul.f32 %v10065_v44, %v2666_v0  ;;  %6228 = vpow2.f32 %v5955_v33  ;;  %v2638_v0 = vor.u32 1.1754944e-38, %v2637_v1  ;;  %v616_v11 = vadd.f32 %v12427_v23, %v9042_v10 }
 0x508   :  { %v2630_v57 = vadd.f32 %v10061_v21, %v2629_v49  ;;  %6230 = vpow2.f32 %v5957_v4  ;;  %v10137_v52 = vadd.f32 %v12428_v27, %v9042_v10  ;;  %vm2684_vm13 = vweird.f32 %v10073_v50 }
 0x509   :  { %v10087_v14 = vpop.eup %6224  ;;  %v2668_v5 = vadd.f32 %v10065_v44, %v2667_v56  ;;  %6232 = vpow2.f32 %v5954_v51  ;;  %v5959_v51 = vmul.f32 -1.442695, %v2847_v32  ;;  %v2846_v61 = vadd.f32 %v2815_v28, %v616_v11 }
 0x50a   :  { %6234 = vrcp.f32 %v10085_v13  ;;  %v2642_v30 = vmul.f32 %v10087_v14, %v10063_v8  ;;  %v2634_v9 = vsel %vm10103_vm8, %v10061_v21, %v2630_v57  ;;  %vm2647_vm14 = vweird.f32 %v10087_v14 }
 0x50b   :  { %6236 = vtanh.f32 %v2612_v26  ;;  %v2672_v3 = vsel %vm10113_vm9, %v10065_v44, %v2668_v5  ;;  %v2639_v16 = vsel %vm2636_vm10, %v2638_v0, %v2634_v9  ;;  %v5956_v44 = vmul.f32 -1.442695, %v2848_v29  ;;  %vm10176_vm2 = vmor %vm2646_vm12, %vm2647_vm14 }
 0x50c   :  { %v10099_v15 = vpop.eup %6226  ;;  %v2643_v49 = vsub.f32 1.0, %v2642_v30  ;;  %v2677_v2 = vsel %vm2674_vm11, %v2676_v41, %v2672_v3  ;;  %6238 = vtanh.f32 %v2616_v39  ;;  %v5958_v26 = vmul.f32 -1.442695, %v2849_v7 }
 0x50d   :  { %v6229_v62 = vpop.eup %6228  ;;  %v2680_v53 = vmul.f32 %v10099_v15, %v10073_v50  ;;  %v684_v5 = vadd.f32 %v9223_v20, %v12347_v22  ;;  %v2734_v1 = vmul.f32 %v2677_v2, %v9788_v37  ;;  %v2652_v30 = vand.u32 2147483648, %v10063_v8  ;;  %v2841_v20 = vpop.f32.mrf.mxu3 }
 0x50e   :  { %v6231_v33 = vpop.eup %6230  ;;  %v10126_v4 = vadd.f32 1.0, %v6229_v62  ;;  %v2644_v47 = vmul.f32 %v10087_v14, %v2643_v49  ;;  %v2690_v9 = vand.u32 2147483648, %v10073_v50  ;;  %v2688_v39 = vand.u32 2147483647, %v10073_v50 }
 0x50f   :  { %v6233_v21 = vpop.eup %6232  ;;  %v10128_v46 = vadd.f32 1.0, %v6231_v33  ;;  %v2681_v45 = vsub.f32 1.0, %v2680_v53  ;;  %v2851_v29 = vadd.f32 %v2841_v20, %v684_v5  ;;  %vm10164_vm15 = vcmp.eq.f32.partialorder %v2650_v36, 8.507059e+37 }
 0x510   :  { %v10130_v56 = vpop.eup %6234  ;;  %6240 = vrcp.f32 %v10126_v4  ;;  %v10141_v59 = vadd.f32 1.0, %v6233_v21  ;;  %v2645_v53 = vadd.f32 %v10087_v14, %v2644_v47  ;;  %v2653_v0 = vor.u32 1.1754944e-38, %v2652_v30 }
 0x511   :  { %v6237_v57 = vpop.eup %6236  ;;  %6242 = vrcp.f32 %v10128_v46  ;;  %v2705_v38 = vmul.f32 %v10130_v56, %v10085_v13  ;;  %v2682_v32 = vmul.f32 %v10099_v15, %v2681_v45  ;;  %vm2685_vm0 = vweird.f32 %v10099_v15 }
 0x512   :  { %v2736_v63 = vmul.f32 %v6237_v57, %v2639_v16  ;;  %6244 = vpow2.f32 %v5959_v51  ;;  %v6239_v37 = vpop.eup %6238  ;;  %v5960_v2 = vmul.f32 -1.442695, %v2851_v29  ;;  %v2691_v23 = vor.u32 1.1754944e-38, %v2690_v9  ;;  %vm10196_vm4 = vmor %vm2684_vm13, %vm2685_vm0 }
 0x513   :  { %6246 = vpow2.f32 %v5956_v44  ;;  %v2706_v33 = vsub.f32 1.0, %v2705_v38  ;;  %v2683_v51 = vadd.f32 %v10099_v15, %v2682_v32  ;;  %vm10180_vm1 = vcmp.eq.f32.partialorder %v2688_v39, 8.507059e+37 }
 0x514   :  { %6248 = vpow2.f32 %v5958_v26  ;;  %v10158_v3 = vadd.f32 %v2736_v63, %v2734_v1  ;;  %v2649_v27 = vsel %vm10176_vm2, %v10087_v14, %v2645_v53  ;;  %vm2865_vm5 = vweird.f32 %v10126_v4 }
 0x515   :  { %6250 = vrcp.f32 %v10141_v59  ;;  %v2707_v14 = vmul.f32 %v10130_v56, %v2706_v33  ;;  %v2687_v36 = vsel %vm10196_vm4, %v10099_v15, %v2683_v51  ;;  %v2654_v50 = vsel %vm10164_vm15, %v2653_v0, %v2649_v27 }
 0x516   :  { %v10156_v62 = vpop.eup %6240  ;;  %6252 = vtanh.f32 %v2846_v61  ;;  %v2869_v20 = vand.u32 2147483647, %v10126_v4  ;;  %v2871_v15 = vand.u32 2147483648, %v10126_v4  ;;  %v2692_v39 = vsel %vm10180_vm1, %v2691_v23, %v2687_v36 }
 0x517   :  { %v10162_v7 = vpop.eup %6242  ;;  %v2861_v21 = vmul.f32 %v10156_v62, %v10126_v4  ;;  %6254 = vtanh.f32 %v10158_v3  ;;  %vm2866_vm6 = vweird.f32 %v10156_v62  ;;  %v2909_v33 = vand.u32 2147483648, %v10128_v46 }
 0x518   :  { %v6245_v49 = vpop.eup %6244  ;;  %v2899_v16 = vmul.f32 %v10162_v7, %v10128_v46  ;;  %6256 = vpow2.f32 %v5960_v2  ;;  %vm2904_vm7 = vweird.f32 %v10162_v7  ;;  %v2907_v41 = vand.u32 2147483647, %v10128_v46  ;;  %vm10235_vm10 = vmor %vm2865_vm5, %vm2866_vm6 }
 0x519   :  { %v6247_v44 = vpop.eup %6246  ;;  %v2862_v26 = vsub.f32 1.0, %v2861_v21  ;;  %v10201_v47 = vadd.f32 1.0, %v6245_v49  ;;  %v2708_v0 = vadd.f32 %v10130_v56, %v2707_v14  ;;  %vm2710_vm8 = vweird.f32 %v10130_v56 }
 0x51a   :  { %v6249_v57 = vpop.eup %6248  ;;  %v2900_v5 = vsub.f32 1.0, %v2899_v16  ;;  %v10188_v28 = vadd.f32 1.0, %v6247_v44  ;;  %v2737_v49 = vmul.f32 %v6239_v37, %v2654_v50  ;;  %vm2903_vm9 = vweird.f32 %v10128_v46  ;;  %v7005_v46 = vld [vmem:[#allocation4 + $0x1e8] sm:$0xff] }
 0x51b   :  { %v10190_v8 = vpop.eup %6250  ;;  %v2863_v63 = vmul.f32 %v10156_v62, %v2862_v26  ;;  %v10203_v38 = vadd.f32 1.0, %v6249_v57  ;;  %vm10239_vm11 = vcmp.eq.f32.partialorder %v2869_v20, 8.507059e+37  ;;  %v2715_v2 = vand.u32 2147483648, %v10085_v13  ;;  %vm10249_vm12 = vmor %vm2903_vm9, %vm2904_vm7  ;;  %v7007_v57 = vld [vmem:[#allocation4 + $0x1f8] sm:$0xff] }
 0x51c   :  { %v2901_v30 = vmul.f32 %v10162_v7, %v2900_v5  ;;  %6258 = vrcp.f32 %v10188_v28  ;;  %v2720_v32 = vmul.f32 %v10190_v8, %v10141_v59  ;;  %v6253_v9 = vpop.eup %6252  ;;  %v2735_v37 = vmul.f32 %v2692_v39, %v9919_v48  ;;  %v2818_v5 = vpop.f32.mrf.mxu2 }
 0x51d   :  { %6260 = vrcp.f32 %v10203_v38  ;;  %v2864_v61 = vadd.f32 %v10156_v62, %v2863_v63  ;;  %v6255_v29 = vpop.eup %6254  ;;  %vm2709_vm13 = vweird.f32 %v10085_v13  ;;  %v2713_v23 = vand.u32 2147483647, %v10085_v13 }
 0x51e   :  { %v2902_v53 = vadd.f32 %v10162_v7, %v2901_v30  ;;  %6262 = vrcp.f32 %v10201_v47  ;;  %v6257_v21 = vpop.eup %6256  ;;  %v2872_v45 = vor.u32 1.1754944e-38, %v2871_v15  ;;  %vm10267_vm14 = vmor %vm2709_vm13, %vm2710_vm8  ;;  %v2910_v27 = vor.u32 1.1754944e-38, %v2909_v33 }
 0x51f   :  { %v2868_v4 = vsel %vm10235_vm10, %v10156_v62, %v2864_v61  ;;  %v2721_v62 = vsub.f32 1.0, %v2720_v32  ;;  %vm2908_vm15 = vcmp.eq.f32.partialorder %v2907_v41, 8.507059e+37  ;;  %v10280_v36 = vadd.f32 1.0, %v6257_v21 }
 0x520   :  { %v2906_v48 = vsel %vm10249_vm12, %v10162_v7, %v2902_v53  ;;  %v2712_v7 = vsel %vm10267_vm14, %v10130_v56, %v2708_v0  ;;  %v2873_v63 = vsel %vm10239_vm11, %v2872_v45, %v2868_v4  ;;  %v2716_v30 = vor.u32 1.1754944e-38, %v2715_v2  ;;  %v7020_v4 = vld [vmem:[#allocation4 + $0x160] sm:$0xff] }
 0x521   :  { %v10282_v50 = vadd.f32 %v2737_v49, %v2735_v37  ;;  %v2911_v20 = vsel %vm2908_vm15, %v2910_v27, %v2906_v48  ;;  %vm2714_vm0 = vcmp.eq.f32.partialorder %v2713_v23, 8.507059e+37  ;;  %v2850_v61 = vadd.f32 %v2818_v5, %v10137_v52  ;;  %v7004_v37 = vld [vmem:[#allocation4 + $0x1e0] sm:$0xff]  ;;  %v7021_v23 = vld [vmem:[#allocation4 + $0x168] sm:$0xff] }
 0x522   :  { %v10244_v44 = vpop.eup %6258  ;;  %v2717_v39 = vsel %vm2714_vm0, %v2716_v30, %v2712_v7  ;;  %v2722_v56 = vmul.f32 %v10190_v8, %v2721_v62  ;;  %v2970_v53 = vmul.f32 %v6253_v9, %v2873_v63  ;;  %v2968_v21 = vmul.f32 %v2911_v20, %v9945_v12  ;;  %v7008_v27 = vld [vmem:[#allocation4 + $0x1c0] sm:$0xff]  ;;  %v7010_v63 = vld [vmem:[#allocation4 + $0x1d0] sm:$0xff] }
 0x523   :  { %v10258_v11 = vpop.eup %6260  ;;  %v2876_v26 = vmul.f32 %v10244_v44, %v10188_v28  ;;  %v2742_v0 = vmul.f32 %v6255_v29, %v2717_v39  ;;  %6264 = vrcp.f32 %v10280_v36  ;;  %vm2725_vm2 = vweird.f32 %v10190_v8  ;;  %v7013_v39 = vld [vmem:[#allocation4 + $0x1a8] sm:$0xff] }
 0x524   :  { %v2914_v13 = vmul.f32 %v10258_v11, %v10203_v38  ;;  %v10276_v1 = vpop.eup %6262  ;;  %v2723_v49 = vadd.f32 %v10190_v8, %v2722_v56  ;;  %vm2881_vm1 = vweird.f32 %v10244_v44  ;;  %vm2724_vm4 = vweird.f32 %v10141_v59 }
 0x525   :  { %v2877_v14 = vsub.f32 1.0, %v2876_v26  ;;  %v2939_v33 = vmul.f32 %v10276_v1, %v10201_v47  ;;  %2994 = vmatmul.f32.vlgmr.msra.gmra.mxu0 %v2742_v0  ;;  %3017 = vmatmul.f32.vlgmr.msrb.gmra.mxu1 %v2742_v0  ;;  %v2730_v52 = vand.u32 2147483648, %v10141_v59  ;;  %6266 = vtanh.f32 %v10282_v50  ;;  %vm10309_vm7 = vmor %vm2724_vm4, %vm2725_vm2  ;;  %v7006_v26 = vld [vmem:[#allocation4 + $0x1f0] sm:$0xff] }
 0x526   :  { %v2915_v32 = vsub.f32 1.0, %v2914_v13  ;;  %vm2919_vm5 = vweird.f32 %v10258_v11  ;;  %3040 = vmatmul.f32.vlgmr.msrb.gmra.mxu2 %v2742_v0  ;;  %3063 = vmatmul.f32.vlgmr.msra.gmra.mxu3 %v2742_v0  ;;  %v2728_v29 = vand.u32 2147483647, %v10141_v59  ;;  %v2924_v16 = vand.u32 2147483648, %v10203_v38 }
 0x527   :  { %v2878_v15 = vmul.f32 %v10244_v44, %v2877_v14  ;;  %v2940_v51 = vsub.f32 1.0, %v2939_v33  ;;  %vm2880_vm6 = vweird.f32 %v10188_v28  ;;  %v2886_v2 = vand.u32 2147483648, %v10188_v28  ;;  %3304 = vmatpush.msra.mxu0 %v7004_v37  ;;  %3327 = vmatpush.msrb.mxu1 %v7005_v46  ;;  %v7011_v14 = vld [vmem:[#allocation4 + $0x1d8] sm:$0xff] }
 0x528   :  { %v2916_v41 = vmul.f32 %v10258_v11, %v2915_v32  ;;  %vm2918_vm8 = vweird.f32 %v10203_v38  ;;  %vm10316_vm9 = vmor %vm2880_vm6, %vm2881_vm1  ;;  %v2884_v45 = vand.u32 2147483647, %v10188_v28  ;;  %v2922_v48 = vand.u32 2147483647, %v10203_v38  ;;  %3350 = vmatpush.msrb.mxu2 %v7006_v26  ;;  %3373 = vmatpush.msra.mxu3 %v7007_v57  ;;  %v7009_v28 = vld [vmem:[#allocation4 + $0x1c8] sm:$0xff] }
 0x529   :  { %v2879_v12 = vadd.f32 %v10244_v44, %v2878_v15  ;;  %v2727_v59 = vsel %vm10309_vm7, %v10190_v8, %v2723_v49  ;;  %vm10327_vm10 = vmor %vm2918_vm8, %vm2919_vm5  ;;  %6268 = vtanh.f32 %v2850_v61  ;;  %3305 = vmatpush.msra.mxu0 %v7008_v27  ;;  %3328 = vmatpush.msrb.mxu1 %v7009_v28  ;;  %v2731_v38 = vor.u32 1.1754944e-38, %v2730_v52  ;;  %v10331_v13 = vpop.eup %6264  ;;  %v7012_v15 = vld [vmem:[#allocation4 + $0x1a0] sm:$0xff]  ;;  %v7017_v49 = vld [vmem:[#allocation4 + $0x188] sm:$0xff] }
 0x52a   :  { %v2917_v9 = vadd.f32 %v10258_v11, %v2916_v41  ;;  %v10333_v5 = vadd.f32 %v2970_v53, %v2968_v21  ;;  %3351 = vmatpush.msrb.mxu2 %v7010_v63  ;;  %3374 = vmatpush.msra.mxu3 %v7011_v14  ;;  %vm2729_vm11 = vcmp.eq.f32.partialorder %v2728_v29, 8.507059e+37  ;;  %v2941_v20 = vmul.f32 %v10276_v1, %v2940_v51  ;;  %v7016_v21 = vld [vmem:[#allocation4 + $0x180] sm:$0xff]  ;;  %v7018_v52 = vld [vmem:[#allocation4 + $0x190] sm:$0xff]  ;;  %v7025_v57 = vld [vmem:[#allocation4 + $0x148] sm:$0xff] }
 0x52b   :  { %v2883_v8 = vsel %vm10316_vm9, %v10244_v44, %v2879_v12  ;;  %v6267_v30 = vpop.eup %6266  ;;  %v2925_v32 = vor.u32 1.1754944e-38, %v2924_v16  ;;  %v2887_v61 = vor.u32 1.1754944e-38, %v2886_v2  ;;  %3306 = vmatpush.msra.mxu0 %v7012_v15  ;;  %3329 = vmatpush.msrb.mxu1 %v7013_v39  ;;  %v2732_v56 = vsel %vm2729_vm11, %v2731_v38, %v2727_v59  ;;  %v7014_v44 = vld [vmem:[#allocation4 + $0x1b0] sm:$0xff]  ;;  %v7019_v12 = vld [vmem:[#allocation4 + $0x198] sm:$0xff]  ;;  %v7029_v63 = vld [vmem:[#allocation4 + $0x128] sm:$0xff] }
 0x52c   :  { %v2921_v7 = vsel %vm10327_vm10, %v10258_v11, %v2917_v9  ;;  %vm2885_vm12 = vcmp.eq.f32.partialorder %v2884_v45, 8.507059e+37  ;;  %vm2923_vm13 = vcmp.eq.f32.partialorder %v2922_v48, 8.507059e+37  ;;  %3352 = vmatpush.msrb.mxu2 %v7014_v44  ;;  %v7015_v11 = vld [vmem:[#allocation4 + $0x1b8] sm:$0xff]  ;;  %v2743_v53 = vmul.f32 %v6267_v30, %v2732_v56  ;;  %v7022_v48 = vld [vmem:[#allocation4 + $0x170] sm:$0xff]  ;;  %v7049_v45 = vld [vmem:[#allocation4 + $0x88] sm:$0xff] }
 0x52d   :  { %3375 = vmatpush.msra.mxu3 %v7015_v11  ;;  %v2888_v33 = vsel %vm2885_vm12, %v2887_v61, %v2883_v8  ;;  %v2926_v41 = vsel %vm2923_vm13, %v2925_v32, %v2921_v7  ;;  %v2954_v0 = vmul.f32 %v10331_v13, %v10280_v36  ;;  %3307 = vmatpush.msra.mxu0 %v7016_v21  ;;  %6270 = vtanh.f32 %v10333_v5  ;;  %v7026_v28 = vld [vmem:[#allocation4 + $0x150] sm:$0xff]  ;;  %v7027_v38 = vld [vmem:[#allocation4 + $0x158] sm:$0xff]  ;;  %v7028_v7 = vld [vmem:[#allocation4 + $0x120] sm:$0xff] }
 0x52e   :  { %3330 = vmatpush.msrb.mxu1 %v7017_v49  ;;  %3353 = vmatpush.msrb.mxu2 %v7018_v52  ;;  %v2942_v29 = vadd.f32 %v10276_v1, %v2941_v20  ;;  %vm2944_vm14 = vweird.f32 %v10276_v1  ;;  %v2949_v51 = vand.u32 2147483648, %v10201_v47  ;;  %v2969_v16 = vmul.f32 %v2926_v41, %v10005_v6  ;;  %v7023_v6 = vld [vmem:[#allocation4 + $0x178] sm:$0xff]  ;;  %v7030_v14 = vld [vmem:[#allocation4 + $0x130] sm:$0xff]  ;;  %v7032_v32 = vld [vmem:[#allocation4 + $0x100] sm:$0xff] }
 0x52f   :  { %3376 = vmatpush.msra.mxu3 %v7019_v12  ;;  %v6269_v9 = vpop.eup %6268  ;;  %2997 = vmatmul.f32.gmra.mxu0 %v2743_v53  ;;  %vm2943_vm15 = vweird.f32 %v10201_v47  ;;  %v2947_v37 = vand.u32 2147483647, %v10201_v47  ;;  %v2955_v46 = vsub.f32 1.0, %v2954_v0  ;;  %v7024_v47 = vld [vmem:[#allocation4 + $0x140] sm:$0xff]  ;;  %v7031_v30 = vld [vmem:[#allocation4 + $0x138] sm:$0xff]  ;;  %v7033_v61 = vld [vmem:[#allocation4 + $0x108] sm:$0xff]  ;;  %vm2959_vm1 = vweird.f32 %v10331_v13 }
 0x530   :  { %3020 = vmatmul.f32.gmra.mxu1 %v2743_v53  ;;  %v2971_v2 = vmul.f32 %v6269_v9, %v2888_v33  ;;  %3043 = vmatmul.f32.gmra.mxu2 %v2743_v53  ;;  %vm10353_vm0 = vmor %vm2943_vm15, %vm2944_vm14  ;;  %v2950_v62 = vor.u32 1.1754944e-38, %v2949_v51  ;;  %v7034_v15 = vld [vmem:[#allocation4 + $0x110] sm:$0xff]  ;;  %v7035_v39 = vld [vmem:[#allocation4 + $0x118] sm:$0xff]  ;;  %v2964_v44 = vand.u32 2147483648, %v10280_v36  ;;  %vm2958_vm4 = vweird.f32 %v10280_v36 }
 0x531   :  { %3066 = vmatmul.f32.gmra.mxu3 %v2743_v53  ;;  %3308 = vmatpush.msra.mxu0 %v7020_v4  ;;  %v2946_v26 = vsel %vm10353_vm0, %v10276_v1, %v2942_v29  ;;  %vm2948_vm2 = vcmp.eq.f32.partialorder %v2947_v37, 8.507059e+37  ;;  %v2956_v8 = vmul.f32 %v10331_v13, %v2955_v46  ;;  %v2962_v11 = vand.u32 2147483647, %v10280_v36  ;;  %v7036_v53 = vld [vmem:[#allocation4 + $0xe0] sm:$0xff]  ;;  %v7037_v33 = vld [vmem:[#allocation4 + $0xe8] sm:$0xff]  ;;  %vm10375_vm5 = vmor %vm2958_vm4, %vm2959_vm1 }
 0x532   :  { %3331 = vmatpush.msrb.mxu1 %v7021_v23  ;;  %3354 = vmatpush.msrb.mxu2 %v7022_v48  ;;  %v10360_v27 = vadd.f32 %v2971_v2, %v2969_v16  ;;  %v2951_v1 = vsel %vm2948_vm2, %v2950_v62, %v2946_v26  ;;  %v7038_v0 = vld [vmem:[#allocation4 + $0xf0] sm:$0xff]  ;;  %v7039_v21 = vld [vmem:[#allocation4 + $0xf8] sm:$0xff]  ;;  %v7040_v52 = vld [vmem:[#allocation4 + $0xc0] sm:$0xff]  ;;  %v2965_v9 = vor.u32 1.1754944e-38, %v2964_v44 }
 0x533   :  { %3377 = vmatpush.msra.mxu3 %v7023_v6  ;;  %3309 = vmatpush.msra.mxu0 %v7024_v47  ;;  %v6271_v59 = vpop.eup %6270  ;;  %v2957_v56 = vadd.f32 %v10331_v13, %v2956_v8  ;;  %v7041_v12 = vld [vmem:[#allocation4 + $0xc8] sm:$0xff]  ;;  %v7042_v29 = vld [vmem:[#allocation4 + $0xd0] sm:$0xff]  ;;  %v7043_v51 = vld [vmem:[#allocation4 + $0xd8] sm:$0xff]  ;;  %vm2963_vm6 = vcmp.eq.f32.partialorder %v2962_v11, 8.507059e+37 }
 0x534   :  { %3332 = vmatpush.msrb.mxu1 %v7025_v57  ;;  %3355 = vmatpush.msrb.mxu2 %v7026_v28  ;;  %v10363_v20 = vmul.f32 %v6271_v59, %v2951_v1  ;;  %6272 = vtanh.f32 %v10360_v27  ;;  %v7044_v16 = vld [vmem:[#allocation4 + $0xa0] sm:$0xff]  ;;  %v7045_v2 = vld [vmem:[#allocation4 + $0xa8] sm:$0xff]  ;;  %v7046_v46 = vld [vmem:[#allocation4 + $0xb0] sm:$0xff] }
 0x535   :  { %3378 = vmatpush.msra.mxu3 %v7027_v38  ;;  %3310 = vmatpush.msra.mxu0 %v7028_v7  ;;  %v2961_v49 = vsel %vm10375_vm5, %v10331_v13, %v2957_v56  ;;  %v7047_v4 = vld [vmem:[#allocation4 + $0xb8] sm:$0xff]  ;;  %v7048_v23 = vld [vmem:[#allocation4 + $0x80] sm:$0xff]  ;;  %v7050_v48 = vld [vmem:[#allocation4 + $0x90] sm:$0xff] }
 0x536   :  { %3333 = vmatpush.msrb.mxu1 %v7029_v63  ;;  %3356 = vmatpush.msrb.mxu2 %v7030_v14  ;;  %v2966_v37 = vsel %vm2963_vm6, %v2965_v9, %v2961_v49  ;;  %v7051_v6 = vld [vmem:[#allocation4 + $0x98] sm:$0xff]  ;;  %v7052_v26 = vld [vmem:[#allocation4 + $0x60] sm:$0xff]  ;;  %v7053_v47 = vld [vmem:[#allocation4 + $0x68] sm:$0xff] }
 0x537   :  { %3379 = vmatpush.msra.mxu3 %v7031_v30  ;;  %3311 = vmatpush.msra.mxu0 %v7032_v32  ;;  %v7054_v57 = vld [vmem:[#allocation4 + $0x70] sm:$0xff]  ;;  %v7055_v59 = vld [vmem:[#allocation4 + $0x78] sm:$0xff]  ;;  %v7056_v62 = vld [vmem:[#allocation4 + $0x40] sm:$0xff] }
 0x538   :  { %3334 = vmatpush.msrb.mxu1 %v7033_v61  ;;  %3357 = vmatpush.msrb.mxu2 %v7034_v15  ;;  %v7057_v28 = vld [vmem:[#allocation4 + $0x48] sm:$0xff]  ;;  %v7058_v38 = vld [vmem:[#allocation4 + $0x50] sm:$0xff]  ;;  %v7059_v8 = vld [vmem:[#allocation4 + $0x58] sm:$0xff] }
 0x539   :  { %3380 = vmatpush.msra.mxu3 %v7035_v39  ;;  %3086 = vmatmul.f32.vlgmr.msrb.gmra.mxu0 %v10363_v20  ;;  %v7060_v7 = vld [vmem:[#allocation4 + $0x20] sm:$0xff]  ;;  %v7061_v63 = vld [vmem:[#allocation4 + $0x28] sm:$0xff]  ;;  %v7062_v1 = vld [vmem:[#allocation4 + $0x30] sm:$0xff] }
 0x53a   :  { %3109 = vmatmul.f32.vlgmr.msra.gmra.mxu1 %v10363_v20  ;;  %3132 = vmatmul.f32.vlgmr.msra.gmra.mxu2 %v10363_v20  ;;  %v6273_v36 = vpop.eup %6272  ;;  %v7063_v14 = vld [vmem:[#allocation4 + $0x38] sm:$0xff]  ;;  %v7064_v30 = vld [vmem:[#allocation4] sm:$0xff]  ;;  %v7065_v32 = vld [vmem:[#allocation4 + $0x8] sm:$0xff] }
 0x53b   :  { %3155 = vmatmul.f32.vlgmr.msrb.gmra.mxu3 %v10363_v20  ;;  %3312 = vmatpush.msra.mxu0 %v7036_v53  ;;  %v10382_v13 = vmul.f32 %v6273_v36, %v2966_v37  ;;  %v7066_v61 = vld [vmem:[#allocation4 + $0x10] sm:$0xff]  ;;  %v7067_v15 = vld [vmem:[#allocation4 + $0x18] sm:$0xff]  ;;  %v7068_v39 = vld [vmem:[#allocation8 + $0x1e0] sm:$0xff] }
 0x53c   :  { %3335 = vmatpush.msrb.mxu1 %v7037_v33  ;;  %3358 = vmatpush.msrb.mxu2 %v7038_v0  ;;  %v7069_v56 = vld [vmem:[#allocation8 + $0x1e8] sm:$0xff]  ;;  %v7070_v44 = vld [vmem:[#allocation8 + $0x1f0] sm:$0xff]  ;;  %v7071_v11 = vld [vmem:[#allocation8 + $0x1f8] sm:$0xff] }
 0x53d   :  { %3381 = vmatpush.msra.mxu3 %v7039_v21  ;;  %3313 = vmatpush.msra.mxu0 %v7040_v52  ;;  %v7072_v53 = vld [vmem:[#allocation8 + $0x1c0] sm:$0xff]  ;;  %v7073_v33 = vld [vmem:[#allocation8 + $0x1c8] sm:$0xff]  ;;  %v7074_v41 = vld [vmem:[#allocation8 + $0x1d0] sm:$0xff] }
 0x53e   :  { %3336 = vmatpush.msrb.mxu1 %v7041_v12  ;;  %3359 = vmatpush.msrb.mxu2 %v7042_v29  ;;  %v7075_v0 = vld [vmem:[#allocation8 + $0x1d8] sm:$0xff]  ;;  %v7076_v21 = vld [vmem:[#allocation8 + $0x1a0] sm:$0xff]  ;;  %v7077_v49 = vld [vmem:[#allocation8 + $0x1a8] sm:$0xff] }
 0x53f   :  { %3382 = vmatpush.msra.mxu3 %v7043_v51  ;;  %3314 = vmatpush.msra.mxu0 %v7044_v16  ;;  %v7079_v52 = vld [vmem:[#allocation8 + $0x1b8] sm:$0xff]  ;;  %v7080_v12 = vld [vmem:[#allocation8 + $0x180] sm:$0xff]  ;;  %v7081_v36 = vld [vmem:[#allocation8 + $0x188] sm:$0xff] }
 0x540   :  { %3337 = vmatpush.msrb.mxu1 %v7045_v2  ;;  %3360 = vmatpush.msrb.mxu2 %v7046_v46  ;;  %v7082_v9 = vld [vmem:[#allocation8 + $0x190] sm:$0xff]  ;;  %v7083_v29 = vld [vmem:[#allocation8 + $0x198] sm:$0xff]  ;;  %v7084_v51 = vld [vmem:[#allocation8 + $0x160] sm:$0xff] }
 0x541   :  { %3383 = vmatpush.msra.mxu3 %v7047_v4  ;;  %3315 = vmatpush.msra.mxu0 %v7048_v23  ;;  %v7085_v16 = vld [vmem:[#allocation8 + $0x168] sm:$0xff]  ;;  %v7086_v2 = vld [vmem:[#allocation8 + $0x170] sm:$0xff]  ;;  %v7087_v37 = vld [vmem:[#allocation8 + $0x178] sm:$0xff] }
 0x542   :  { %3338 = vmatpush.msrb.mxu1 %v7049_v45  ;;  %3361 = vmatpush.msrb.mxu2 %v7050_v48  ;;  %v7088_v46 = vld [vmem:[#allocation8 + $0x140] sm:$0xff]  ;;  %v7089_v4 = vld [vmem:[#allocation8 + $0x148] sm:$0xff]  ;;  %v7091_v23 = vld [vmem:[#allocation8 + $0x158] sm:$0xff] }
 0x543   :  { %3384 = vmatpush.msra.mxu3 %v7051_v6  ;;  %3089 = vmatmul.f32.gmra.mxu0 %v10382_v13  ;;  %v7092_v45 = vld [vmem:[#allocation8 + $0x120] sm:$0xff]  ;;  %v7093_v48 = vld [vmem:[#allocation8 + $0x128] sm:$0xff]  ;;  %v7094_v6 = vld [vmem:[#allocation8 + $0x130] sm:$0xff] }
 0x544   :  { %3112 = vmatmul.f32.gmra.mxu1 %v10382_v13  ;;  %3135 = vmatmul.f32.gmra.mxu2 %v10382_v13 }
 0x545   :  { %3158 = vmatmul.f32.gmra.mxu3 %v10382_v13  ;;  %3316 = vmatpush.msra.mxu0 %v7052_v26  ;;  %v7095_v26 = vld [vmem:[#allocation8 + $0x138] sm:$0xff] }
 0x546   :  { %3339 = vmatpush.msrb.mxu1 %v7053_v47  ;;  %3362 = vmatpush.msrb.mxu2 %v7054_v57  ;;  %v7096_v47 = vld [vmem:[#allocation8 + $0x100] sm:$0xff]  ;;  %v7097_v57 = vld [vmem:[#allocation8 + $0x108] sm:$0xff] }
 0x547   :  { %3385 = vmatpush.msra.mxu3 %v7055_v59  ;;  %3317 = vmatpush.msra.mxu0 %v7056_v62  ;;  %v7098_v59 = vld [vmem:[#allocation8 + $0x110] sm:$0xff]  ;;  %v7099_v62 = vld [vmem:[#allocation8 + $0x118] sm:$0xff] }
 0x548   :  { %3340 = vmatpush.msrb.mxu1 %v7057_v28  ;;  %3363 = vmatpush.msrb.mxu2 %v7058_v38  ;;  %v7100_v28 = vld [vmem:[#allocation8 + $0xe0] sm:$0xff]  ;;  %v7101_v38 = vld [vmem:[#allocation8 + $0xe8] sm:$0xff] }
 0x549   :  { %3386 = vmatpush.msra.mxu3 %v7059_v8  ;;  %3318 = vmatpush.msra.mxu0 %v7060_v7  ;;  %v7102_v8 = vld [vmem:[#allocation8 + $0xf0] sm:$0xff]  ;;  %v7103_v7 = vld [vmem:[#allocation8 + $0xf8] sm:$0xff] }
 0x54a   :  { %3341 = vmatpush.msrb.mxu1 %v7061_v63  ;;  %3364 = vmatpush.msrb.mxu2 %v7062_v1  ;;  %v7104_v63 = vld [vmem:[#allocation8 + $0xc0] sm:$0xff]  ;;  %v7105_v1 = vld [vmem:[#allocation8 + $0xc8] sm:$0xff] }
 0x54b   :  { %3387 = vmatpush.msra.mxu3 %v7063_v14  ;;  %3319 = vmatpush.msra.mxu0 %v7064_v30  ;;  %v7106_v14 = vld [vmem:[#allocation8 + $0xd0] sm:$0xff]  ;;  %v7107_v30 = vld [vmem:[#allocation8 + $0xd8] sm:$0xff] }
 0x54c   :  { %3342 = vmatpush.msrb.mxu1 %v7065_v32  ;;  %3365 = vmatpush.msrb.mxu2 %v7066_v61  ;;  %v7108_v32 = vld [vmem:[#allocation8 + $0xa0] sm:$0xff]  ;;  %v7109_v61 = vld [vmem:[#allocation8 + $0xa8] sm:$0xff] }
 0x54d   :  { %3388 = vmatpush.msra.mxu3 %v7067_v15  ;;  %3320 = vmatmul.f32.vlgmr.msra.gmra.mxu0 %v10363_v20  ;;  %v7110_v15 = vld [vmem:[#allocation8 + $0xb0] sm:$0xff] }
 0x54e   :  { %3343 = vmatmul.f32.vlgmr.msrb.gmra.mxu1 %v10363_v20  ;;  %3366 = vmatmul.f32.vlgmr.msrb.gmra.mxu2 %v10363_v20 }
 0x54f   :  { %3389 = vmatmul.f32.vlgmr.msra.gmra.mxu3 %v10363_v20  ;;  %3530 = vmatpush.msrb.mxu0 %v7068_v39  ;;  %v7078_v20 = vld [vmem:[#allocation8 + $0x1b0] sm:$0xff]  ;;  %v7111_v39 = vld [vmem:[#allocation8 + $0xb8] sm:$0xff] }
 0x550   :  { %3553 = vmatpush.msra.mxu1 %v7069_v56  ;;  %3576 = vmatpush.msra.mxu2 %v7070_v44  ;;  %v7112_v56 = vld [vmem:[#allocation8 + $0x80] sm:$0xff]  ;;  %v7113_v44 = vld [vmem:[#allocation8 + $0x88] sm:$0xff] }
 0x551   :  { %3599 = vmatpush.msrb.mxu3 %v7071_v11  ;;  %3531 = vmatpush.msrb.mxu0 %v7072_v53  ;;  %v7114_v11 = vld [vmem:[#allocation8 + $0x90] sm:$0xff]  ;;  %v7115_v53 = vld [vmem:[#allocation8 + $0x98] sm:$0xff] }
 0x552   :  { %3554 = vmatpush.msra.mxu1 %v7073_v33  ;;  %3577 = vmatpush.msra.mxu2 %v7074_v41  ;;  %v7116_v33 = vld [vmem:[#allocation8 + $0x60] sm:$0xff]  ;;  %v7117_v41 = vld [vmem:[#allocation8 + $0x68] sm:$0xff] }
 0x553   :  { %3600 = vmatpush.msrb.mxu3 %v7075_v0  ;;  %3532 = vmatpush.msrb.mxu0 %v7076_v21  ;;  %v7118_v0 = vld [vmem:[#allocation8 + $0x70] sm:$0xff]  ;;  %v7119_v21 = vld [vmem:[#allocation8 + $0x78] sm:$0xff] }
 0x554   :  { %3555 = vmatpush.msra.mxu1 %v7077_v49  ;;  %3578 = vmatpush.msra.mxu2 %v7078_v20  ;;  %v7120_v49 = vld [vmem:[#allocation8 + $0x40] sm:$0xff]  ;;  %v7121_v20 = vld [vmem:[#allocation8 + $0x48] sm:$0xff] }
 0x555   :  { %3601 = vmatpush.msrb.mxu3 %v7079_v52  ;;  %3323 = vmatmul.f32.gmra.mxu0 %v10382_v13  ;;  %v7122_v52 = vld [vmem:[#allocation8 + $0x50] sm:$0xff] }
 0x556   :  { %3346 = vmatmul.f32.gmra.mxu1 %v10382_v13  ;;  %3369 = vmatmul.f32.gmra.mxu2 %v10382_v13 }
 0x557   :  { %3392 = vmatmul.f32.gmra.mxu3 %v10382_v13  ;;  %3533 = vmatpush.msrb.mxu0 %v7080_v12  ;;  %v7090_v13 = vld [vmem:[#allocation8 + $0x150] sm:$0xff]  ;;  %v7123_v12 = vld [vmem:[#allocation8 + $0x58] sm:$0xff] }
 0x558   :  { %3556 = vmatpush.msra.mxu1 %v7081_v36  ;;  %3579 = vmatpush.msra.mxu2 %v7082_v9  ;;  %v7124_v36 = vld [vmem:[#allocation8 + $0x20] sm:$0xff]  ;;  %v7125_v9 = vld [vmem:[#allocation8 + $0x28] sm:$0xff] }
 0x559   :  { %3602 = vmatpush.msrb.mxu3 %v7083_v29  ;;  %3534 = vmatpush.msrb.mxu0 %v7084_v51  ;;  %v7126_v29 = vld [vmem:[#allocation8 + $0x30] sm:$0xff]  ;;  %v7127_v51 = vld [vmem:[#allocation8 + $0x38] sm:$0xff] }
 0x55a   :  { %3557 = vmatpush.msra.mxu1 %v7085_v16  ;;  %3580 = vmatpush.msra.mxu2 %v7086_v2  ;;  %v7128_v16 = vld [vmem:[#allocation8] sm:$0xff]  ;;  %v7129_v2 = vld [vmem:[#allocation8 + $0x8] sm:$0xff] }
 0x55b   :  { %3603 = vmatpush.msrb.mxu3 %v7087_v37  ;;  %3535 = vmatpush.msrb.mxu0 %v7088_v46  ;;  %v7130_v37 = vld [vmem:[#allocation8 + $0x10] sm:$0xff]  ;;  %v7131_v46 = vld [vmem:[#allocation8 + $0x18] sm:$0xff] }
 0x55c   :  { %3558 = vmatpush.msra.mxu1 %v7089_v4  ;;  %3581 = vmatpush.msra.mxu2 %v7090_v13  ;;  %v7132_v4 = vld [vmem:[#allocation6 + $0x1e0] sm:$0xff]  ;;  %v7133_v13 = vld [vmem:[#allocation6 + $0x1e8] sm:$0xff] }
 0x55d   :  { %3604 = vmatpush.msrb.mxu3 %v7091_v23  ;;  %3536 = vmatpush.msrb.mxu0 %v7092_v45  ;;  %v7134_v23 = vld [vmem:[#allocation6 + $0x1f0] sm:$0xff]  ;;  %v7135_v45 = vld [vmem:[#allocation6 + $0x1f8] sm:$0xff] }
 0x55e   :  { %3559 = vmatpush.msra.mxu1 %v7093_v48  ;;  %3582 = vmatpush.msra.mxu2 %v7094_v6  ;;  %v7136_v48 = vld [vmem:[#allocation6 + $0x1c0] sm:$0xff]  ;;  %v7137_v6 = vld [vmem:[#allocation6 + $0x1c8] sm:$0xff] }
 0x55f   :  { %3605 = vmatpush.msrb.mxu3 %v7095_v26  ;;  %3537 = vmatpush.msrb.mxu0 %v7096_v47  ;;  %v7138_v26 = vld [vmem:[#allocation6 + $0x1d0] sm:$0xff]  ;;  %v7139_v47 = vld [vmem:[#allocation6 + $0x1d8] sm:$0xff] }
 0x560   :  { %3560 = vmatpush.msra.mxu1 %v7097_v57  ;;  %3583 = vmatpush.msra.mxu2 %v7098_v59  ;;  %v7140_v57 = vld [vmem:[#allocation6 + $0x1a0] sm:$0xff]  ;;  %v7141_v59 = vld [vmem:[#allocation6 + $0x1a8] sm:$0xff] }
 0x561   :  { %3606 = vmatpush.msrb.mxu3 %v7099_v62  ;;  %3538 = vmatpush.msrb.mxu0 %v7100_v28  ;;  %v7142_v62 = vld [vmem:[#allocation6 + $0x1b0] sm:$0xff]  ;;  %v7143_v28 = vld [vmem:[#allocation6 + $0x1b8] sm:$0xff] }
 0x562   :  { %3561 = vmatpush.msra.mxu1 %v7101_v38  ;;  %3584 = vmatpush.msra.mxu2 %v7102_v8  ;;  %v7144_v38 = vld [vmem:[#allocation6 + $0x180] sm:$0xff]  ;;  %v7145_v8 = vld [vmem:[#allocation6 + $0x188] sm:$0xff] }
 0x563   :  { %3607 = vmatpush.msrb.mxu3 %v7103_v7  ;;  %3539 = vmatpush.msrb.mxu0 %v7104_v63  ;;  %v7146_v7 = vld [vmem:[#allocation6 + $0x190] sm:$0xff]  ;;  %v7147_v63 = vld [vmem:[#allocation6 + $0x198] sm:$0xff] }
 0x564   :  { %3562 = vmatpush.msra.mxu1 %v7105_v1  ;;  %3585 = vmatpush.msra.mxu2 %v7106_v14  ;;  %v7148_v1 = vld [vmem:[#allocation6 + $0x160] sm:$0xff]  ;;  %v7149_v14 = vld [vmem:[#allocation6 + $0x168] sm:$0xff] }
 0x565   :  { %3608 = vmatpush.msrb.mxu3 %v7107_v30  ;;  %3540 = vmatpush.msrb.mxu0 %v7108_v32  ;;  %v7150_v30 = vld [vmem:[#allocation6 + $0x170] sm:$0xff]  ;;  %v7151_v32 = vld [vmem:[#allocation6 + $0x178] sm:$0xff] }
 0x566   :  { %3563 = vmatpush.msra.mxu1 %v7109_v61  ;;  %3586 = vmatpush.msra.mxu2 %v7110_v15  ;;  %v7152_v61 = vld [vmem:[#allocation6 + $0x140] sm:$0xff]  ;;  %v7153_v15 = vld [vmem:[#allocation6 + $0x148] sm:$0xff] }
 0x567   :  { %3609 = vmatpush.msrb.mxu3 %v7111_v39  ;;  %3541 = vmatpush.msrb.mxu0 %v7112_v56  ;;  %v7154_v39 = vld [vmem:[#allocation6 + $0x150] sm:$0xff]  ;;  %v7155_v56 = vld [vmem:[#allocation6 + $0x158] sm:$0xff] }
 0x568   :  { %3564 = vmatpush.msra.mxu1 %v7113_v44  ;;  %3587 = vmatpush.msra.mxu2 %v7114_v11  ;;  %v7156_v44 = vld [vmem:[#allocation6 + $0x120] sm:$0xff]  ;;  %v7157_v11 = vld [vmem:[#allocation6 + $0x128] sm:$0xff] }
 0x569   :  { %3610 = vmatpush.msrb.mxu3 %v7115_v53  ;;  %3542 = vmatpush.msrb.mxu0 %v7116_v33  ;;  %v7158_v53 = vld [vmem:[#allocation6 + $0x130] sm:$0xff]  ;;  %v7159_v33 = vld [vmem:[#allocation6 + $0x138] sm:$0xff] }
 0x56a   :  { %3565 = vmatpush.msra.mxu1 %v7117_v41  ;;  %3588 = vmatpush.msra.mxu2 %v7118_v0  ;;  %v7160_v41 = vld [vmem:[#allocation6 + $0x100] sm:$0xff]  ;;  %v7161_v0 = vld [vmem:[#allocation6 + $0x108] sm:$0xff] }
 0x56b   :  { %3611 = vmatpush.msrb.mxu3 %v7119_v21  ;;  %3543 = vmatpush.msrb.mxu0 %v7120_v49  ;;  %v7162_v21 = vld [vmem:[#allocation6 + $0x110] sm:$0xff]  ;;  %v7163_v49 = vld [vmem:[#allocation6 + $0x118] sm:$0xff] }
 0x56c   :  { %3566 = vmatpush.msra.mxu1 %v7121_v20  ;;  %3589 = vmatpush.msra.mxu2 %v7122_v52  ;;  %v7164_v20 = vld [vmem:[#allocation6 + $0xe0] sm:$0xff]  ;;  %v7165_v52 = vld [vmem:[#allocation6 + $0xe8] sm:$0xff] }
 0x56d   :  { %3612 = vmatpush.msrb.mxu3 %v7123_v12  ;;  %3544 = vmatpush.msrb.mxu0 %v7124_v36  ;;  %v7166_v12 = vld [vmem:[#allocation6 + $0xf0] sm:$0xff]  ;;  %v7167_v36 = vld [vmem:[#allocation6 + $0xf8] sm:$0xff] }
 0x56e   :  { %3567 = vmatpush.msra.mxu1 %v7125_v9  ;;  %3590 = vmatpush.msra.mxu2 %v7126_v29  ;;  %v7168_v9 = vld [vmem:[#allocation6 + $0xc0] sm:$0xff]  ;;  %v7169_v29 = vld [vmem:[#allocation6 + $0xc8] sm:$0xff] }
 0x56f   :  { %3613 = vmatpush.msrb.mxu3 %v7127_v51  ;;  %3545 = vmatpush.msrb.mxu0 %v7128_v16  ;;  %v7170_v51 = vld [vmem:[#allocation6 + $0xd0] sm:$0xff]  ;;  %v7171_v16 = vld [vmem:[#allocation6 + $0xd8] sm:$0xff] }
 0x570   :  { %3568 = vmatpush.msra.mxu1 %v7129_v2  ;;  %3591 = vmatpush.msra.mxu2 %v7130_v37  ;;  %v7172_v2 = vld [vmem:[#allocation6 + $0xa0] sm:$0xff]  ;;  %v7173_v37 = vld [vmem:[#allocation6 + $0xa8] sm:$0xff] }
 0x571   :  { %3614 = vmatpush.msrb.mxu3 %v7131_v46  ;;  %3622 = vmatpush.msra.mxu0 %v7132_v4  ;;  %v7174_v46 = vld [vmem:[#allocation6 + $0xb0] sm:$0xff]  ;;  %v7175_v4 = vld [vmem:[#allocation6 + $0xb8] sm:$0xff] }
 0x572   :  { %3645 = vmatpush.msrb.mxu1 %v7133_v13  ;;  %3668 = vmatpush.msrb.mxu2 %v7134_v23  ;;  %v7176_v13 = vld [vmem:[#allocation6 + $0x80] sm:$0xff]  ;;  %v7177_v23 = vld [vmem:[#allocation6 + $0x88] sm:$0xff] }
 0x573   :  { %3691 = vmatpush.msra.mxu3 %v7135_v45  ;;  %3623 = vmatpush.msra.mxu0 %v7136_v48  ;;  %v7178_v45 = vld [vmem:[#allocation6 + $0x90] sm:$0xff]  ;;  %v7179_v48 = vld [vmem:[#allocation6 + $0x98] sm:$0xff] }
 0x574   :  { %3646 = vmatpush.msrb.mxu1 %v7137_v6  ;;  %3669 = vmatpush.msrb.mxu2 %v7138_v26  ;;  %v7180_v6 = vld [vmem:[#allocation6 + $0x60] sm:$0xff]  ;;  %v7181_v26 = vld [vmem:[#allocation6 + $0x68] sm:$0xff] }
 0x575   :  { %3692 = vmatpush.msra.mxu3 %v7139_v47  ;;  %3624 = vmatpush.msra.mxu0 %v7140_v57  ;;  %v7182_v47 = vld [vmem:[#allocation6 + $0x70] sm:$0xff]  ;;  %v7183_v57 = vld [vmem:[#allocation6 + $0x78] sm:$0xff] }
 0x576   :  { %3647 = vmatpush.msrb.mxu1 %v7141_v59  ;;  %3670 = vmatpush.msrb.mxu2 %v7142_v62  ;;  %v7184_v59 = vld [vmem:[#allocation6 + $0x40] sm:$0xff]  ;;  %v7185_v62 = vld [vmem:[#allocation6 + $0x48] sm:$0xff] }
 0x577   :  { %3693 = vmatpush.msra.mxu3 %v7143_v28  ;;  %3625 = vmatpush.msra.mxu0 %v7144_v38  ;;  %v7186_v28 = vld [vmem:[#allocation6 + $0x50] sm:$0xff]  ;;  %v7187_v38 = vld [vmem:[#allocation6 + $0x58] sm:$0xff] }
 0x578   :  { %3648 = vmatpush.msrb.mxu1 %v7145_v8  ;;  %3671 = vmatpush.msrb.mxu2 %v7146_v7  ;;  %v7188_v8 = vld [vmem:[#allocation6 + $0x20] sm:$0xff]  ;;  %v7189_v7 = vld [vmem:[#allocation6 + $0x28] sm:$0xff] }
 0x579   :  { %3694 = vmatpush.msra.mxu3 %v7147_v63  ;;  %3626 = vmatpush.msra.mxu0 %v7148_v1  ;;  %v7190_v63 = vld [vmem:[#allocation6 + $0x30] sm:$0xff]  ;;  %v7191_v1 = vld [vmem:[#allocation6 + $0x38] sm:$0xff] }
 0x57a   :  { %3649 = vmatpush.msrb.mxu1 %v7149_v14  ;;  %3672 = vmatpush.msrb.mxu2 %v7150_v30  ;;  %v7192_v14 = vld [vmem:[#allocation6] sm:$0xff]  ;;  %v7193_v30 = vld [vmem:[#allocation6 + $0x8] sm:$0xff] }
 0x57b   :  { %3695 = vmatpush.msra.mxu3 %v7151_v32  ;;  %3627 = vmatpush.msra.mxu0 %v7152_v61  ;;  %v7194_v32 = vld [vmem:[#allocation6 + $0x10] sm:$0xff]  ;;  %v7195_v61 = vld [vmem:[#allocation6 + $0x18] sm:$0xff] }
 0x57c   :  { %3650 = vmatpush.msrb.mxu1 %v7153_v15  ;;  %3673 = vmatpush.msrb.mxu2 %v7154_v39 }
 0x57d   :  { %3696 = vmatpush.msra.mxu3 %v7155_v56  ;;  %3628 = vmatpush.msra.mxu0 %v7156_v44 }
 0x57e   :  { %3651 = vmatpush.msrb.mxu1 %v7157_v11  ;;  %3674 = vmatpush.msrb.mxu2 %v7158_v53 }
 0x57f   :  { %3697 = vmatpush.msra.mxu3 %v7159_v33  ;;  %3629 = vmatpush.msra.mxu0 %v7160_v41 }
 0x580   :  { %3652 = vmatpush.msrb.mxu1 %v7161_v0  ;;  %3675 = vmatpush.msrb.mxu2 %v7162_v21 }
 0x581   :  { %3698 = vmatpush.msra.mxu3 %v7163_v49  ;;  %3630 = vmatpush.msra.mxu0 %v7164_v20 }
 0x582   :  { %3653 = vmatpush.msrb.mxu1 %v7165_v52  ;;  %3676 = vmatpush.msrb.mxu2 %v7166_v12 }
 0x583   :  { %3699 = vmatpush.msra.mxu3 %v7167_v36  ;;  %3631 = vmatpush.msra.mxu0 %v7168_v9 }
 0x584   :  { %3654 = vmatpush.msrb.mxu1 %v7169_v29  ;;  %3677 = vmatpush.msrb.mxu2 %v7170_v51 }
 0x585   :  { %3700 = vmatpush.msra.mxu3 %v7171_v16  ;;  %3632 = vmatpush.msra.mxu0 %v7172_v2 }
 0x586   :  { %3655 = vmatpush.msrb.mxu1 %v7173_v37  ;;  %3678 = vmatpush.msrb.mxu2 %v7174_v46 }
 0x587   :  { %3701 = vmatpush.msra.mxu3 %v7175_v4  ;;  %3633 = vmatpush.msra.mxu0 %v7176_v13 }
 0x588   :  { %3656 = vmatpush.msrb.mxu1 %v7177_v23  ;;  %3679 = vmatpush.msrb.mxu2 %v7178_v45 }
 0x589   :  { %3702 = vmatpush.msra.mxu3 %v7179_v48  ;;  %3634 = vmatpush.msra.mxu0 %v7180_v6 }
 0x58a   :  { %3657 = vmatpush.msrb.mxu1 %v7181_v26  ;;  %3680 = vmatpush.msrb.mxu2 %v7182_v47 }
 0x58b   :  { %3703 = vmatpush.msra.mxu3 %v7183_v57  ;;  %3635 = vmatpush.msra.mxu0 %v7184_v59 }
 0x58c   :  { %3658 = vmatpush.msrb.mxu1 %v7185_v62  ;;  %3681 = vmatpush.msrb.mxu2 %v7186_v28 }
 0x58d   :  { %3704 = vmatpush.msra.mxu3 %v7187_v38  ;;  %3636 = vmatpush.msra.mxu0 %v7188_v8  ;;  %v12455_v38 = vld [vmem:[#allocation35_spill] sm:$0xff] }
 0x58e   :  { %3659 = vmatpush.msrb.mxu1 %v7189_v7  ;;  %3682 = vmatpush.msrb.mxu2 %v7190_v63  ;;  %v492_v8 = vadd.f32 %v12455_v38, %v12341_v60 }
 0x58f   :  { %3705 = vmatpush.msra.mxu3 %v7191_v1  ;;  %3637 = vmatpush.msra.mxu0 %v7192_v14  ;;  %v12456_v1 = vld [vmem:[#allocation20_spill] sm:$0xff] }
 0x590   :  { %3660 = vmatpush.msrb.mxu1 %v7193_v30  ;;  %3683 = vmatpush.msrb.mxu2 %v7194_v32  ;;  %v557_v14 = vadd.f32 %v12456_v1, %v8986_v43 }
 0x591   :  { %3706 = vmatpush.msra.mxu3 %v7195_v61 }
 0x5a2   :  { %v2995_v15 = vpop.f32.mrf.mxu0  ;;  %v3018_v39 = vpop.f32.mrf.mxu1 }
 0x5a9   :  { %v3064_v56 = vpop.f32.mrf.mxu3  ;;  %v3041_v53 = vpop.f32.mrf.mxu2 }
 0x5ac   :  { %v2998_v44 = vpop.f32.mrf.mxu0 }
 0x5ad   :  { %v3021_v11 = vpop.f32.mrf.mxu1 }
 0x5b3   :  { %v3044_v20 = vpop.f32.mrf.mxu2 }
 0x5b4   :  { %v3067_v33 = vpop.f32.mrf.mxu3 }
 0x5b6   :  { %v3087_v41 = vpop.f32.mrf.mxu0 }
 0x5b7   :  { %v3110_v0 = vpop.f32.mrf.mxu1  ;;  %v3088_v21 = vadd.f32 %v3087_v41, %v2995_v15 }
 0x5b8   :  { %v3111_v49 = vadd.f32 %v3110_v0, %v3018_v39 }
 0x5b9   :  { %v3162_v52 = vadd.f32 %v3088_v21, %v9304_v31 }
 0x5ba   :  { %v3163_v12 = vadd.f32 %v3111_v49, %v9306_v34 }
 0x5bb   :  { %v5961_v36 = vmul.f32 -1.442695, %v3162_v52  ;;  %v12457_v52 = vld [vmem:[#allocation42_spill] sm:$0xff] }
 0x5bc   :  { %v5963_v9 = vmul.f32 -1.442695, %v3163_v12  ;;  %v10422_v12 = vadd.f32 %v12457_v52, %v9042_v10 }
 0x5bd   :  { %6274 = vpow2.f32 %v5961_v36  ;;  %v3133_v13 = vpop.f32.mrf.mxu2 }
 0x5be   :  { %v3156_v29 = vpop.f32.mrf.mxu3  ;;  %6276 = vpow2.f32 %v5963_v9  ;;  %v3134_v0 = vadd.f32 %v3133_v13, %v3041_v53 }
 0x5bf   :  { %v3157_v51 = vadd.f32 %v3156_v29, %v3064_v56 }
 0x5c0   :  { %v3090_v2 = vpop.f32.mrf.mxu0 }
 0x5c1   :  { %v3165_v16 = vadd.f32 %v3157_v51, %v9310_v35  ;;  %v3113_v37 = vpop.f32.mrf.mxu1  ;;  %v3091_v46 = vadd.f32 %v3090_v2, %v2998_v44 }
 0x5c2   :  { %v3114_v4 = vadd.f32 %v3113_v37, %v3021_v11 }
 0x5c3   :  { %v5965_v23 = vmul.f32 -1.442695, %v3165_v16  ;;  %v6275_v45 = vpop.eup %6274  ;;  %v3166_v48 = vadd.f32 %v3091_v46, %v9304_v31 }
 0x5c4   :  { %v3167_v6 = vadd.f32 %v3114_v4, %v9306_v34  ;;  %v6277_v26 = vpop.eup %6276  ;;  %v10401_v47 = vadd.f32 1.0, %v6275_v45  ;;  %v3164_v4 = vadd.f32 %v3134_v0, %v9325_v42 }
 0x5c5   :  { %6278 = vpow2.f32 %v5965_v23  ;;  %v10403_v57 = vadd.f32 1.0, %v6277_v26  ;;  %v5962_v59 = vmul.f32 -1.442695, %v3166_v48 }
 0x5c6   :  { %v5964_v62 = vmul.f32 -1.442695, %v3167_v6  ;;  %6280 = vrcp.f32 %v10401_v47  ;;  %vm3183_vm7 = vweird.f32 %v10401_v47  ;;  %v3189_v6 = vand.u32 2147483648, %v10401_v47 }
 0x5c7   :  { %6282 = vrcp.f32 %v10403_v57  ;;  %v3136_v44 = vpop.f32.mrf.mxu2  ;;  %v3227_v45 = vand.u32 2147483648, %v10403_v57  ;;  %vm3221_vm10 = vweird.f32 %v10403_v57 }
 0x5c8   :  { %v3159_v28 = vpop.f32.mrf.mxu3  ;;  %6284 = vpow2.f32 %v5962_v59  ;;  %v3137_v2 = vadd.f32 %v3136_v44, %v3044_v20  ;;  %v3187_v20 = vand.u32 2147483647, %v10401_v47  ;;  %v10469_v44 = vadd.f32 %v9257_v58, %v12347_v22 }
 0x5c9   :  { %6286 = vpow2.f32 %v5964_v62  ;;  %v3160_v7 = vadd.f32 %v3159_v28, %v3067_v33  ;;  %v3225_v62 = vand.u32 2147483647, %v10403_v57  ;;  %v3190_v58 = vor.u32 1.1754944e-38, %v3189_v6 }
 0x5ca   :  { %v3321_v30 = vpop.f32.mrf.mxu0  ;;  %v3168_v28 = vadd.f32 %v3137_v2, %v9325_v42  ;;  %vm10477_vm13 = vcmp.eq.f32.partialorder %v3187_v20, 8.507059e+37  ;;  %v3228_v52 = vor.u32 1.1754944e-38, %v3227_v45 }
 0x5cb   :  { %v6279_v63 = vpop.eup %6278  ;;  %v3344_v32 = vpop.f32.mrf.mxu1  ;;  %v3169_v15 = vadd.f32 %v3160_v7, %v9310_v35  ;;  %v3396_v39 = vadd.f32 %v3321_v30, %v492_v8  ;;  %v12458_v8 = vld [vmem:[#allocation41_spill] sm:$0xff]  ;;  %vm3226_vm14 = vcmp.eq.f32.partialorder %v3225_v62, 8.507059e+37 }
 0x5cc   :  { %v10411_v61 = vadd.f32 1.0, %v6279_v63  ;;  %v10414_v56 = vpop.eup %6280  ;;  %v3397_v11 = vadd.f32 %v3344_v32, %v557_v14  ;;  %v495_v7 = vadd.f32 %v12458_v8, %v12341_v60  ;;  %v12459_v63 = vld [vmem:[#allocation22_spill] sm:$0xff]  ;;  %v12460_v14 = vld [vmem:[#allocation44_spill] sm:$0xff] }
 0x5cd   :  { %v10416_v41 = vpop.eup %6282  ;;  %v3179_v33 = vmul.f32 %v10414_v56, %v10401_v47  ;;  %v5966_v21 = vmul.f32 -1.442695, %v3169_v15  ;;  %v5967_v9 = vmul.f32 -1.442695, %v3396_v39  ;;  %vm3184_vm8 = vweird.f32 %v10414_v56 }
 0x5ce   :  { %v6285_v49 = vpop.eup %6284  ;;  %v3217_v36 = vmul.f32 %v10416_v41, %v10403_v57  ;;  %6288 = vrcp.f32 %v10411_v61  ;;  %v5969_v46 = vmul.f32 -1.442695, %v3397_v11  ;;  %vm3222_vm9 = vweird.f32 %v10416_v41  ;;  %vm10461_vm11 = vmor %vm3183_vm7, %vm3184_vm8 }
 0x5cf   :  { %v6287_v29 = vpop.eup %6286  ;;  %v3180_v51 = vsub.f32 1.0, %v3179_v33  ;;  %v10427_v16 = vadd.f32 1.0, %v6285_v49  ;;  %6290 = vpow2.f32 %v5966_v21  ;;  %v560_v1 = vadd.f32 %v12459_v63, %v8986_v43  ;;  %vm10473_vm12 = vmor %vm3221_vm10, %vm3222_vm9 }
 0x5d0   :  { %v3218_v37 = vsub.f32 1.0, %v3217_v36  ;;  %v10429_v53 = vadd.f32 1.0, %v6287_v29  ;;  %6292 = vpow2.f32 %v5967_v9  ;;  %v10454_v30 = vadd.f32 %v12460_v14, %v9042_v10 }
 0x5d1   :  { %v3181_v13 = vmul.f32 %v10414_v56, %v3180_v51  ;;  %6294 = vrcp.f32 %v10427_v16  ;;  %v687_v39 = vadd.f32 %v9240_v17, %v12347_v22  ;;  %v3202_v29 = vand.u32 2147483647, %v10427_v16  ;;  %v3367_v45 = vpop.f32.mrf.mxu2 }
 0x5d2   :  { %v3219_v23 = vmul.f32 %v10416_v41, %v3218_v37  ;;  %6296 = vrcp.f32 %v10429_v53  ;;  %v3390_v11 = vpop.f32.mrf.mxu3  ;;  %v3324_v51 = vpop.f32.mrf.mxu0  ;;  %vm3198_vm15 = vweird.f32 %v10427_v16  ;;  %vm3236_vm0 = vweird.f32 %v10429_v53 }
 0x5d3   :  { %v3182_v48 = vadd.f32 %v10414_v56, %v3181_v13  ;;  %6298 = vpow2.f32 %v5969_v46  ;;  %v3204_v62 = vand.u32 2147483648, %v10427_v16  ;;  %v3347_v8 = vpop.f32.mrf.mxu1  ;;  %v3240_v32 = vand.u32 2147483647, %v10429_v53 }
 0x5d4   :  { %v10443_v26 = vpop.eup %6288  ;;  %v3220_v59 = vadd.f32 %v10416_v41, %v3219_v23  ;;  %6300 = vtanh.f32 %v3164_v4  ;;  %v3398_v57 = vadd.f32 %v3367_v45, %v10422_v12  ;;  %vm10527_vm4 = vcmp.eq.f32.partialorder %v3202_v29, 8.507059e+37 }
 0x5d5   :  { %v6291_v38 = vpop.eup %6290  ;;  %v3186_v17 = vsel %vm10461_vm11, %v10414_v56, %v3182_v48  ;;  %6302 = vtanh.f32 %v3168_v28  ;;  %v3257_v9 = vmul.f32 %v10443_v26, %v10411_v61  ;;  %v3399_v48 = vadd.f32 %v3390_v11, %v687_v39 }
 0x5d6   :  { %v6293_v15 = vpop.eup %6292  ;;  %v3224_v0 = vsel %vm10473_vm12, %v10416_v41, %v3220_v59  ;;  %v3265_v41 = vand.u32 2147483647, %v10411_v61  ;;  %v3191_v37 = vsel %vm10477_vm13, %v3190_v58, %v3186_v17  ;;  %v10505_v23 = vadd.f32 1.0, %v6291_v38 }
 0x5d7   :  { %v10481_v33 = vpop.eup %6294  ;;  %v10489_v21 = vadd.f32 1.0, %v6293_v15  ;;  %v3229_v46 = vsel %vm3226_vm14, %v3228_v52, %v3224_v0  ;;  %v3242_v59 = vand.u32 2147483648, %v10429_v53  ;;  %v3400_v28 = vadd.f32 %v3324_v51, %v495_v7 }
 0x5d8   :  { %v10491_v49 = vpop.eup %6296  ;;  %v3194_v36 = vmul.f32 %v10481_v33, %v10427_v16  ;;  %v3286_v63 = vmul.f32 %v3229_v46, %v10158_v3  ;;  %v5971_v47 = vmul.f32 -1.442695, %v3399_v48  ;;  %v3258_v11 = vsub.f32 1.0, %v3257_v9  ;;  %v7205_v16 = vld [vmem:[#allocation4 + $0x1a8] sm:$0xff] }
 0x5d9   :  { %v3232_v56 = vmul.f32 %v10491_v49, %v10429_v53  ;;  %v6299_v2 = vpop.eup %6298  ;;  %6304 = vrcp.f32 %v10489_v21  ;;  %v5968_v7 = vmul.f32 -1.442695, %v3400_v28  ;;  %v3401_v17 = vadd.f32 %v3347_v8, %v560_v1 }
 0x5da   :  { %v3195_v4 = vsub.f32 1.0, %v3194_v36  ;;  %v10507_v20 = vadd.f32 1.0, %v6299_v2  ;;  %v6301_v6 = vpop.eup %6300  ;;  %v3243_v58 = vor.u32 1.1754944e-38, %v3242_v59  ;;  %vm3199_vm2 = vweird.f32 %v10481_v33  ;;  %v3393_v52 = vpop.f32.mrf.mxu3 }
 0x5db   :  { %v3233_v13 = vsub.f32 1.0, %v3232_v56  ;;  %v3288_v14 = vmul.f32 %v6301_v6, %v3191_v37  ;;  %v10515_v38 = vpop.eup %6302  ;;  %v3205_v0 = vor.u32 1.1754944e-38, %v3204_v62  ;;  %vm3237_vm1 = vweird.f32 %v10491_v49  ;;  %vm10545_vm6 = vmor %vm3198_vm15, %vm3199_vm2 }
 0x5dc   :  { %6306 = vrcp.f32 %v10507_v20  ;;  %v3196_v39 = vmul.f32 %v10481_v33, %v3195_v4  ;;  %v3421_v1 = vand.u32 2147483647, %v10489_v21  ;;  %vm3261_vm5 = vweird.f32 %v10411_v61  ;;  %vm10563_vm9 = vmor %vm3236_vm0, %vm3237_vm1 }
 0x5dd   :  { %v3234_v15 = vmul.f32 %v10491_v49, %v3233_v13  ;;  %6308 = vrcp.f32 %v10505_v23  ;;  %v10524_v36 = vadd.f32 %v3288_v14, %v3286_v63  ;;  %v5970_v2 = vmul.f32 -1.442695, %v3401_v17 }
 0x5de   :  { %6310 = vpow2.f32 %v5971_v47  ;;  %v3197_v56 = vadd.f32 %v10481_v33, %v3196_v39  ;;  %v3259_v29 = vmul.f32 %v10443_v26, %v3258_v11  ;;  %v3403_v4 = vadd.f32 %v3393_v52, %v10469_v44 }
 0x5df   :  { %v10521_v3 = vpop.eup %6304  ;;  %v3235_v51 = vadd.f32 %v10491_v49, %v3234_v15  ;;  %6312 = vpow2.f32 %v5968_v7  ;;  %vm10549_vm7 = vcmp.eq.f32.partialorder %v3240_v32, 8.507059e+37  ;;  %vm3417_vm8 = vweird.f32 %v10489_v21 }
 0x5e0   :  { %v3413_v9 = vmul.f32 %v10521_v3, %v10489_v21  ;;  %6314 = vtanh.f32 %v3398_v57  ;;  %v3423_v59 = vand.u32 2147483648, %v10489_v21  ;;  %v5972_v62 = vmul.f32 -1.442695, %v3403_v4 }
 0x5e1   :  { %6316 = vpow2.f32 %v5970_v2  ;;  %v3201_v8 = vsel %vm10545_vm6, %v10481_v33, %v3197_v56  ;;  %v3239_v63 = vsel %vm10563_vm9, %v10491_v49, %v3235_v51  ;;  %vm10575_vm10 = vcmp.eq.f32.partialorder %v3421_v1, 8.507059e+37 }
 0x5e2   :  { %v10537_v37 = vpop.eup %6306  ;;  %v3414_v46 = vsub.f32 1.0, %v3413_v9  ;;  %6318 = vtanh.f32 %v10524_v36  ;;  %v3260_v15 = vadd.f32 %v10443_v26, %v3259_v29  ;;  %vm3262_vm11 = vweird.f32 %v10443_v26 }
 0x5e3   :  { %v3451_v48 = vmul.f32 %v10537_v37, %v10507_v20  ;;  %v10556_v6 = vpop.eup %6308  ;;  %6320 = vpow2.f32 %v5972_v62  ;;  %vm3418_vm12 = vweird.f32 %v10521_v3  ;;  %v3267_v49 = vand.u32 2147483648, %v10411_v61  ;;  %vm10602_vm15 = vmor %vm3261_vm5, %vm3262_vm11 }
 0x5e4   :  { %v3415_v44 = vmul.f32 %v10521_v3, %v3414_v46  ;;  %v6311_v28 = vpop.eup %6310  ;;  %v3272_v11 = vmul.f32 %v10556_v6, %v10505_v23  ;;  %vm3455_vm13 = vweird.f32 %v10507_v20  ;;  %v3461_v7 = vand.u32 2147483648, %v10507_v20  ;;  %vm10612_vm0 = vmor %vm3417_vm8, %vm3418_vm12  ;;  %v3370_v46 = vpop.f32.mrf.mxu2 }
 0x5e5   :  { %v3452_v14 = vsub.f32 1.0, %v3451_v48  ;;  %v10579_v32 = vadd.f32 1.0, %v6311_v28  ;;  %v6313_v39 = vpop.eup %6312  ;;  %v3206_v52 = vsel %vm10527_vm4, %v3205_v0, %v3201_v8  ;;  %vm3456_vm14 = vweird.f32 %v10537_v37 }
 0x5e6   :  { %v3416_v33 = vadd.f32 %v10521_v3, %v3415_v44  ;;  %v6315_v47 = vpop.eup %6314  ;;  %v10596_v1 = vadd.f32 1.0, %v6313_v39  ;;  %v3244_v2 = vsel %vm10549_vm7, %v3243_v58, %v3239_v63  ;;  %v3424_v12 = vor.u32 1.1754944e-38, %v3423_v59  ;;  %vm10631_vm2 = vmor %vm3455_vm13, %vm3456_vm14 }
 0x5e7   :  { %v3453_v57 = vmul.f32 %v10537_v37, %v3452_v14  ;;  %6322 = vrcp.f32 %v10579_v32  ;;  %v6317_v17 = vpop.eup %6316  ;;  %v3264_v4 = vsel %vm10602_vm15, %v10443_v26, %v3260_v15  ;;  %v3459_v13 = vand.u32 2147483647, %v10507_v20 }
 0x5e8   :  { %v6319_v51 = vpop.eup %6318  ;;  %v10616_v29 = vadd.f32 1.0, %v6317_v17  ;;  %v3420_v58 = vsel %vm10612_vm0, %v10521_v3, %v3416_v33  ;;  %6324 = vrcp.f32 %v10596_v1  ;;  %v3268_v21 = vor.u32 1.1754944e-38, %v3267_v49  ;;  %v7197_v33 = vld [vmem:[#allocation4 + $0x1e8] sm:$0xff]  ;;  %v7198_v17 = vld [vmem:[#allocation4 + $0x1f0] sm:$0xff] }
 0x5e9   :  { %v3454_v9 = vadd.f32 %v10537_v37, %v3453_v57  ;;  %v6321_v45 = vpop.eup %6320  ;;  %v3289_v48 = vmul.f32 %v10515_v38, %v3206_v52  ;;  %vm3266_vm1 = vcmp.eq.f32.partialorder %v3265_v41, 8.507059e+37  ;;  %v3273_v26 = vsub.f32 1.0, %v3272_v11  ;;  %v7196_v57 = vld [vmem:[#allocation4 + $0x1e0] sm:$0xff]  ;;  %v7199_v52 = vld [vmem:[#allocation4 + $0x1f8] sm:$0xff] }
 0x5ea   :  { %6326 = vrcp.f32 %v10616_v29  ;;  %v3287_v3 = vmul.f32 %v3244_v2, %v10282_v50  ;;  %v3402_v44 = vadd.f32 %v3370_v46, %v10454_v30  ;;  %v3269_v59 = vsel %vm3266_vm1, %v3268_v21, %v3264_v4  ;;  %v7201_v2 = vld [vmem:[#allocation4 + $0x1c8] sm:$0xff]  ;;  %v7202_v46 = vld [vmem:[#allocation4 + $0x1d0] sm:$0xff]  ;;  %v7203_v4 = vld [vmem:[#allocation4 + $0x1d8] sm:$0xff] }
 0x5eb   :  { %v3458_v38 = vsel %vm10631_vm2, %v10537_v37, %v3454_v9  ;;  %v3462_v62 = vor.u32 1.1754944e-38, %v3461_v7  ;;  %v3425_v28 = vsel %vm10575_vm10, %v3424_v12, %v3420_v58  ;;  %v10647_v8 = vadd.f32 1.0, %v6321_v45 }
 0x5ec   :  { %v3294_v61 = vmul.f32 %v6319_v51, %v3269_v59  ;;  %vm3460_vm4 = vcmp.eq.f32.partialorder %v3459_v13, 8.507059e+37  ;;  %v3274_v30 = vmul.f32 %v10556_v6, %v3273_v26  ;;  %v10655_v63 = vadd.f32 %v3289_v48, %v3287_v3  ;;  %v7200_v51 = vld [vmem:[#allocation4 + $0x1c0] sm:$0xff] }
 0x5ed   :  { %v10643_v20 = vpop.eup %6322  ;;  %v3463_v41 = vsel %vm3460_vm4, %v3462_v62, %v3458_v38  ;;  %6328 = vrcp.f32 %v10647_v8  ;;  %v3522_v14 = vmul.f32 %v6315_v47, %v3425_v28  ;;  %vm3276_vm5 = vweird.f32 %v10505_v23  ;;  %v7204_v48 = vld [vmem:[#allocation4 + $0x1a0] sm:$0xff]  ;;  %v7206_v62 = vld [vmem:[#allocation4 + $0x1b0] sm:$0xff]  ;;  %v7207_v28 = vld [vmem:[#allocation4 + $0x1b8] sm:$0xff] }
 0x5ee   :  { %v3491_v50 = vmul.f32 %v10643_v20, %v10579_v32  ;;  %3546 = vmatmul.f32.vlgmr.msrb.gmra.mxu0 %v3294_v61  ;;  %3569 = vmatmul.f32.vlgmr.msra.gmra.mxu1 %v3294_v61  ;;  %v10653_v37 = vpop.eup %6324  ;;  %6330 = vtanh.f32 %v3402_v44  ;;  %vm3470_vm6 = vweird.f32 %v10616_v29  ;;  %vm3432_vm7 = vweird.f32 %v10596_v1 }
 0x5ef   :  { %3592 = vmatmul.f32.vlgmr.msra.gmra.mxu2 %v3294_v61  ;;  %3615 = vmatmul.f32.vlgmr.msrb.gmra.mxu3 %v3294_v61  ;;  %v3428_v39 = vmul.f32 %v10653_v37, %v10596_v1  ;;  %v3520_v49 = vmul.f32 %v3463_v41, %v10333_v5  ;;  %v3476_v11 = vand.u32 2147483648, %v10616_v29  ;;  %v3436_v7 = vand.u32 2147483647, %v10596_v1  ;;  %v7222_v61 = vld [vmem:[#allocation4 + $0x130] sm:$0xff] }
 0x5f0   :  { %v10658_v53 = vpop.eup %6326  ;;  %v3492_v15 = vsub.f32 1.0, %v3491_v50  ;;  %3856 = vmatpush.msrb.mxu0 %v7196_v57  ;;  %3879 = vmatpush.msra.mxu1 %v7197_v33  ;;  %v3438_v56 = vand.u32 2147483648, %v10596_v1  ;;  %v3275_v5 = vadd.f32 %v10556_v6, %v3274_v30  ;;  %vm3277_vm8 = vweird.f32 %v10556_v6  ;;  %v7208_v30 = vld [vmem:[#allocation4 + $0x180] sm:$0xff]  ;;  %v7271_v1 = vld [vmem:[#allocation8 + $0x1b8] sm:$0xff] }
 0x5f1   :  { %v3466_v47 = vmul.f32 %v10658_v53, %v10616_v29  ;;  %3902 = vmatpush.msra.mxu2 %v7198_v17  ;;  %3925 = vmatpush.msrb.mxu3 %v7199_v52  ;;  %v3429_v9 = vsub.f32 1.0, %v3428_v39  ;;  %v3474_v12 = vand.u32 2147483647, %v10616_v29  ;;  %v3282_v58 = vand.u32 2147483648, %v10505_v23  ;;  %vm10689_vm11 = vmor %vm3276_vm5, %vm3277_vm8  ;;  %v7212_v17 = vld [vmem:[#allocation4 + $0x160] sm:$0xff]  ;;  %v7213_v52 = vld [vmem:[#allocation4 + $0x168] sm:$0xff] }
 0x5f2   :  { %3857 = vmatpush.msrb.mxu0 %v7200_v51  ;;  %3880 = vmatpush.msra.mxu1 %v7201_v2  ;;  %6332 = vtanh.f32 %v10655_v63  ;;  %v3493_v21 = vmul.f32 %v10643_v20, %v3492_v15  ;;  %vm3433_vm9 = vweird.f32 %v10653_v37  ;;  %v3280_v26 = vand.u32 2147483647, %v10505_v23  ;;  %v7214_v2 = vld [vmem:[#allocation4 + $0x170] sm:$0xff] }
 0x5f3   :  { %v3467_v0 = vsub.f32 1.0, %v3466_v47  ;;  %3903 = vmatpush.msra.mxu2 %v7202_v46  ;;  %3926 = vmatpush.msrb.mxu3 %v7203_v4  ;;  %v10675_v13 = vpop.eup %6328  ;;  %v3430_v45 = vmul.f32 %v10653_v37, %v3429_v9  ;;  %v10681_v38 = vadd.f32 %v3522_v14, %v3520_v49  ;;  %vm3471_vm10 = vweird.f32 %v10658_v53  ;;  %v7209_v14 = vld [vmem:[#allocation4 + $0x188] sm:$0xff]  ;;  %vm10704_vm13 = vmor %vm3432_vm7, %vm3433_vm9  ;;  %v7210_v49 = vld [vmem:[#allocation4 + $0x190] sm:$0xff] }
 0x5f4   :  { %3858 = vmatpush.msrb.mxu0 %v7204_v48  ;;  %3881 = vmatpush.msra.mxu1 %v7205_v16  ;;  %v6331_v3 = vpop.eup %6330  ;;  %v3477_v59 = vor.u32 1.1754944e-38, %v3476_v11  ;;  %vm3496_vm12 = vweird.f32 %v10643_v20  ;;  %v3506_v41 = vmul.f32 %v10675_v13, %v10647_v8  ;;  %v3279_v15 = vsel %vm10689_vm11, %v10556_v6, %v3275_v5  ;;  %v7211_v47 = vld [vmem:[#allocation4 + $0x198] sm:$0xff]  ;;  %vm10718_vm15 = vmor %vm3470_vm6, %vm3471_vm10  ;;  %v7216_v4 = vld [vmem:[#allocation4 + $0x140] sm:$0xff] }
 0x5f5   :  { %v3468_v44 = vmul.f32 %v10658_v53, %v3467_v0  ;;  %3904 = vmatpush.msra.mxu2 %v7206_v62  ;;  %3927 = vmatpush.msrb.mxu3 %v7207_v28  ;;  %v3431_v50 = vadd.f32 %v10653_v37, %v3430_v45  ;;  %vm10708_vm14 = vcmp.eq.f32.partialorder %v3436_v7, 8.507059e+37  ;;  %v3439_v57 = vor.u32 1.1754944e-38, %v3438_v56  ;;  %v7218_v48 = vld [vmem:[#allocation4 + $0x150] sm:$0xff] }
 0x5f6   :  { %3859 = vmatpush.msrb.mxu0 %v7208_v30  ;;  %3882 = vmatpush.msra.mxu1 %v7209_v14  ;;  %v3283_v6 = vor.u32 1.1754944e-38, %v3282_v58  ;;  %v3494_v11 = vadd.f32 %v10643_v20, %v3493_v21  ;;  %vm3475_vm0 = vcmp.eq.f32.partialorder %v3474_v12, 8.507059e+37  ;;  %vm3281_vm2 = vcmp.eq.f32.partialorder %v3280_v26, 8.507059e+37  ;;  %v7217_v58 = vld [vmem:[#allocation4 + $0x148] sm:$0xff] }
 0x5f7   :  { %v3469_v33 = vadd.f32 %v10658_v53, %v3468_v44  ;;  %3905 = vmatpush.msra.mxu2 %v7210_v49  ;;  %3928 = vmatpush.msrb.mxu3 %v7211_v47  ;;  %v3435_v7 = vsel %vm10704_vm13, %v10653_v37, %v3431_v50  ;;  %6334 = vtanh.f32 %v10681_v38  ;;  %v7215_v37 = vld [vmem:[#allocation4 + $0x178] sm:$0xff]  ;;  %v3507_v12 = vsub.f32 1.0, %v3506_v41  ;;  %v7224_v41 = vld [vmem:[#allocation4 + $0x100] sm:$0xff]  ;;  %v7225_v30 = vld [vmem:[#allocation4 + $0x108] sm:$0xff] }
 0x5f8   :  { %3860 = vmatpush.msrb.mxu0 %v7212_v17  ;;  %3883 = vmatpush.msra.mxu1 %v7213_v52  ;;  %v6333_v9 = vpop.eup %6332  ;;  %v3440_v29 = vsel %vm10708_vm14, %v3439_v57, %v3435_v7  ;;  %v3284_v51 = vsel %vm3281_vm2, %v3283_v6, %v3279_v15  ;;  %v3501_v21 = vand.u32 2147483648, %v10579_v32  ;;  %vm3495_vm1 = vweird.f32 %v10579_v32  ;;  %v7223_v50 = vld [vmem:[#allocation4 + $0x138] sm:$0xff]  ;;  %v7228_v57 = vld [vmem:[#allocation4 + $0xe0] sm:$0xff]  ;;  %v7230_v47 = vld [vmem:[#allocation4 + $0xf0] sm:$0xff] }
 0x5f9   :  { %v3473_v56 = vsel %vm10718_vm15, %v10658_v53, %v3469_v33  ;;  %3906 = vmatpush.msra.mxu2 %v7214_v2  ;;  %3929 = vmatpush.msrb.mxu3 %v7215_v37  ;;  %v3523_v0 = vmul.f32 %v6331_v3, %v3440_v29  ;;  %v3295_v46 = vmul.f32 %v6333_v9, %v3284_v51  ;;  %v7219_v53 = vld [vmem:[#allocation4 + $0x158] sm:$0xff]  ;;  %v3499_v16 = vand.u32 2147483647, %v10579_v32  ;;  %vm10737_vm4 = vmor %vm3495_vm1, %vm3496_vm12  ;;  %v7221_v32 = vld [vmem:[#allocation4 + $0x128] sm:$0xff] }
 0x5fa   :  { %v3478_v5 = vsel %vm3475_vm0, %v3477_v59, %v3473_v56  ;;  %3861 = vmatpush.msrb.mxu0 %v7216_v4  ;;  %3884 = vmatpush.msra.mxu1 %v7217_v58  ;;  %v3508_v44 = vmul.f32 %v10675_v13, %v3507_v12  ;;  %v7220_v59 = vld [vmem:[#allocation4 + $0x120] sm:$0xff]  ;;  %v3502_v28 = vor.u32 1.1754944e-38, %v3501_v21  ;;  %v7227_v15 = vld [vmem:[#allocation4 + $0x118] sm:$0xff]  ;;  %vm3511_vm6 = vweird.f32 %v10675_v13  ;;  %v7229_v33 = vld [vmem:[#allocation4 + $0xe8] sm:$0xff] }
 0x5fb   :  { %v3521_v45 = vmul.f32 %v3478_v5, %v10360_v27  ;;  %3907 = vmatpush.msra.mxu2 %v7218_v48  ;;  %3930 = vmatpush.msrb.mxu3 %v7219_v53  ;;  %v3498_v27 = vsel %vm10737_vm4, %v10643_v20, %v3494_v11  ;;  %vm3500_vm5 = vcmp.eq.f32.partialorder %v3499_v16, 8.507059e+37  ;;  %v7226_v20 = vld [vmem:[#allocation4 + $0x110] sm:$0xff]  ;;  %v3516_v49 = vand.u32 2147483648, %v10647_v8  ;;  %v7231_v6 = vld [vmem:[#allocation4 + $0xf8] sm:$0xff]  ;;  %v7232_v17 = vld [vmem:[#allocation4 + $0xc0] sm:$0xff] }
 0x5fc   :  { %3549 = vmatmul.f32.gmra.mxu0 %v3295_v46  ;;  %3572 = vmatmul.f32.gmra.mxu1 %v3295_v46  ;;  %v3503_v14 = vsel %vm3500_vm5, %v3502_v28, %v3498_v27  ;;  %v3509_v39 = vadd.f32 %v10675_v13, %v3508_v44  ;;  %vm3510_vm7 = vweird.f32 %v10647_v8  ;;  %v3514_v11 = vand.u32 2147483647, %v10647_v8  ;;  %v7233_v52 = vld [vmem:[#allocation4 + $0xc8] sm:$0xff]  ;;  %v7234_v29 = vld [vmem:[#allocation4 + $0xd0] sm:$0xff]  ;;  %v7235_v56 = vld [vmem:[#allocation4 + $0xd8] sm:$0xff] }
 0x5fd   :  { %v10741_v3 = vadd.f32 %v3523_v0, %v3521_v45  ;;  %3595 = vmatmul.f32.gmra.mxu2 %v3295_v46  ;;  %3618 = vmatmul.f32.gmra.mxu3 %v3295_v46  ;;  %v6335_v62 = vpop.eup %6334  ;;  %vm10757_vm8 = vmor %vm3510_vm7, %vm3511_vm6  ;;  %v3517_v9 = vor.u32 1.1754944e-38, %v3516_v49  ;;  %v7236_v51 = vld [vmem:[#allocation4 + $0xa0] sm:$0xff]  ;;  %v7237_v2 = vld [vmem:[#allocation4 + $0xa8] sm:$0xff] }
 0x5fe   :  { %3862 = vmatpush.msrb.mxu0 %v7220_v59  ;;  %3885 = vmatpush.msra.mxu1 %v7221_v32  ;;  %v10748_v23 = vmul.f32 %v6335_v62, %v3503_v14  ;;  %v3513_v7 = vsel %vm10757_vm8, %v10675_v13, %v3509_v39  ;;  %vm3515_vm9 = vcmp.eq.f32.partialorder %v3514_v11, 8.507059e+37  ;;  %v7238_v5 = vld [vmem:[#allocation4 + $0xb0] sm:$0xff]  ;;  %v7239_v0 = vld [vmem:[#allocation4 + $0xb8] sm:$0xff]  ;;  %v7240_v12 = vld [vmem:[#allocation4 + $0x80] sm:$0xff] }
 0x5ff   :  { %3908 = vmatpush.msra.mxu2 %v7222_v61  ;;  %3931 = vmatpush.msrb.mxu3 %v7223_v50  ;;  %6336 = vtanh.f32 %v10741_v3  ;;  %v3518_v37 = vsel %vm3515_vm9, %v3517_v9, %v3513_v7  ;;  %v7241_v46 = vld [vmem:[#allocation4 + $0x88] sm:$0xff]  ;;  %v7242_v4 = vld [vmem:[#allocation4 + $0x90] sm:$0xff]  ;;  %v7243_v58 = vld [vmem:[#allocation4 + $0x98] sm:$0xff] }
 0x600   :  { %3863 = vmatpush.msrb.mxu0 %v7224_v41  ;;  %3886 = vmatpush.msra.mxu1 %v7225_v30  ;;  %v7244_v21 = vld [vmem:[#allocation4 + $0x60] sm:$0xff]  ;;  %v7245_v45 = vld [vmem:[#allocation4 + $0x68] sm:$0xff]  ;;  %v7246_v48 = vld [vmem:[#allocation4 + $0x70] sm:$0xff] }
 0x601   :  { %3909 = vmatpush.msra.mxu2 %v7226_v20  ;;  %3932 = vmatpush.msrb.mxu3 %v7227_v15  ;;  %v7247_v53 = vld [vmem:[#allocation4 + $0x78] sm:$0xff]  ;;  %v7248_v16 = vld [vmem:[#allocation4 + $0x40] sm:$0xff]  ;;  %v7249_v26 = vld [vmem:[#allocation4 + $0x48] sm:$0xff] }
 0x602   :  { %3864 = vmatpush.msrb.mxu0 %v7228_v57  ;;  %3887 = vmatpush.msra.mxu1 %v7229_v33  ;;  %v7250_v27 = vld [vmem:[#allocation4 + $0x50] sm:$0xff]  ;;  %v7251_v44 = vld [vmem:[#allocation4 + $0x58] sm:$0xff]  ;;  %v7252_v59 = vld [vmem:[#allocation4 + $0x20] sm:$0xff] }
 0x603   :  { %3910 = vmatpush.msra.mxu2 %v7230_v47  ;;  %3933 = vmatpush.msrb.mxu3 %v7231_v6  ;;  %v7253_v32 = vld [vmem:[#allocation4 + $0x28] sm:$0xff]  ;;  %v7254_v62 = vld [vmem:[#allocation4 + $0x30] sm:$0xff]  ;;  %v7255_v28 = vld [vmem:[#allocation4 + $0x38] sm:$0xff] }
 0x604   :  { %3638 = vmatmul.f32.vlgmr.msra.gmra.mxu0 %v10748_v23  ;;  %3661 = vmatmul.f32.vlgmr.msrb.gmra.mxu1 %v10748_v23  ;;  %v7256_v61 = vld [vmem:[#allocation4] sm:$0xff]  ;;  %v7257_v50 = vld [vmem:[#allocation4 + $0x8] sm:$0xff]  ;;  %v7258_v41 = vld [vmem:[#allocation4 + $0x10] sm:$0xff] }
 0x605   :  { %3684 = vmatmul.f32.vlgmr.msrb.gmra.mxu2 %v10748_v23  ;;  %3707 = vmatmul.f32.vlgmr.msra.gmra.mxu3 %v10748_v23  ;;  %v6337_v8 = vpop.eup %6336  ;;  %v7259_v30 = vld [vmem:[#allocation4 + $0x18] sm:$0xff]  ;;  %v7260_v14 = vld [vmem:[#allocation8 + $0x1e0] sm:$0xff]  ;;  %v7261_v20 = vld [vmem:[#allocation8 + $0x1e8] sm:$0xff] }
 0x606   :  { %3865 = vmatpush.msrb.mxu0 %v7232_v17  ;;  %3888 = vmatpush.msra.mxu1 %v7233_v52  ;;  %v10766_v13 = vmul.f32 %v6337_v8, %v3518_v37  ;;  %v7262_v15 = vld [vmem:[#allocation8 + $0x1f0] sm:$0xff]  ;;  %v7263_v39 = vld [vmem:[#allocation8 + $0x1f8] sm:$0xff]  ;;  %v7264_v57 = vld [vmem:[#allocation8 + $0x1c0] sm:$0xff] }
 0x607   :  { %3911 = vmatpush.msra.mxu2 %v7234_v29  ;;  %3934 = vmatpush.msrb.mxu3 %v7235_v56  ;;  %v7265_v33 = vld [vmem:[#allocation8 + $0x1c8] sm:$0xff]  ;;  %v7266_v49 = vld [vmem:[#allocation8 + $0x1d0] sm:$0xff]  ;;  %v7267_v47 = vld [vmem:[#allocation8 + $0x1d8] sm:$0xff] }
 0x608   :  { %3866 = vmatpush.msrb.mxu0 %v7236_v51  ;;  %3889 = vmatpush.msra.mxu1 %v7237_v2  ;;  %v7268_v6 = vld [vmem:[#allocation8 + $0x1a0] sm:$0xff]  ;;  %v7269_v11 = vld [vmem:[#allocation8 + $0x1a8] sm:$0xff]  ;;  %v7274_v52 = vld [vmem:[#allocation8 + $0x190] sm:$0xff] }
 0x609   :  { %3912 = vmatpush.msra.mxu2 %v7238_v5  ;;  %3935 = vmatpush.msrb.mxu3 %v7239_v0  ;;  %v7272_v7 = vld [vmem:[#allocation8 + $0x180] sm:$0xff]  ;;  %v7273_v17 = vld [vmem:[#allocation8 + $0x188] sm:$0xff]  ;;  %v7275_v8 = vld [vmem:[#allocation8 + $0x198] sm:$0xff] }
 0x60a   :  { %3867 = vmatpush.msrb.mxu0 %v7240_v12  ;;  %3890 = vmatpush.msra.mxu1 %v7241_v46  ;;  %v7276_v9 = vld [vmem:[#allocation8 + $0x160] sm:$0xff]  ;;  %v7277_v29 = vld [vmem:[#allocation8 + $0x168] sm:$0xff]  ;;  %v7278_v56 = vld [vmem:[#allocation8 + $0x170] sm:$0xff] }
 0x60b   :  { %3913 = vmatpush.msra.mxu2 %v7242_v4  ;;  %3936 = vmatpush.msrb.mxu3 %v7243_v58  ;;  %v7279_v51 = vld [vmem:[#allocation8 + $0x178] sm:$0xff]  ;;  %v7280_v2 = vld [vmem:[#allocation8 + $0x140] sm:$0xff]  ;;  %v7281_v37 = vld [vmem:[#allocation8 + $0x148] sm:$0xff] }
 0x60c   :  { %3641 = vmatmul.f32.gmra.mxu0 %v10766_v13  ;;  %3664 = vmatmul.f32.gmra.mxu1 %v10766_v13  ;;  %v7282_v5 = vld [vmem:[#allocation8 + $0x150] sm:$0xff]  ;;  %v7283_v0 = vld [vmem:[#allocation8 + $0x158] sm:$0xff]  ;;  %v7285_v12 = vld [vmem:[#allocation8 + $0x128] sm:$0xff] }
 0x60d   :  { %3687 = vmatmul.f32.gmra.mxu2 %v10766_v13  ;;  %3710 = vmatmul.f32.gmra.mxu3 %v10766_v13  ;;  %v7286_v46 = vld [vmem:[#allocation8 + $0x130] sm:$0xff]  ;;  %v7287_v4 = vld [vmem:[#allocation8 + $0x138] sm:$0xff]  ;;  %v7288_v58 = vld [vmem:[#allocation8 + $0x100] sm:$0xff] }
 0x60e   :  { %3868 = vmatpush.msrb.mxu0 %v7244_v21  ;;  %3891 = vmatpush.msra.mxu1 %v7245_v45  ;;  %v7289_v21 = vld [vmem:[#allocation8 + $0x108] sm:$0xff]  ;;  %v7290_v45 = vld [vmem:[#allocation8 + $0x110] sm:$0xff] }
 0x60f   :  { %3914 = vmatpush.msra.mxu2 %v7246_v48  ;;  %3937 = vmatpush.msrb.mxu3 %v7247_v53  ;;  %v7291_v48 = vld [vmem:[#allocation8 + $0x118] sm:$0xff]  ;;  %v7292_v53 = vld [vmem:[#allocation8 + $0xe0] sm:$0xff] }
 0x610   :  { %3869 = vmatpush.msrb.mxu0 %v7248_v16  ;;  %3892 = vmatpush.msra.mxu1 %v7249_v26  ;;  %v7293_v16 = vld [vmem:[#allocation8 + $0xe8] sm:$0xff]  ;;  %v7294_v26 = vld [vmem:[#allocation8 + $0xf0] sm:$0xff] }
 0x611   :  { %3915 = vmatpush.msra.mxu2 %v7250_v27  ;;  %3938 = vmatpush.msrb.mxu3 %v7251_v44  ;;  %v7295_v27 = vld [vmem:[#allocation8 + $0xf8] sm:$0xff]  ;;  %v7296_v44 = vld [vmem:[#allocation8 + $0xc0] sm:$0xff] }
 0x612   :  { %3870 = vmatpush.msrb.mxu0 %v7252_v59  ;;  %3893 = vmatpush.msra.mxu1 %v7253_v32  ;;  %v7297_v59 = vld [vmem:[#allocation8 + $0xc8] sm:$0xff]  ;;  %v7298_v32 = vld [vmem:[#allocation8 + $0xd0] sm:$0xff] }
 0x613   :  { %3916 = vmatpush.msra.mxu2 %v7254_v62  ;;  %3939 = vmatpush.msrb.mxu3 %v7255_v28  ;;  %v7299_v62 = vld [vmem:[#allocation8 + $0xd8] sm:$0xff]  ;;  %v7300_v28 = vld [vmem:[#allocation8 + $0xa0] sm:$0xff] }
 0x614   :  { %3871 = vmatpush.msrb.mxu0 %v7256_v61  ;;  %3894 = vmatpush.msra.mxu1 %v7257_v50  ;;  %v7301_v61 = vld [vmem:[#allocation8 + $0xa8] sm:$0xff]  ;;  %v7302_v50 = vld [vmem:[#allocation8 + $0xb0] sm:$0xff] }
 0x615   :  { %3917 = vmatpush.msra.mxu2 %v7258_v41  ;;  %3940 = vmatpush.msrb.mxu3 %v7259_v30  ;;  %v7303_v41 = vld [vmem:[#allocation8 + $0xb8] sm:$0xff]  ;;  %v7304_v30 = vld [vmem:[#allocation8 + $0x80] sm:$0xff] }
 0x616   :  { %3872 = vmatmul.f32.vlgmr.msrb.gmra.mxu0 %v10748_v23  ;;  %3895 = vmatmul.f32.vlgmr.msra.gmra.mxu1 %v10748_v23 }
 0x617   :  { %3918 = vmatmul.f32.vlgmr.msra.gmra.mxu2 %v10748_v23  ;;  %3941 = vmatmul.f32.vlgmr.msrb.gmra.mxu3 %v10748_v23  ;;  %v7270_v23 = vld [vmem:[#allocation8 + $0x1b0] sm:$0xff] }
 0x618   :  { %4082 = vmatpush.msra.mxu0 %v7260_v14  ;;  %4105 = vmatpush.msrb.mxu1 %v7261_v20  ;;  %v7305_v14 = vld [vmem:[#allocation8 + $0x88] sm:$0xff]  ;;  %v7306_v20 = vld [vmem:[#allocation8 + $0x90] sm:$0xff] }
 0x619   :  { %4128 = vmatpush.msrb.mxu2 %v7262_v15  ;;  %4151 = vmatpush.msra.mxu3 %v7263_v39  ;;  %v7307_v15 = vld [vmem:[#allocation8 + $0x98] sm:$0xff]  ;;  %v7308_v39 = vld [vmem:[#allocation8 + $0x60] sm:$0xff] }
 0x61a   :  { %4083 = vmatpush.msra.mxu0 %v7264_v57  ;;  %4106 = vmatpush.msrb.mxu1 %v7265_v33  ;;  %v7309_v57 = vld [vmem:[#allocation8 + $0x68] sm:$0xff]  ;;  %v7310_v33 = vld [vmem:[#allocation8 + $0x70] sm:$0xff] }
 0x61b   :  { %4129 = vmatpush.msrb.mxu2 %v7266_v49  ;;  %4152 = vmatpush.msra.mxu3 %v7267_v47  ;;  %v7311_v49 = vld [vmem:[#allocation8 + $0x78] sm:$0xff]  ;;  %v7312_v47 = vld [vmem:[#allocation8 + $0x40] sm:$0xff] }
 0x61c   :  { %4084 = vmatpush.msra.mxu0 %v7268_v6  ;;  %4107 = vmatpush.msrb.mxu1 %v7269_v11  ;;  %v7313_v6 = vld [vmem:[#allocation8 + $0x48] sm:$0xff]  ;;  %v7314_v11 = vld [vmem:[#allocation8 + $0x50] sm:$0xff] }
 0x61d   :  { %4130 = vmatpush.msrb.mxu2 %v7270_v23  ;;  %4153 = vmatpush.msra.mxu3 %v7271_v1  ;;  %v7315_v23 = vld [vmem:[#allocation8 + $0x58] sm:$0xff]  ;;  %v7316_v1 = vld [vmem:[#allocation8 + $0x20] sm:$0xff] }
 0x61e   :  { %3875 = vmatmul.f32.gmra.mxu0 %v10766_v13  ;;  %3898 = vmatmul.f32.gmra.mxu1 %v10766_v13 }
 0x61f   :  { %3921 = vmatmul.f32.gmra.mxu2 %v10766_v13  ;;  %3944 = vmatmul.f32.gmra.mxu3 %v10766_v13  ;;  %v7284_v13 = vld [vmem:[#allocation8 + $0x120] sm:$0xff] }
 0x620   :  { %4085 = vmatpush.msra.mxu0 %v7272_v7  ;;  %4108 = vmatpush.msrb.mxu1 %v7273_v17  ;;  %v7317_v7 = vld [vmem:[#allocation8 + $0x28] sm:$0xff]  ;;  %v7318_v17 = vld [vmem:[#allocation8 + $0x30] sm:$0xff] }
 0x621   :  { %4131 = vmatpush.msrb.mxu2 %v7274_v52  ;;  %4154 = vmatpush.msra.mxu3 %v7275_v8  ;;  %v7319_v52 = vld [vmem:[#allocation8 + $0x38] sm:$0xff]  ;;  %v7320_v8 = vld [vmem:[#allocation8] sm:$0xff] }
 0x622   :  { %4086 = vmatpush.msra.mxu0 %v7276_v9  ;;  %4109 = vmatpush.msrb.mxu1 %v7277_v29  ;;  %v7321_v9 = vld [vmem:[#allocation8 + $0x8] sm:$0xff]  ;;  %v7322_v29 = vld [vmem:[#allocation8 + $0x10] sm:$0xff] }
 0x623   :  { %4132 = vmatpush.msrb.mxu2 %v7278_v56  ;;  %4155 = vmatpush.msra.mxu3 %v7279_v51  ;;  %v7323_v56 = vld [vmem:[#allocation8 + $0x18] sm:$0xff]  ;;  %v7324_v51 = vld [vmem:[#allocation6 + $0x1e0] sm:$0xff] }
 0x624   :  { %4087 = vmatpush.msra.mxu0 %v7280_v2  ;;  %4110 = vmatpush.msrb.mxu1 %v7281_v37  ;;  %v7325_v2 = vld [vmem:[#allocation6 + $0x1e8] sm:$0xff]  ;;  %v7326_v37 = vld [vmem:[#allocation6 + $0x1f0] sm:$0xff] }
 0x625   :  { %4133 = vmatpush.msrb.mxu2 %v7282_v5  ;;  %4156 = vmatpush.msra.mxu3 %v7283_v0  ;;  %v7327_v5 = vld [vmem:[#allocation6 + $0x1f8] sm:$0xff]  ;;  %v7328_v0 = vld [vmem:[#allocation6 + $0x1c0] sm:$0xff] }
 0x626   :  { %4088 = vmatpush.msra.mxu0 %v7284_v13  ;;  %4111 = vmatpush.msrb.mxu1 %v7285_v12  ;;  %v7329_v13 = vld [vmem:[#allocation6 + $0x1c8] sm:$0xff]  ;;  %v7330_v12 = vld [vmem:[#allocation6 + $0x1d0] sm:$0xff] }
 0x627   :  { %4134 = vmatpush.msrb.mxu2 %v7286_v46  ;;  %4157 = vmatpush.msra.mxu3 %v7287_v4  ;;  %v7331_v46 = vld [vmem:[#allocation6 + $0x1d8] sm:$0xff]  ;;  %v7332_v4 = vld [vmem:[#allocation6 + $0x1a0] sm:$0xff] }
 0x628   :  { %4089 = vmatpush.msra.mxu0 %v7288_v58  ;;  %4112 = vmatpush.msrb.mxu1 %v7289_v21  ;;  %v7333_v58 = vld [vmem:[#allocation6 + $0x1a8] sm:$0xff]  ;;  %v7334_v21 = vld [vmem:[#allocation6 + $0x1b0] sm:$0xff] }
 0x629   :  { %4135 = vmatpush.msrb.mxu2 %v7290_v45  ;;  %4158 = vmatpush.msra.mxu3 %v7291_v48  ;;  %v7335_v45 = vld [vmem:[#allocation6 + $0x1b8] sm:$0xff]  ;;  %v7336_v48 = vld [vmem:[#allocation6 + $0x180] sm:$0xff] }
 0x62a   :  { %4090 = vmatpush.msra.mxu0 %v7292_v53  ;;  %4113 = vmatpush.msrb.mxu1 %v7293_v16  ;;  %v7337_v53 = vld [vmem:[#allocation6 + $0x188] sm:$0xff]  ;;  %v7338_v16 = vld [vmem:[#allocation6 + $0x190] sm:$0xff] }
 0x62b   :  { %4136 = vmatpush.msrb.mxu2 %v7294_v26  ;;  %4159 = vmatpush.msra.mxu3 %v7295_v27  ;;  %v7339_v26 = vld [vmem:[#allocation6 + $0x198] sm:$0xff]  ;;  %v7340_v27 = vld [vmem:[#allocation6 + $0x160] sm:$0xff] }
 0x62c   :  { %4091 = vmatpush.msra.mxu0 %v7296_v44  ;;  %4114 = vmatpush.msrb.mxu1 %v7297_v59  ;;  %v7341_v44 = vld [vmem:[#allocation6 + $0x168] sm:$0xff]  ;;  %v7342_v59 = vld [vmem:[#allocation6 + $0x170] sm:$0xff] }
 0x62d   :  { %4137 = vmatpush.msrb.mxu2 %v7298_v32  ;;  %4160 = vmatpush.msra.mxu3 %v7299_v62  ;;  %v7343_v32 = vld [vmem:[#allocation6 + $0x178] sm:$0xff]  ;;  %v7344_v62 = vld [vmem:[#allocation6 + $0x140] sm:$0xff] }
 0x62e   :  { %4092 = vmatpush.msra.mxu0 %v7300_v28  ;;  %4115 = vmatpush.msrb.mxu1 %v7301_v61  ;;  %v7345_v28 = vld [vmem:[#allocation6 + $0x148] sm:$0xff]  ;;  %v7346_v61 = vld [vmem:[#allocation6 + $0x150] sm:$0xff] }
 0x62f   :  { %4138 = vmatpush.msrb.mxu2 %v7302_v50  ;;  %4161 = vmatpush.msra.mxu3 %v7303_v41  ;;  %v7347_v50 = vld [vmem:[#allocation6 + $0x158] sm:$0xff]  ;;  %v7348_v41 = vld [vmem:[#allocation6 + $0x120] sm:$0xff] }
 0x630   :  { %4093 = vmatpush.msra.mxu0 %v7304_v30  ;;  %4116 = vmatpush.msrb.mxu1 %v7305_v14  ;;  %v7349_v30 = vld [vmem:[#allocation6 + $0x128] sm:$0xff]  ;;  %v7350_v14 = vld [vmem:[#allocation6 + $0x130] sm:$0xff] }
 0x631   :  { %4139 = vmatpush.msrb.mxu2 %v7306_v20  ;;  %4162 = vmatpush.msra.mxu3 %v7307_v15  ;;  %v7351_v20 = vld [vmem:[#allocation6 + $0x138] sm:$0xff]  ;;  %v7352_v15 = vld [vmem:[#allocation6 + $0x100] sm:$0xff] }
 0x632   :  { %4094 = vmatpush.msra.mxu0 %v7308_v39  ;;  %4117 = vmatpush.msrb.mxu1 %v7309_v57  ;;  %v7353_v39 = vld [vmem:[#allocation6 + $0x108] sm:$0xff]  ;;  %v7354_v57 = vld [vmem:[#allocation6 + $0x110] sm:$0xff] }
 0x633   :  { %4140 = vmatpush.msrb.mxu2 %v7310_v33  ;;  %4163 = vmatpush.msra.mxu3 %v7311_v49  ;;  %v7355_v33 = vld [vmem:[#allocation6 + $0x118] sm:$0xff]  ;;  %v7356_v49 = vld [vmem:[#allocation6 + $0xe0] sm:$0xff] }
 0x634   :  { %4095 = vmatpush.msra.mxu0 %v7312_v47  ;;  %4118 = vmatpush.msrb.mxu1 %v7313_v6  ;;  %v7357_v47 = vld [vmem:[#allocation6 + $0xe8] sm:$0xff]  ;;  %v7358_v6 = vld [vmem:[#allocation6 + $0xf0] sm:$0xff] }
 0x635   :  { %4141 = vmatpush.msrb.mxu2 %v7314_v11  ;;  %4164 = vmatpush.msra.mxu3 %v7315_v23  ;;  %v7359_v11 = vld [vmem:[#allocation6 + $0xf8] sm:$0xff]  ;;  %v7360_v23 = vld [vmem:[#allocation6 + $0xc0] sm:$0xff] }
 0x636   :  { %4096 = vmatpush.msra.mxu0 %v7316_v1  ;;  %4119 = vmatpush.msrb.mxu1 %v7317_v7  ;;  %v7361_v1 = vld [vmem:[#allocation6 + $0xc8] sm:$0xff]  ;;  %v7362_v7 = vld [vmem:[#allocation6 + $0xd0] sm:$0xff] }
 0x637   :  { %4142 = vmatpush.msrb.mxu2 %v7318_v17  ;;  %4165 = vmatpush.msra.mxu3 %v7319_v52  ;;  %v7363_v17 = vld [vmem:[#allocation6 + $0xd8] sm:$0xff]  ;;  %v7364_v52 = vld [vmem:[#allocation6 + $0xa0] sm:$0xff] }
 0x638   :  { %4097 = vmatpush.msra.mxu0 %v7320_v8  ;;  %4120 = vmatpush.msrb.mxu1 %v7321_v9  ;;  %v7365_v8 = vld [vmem:[#allocation6 + $0xa8] sm:$0xff]  ;;  %v7366_v9 = vld [vmem:[#allocation6 + $0xb0] sm:$0xff] }
 0x639   :  { %4143 = vmatpush.msrb.mxu2 %v7322_v29  ;;  %4166 = vmatpush.msra.mxu3 %v7323_v56  ;;  %v7367_v29 = vld [vmem:[#allocation6 + $0xb8] sm:$0xff]  ;;  %v7368_v56 = vld [vmem:[#allocation6 + $0x80] sm:$0xff] }
 0x63a   :  { %4174 = vmatpush.msrb.mxu0 %v7324_v51  ;;  %4197 = vmatpush.msra.mxu1 %v7325_v2  ;;  %v7369_v51 = vld [vmem:[#allocation6 + $0x88] sm:$0xff]  ;;  %v7370_v2 = vld [vmem:[#allocation6 + $0x90] sm:$0xff] }
 0x63b   :  { %4220 = vmatpush.msra.mxu2 %v7326_v37  ;;  %4243 = vmatpush.msrb.mxu3 %v7327_v5  ;;  %v7371_v37 = vld [vmem:[#allocation6 + $0x98] sm:$0xff]  ;;  %v7372_v5 = vld [vmem:[#allocation6 + $0x60] sm:$0xff] }
 0x63c   :  { %4175 = vmatpush.msrb.mxu0 %v7328_v0  ;;  %4198 = vmatpush.msra.mxu1 %v7329_v13  ;;  %v7373_v0 = vld [vmem:[#allocation6 + $0x68] sm:$0xff]  ;;  %v7374_v13 = vld [vmem:[#allocation6 + $0x70] sm:$0xff] }
 0x63d   :  { %4221 = vmatpush.msra.mxu2 %v7330_v12  ;;  %4244 = vmatpush.msrb.mxu3 %v7331_v46  ;;  %v7375_v12 = vld [vmem:[#allocation6 + $0x78] sm:$0xff]  ;;  %v7376_v46 = vld [vmem:[#allocation6 + $0x40] sm:$0xff] }
 0x63e   :  { %4176 = vmatpush.msrb.mxu0 %v7332_v4  ;;  %4199 = vmatpush.msra.mxu1 %v7333_v58  ;;  %v7377_v4 = vld [vmem:[#allocation6 + $0x48] sm:$0xff]  ;;  %v7378_v58 = vld [vmem:[#allocation6 + $0x50] sm:$0xff] }
 0x63f   :  { %4222 = vmatpush.msra.mxu2 %v7334_v21  ;;  %4245 = vmatpush.msrb.mxu3 %v7335_v45  ;;  %v7379_v21 = vld [vmem:[#allocation6 + $0x58] sm:$0xff]  ;;  %v7380_v45 = vld [vmem:[#allocation6 + $0x20] sm:$0xff] }
 0x640   :  { %4177 = vmatpush.msrb.mxu0 %v7336_v48  ;;  %4200 = vmatpush.msra.mxu1 %v7337_v53  ;;  %v7381_v48 = vld [vmem:[#allocation6 + $0x28] sm:$0xff]  ;;  %v7382_v53 = vld [vmem:[#allocation6 + $0x30] sm:$0xff] }
 0x641   :  { %4223 = vmatpush.msra.mxu2 %v7338_v16  ;;  %4246 = vmatpush.msrb.mxu3 %v7339_v26  ;;  %v7383_v16 = vld [vmem:[#allocation6 + $0x38] sm:$0xff]  ;;  %v7384_v26 = vld [vmem:[#allocation6] sm:$0xff] }
 0x642   :  { %4178 = vmatpush.msrb.mxu0 %v7340_v27  ;;  %4201 = vmatpush.msra.mxu1 %v7341_v44  ;;  %v7385_v27 = vld [vmem:[#allocation6 + $0x8] sm:$0xff]  ;;  %v7386_v44 = vld [vmem:[#allocation6 + $0x10] sm:$0xff] }
 0x643   :  { %4224 = vmatpush.msra.mxu2 %v7342_v59  ;;  %4247 = vmatpush.msrb.mxu3 %v7343_v32  ;;  %v7387_v59 = vld [vmem:[#allocation6 + $0x18] sm:$0xff] }
 0x644   :  { %4179 = vmatpush.msrb.mxu0 %v7344_v62  ;;  %4202 = vmatpush.msra.mxu1 %v7345_v28 }
 0x645   :  { %4225 = vmatpush.msra.mxu2 %v7346_v61  ;;  %4248 = vmatpush.msrb.mxu3 %v7347_v50 }
 0x646   :  { %4180 = vmatpush.msrb.mxu0 %v7348_v41  ;;  %4203 = vmatpush.msra.mxu1 %v7349_v30 }
 0x647   :  { %4226 = vmatpush.msra.mxu2 %v7350_v14  ;;  %4249 = vmatpush.msrb.mxu3 %v7351_v20 }
 0x648   :  { %4181 = vmatpush.msrb.mxu0 %v7352_v15  ;;  %4204 = vmatpush.msra.mxu1 %v7353_v39 }
 0x649   :  { %4227 = vmatpush.msra.mxu2 %v7354_v57  ;;  %4250 = vmatpush.msrb.mxu3 %v7355_v33 }
 0x64a   :  { %4182 = vmatpush.msrb.mxu0 %v7356_v49  ;;  %4205 = vmatpush.msra.mxu1 %v7357_v47 }
 0x64b   :  { %4228 = vmatpush.msra.mxu2 %v7358_v6  ;;  %4251 = vmatpush.msrb.mxu3 %v7359_v11 }
 0x64c   :  { %4183 = vmatpush.msrb.mxu0 %v7360_v23  ;;  %4206 = vmatpush.msra.mxu1 %v7361_v1 }
 0x64d   :  { %4229 = vmatpush.msra.mxu2 %v7362_v7  ;;  %4252 = vmatpush.msrb.mxu3 %v7363_v17 }
 0x64e   :  { %4184 = vmatpush.msrb.mxu0 %v7364_v52  ;;  %4207 = vmatpush.msra.mxu1 %v7365_v8 }
 0x64f   :  { %4230 = vmatpush.msra.mxu2 %v7366_v9  ;;  %4253 = vmatpush.msrb.mxu3 %v7367_v29 }
 0x650   :  { %4185 = vmatpush.msrb.mxu0 %v7368_v56  ;;  %4208 = vmatpush.msra.mxu1 %v7369_v51 }
 0x651   :  { %4231 = vmatpush.msra.mxu2 %v7370_v2  ;;  %4254 = vmatpush.msrb.mxu3 %v7371_v37 }
 0x652   :  { %4186 = vmatpush.msrb.mxu0 %v7372_v5  ;;  %4209 = vmatpush.msra.mxu1 %v7373_v0 }
 0x653   :  { %4232 = vmatpush.msra.mxu2 %v7374_v13  ;;  %4255 = vmatpush.msrb.mxu3 %v7375_v12 }
 0x654   :  { %4187 = vmatpush.msrb.mxu0 %v7376_v46  ;;  %4210 = vmatpush.msra.mxu1 %v7377_v4  ;;  %v12495_v4 = vld [vmem:[#allocation43_spill] sm:$0xff] }
 0x655   :  { %4233 = vmatpush.msra.mxu2 %v7378_v58  ;;  %4256 = vmatpush.msrb.mxu3 %v7379_v21  ;;  %v498_v58 = vadd.f32 %v12495_v4, %v12341_v60 }
 0x656   :  { %4188 = vmatpush.msrb.mxu0 %v7380_v45  ;;  %4211 = vmatpush.msra.mxu1 %v7381_v48 }
 0x657   :  { %4234 = vmatpush.msra.mxu2 %v7382_v53  ;;  %4257 = vmatpush.msrb.mxu3 %v7383_v16 }
 0x658   :  { %4189 = vmatpush.msrb.mxu0 %v7384_v26  ;;  %4212 = vmatpush.msra.mxu1 %v7385_v27 }
 0x659   :  { %4235 = vmatpush.msra.mxu2 %v7386_v44  ;;  %4258 = vmatpush.msrb.mxu3 %v7387_v59  ;;  %v12496_v44 = vld [vmem:[#allocation24_spill] sm:$0xff] }
 0x65a   :  { %v563_v59 = vadd.f32 %v12496_v44, %v8986_v43 }
 0x66b   :  { %v3547_v32 = vpop.f32.mrf.mxu0  ;;  %v3570_v62 = vpop.f32.mrf.mxu1 }
 0x672   :  { %v3593_v28 = vpop.f32.mrf.mxu2  ;;  %v3616_v61 = vpop.f32.mrf.mxu3 }
 0x679   :  { %v3550_v50 = vpop.f32.mrf.mxu0  ;;  %v3573_v41 = vpop.f32.mrf.mxu1 }
 0x680   :  { %v3596_v30 = vpop.f32.mrf.mxu2  ;;  %v3619_v14 = vpop.f32.mrf.mxu3 }
 0x681   :  { %v3639_v20 = vpop.f32.mrf.mxu0  ;;  %v3662_v15 = vpop.f32.mrf.mxu1 }
 0x682   :  { %v3640_v39 = vadd.f32 %v3639_v20, %v3547_v32  ;;  %v3663_v57 = vadd.f32 %v3662_v15, %v3570_v62  ;;  %v12497_v32 = vld [vmem:[#allocation46_spill] sm:$0xff] }
 0x683   :  { %v628_v62 = vadd.f32 %v12497_v32, %v9042_v10 }
 0x684   :  { %v3714_v33 = vadd.f32 %v3640_v39, %v9304_v31  ;;  %v3715_v49 = vadd.f32 %v3663_v57, %v9306_v34  ;;  %v693_v39 = vadd.f32 %v9279_v19, %v12347_v22  ;;  %v10813_v57 = vadd.f32 %v9291_v54, %v12347_v22 }
 0x686   :  { %v5973_v47 = vmul.f32 -1.442695, %v3714_v33  ;;  %v5975_v6 = vmul.f32 -1.442695, %v3715_v49 }
 0x688   :  { %6338 = vpow2.f32 %v5973_v47  ;;  %v3708_v11 = vpop.f32.mrf.mxu3  ;;  %v3685_v17 = vpop.f32.mrf.mxu2 }
 0x689   :  { %6340 = vpow2.f32 %v5975_v6  ;;  %v3709_v23 = vadd.f32 %v3708_v11, %v3616_v61  ;;  %v3642_v1 = vpop.f32.mrf.mxu0  ;;  %v3665_v7 = vpop.f32.mrf.mxu1  ;;  %v3686_v45 = vadd.f32 %v3685_v17, %v3593_v28  ;;  %v12498_v61 = vld [vmem:[#allocation45_spill] sm:$0xff] }
 0x68a   :  { %v3643_v52 = vadd.f32 %v3642_v1, %v3550_v50  ;;  %v3666_v8 = vadd.f32 %v3665_v7, %v3573_v41  ;;  %v10799_v50 = vadd.f32 %v12498_v61, %v12341_v60  ;;  %v12499_v41 = vld [vmem:[#allocation26_spill] sm:$0xff] }
 0x68b   :  { %v3717_v9 = vadd.f32 %v3709_v23, %v9310_v35  ;;  %v10803_v20 = vadd.f32 %v12499_v41, %v8986_v43  ;;  %v3716_v17 = vadd.f32 %v3686_v45, %v9325_v42 }
 0x68c   :  { %v3718_v29 = vadd.f32 %v3643_v52, %v9304_v31  ;;  %v3719_v56 = vadd.f32 %v3666_v8, %v9306_v34 }
 0x68d   :  { %v5977_v51 = vmul.f32 -1.442695, %v3717_v9 }
 0x68e   :  { %v6339_v2 = vpop.eup %6338  ;;  %v5974_v37 = vmul.f32 -1.442695, %v3718_v29  ;;  %v5976_v13 = vmul.f32 -1.442695, %v3719_v56 }
 0x68f   :  { %v6341_v5 = vpop.eup %6340  ;;  %v10785_v0 = vadd.f32 1.0, %v6339_v2  ;;  %6342 = vpow2.f32 %v5977_v51 }
 0x690   :  { %v10787_v12 = vadd.f32 1.0, %v6341_v5  ;;  %6344 = vpow2.f32 %v5974_v37  ;;  %v3711_v46 = vpop.f32.mrf.mxu3  ;;  %v3688_v48 = vpop.f32.mrf.mxu2 }
 0x691   :  { %6346 = vrcp.f32 %v10785_v0  ;;  %v3712_v53 = vadd.f32 %v3711_v46, %v3619_v14  ;;  %v12500_v14 = vld [vmem:[#allocation57_spill] sm:$0xff]  ;;  %v3739_v19 = vand.u32 2147483647, %v10785_v0  ;;  %v3689_v52 = vadd.f32 %v3688_v48, %v3596_v30 }
 0x692   :  { %6348 = vrcp.f32 %v10787_v12  ;;  %v10807_v15 = vadd.f32 %v12500_v14, %v9042_v10  ;;  %v3779_v9 = vand.u32 2147483648, %v10787_v12  ;;  %v3741_v29 = vand.u32 2147483648, %v10785_v0 }
 0x693   :  { %6350 = vpow2.f32 %v5976_v13  ;;  %v3873_v21 = vpop.f32.mrf.mxu0  ;;  %v3896_v26 = vpop.f32.mrf.mxu1  ;;  %v3721_v6 = vadd.f32 %v3712_v53, %v9310_v35  ;;  %v3777_v51 = vand.u32 2147483647, %v10787_v12  ;;  %v3720_v46 = vadd.f32 %v3689_v52, %v9325_v42 }
 0x694   :  { %v3948_v16 = vadd.f32 %v3873_v21, %v498_v58  ;;  %v3949_v23 = vadd.f32 %v3896_v26, %v563_v59  ;;  %vm3735_vm12 = vweird.f32 %v10785_v0  ;;  %vm3773_vm13 = vweird.f32 %v10787_v12 }
 0x695   :  { %v6343_v27 = vpop.eup %6342  ;;  %v5978_v5 = vmul.f32 -1.442695, %v3721_v6  ;;  %vm10835_vm14 = vcmp.eq.f32.partialorder %v3739_v19, 8.507059e+37  ;;  %v3780_v53 = vor.u32 1.1754944e-38, %v3779_v9  ;;  %v3742_v26 = vor.u32 1.1754944e-38, %v3741_v29 }
 0x696   :  { %v6345_v28 = vpop.eup %6344  ;;  %v10815_v33 = vadd.f32 1.0, %v6343_v27  ;;  %v5979_v11 = vmul.f32 -1.442695, %v3948_v16  ;;  %v5981_v30 = vmul.f32 -1.442695, %v3949_v23  ;;  %vm3778_vm2 = vcmp.eq.f32.partialorder %v3777_v51, 8.507059e+37 }
 0x697   :  { %v6347_v49 = vpop.eup %6346  ;;  %v10817_v47 = vadd.f32 1.0, %v6345_v28 }
 0x698   :  { %v6349_v1 = vpop.eup %6348  ;;  %v3731_v7 = vmul.f32 %v6347_v49, %v10785_v0  ;;  %vm3736_vm10 = vweird.f32 %v6347_v49  ;;  %v3819_v28 = vand.u32 2147483648, %v10815_v33  ;;  %vm3813_vm7 = vweird.f32 %v10815_v33 }
 0x699   :  { %v6351_v8 = vpop.eup %6350  ;;  %v3769_v54 = vmul.f32 %v6349_v1, %v10787_v12  ;;  %6352 = vrcp.f32 %v10817_v47  ;;  %vm3774_vm11 = vweird.f32 %v6349_v1  ;;  %vm10841_vm15 = vmor %vm3735_vm12, %vm3736_vm10  ;;  %vm3750_vm1 = vweird.f32 %v10817_v47 }
 0x69a   :  { %v3732_v56 = vsub.f32 1.0, %v3731_v7  ;;  %6354 = vrcp.f32 %v10815_v33  ;;  %v10829_v2 = vadd.f32 1.0, %v6351_v8  ;;  %v3919_v45 = vpop.f32.mrf.mxu2  ;;  %v3942_v0 = vpop.f32.mrf.mxu3  ;;  %vm10848_vm0 = vmor %vm3773_vm13, %vm3774_vm11  ;;  %v3754_v23 = vand.u32 2147483647, %v10817_v47 }
 0x69b   :  { %v3770_v37 = vsub.f32 1.0, %v3769_v54  ;;  %6356 = vpow2.f32 %v5979_v11  ;;  %v3950_v14 = vadd.f32 %v3919_v45, %v628_v62  ;;  %v3951_v7 = vadd.f32 %v3942_v0, %v693_v39  ;;  %v3876_v39 = vpop.f32.mrf.mxu0 }
 0x69c   :  { %v3733_v13 = vmul.f32 %v6347_v49, %v3732_v56  ;;  %6358 = vrcp.f32 %v10829_v2  ;;  %v3794_v54 = vand.u32 2147483648, %v10829_v2  ;;  %v3756_v29 = vand.u32 2147483648, %v10817_v47 }
 0x69d   :  { %v3771_v4 = vmul.f32 %v6349_v1, %v3770_v37  ;;  %6360 = vtanh.f32 %v3716_v17  ;;  %vm3788_vm5 = vweird.f32 %v10829_v2  ;;  %vm10885_vm6 = vcmp.eq.f32.partialorder %v3754_v23, 8.507059e+37 }
 0x69e   :  { %v3734_v58 = vadd.f32 %v6347_v49, %v3733_v13  ;;  %6362 = vpow2.f32 %v5978_v5 }
 0x69f   :  { %v10839_v48 = vpop.eup %6352  ;;  %v3772_v27 = vadd.f32 %v6349_v1, %v3771_v4  ;;  %6364 = vpow2.f32 %v5981_v30  ;;  %v5983_v4 = vmul.f32 -1.442695, %v3951_v7 }
 0x6a0   :  { %v10845_v44 = vpop.eup %6354  ;;  %v3738_v59 = vsel %vm10841_vm15, %v6347_v49, %v3734_v58  ;;  %v3746_v32 = vmul.f32 %v10839_v48, %v10817_v47  ;;  %6366 = vtanh.f32 %v3720_v46  ;;  %vm3751_vm4 = vweird.f32 %v10839_v48 }
 0x6a1   :  { %v6357_v61 = vpop.eup %6356  ;;  %v3776_v41 = vsel %vm10848_vm0, %v6349_v1, %v3772_v27  ;;  %v3743_v19 = vsel %vm10835_vm14, %v3742_v26, %v3738_v59  ;;  %v3809_v1 = vmul.f32 %v10845_v44, %v10815_v33  ;;  %v3792_v26 = vand.u32 2147483647, %v10829_v2  ;;  %vm10903_vm9 = vmor %vm3750_vm1, %vm3751_vm4 }
 0x6a2   :  { %v10860_v6 = vpop.eup %6358  ;;  %v3747_v11 = vsub.f32 1.0, %v3746_v32  ;;  %v10863_v49 = vadd.f32 1.0, %v6357_v61  ;;  %v3781_v52 = vsel %vm3778_vm2, %v3780_v53, %v3776_v41  ;;  %v3952_v53 = vadd.f32 %v3876_v39, %v10799_v50  ;;  %v3899_v50 = vpop.f32.mrf.mxu1 }
 0x6a3   :  { %v6361_v17 = vpop.eup %6360  ;;  %v3784_v8 = vmul.f32 %v10860_v6, %v10829_v2  ;;  %v3838_v30 = vmul.f32 %v3781_v52, %v10524_v36  ;;  %v3810_v58 = vsub.f32 1.0, %v3809_v1  ;;  %vm3789_vm8 = vweird.f32 %v10860_v6  ;;  %v3945_v41 = vpop.f32.mrf.mxu3 }
 0x6a4   :  { %v6363_v62 = vpop.eup %6362  ;;  %v3748_v9 = vmul.f32 %v10839_v48, %v3747_v11  ;;  %6368 = vrcp.f32 %v10863_v49  ;;  %v3840_v13 = vmul.f32 %v6361_v17, %v3743_v19  ;;  %v3757_v36 = vor.u32 1.1754944e-38, %v3756_v29  ;;  %vm10920_vm10 = vmor %vm3788_vm5, %vm3789_vm8 }
 0x6a5   :  { %v6365_v56 = vpop.eup %6364  ;;  %v3785_v51 = vsub.f32 1.0, %v3784_v8  ;;  %v10876_v37 = vadd.f32 1.0, %v6363_v62  ;;  %6370 = vtanh.f32 %v3950_v14  ;;  %v3795_v59 = vor.u32 1.1754944e-38, %v3794_v54 }
 0x6a6   :  { %v6367_v5 = vpop.eup %6366  ;;  %v10879_v46 = vadd.f32 1.0, %v6365_v56  ;;  %v3749_v45 = vadd.f32 %v10839_v48, %v3748_v9  ;;  %v10897_v12 = vadd.f32 %v3840_v13, %v3838_v30  ;;  %v5980_v61 = vmul.f32 -1.442695, %v3952_v53 }
 0x6a7   :  { %v3786_v21 = vmul.f32 %v10860_v6, %v3785_v51  ;;  %6372 = vrcp.f32 %v10876_v37  ;;  %v3811_v11 = vmul.f32 %v10845_v44, %v3810_v58  ;;  %v3973_v47 = vand.u32 2147483647, %v10863_v49 }
 0x6a8   :  { %6374 = vrcp.f32 %v10879_v46  ;;  %v3753_v23 = vsel %vm10903_vm9, %v10839_v48, %v3749_v45  ;;  %vm10924_vm11 = vcmp.eq.f32.partialorder %v3792_v26, 8.507059e+37  ;;  %vm3969_vm12 = vweird.f32 %v10863_v49 }
 0x6a9   :  { %v3787_v27 = vadd.f32 %v10860_v6, %v3786_v21  ;;  %6376 = vpow2.f32 %v5983_v4  ;;  %v3953_v48 = vadd.f32 %v3899_v50, %v10803_v20  ;;  %v3975_v2 = vand.u32 2147483648, %v10863_v49 }
 0x6aa   :  { %v10895_v0 = vpop.eup %6368  ;;  %6378 = vpow2.f32 %v5980_v61  ;;  %v3955_v8 = vadd.f32 %v3945_v41, %v10813_v57  ;;  %v3758_v54 = vsel %vm10885_vm6, %v3757_v36, %v3753_v23  ;;  %v4013_v9 = vand.u32 2147483648, %v10879_v46 }
 0x6ab   :  { %v10907_v14 = vpop.eup %6370  ;;  %v3965_v7 = vmul.f32 %v10895_v0, %v10863_v49  ;;  %v3791_v52 = vsel %vm10920_vm10, %v10860_v6, %v3787_v27  ;;  %6380 = vtanh.f32 %v10897_v12  ;;  %v5982_v29 = vmul.f32 -1.442695, %v3953_v48  ;;  %v7389_v6 = vld [vmem:[#allocation4 + $0x1e8] sm:$0xff] }
 0x6ac   :  { %vm10942_vm13 = vcmp.eq.f32.partialorder %v3973_v47, 8.507059e+37  ;;  %v5984_v56 = vmul.f32 -1.442695, %v3955_v8  ;;  %v3812_v57 = vadd.f32 %v10845_v44, %v3811_v11  ;;  %vm3814_vm14 = vweird.f32 %v10845_v44 }
 0x6ad   :  { %v3966_v1 = vsub.f32 1.0, %v3965_v7  ;;  %v10935_v62 = vpop.eup %6372  ;;  %v3796_v30 = vsel %vm10924_vm11, %v3795_v59, %v3791_v52  ;;  %6382 = vpow2.f32 %v5982_v29  ;;  %vm3970_vm15 = vweird.f32 %v10895_v0  ;;  %vm10963_vm0 = vmor %vm3813_vm7, %vm3814_vm14  ;;  %v3922_v7 = vpop.f32.mrf.mxu2 }
 0x6ae   :  { %v6375_v20 = vpop.eup %6374  ;;  %v3824_v13 = vmul.f32 %v10935_v62, %v10876_v37  ;;  %v3817_v45 = vand.u32 2147483647, %v10815_v33  ;;  %v3841_v16 = vmul.f32 %v6367_v5, %v3758_v54  ;;  %v4011_v36 = vand.u32 2147483647, %v10879_v46  ;;  %vm10976_vm1 = vmor %vm3969_vm12, %vm3970_vm15 }
 0x6af   :  { %v3967_v39 = vmul.f32 %v10895_v0, %v3966_v1  ;;  %v6377_v51 = vpop.eup %6376  ;;  %v4003_v4 = vmul.f32 %v6375_v20, %v10879_v46  ;;  %6384 = vpow2.f32 %v5984_v56  ;;  %v3839_v50 = vmul.f32 %v3796_v30, %v10655_v63  ;;  %v7391_v30 = vld [vmem:[#allocation4 + $0x1f8] sm:$0xff] }
 0x6b0   :  { %v10955_v21 = vadd.f32 1.0, %v6377_v51  ;;  %v6379_v53 = vpop.eup %6378  ;;  %vm4008_vm2 = vweird.f32 %v6375_v20  ;;  %v3816_v5 = vsel %vm10963_vm0, %v10845_v44, %v3812_v57  ;;  %v3825_v32 = vsub.f32 1.0, %v3824_v13  ;;  %v7390_v51 = vld [vmem:[#allocation4 + $0x1f0] sm:$0xff] }
 0x6b1   :  { %v3968_v58 = vadd.f32 %v10895_v0, %v3967_v39  ;;  %v4004_v26 = vsub.f32 1.0, %v4003_v4  ;;  %v6381_v59 = vpop.eup %6380  ;;  %v10980_v11 = vadd.f32 1.0, %v6379_v53  ;;  %v3820_v63 = vor.u32 1.1754944e-38, %v3819_v28  ;;  %v7388_v39 = vld [vmem:[#allocation4 + $0x1e0] sm:$0xff]  ;;  %v7393_v4 = vld [vmem:[#allocation4 + $0x1c8] sm:$0xff]  ;;  %v7395_v53 = vld [vmem:[#allocation4 + $0x1d8] sm:$0xff] }
 0x6b2   :  { %6386 = vrcp.f32 %v10955_v21  ;;  %vm4007_vm4 = vweird.f32 %v10879_v46  ;;  %v3976_v23 = vor.u32 1.1754944e-38, %v3975_v2  ;;  %vm3818_vm5 = vcmp.eq.f32.partialorder %v3817_v45, 8.507059e+37  ;;  %v7394_v45 = vld [vmem:[#allocation4 + $0x1d0] sm:$0xff] }
 0x6b3   :  { %v4005_v61 = vmul.f32 %v6375_v20, %v4004_v26  ;;  %v3972_v44 = vsel %vm10976_vm1, %v10895_v0, %v3968_v58  ;;  %v6383_v47 = vpop.eup %6382  ;;  %v4014_v49 = vor.u32 1.1754944e-38, %v4013_v9  ;;  %6388 = vrcp.f32 %v10980_v11  ;;  %vm4009_vm6 = vmor %vm4007_vm4, %vm4008_vm2 }
 0x6b4   :  { %v3821_v19 = vsel %vm3818_vm5, %v3820_v63, %v3816_v5  ;;  %v10989_v48 = vadd.f32 %v3841_v16, %v3839_v50  ;;  %vm4012_vm7 = vcmp.eq.f32.partialorder %v4011_v36, 8.507059e+37  ;;  %v10992_v33 = vadd.f32 1.0, %v6383_v47  ;;  %v7396_v5 = vld [vmem:[#allocation4 + $0x1a0] sm:$0xff] }
 0x6b5   :  { %v4006_v17 = vadd.f32 %v6375_v20, %v4005_v61  ;;  %v3846_v28 = vmul.f32 %v6381_v59, %v3821_v19  ;;  %v6385_v46 = vpop.eup %6384  ;;  %v3977_v0 = vsel %vm10942_vm13, %v3976_v23, %v3972_v44  ;;  %v3954_v1 = vadd.f32 %v3922_v7, %v10807_v15  ;;  %v7397_v59 = vld [vmem:[#allocation4 + $0x1a8] sm:$0xff]  ;;  %v7398_v23 = vld [vmem:[#allocation4 + $0x1b0] sm:$0xff]  ;;  %v7399_v7 = vld [vmem:[#allocation4 + $0x1b8] sm:$0xff] }
 0x6b6   :  { %v3826_v2 = vmul.f32 %v10935_v62, %v3825_v32  ;;  %6390 = vrcp.f32 %v10992_v33  ;;  %v4074_v15 = vmul.f32 %v10907_v14, %v3977_v0  ;;  %vm3829_vm8 = vweird.f32 %v10935_v62  ;;  %v7392_v14 = vld [vmem:[#allocation4 + $0x1c0] sm:$0xff]  ;;  %v7401_v19 = vld [vmem:[#allocation4 + $0x188] sm:$0xff]  ;;  %v7410_v32 = vld [vmem:[#allocation4 + $0x150] sm:$0xff] }
 0x6b7   :  { %v4010_v52 = vsel %vm4009_vm6, %v6375_v20, %v4006_v17  ;;  %4098 = vmatmul.f32.vlgmr.msra.gmra.mxu0 %v3846_v28  ;;  %4121 = vmatmul.f32.vlgmr.msrb.gmra.mxu1 %v3846_v28  ;;  %6392 = vtanh.f32 %v10989_v48  ;;  %v11006_v20 = vadd.f32 1.0, %v6385_v46  ;;  %vm4047_vm9 = vweird.f32 %v10955_v21  ;;  %v7400_v17 = vld [vmem:[#allocation4 + $0x180] sm:$0xff] }
 0x6b8   :  { %v10998_v8 = vpop.eup %6386  ;;  %v4015_v54 = vsel %vm4012_vm7, %v4014_v49, %v4010_v52  ;;  %4144 = vmatmul.f32.vlgmr.msrb.gmra.mxu2 %v3846_v28  ;;  %4167 = vmatmul.f32.vlgmr.msra.gmra.mxu3 %v3846_v28  ;;  %6394 = vtanh.f32 %v3954_v1  ;;  %v3827_v13 = vadd.f32 %v10935_v62, %v3826_v2  ;;  %vm3984_vm10 = vweird.f32 %v10980_v11  ;;  %v7402_v2 = vld [vmem:[#allocation4 + $0x190] sm:$0xff] }
 0x6b9   :  { %v4043_v9 = vmul.f32 %v10998_v8, %v10955_v21  ;;  %v4072_v29 = vmul.f32 %v4015_v54, %v10681_v38  ;;  %4408 = vmatpush.msra.mxu0 %v7388_v39  ;;  %4431 = vmatpush.msrb.mxu1 %v7389_v6  ;;  %v11008_v56 = vpop.eup %6388  ;;  %6396 = vrcp.f32 %v11006_v20  ;;  %v3990_v58 = vand.u32 2147483648, %v10980_v11  ;;  %v7404_v39 = vld [vmem:[#allocation4 + $0x160] sm:$0xff]  ;;  %v7405_v6 = vld [vmem:[#allocation4 + $0x168] sm:$0xff] }
 0x6ba   :  { %4454 = vmatpush.msrb.mxu2 %v7390_v51  ;;  %4477 = vmatpush.msra.mxu3 %v7391_v30  ;;  %v3980_v38 = vmul.f32 %v11008_v56, %v10980_v11  ;;  %vm3828_vm11 = vweird.f32 %v10876_v37  ;;  %v3832_v16 = vand.u32 2147483647, %v10876_v37  ;;  %v3834_v61 = vand.u32 2147483648, %v10876_v37  ;;  %v7425_v51 = vld [vmem:[#allocation4 + $0xc8] sm:$0xff] }
 0x6bb   :  { %v4044_v57 = vsub.f32 1.0, %v4043_v9  ;;  %4409 = vmatpush.msra.mxu0 %v7392_v14  ;;  %4432 = vmatpush.msrb.mxu1 %v7393_v4  ;;  %v11022_v36 = vadd.f32 %v4074_v15, %v4072_v29  ;;  %vm11027_vm12 = vmor %vm3828_vm11, %vm3829_vm8  ;;  %v4028_v63 = vand.u32 2147483648, %v10992_v33  ;;  %v3988_v44 = vand.u32 2147483647, %v10980_v11  ;;  %v7407_v14 = vld [vmem:[#allocation4 + $0x178] sm:$0xff] }
 0x6bc   :  { %4455 = vmatpush.msrb.mxu2 %v7394_v45  ;;  %4478 = vmatpush.msra.mxu3 %v7395_v53  ;;  %v11020_v26 = vpop.eup %6390  ;;  %v3981_v50 = vsub.f32 1.0, %v3980_v38  ;;  %v3831_v47 = vsel %vm11027_vm12, %v10935_v62, %v3827_v13  ;;  %vm4048_vm13 = vweird.f32 %v10998_v8  ;;  %vm3985_vm14 = vweird.f32 %v11008_v56  ;;  %v7403_v62 = vld [vmem:[#allocation4 + $0x198] sm:$0xff]  ;;  %v7406_v38 = vld [vmem:[#allocation4 + $0x170] sm:$0xff]  ;;  %v7408_v45 = vld [vmem:[#allocation4 + $0x140] sm:$0xff] }
 0x6bd   :  { %v4045_v27 = vmul.f32 %v10998_v8, %v4044_v57  ;;  %4410 = vmatpush.msra.mxu0 %v7396_v5  ;;  %4433 = vmatpush.msrb.mxu1 %v7397_v59  ;;  %v4018_v41 = vmul.f32 %v11020_v26, %v10992_v33  ;;  %v6393_v49 = vpop.eup %6392  ;;  %v3835_v28 = vor.u32 1.1754944e-38, %v3834_v61  ;;  %v3991_v52 = vor.u32 1.1754944e-38, %v3990_v58  ;;  %vm11054_vm2 = vmor %vm3984_vm10, %vm3985_vm14  ;;  %v7409_v53 = vld [vmem:[#allocation4 + $0x148] sm:$0xff]  ;;  %v7411_v61 = vld [vmem:[#allocation4 + $0x158] sm:$0xff] }
 0x6be   :  { %4456 = vmatpush.msrb.mxu2 %v7398_v23  ;;  %4479 = vmatpush.msra.mxu3 %v7399_v7  ;;  %v3982_v37 = vmul.f32 %v11008_v56, %v3981_v50  ;;  %v6395_v46 = vpop.eup %6394  ;;  %v4026_v1 = vand.u32 2147483647, %v10992_v33  ;;  %vm3833_vm15 = vcmp.eq.f32.partialorder %v3832_v16, 8.507059e+37  ;;  %6398 = vtanh.f32 %v11022_v36  ;;  %vm11069_vm4 = vmor %vm4047_vm9, %vm4048_vm13  ;;  %v7433_v16 = vld [vmem:[#allocation4 + $0x88] sm:$0xff] }
 0x6bf   :  { %4411 = vmatpush.msra.mxu0 %v7400_v17  ;;  %4434 = vmatpush.msrb.mxu1 %v7401_v19  ;;  %v4019_v0 = vsub.f32 1.0, %v4018_v41  ;;  %v11043_v54 = vpop.eup %6396  ;;  %v4046_v9 = vadd.f32 %v10998_v8, %v4045_v27  ;;  %v3836_v15 = vsel %vm3833_vm15, %v3835_v28, %v3831_v47  ;;  %vm4023_vm0 = vweird.f32 %v11020_v26  ;;  %v7413_v47 = vld [vmem:[#allocation4 + $0x128] sm:$0xff]  ;;  %v7416_v17 = vld [vmem:[#allocation4 + $0x100] sm:$0xff] }
 0x6c0   :  { %4457 = vmatpush.msrb.mxu2 %v7402_v2  ;;  %4480 = vmatpush.msra.mxu3 %v7403_v62  ;;  %v3983_v29 = vadd.f32 %v11008_v56, %v3982_v37  ;;  %v4058_v30 = vmul.f32 %v11043_v54, %v11006_v20  ;;  %v3847_v13 = vmul.f32 %v6393_v49, %v3836_v15  ;;  %v4051_v4 = vand.u32 2147483647, %v10955_v21  ;;  %v7414_v49 = vld [vmem:[#allocation4 + $0x130] sm:$0xff]  ;;  %v7417_v19 = vld [vmem:[#allocation4 + $0x108] sm:$0xff] }
 0x6c1   :  { %4412 = vmatpush.msra.mxu0 %v7404_v39  ;;  %4435 = vmatpush.msrb.mxu1 %v7405_v6  ;;  %v4020_v57 = vmul.f32 %v11020_v26, %v4019_v0  ;;  %v4053_v58 = vand.u32 2147483648, %v10955_v21  ;;  %vm3989_vm1 = vcmp.eq.f32.partialorder %v3988_v44, 8.507059e+37  ;;  %vm4022_vm5 = vweird.f32 %v10992_v33  ;;  %v7418_v0 = vld [vmem:[#allocation4 + $0x110] sm:$0xff]  ;;  %v7421_v2 = vld [vmem:[#allocation4 + $0xe8] sm:$0xff]  ;;  %v7423_v39 = vld [vmem:[#allocation4 + $0xf8] sm:$0xff] }
 0x6c2   :  { %4458 = vmatpush.msrb.mxu2 %v7406_v38  ;;  %4481 = vmatpush.msra.mxu3 %v7407_v14  ;;  %v3987_v11 = vsel %vm11054_vm2, %v11008_v56, %v3983_v29  ;;  %v4059_v5 = vsub.f32 1.0, %v4058_v30  ;;  %vm4024_vm6 = vmor %vm4022_vm5, %vm4023_vm0  ;;  %v4029_v56 = vor.u32 1.1754944e-38, %v4028_v63  ;;  %v4050_v21 = vsel %vm11069_vm4, %v10998_v8, %v4046_v9  ;;  %v7412_v63 = vld [vmem:[#allocation4 + $0x120] sm:$0xff]  ;;  %v7422_v15 = vld [vmem:[#allocation4 + $0xf0] sm:$0xff] }
 0x6c3   :  { %4413 = vmatpush.msra.mxu0 %v7408_v45  ;;  %4436 = vmatpush.msrb.mxu1 %v7409_v53  ;;  %v3992_v27 = vsel %vm3989_vm1, %v3991_v52, %v3987_v11  ;;  %v4021_v50 = vadd.f32 %v11020_v26, %v4020_v57  ;;  %vm4027_vm7 = vcmp.eq.f32.partialorder %v4026_v1, 8.507059e+37  ;;  %v4054_v44 = vor.u32 1.1754944e-38, %v4053_v58  ;;  %v7419_v52 = vld [vmem:[#allocation4 + $0x118] sm:$0xff]  ;;  %v7424_v57 = vld [vmem:[#allocation4 + $0xc0] sm:$0xff]  ;;  %v7426_v30 = vld [vmem:[#allocation4 + $0xd0] sm:$0xff] }
 0x6c4   :  { %4101 = vmatmul.f32.gmra.mxu0 %v3847_v13  ;;  %4124 = vmatmul.f32.gmra.mxu1 %v3847_v13  ;;  %v4075_v33 = vmul.f32 %v6395_v46, %v3992_v27  ;;  %v6399_v41 = vpop.eup %6398  ;;  %v4060_v7 = vmul.f32 %v11043_v54, %v4059_v5  ;;  %vm4052_vm8 = vcmp.eq.f32.partialorder %v4051_v4, 8.507059e+37  ;;  %vm4063_vm9 = vweird.f32 %v11043_v54  ;;  %v7428_v38 = vld [vmem:[#allocation4 + $0xa0] sm:$0xff]  ;;  %v7429_v14 = vld [vmem:[#allocation4 + $0xa8] sm:$0xff]  ;;  %v7430_v11 = vld [vmem:[#allocation4 + $0xb0] sm:$0xff] }
 0x6c5   :  { %4147 = vmatmul.f32.gmra.mxu2 %v3847_v13  ;;  %4170 = vmatmul.f32.gmra.mxu3 %v3847_v13  ;;  %v4025_v59 = vsel %vm4024_vm6, %v11020_v26, %v4021_v50  ;;  %v7415_v26 = vld [vmem:[#allocation4 + $0x138] sm:$0xff]  ;;  %v4055_v37 = vsel %vm4052_vm8, %v4054_v44, %v4050_v21  ;;  %v4068_v62 = vand.u32 2147483648, %v11006_v20  ;;  %vm4062_vm10 = vweird.f32 %v11006_v20  ;;  %v7432_v53 = vld [vmem:[#allocation4 + $0x80] sm:$0xff]  ;;  %v7434_v27 = vld [vmem:[#allocation4 + $0x90] sm:$0xff] }
 0x6c6   :  { %4459 = vmatpush.msrb.mxu2 %v7410_v32  ;;  %4482 = vmatpush.msra.mxu3 %v7411_v61  ;;  %v4030_v23 = vsel %vm4027_vm7, %v4029_v56, %v4025_v59  ;;  %v11083_v28 = vmul.f32 %v6399_v41, %v4055_v37  ;;  %v4061_v1 = vadd.f32 %v11043_v54, %v4060_v7  ;;  %v4066_v9 = vand.u32 2147483647, %v11006_v20  ;;  %vm11097_vm11 = vmor %vm4062_vm10, %vm4063_vm9  ;;  %v7427_v13 = vld [vmem:[#allocation4 + $0xd8] sm:$0xff]  ;;  %v7436_v5 = vld [vmem:[#allocation4 + $0x60] sm:$0xff] }
 0x6c7   :  { %4414 = vmatpush.msra.mxu0 %v7412_v63  ;;  %4437 = vmatpush.msrb.mxu1 %v7413_v47  ;;  %v4073_v8 = vmul.f32 %v4030_v23, %v10741_v3  ;;  %v7420_v3 = vld [vmem:[#allocation4 + $0xe0] sm:$0xff]  ;;  %v4069_v20 = vor.u32 1.1754944e-38, %v4068_v62  ;;  %v7431_v45 = vld [vmem:[#allocation4 + $0xb8] sm:$0xff]  ;;  %v7437_v56 = vld [vmem:[#allocation4 + $0x68] sm:$0xff] }
 0x6c8   :  { %4460 = vmatpush.msrb.mxu2 %v7414_v49  ;;  %4483 = vmatpush.msra.mxu3 %v7415_v26  ;;  %v4065_v6 = vsel %vm11097_vm11, %v11043_v54, %v4061_v1  ;;  %vm4067_vm12 = vcmp.eq.f32.partialorder %v4066_v9, 8.507059e+37  ;;  %v7435_v50 = vld [vmem:[#allocation4 + $0x98] sm:$0xff]  ;;  %v7438_v21 = vld [vmem:[#allocation4 + $0x70] sm:$0xff]  ;;  %v7441_v32 = vld [vmem:[#allocation4 + $0x48] sm:$0xff] }
 0x6c9   :  { %4415 = vmatpush.msra.mxu0 %v7416_v17  ;;  %4438 = vmatpush.msrb.mxu1 %v7417_v19  ;;  %v11085_v46 = vadd.f32 %v4075_v33, %v4073_v8  ;;  %v4070_v58 = vsel %vm4067_vm12, %v4069_v20, %v4065_v6  ;;  %v7439_v59 = vld [vmem:[#allocation4 + $0x78] sm:$0xff]  ;;  %v7440_v33 = vld [vmem:[#allocation4 + $0x40] sm:$0xff]  ;;  %v7442_v61 = vld [vmem:[#allocation4 + $0x50] sm:$0xff] }
 0x6ca   :  { %4461 = vmatpush.msrb.mxu2 %v7418_v0  ;;  %4484 = vmatpush.msra.mxu3 %v7419_v52  ;;  %v7443_v41 = vld [vmem:[#allocation4 + $0x58] sm:$0xff]  ;;  %v7444_v44 = vld [vmem:[#allocation4 + $0x20] sm:$0xff]  ;;  %v7445_v23 = vld [vmem:[#allocation4 + $0x28] sm:$0xff] }
 0x6cb   :  { %4416 = vmatpush.msra.mxu0 %v7420_v3  ;;  %4439 = vmatpush.msrb.mxu1 %v7421_v2  ;;  %6400 = vtanh.f32 %v11085_v46  ;;  %v7446_v7 = vld [vmem:[#allocation4 + $0x30] sm:$0xff]  ;;  %v7447_v63 = vld [vmem:[#allocation4 + $0x38] sm:$0xff]  ;;  %v7448_v47 = vld [vmem:[#allocation4] sm:$0xff] }
 0x6cc   :  { %4190 = vmatmul.f32.vlgmr.msrb.gmra.mxu0 %v11083_v28  ;;  %4213 = vmatmul.f32.vlgmr.msra.gmra.mxu1 %v11083_v28  ;;  %v7449_v8 = vld [vmem:[#allocation4 + $0x8] sm:$0xff]  ;;  %v7450_v49 = vld [vmem:[#allocation4 + $0x10] sm:$0xff]  ;;  %v7451_v26 = vld [vmem:[#allocation4 + $0x18] sm:$0xff] }
 0x6cd   :  { %4236 = vmatmul.f32.vlgmr.msra.gmra.mxu2 %v11083_v28  ;;  %4259 = vmatmul.f32.vlgmr.msrb.gmra.mxu3 %v11083_v28  ;;  %v7452_v37 = vld [vmem:[#allocation8 + $0x1e0] sm:$0xff]  ;;  %v7453_v17 = vld [vmem:[#allocation8 + $0x1e8] sm:$0xff]  ;;  %v7454_v19 = vld [vmem:[#allocation8 + $0x1f0] sm:$0xff] }
 0x6ce   :  { %4462 = vmatpush.msrb.mxu2 %v7422_v15  ;;  %4485 = vmatpush.msra.mxu3 %v7423_v39  ;;  %v7455_v0 = vld [vmem:[#allocation8 + $0x1f8] sm:$0xff]  ;;  %v7456_v52 = vld [vmem:[#allocation8 + $0x1c0] sm:$0xff]  ;;  %v7457_v1 = vld [vmem:[#allocation8 + $0x1c8] sm:$0xff] }
 0x6cf   :  { %4417 = vmatpush.msra.mxu0 %v7424_v57  ;;  %4440 = vmatpush.msrb.mxu1 %v7425_v51  ;;  %v7458_v3 = vld [vmem:[#allocation8 + $0x1d0] sm:$0xff]  ;;  %v7459_v2 = vld [vmem:[#allocation8 + $0x1d8] sm:$0xff]  ;;  %v7460_v62 = vld [vmem:[#allocation8 + $0x1a0] sm:$0xff] }
 0x6d0   :  { %4463 = vmatpush.msrb.mxu2 %v7426_v30  ;;  %4486 = vmatpush.msra.mxu3 %v7427_v13  ;;  %v7461_v9 = vld [vmem:[#allocation8 + $0x1a8] sm:$0xff]  ;;  %v7463_v29 = vld [vmem:[#allocation8 + $0x1b8] sm:$0xff]  ;;  %v7464_v15 = vld [vmem:[#allocation8 + $0x180] sm:$0xff] }
 0x6d1   :  { %4418 = vmatpush.msra.mxu0 %v7428_v38  ;;  %4441 = vmatpush.msrb.mxu1 %v7429_v14  ;;  %v6401_v4 = vpop.eup %6400  ;;  %v7465_v39 = vld [vmem:[#allocation8 + $0x188] sm:$0xff]  ;;  %v7466_v6 = vld [vmem:[#allocation8 + $0x190] sm:$0xff]  ;;  %v7467_v57 = vld [vmem:[#allocation8 + $0x198] sm:$0xff] }
 0x6d2   :  { %4464 = vmatpush.msrb.mxu2 %v7430_v11  ;;  %4487 = vmatpush.msra.mxu3 %v7431_v45  ;;  %v11104_v54 = vmul.f32 %v6401_v4, %v4070_v58  ;;  %v7468_v51 = vld [vmem:[#allocation8 + $0x160] sm:$0xff]  ;;  %v7469_v20 = vld [vmem:[#allocation8 + $0x168] sm:$0xff]  ;;  %v7470_v30 = vld [vmem:[#allocation8 + $0x170] sm:$0xff] }
 0x6d3   :  { %4419 = vmatpush.msra.mxu0 %v7432_v53  ;;  %4442 = vmatpush.msrb.mxu1 %v7433_v16  ;;  %v7471_v13 = vld [vmem:[#allocation8 + $0x178] sm:$0xff]  ;;  %v7472_v38 = vld [vmem:[#allocation8 + $0x140] sm:$0xff]  ;;  %v7473_v14 = vld [vmem:[#allocation8 + $0x148] sm:$0xff] }
 0x6d4   :  { %4465 = vmatpush.msrb.mxu2 %v7434_v27  ;;  %4488 = vmatpush.msra.mxu3 %v7435_v50  ;;  %v7474_v4 = vld [vmem:[#allocation8 + $0x150] sm:$0xff]  ;;  %v7475_v58 = vld [vmem:[#allocation8 + $0x158] sm:$0xff]  ;;  %v7476_v11 = vld [vmem:[#allocation8 + $0x120] sm:$0xff] }
 0x6d5   :  { %4193 = vmatmul.f32.gmra.mxu0 %v11104_v54  ;;  %4216 = vmatmul.f32.gmra.mxu1 %v11104_v54  ;;  %v7477_v45 = vld [vmem:[#allocation8 + $0x128] sm:$0xff]  ;;  %v7479_v53 = vld [vmem:[#allocation8 + $0x138] sm:$0xff]  ;;  %v7480_v16 = vld [vmem:[#allocation8 + $0x100] sm:$0xff] }
 0x6d6   :  { %4239 = vmatmul.f32.gmra.mxu2 %v11104_v54  ;;  %4262 = vmatmul.f32.gmra.mxu3 %v11104_v54  ;;  %v7481_v27 = vld [vmem:[#allocation8 + $0x108] sm:$0xff]  ;;  %v7482_v50 = vld [vmem:[#allocation8 + $0x110] sm:$0xff] }
 0x6d7   :  { %4420 = vmatpush.msra.mxu0 %v7436_v5  ;;  %4443 = vmatpush.msrb.mxu1 %v7437_v56  ;;  %v7483_v5 = vld [vmem:[#allocation8 + $0x118] sm:$0xff]  ;;  %v7484_v56 = vld [vmem:[#allocation8 + $0xe0] sm:$0xff] }
 0x6d8   :  { %4466 = vmatpush.msrb.mxu2 %v7438_v21  ;;  %4489 = vmatpush.msra.mxu3 %v7439_v59  ;;  %v7485_v21 = vld [vmem:[#allocation8 + $0xe8] sm:$0xff]  ;;  %v7486_v59 = vld [vmem:[#allocation8 + $0xf0] sm:$0xff] }
 0x6d9   :  { %4421 = vmatpush.msra.mxu0 %v7440_v33  ;;  %4444 = vmatpush.msrb.mxu1 %v7441_v32  ;;  %v7487_v33 = vld [vmem:[#allocation8 + $0xf8] sm:$0xff]  ;;  %v7488_v32 = vld [vmem:[#allocation8 + $0xc0] sm:$0xff] }
 0x6da   :  { %4467 = vmatpush.msrb.mxu2 %v7442_v61  ;;  %4490 = vmatpush.msra.mxu3 %v7443_v41  ;;  %v7489_v61 = vld [vmem:[#allocation8 + $0xc8] sm:$0xff]  ;;  %v7490_v41 = vld [vmem:[#allocation8 + $0xd0] sm:$0xff] }
 0x6db   :  { %4422 = vmatpush.msra.mxu0 %v7444_v44  ;;  %4445 = vmatpush.msrb.mxu1 %v7445_v23  ;;  %v7491_v44 = vld [vmem:[#allocation8 + $0xd8] sm:$0xff]  ;;  %v7492_v23 = vld [vmem:[#allocation8 + $0xa0] sm:$0xff] }
 0x6dc   :  { %4468 = vmatpush.msrb.mxu2 %v7446_v7  ;;  %4491 = vmatpush.msra.mxu3 %v7447_v63  ;;  %v7493_v7 = vld [vmem:[#allocation8 + $0xa8] sm:$0xff]  ;;  %v7494_v63 = vld [vmem:[#allocation8 + $0xb0] sm:$0xff] }
 0x6dd   :  { %4423 = vmatpush.msra.mxu0 %v7448_v47  ;;  %4446 = vmatpush.msrb.mxu1 %v7449_v8  ;;  %v7495_v47 = vld [vmem:[#allocation8 + $0xb8] sm:$0xff]  ;;  %v7496_v8 = vld [vmem:[#allocation8 + $0x80] sm:$0xff] }
 0x6de   :  { %4469 = vmatpush.msrb.mxu2 %v7450_v49  ;;  %4492 = vmatpush.msra.mxu3 %v7451_v26  ;;  %v7497_v49 = vld [vmem:[#allocation8 + $0x88] sm:$0xff]  ;;  %v7498_v26 = vld [vmem:[#allocation8 + $0x90] sm:$0xff] }
 0x6df   :  { %4424 = vmatmul.f32.vlgmr.msra.gmra.mxu0 %v11083_v28  ;;  %4447 = vmatmul.f32.vlgmr.msrb.gmra.mxu1 %v11083_v28 }
 0x6e0   :  { %4470 = vmatmul.f32.vlgmr.msrb.gmra.mxu2 %v11083_v28  ;;  %4493 = vmatmul.f32.vlgmr.msra.gmra.mxu3 %v11083_v28  ;;  %v7462_v28 = vld [vmem:[#allocation8 + $0x1b0] sm:$0xff] }
 0x6e1   :  { %4634 = vmatpush.msrb.mxu0 %v7452_v37  ;;  %4657 = vmatpush.msra.mxu1 %v7453_v17  ;;  %v7499_v37 = vld [vmem:[#allocation8 + $0x98] sm:$0xff]  ;;  %v7500_v17 = vld [vmem:[#allocation8 + $0x60] sm:$0xff] }
 0x6e2   :  { %4680 = vmatpush.msra.mxu2 %v7454_v19  ;;  %4703 = vmatpush.msrb.mxu3 %v7455_v0  ;;  %v7501_v19 = vld [vmem:[#allocation8 + $0x68] sm:$0xff]  ;;  %v7502_v0 = vld [vmem:[#allocation8 + $0x70] sm:$0xff] }
 0x6e3   :  { %4635 = vmatpush.msrb.mxu0 %v7456_v52  ;;  %4658 = vmatpush.msra.mxu1 %v7457_v1  ;;  %v7503_v52 = vld [vmem:[#allocation8 + $0x78] sm:$0xff]  ;;  %v7504_v1 = vld [vmem:[#allocation8 + $0x40] sm:$0xff] }
 0x6e4   :  { %4681 = vmatpush.msra.mxu2 %v7458_v3  ;;  %4704 = vmatpush.msrb.mxu3 %v7459_v2  ;;  %v7505_v3 = vld [vmem:[#allocation8 + $0x48] sm:$0xff]  ;;  %v7506_v2 = vld [vmem:[#allocation8 + $0x50] sm:$0xff] }
 0x6e5   :  { %4636 = vmatpush.msrb.mxu0 %v7460_v62  ;;  %4659 = vmatpush.msra.mxu1 %v7461_v9  ;;  %v7507_v62 = vld [vmem:[#allocation8 + $0x58] sm:$0xff]  ;;  %v7508_v9 = vld [vmem:[#allocation8 + $0x20] sm:$0xff] }
 0x6e6   :  { %4682 = vmatpush.msra.mxu2 %v7462_v28  ;;  %4705 = vmatpush.msrb.mxu3 %v7463_v29  ;;  %v7509_v28 = vld [vmem:[#allocation8 + $0x28] sm:$0xff]  ;;  %v7510_v29 = vld [vmem:[#allocation8 + $0x30] sm:$0xff] }
 0x6e7   :  { %4427 = vmatmul.f32.gmra.mxu0 %v11104_v54  ;;  %4450 = vmatmul.f32.gmra.mxu1 %v11104_v54 }
 0x6e8   :  { %4473 = vmatmul.f32.gmra.mxu2 %v11104_v54  ;;  %4496 = vmatmul.f32.gmra.mxu3 %v11104_v54  ;;  %v7478_v54 = vld [vmem:[#allocation8 + $0x130] sm:$0xff] }
 0x6e9   :  { %4637 = vmatpush.msrb.mxu0 %v7464_v15  ;;  %4660 = vmatpush.msra.mxu1 %v7465_v39  ;;  %v7511_v15 = vld [vmem:[#allocation8 + $0x38] sm:$0xff]  ;;  %v7512_v39 = vld [vmem:[#allocation8] sm:$0xff] }
 0x6ea   :  { %4683 = vmatpush.msra.mxu2 %v7466_v6  ;;  %4706 = vmatpush.msrb.mxu3 %v7467_v57  ;;  %v7513_v6 = vld [vmem:[#allocation8 + $0x8] sm:$0xff]  ;;  %v7514_v57 = vld [vmem:[#allocation8 + $0x10] sm:$0xff] }
 0x6eb   :  { %4638 = vmatpush.msrb.mxu0 %v7468_v51  ;;  %4661 = vmatpush.msra.mxu1 %v7469_v20  ;;  %v7515_v51 = vld [vmem:[#allocation8 + $0x18] sm:$0xff]  ;;  %v7516_v20 = vld [vmem:[#allocation6 + $0x1e0] sm:$0xff] }
 0x6ec   :  { %4684 = vmatpush.msra.mxu2 %v7470_v30  ;;  %4707 = vmatpush.msrb.mxu3 %v7471_v13  ;;  %v7517_v30 = vld [vmem:[#allocation6 + $0x1e8] sm:$0xff]  ;;  %v7518_v13 = vld [vmem:[#allocation6 + $0x1f0] sm:$0xff] }
 0x6ed   :  { %4639 = vmatpush.msrb.mxu0 %v7472_v38  ;;  %4662 = vmatpush.msra.mxu1 %v7473_v14  ;;  %v7519_v38 = vld [vmem:[#allocation6 + $0x1f8] sm:$0xff]  ;;  %v7520_v14 = vld [vmem:[#allocation6 + $0x1c0] sm:$0xff] }
 0x6ee   :  { %4685 = vmatpush.msra.mxu2 %v7474_v4  ;;  %4708 = vmatpush.msrb.mxu3 %v7475_v58  ;;  %v7521_v4 = vld [vmem:[#allocation6 + $0x1c8] sm:$0xff]  ;;  %v7522_v58 = vld [vmem:[#allocation6 + $0x1d0] sm:$0xff] }
 0x6ef   :  { %4640 = vmatpush.msrb.mxu0 %v7476_v11  ;;  %4663 = vmatpush.msra.mxu1 %v7477_v45  ;;  %v7523_v11 = vld [vmem:[#allocation6 + $0x1d8] sm:$0xff]  ;;  %v7524_v45 = vld [vmem:[#allocation6 + $0x1a0] sm:$0xff] }
 0x6f0   :  { %4686 = vmatpush.msra.mxu2 %v7478_v54  ;;  %4709 = vmatpush.msrb.mxu3 %v7479_v53  ;;  %v7525_v54 = vld [vmem:[#allocation6 + $0x1a8] sm:$0xff]  ;;  %v7526_v53 = vld [vmem:[#allocation6 + $0x1b0] sm:$0xff] }
 0x6f1   :  { %4641 = vmatpush.msrb.mxu0 %v7480_v16  ;;  %4664 = vmatpush.msra.mxu1 %v7481_v27  ;;  %v7527_v16 = vld [vmem:[#allocation6 + $0x1b8] sm:$0xff]  ;;  %v7528_v27 = vld [vmem:[#allocation6 + $0x180] sm:$0xff] }
 0x6f2   :  { %4687 = vmatpush.msra.mxu2 %v7482_v50  ;;  %4710 = vmatpush.msrb.mxu3 %v7483_v5  ;;  %v7529_v50 = vld [vmem:[#allocation6 + $0x188] sm:$0xff]  ;;  %v7530_v5 = vld [vmem:[#allocation6 + $0x190] sm:$0xff] }
 0x6f3   :  { %4642 = vmatpush.msrb.mxu0 %v7484_v56  ;;  %4665 = vmatpush.msra.mxu1 %v7485_v21  ;;  %v7531_v56 = vld [vmem:[#allocation6 + $0x198] sm:$0xff]  ;;  %v7532_v21 = vld [vmem:[#allocation6 + $0x160] sm:$0xff] }
 0x6f4   :  { %4688 = vmatpush.msra.mxu2 %v7486_v59  ;;  %4711 = vmatpush.msrb.mxu3 %v7487_v33  ;;  %v7533_v59 = vld [vmem:[#allocation6 + $0x168] sm:$0xff]  ;;  %v7534_v33 = vld [vmem:[#allocation6 + $0x170] sm:$0xff] }
 0x6f5   :  { %4643 = vmatpush.msrb.mxu0 %v7488_v32  ;;  %4666 = vmatpush.msra.mxu1 %v7489_v61  ;;  %v7535_v32 = vld [vmem:[#allocation6 + $0x178] sm:$0xff]  ;;  %v7536_v61 = vld [vmem:[#allocation6 + $0x140] sm:$0xff] }
 0x6f6   :  { %4689 = vmatpush.msra.mxu2 %v7490_v41  ;;  %4712 = vmatpush.msrb.mxu3 %v7491_v44  ;;  %v7537_v41 = vld [vmem:[#allocation6 + $0x148] sm:$0xff]  ;;  %v7538_v44 = vld [vmem:[#allocation6 + $0x150] sm:$0xff] }
 0x6f7   :  { %4644 = vmatpush.msrb.mxu0 %v7492_v23  ;;  %4667 = vmatpush.msra.mxu1 %v7493_v7  ;;  %v7539_v23 = vld [vmem:[#allocation6 + $0x158] sm:$0xff]  ;;  %v7540_v7 = vld [vmem:[#allocation6 + $0x120] sm:$0xff] }
 0x6f8   :  { %4690 = vmatpush.msra.mxu2 %v7494_v63  ;;  %4713 = vmatpush.msrb.mxu3 %v7495_v47  ;;  %v7541_v63 = vld [vmem:[#allocation6 + $0x128] sm:$0xff]  ;;  %v7542_v47 = vld [vmem:[#allocation6 + $0x130] sm:$0xff] }
 0x6f9   :  { %4645 = vmatpush.msrb.mxu0 %v7496_v8  ;;  %4668 = vmatpush.msra.mxu1 %v7497_v49  ;;  %v7543_v8 = vld [vmem:[#allocation6 + $0x138] sm:$0xff]  ;;  %v7544_v49 = vld [vmem:[#allocation6 + $0x100] sm:$0xff] }
 0x6fa   :  { %4691 = vmatpush.msra.mxu2 %v7498_v26  ;;  %4714 = vmatpush.msrb.mxu3 %v7499_v37  ;;  %v7545_v26 = vld [vmem:[#allocation6 + $0x108] sm:$0xff]  ;;  %v7546_v37 = vld [vmem:[#allocation6 + $0x110] sm:$0xff] }
 0x6fb   :  { %4646 = vmatpush.msrb.mxu0 %v7500_v17  ;;  %4669 = vmatpush.msra.mxu1 %v7501_v19  ;;  %v7547_v17 = vld [vmem:[#allocation6 + $0x118] sm:$0xff]  ;;  %v7548_v19 = vld [vmem:[#allocation6 + $0xe0] sm:$0xff] }
 0x6fc   :  { %4692 = vmatpush.msra.mxu2 %v7502_v0  ;;  %4715 = vmatpush.msrb.mxu3 %v7503_v52  ;;  %v7549_v0 = vld [vmem:[#allocation6 + $0xe8] sm:$0xff]  ;;  %v7550_v52 = vld [vmem:[#allocation6 + $0xf0] sm:$0xff] }
 0x6fd   :  { %4647 = vmatpush.msrb.mxu0 %v7504_v1  ;;  %4670 = vmatpush.msra.mxu1 %v7505_v3  ;;  %v7551_v1 = vld [vmem:[#allocation6 + $0xf8] sm:$0xff]  ;;  %v7552_v3 = vld [vmem:[#allocation6 + $0xc0] sm:$0xff] }
 0x6fe   :  { %4693 = vmatpush.msra.mxu2 %v7506_v2  ;;  %4716 = vmatpush.msrb.mxu3 %v7507_v62  ;;  %v7553_v2 = vld [vmem:[#allocation6 + $0xc8] sm:$0xff]  ;;  %v7554_v62 = vld [vmem:[#allocation6 + $0xd0] sm:$0xff] }
 0x6ff   :  { %4648 = vmatpush.msrb.mxu0 %v7508_v9  ;;  %4671 = vmatpush.msra.mxu1 %v7509_v28  ;;  %v7555_v9 = vld [vmem:[#allocation6 + $0xd8] sm:$0xff]  ;;  %v7556_v28 = vld [vmem:[#allocation6 + $0xa0] sm:$0xff] }
 0x700   :  { %4694 = vmatpush.msra.mxu2 %v7510_v29  ;;  %4717 = vmatpush.msrb.mxu3 %v7511_v15  ;;  %v7557_v29 = vld [vmem:[#allocation6 + $0xa8] sm:$0xff]  ;;  %v7558_v15 = vld [vmem:[#allocation6 + $0xb0] sm:$0xff] }
 0x701   :  { %4649 = vmatpush.msrb.mxu0 %v7512_v39  ;;  %4672 = vmatpush.msra.mxu1 %v7513_v6  ;;  %v7559_v39 = vld [vmem:[#allocation6 + $0xb8] sm:$0xff]  ;;  %v7560_v6 = vld [vmem:[#allocation6 + $0x80] sm:$0xff] }
 0x702   :  { %4695 = vmatpush.msra.mxu2 %v7514_v57  ;;  %4718 = vmatpush.msrb.mxu3 %v7515_v51  ;;  %v7561_v57 = vld [vmem:[#allocation6 + $0x88] sm:$0xff]  ;;  %v7562_v51 = vld [vmem:[#allocation6 + $0x90] sm:$0xff] }
 0x703   :  { %4726 = vmatpush.msra.mxu0 %v7516_v20  ;;  %4749 = vmatpush.msrb.mxu1 %v7517_v30  ;;  %v7563_v20 = vld [vmem:[#allocation6 + $0x98] sm:$0xff]  ;;  %v7564_v30 = vld [vmem:[#allocation6 + $0x60] sm:$0xff] }
 0x704   :  { %4772 = vmatpush.msrb.mxu2 %v7518_v13  ;;  %4795 = vmatpush.msra.mxu3 %v7519_v38  ;;  %v7565_v13 = vld [vmem:[#allocation6 + $0x68] sm:$0xff]  ;;  %v7566_v38 = vld [vmem:[#allocation6 + $0x70] sm:$0xff] }
 0x705   :  { %4727 = vmatpush.msra.mxu0 %v7520_v14  ;;  %4750 = vmatpush.msrb.mxu1 %v7521_v4  ;;  %v7567_v14 = vld [vmem:[#allocation6 + $0x78] sm:$0xff]  ;;  %v7568_v4 = vld [vmem:[#allocation6 + $0x40] sm:$0xff] }
 0x706   :  { %4773 = vmatpush.msrb.mxu2 %v7522_v58  ;;  %4796 = vmatpush.msra.mxu3 %v7523_v11  ;;  %v7569_v58 = vld [vmem:[#allocation6 + $0x48] sm:$0xff]  ;;  %v7570_v11 = vld [vmem:[#allocation6 + $0x50] sm:$0xff] }
 0x707   :  { %4728 = vmatpush.msra.mxu0 %v7524_v45  ;;  %4751 = vmatpush.msrb.mxu1 %v7525_v54  ;;  %v7571_v45 = vld [vmem:[#allocation6 + $0x58] sm:$0xff]  ;;  %v7572_v54 = vld [vmem:[#allocation6 + $0x20] sm:$0xff] }
 0x708   :  { %4774 = vmatpush.msrb.mxu2 %v7526_v53  ;;  %4797 = vmatpush.msra.mxu3 %v7527_v16  ;;  %v7573_v53 = vld [vmem:[#allocation6 + $0x28] sm:$0xff]  ;;  %v7574_v16 = vld [vmem:[#allocation6 + $0x30] sm:$0xff] }
 0x709   :  { %4729 = vmatpush.msra.mxu0 %v7528_v27  ;;  %4752 = vmatpush.msrb.mxu1 %v7529_v50  ;;  %v7575_v27 = vld [vmem:[#allocation6 + $0x38] sm:$0xff]  ;;  %v7576_v50 = vld [vmem:[#allocation6] sm:$0xff] }
 0x70a   :  { %4775 = vmatpush.msrb.mxu2 %v7530_v5  ;;  %4798 = vmatpush.msra.mxu3 %v7531_v56  ;;  %v7577_v5 = vld [vmem:[#allocation6 + $0x8] sm:$0xff]  ;;  %v7578_v56 = vld [vmem:[#allocation6 + $0x10] sm:$0xff] }
 0x70b   :  { %4730 = vmatpush.msra.mxu0 %v7532_v21  ;;  %4753 = vmatpush.msrb.mxu1 %v7533_v59  ;;  %v7579_v21 = vld [vmem:[#allocation6 + $0x18] sm:$0xff] }
 0x70c   :  { %4776 = vmatpush.msrb.mxu2 %v7534_v33  ;;  %4799 = vmatpush.msra.mxu3 %v7535_v32 }
 0x70d   :  { %4731 = vmatpush.msra.mxu0 %v7536_v61  ;;  %4754 = vmatpush.msrb.mxu1 %v7537_v41 }
 0x70e   :  { %4777 = vmatpush.msrb.mxu2 %v7538_v44  ;;  %4800 = vmatpush.msra.mxu3 %v7539_v23 }
 0x70f   :  { %4732 = vmatpush.msra.mxu0 %v7540_v7  ;;  %4755 = vmatpush.msrb.mxu1 %v7541_v63 }
 0x710   :  { %4778 = vmatpush.msrb.mxu2 %v7542_v47  ;;  %4801 = vmatpush.msra.mxu3 %v7543_v8 }
 0x711   :  { %4733 = vmatpush.msra.mxu0 %v7544_v49  ;;  %4756 = vmatpush.msrb.mxu1 %v7545_v26 }
 0x712   :  { %4779 = vmatpush.msrb.mxu2 %v7546_v37  ;;  %4802 = vmatpush.msra.mxu3 %v7547_v17 }
 0x713   :  { %4734 = vmatpush.msra.mxu0 %v7548_v19  ;;  %4757 = vmatpush.msrb.mxu1 %v7549_v0 }
 0x714   :  { %4780 = vmatpush.msrb.mxu2 %v7550_v52  ;;  %4803 = vmatpush.msra.mxu3 %v7551_v1 }
 0x715   :  { %4735 = vmatpush.msra.mxu0 %v7552_v3  ;;  %4758 = vmatpush.msrb.mxu1 %v7553_v2 }
 0x716   :  { %4781 = vmatpush.msrb.mxu2 %v7554_v62  ;;  %4804 = vmatpush.msra.mxu3 %v7555_v9 }
 0x717   :  { %4736 = vmatpush.msra.mxu0 %v7556_v28  ;;  %4759 = vmatpush.msrb.mxu1 %v7557_v29 }
 0x718   :  { %4782 = vmatpush.msrb.mxu2 %v7558_v15  ;;  %4805 = vmatpush.msra.mxu3 %v7559_v39 }
 0x719   :  { %4737 = vmatpush.msra.mxu0 %v7560_v6  ;;  %4760 = vmatpush.msrb.mxu1 %v7561_v57 }
 0x71a   :  { %4783 = vmatpush.msrb.mxu2 %v7562_v51  ;;  %4806 = vmatpush.msra.mxu3 %v7563_v20 }
 0x71b   :  { %4738 = vmatpush.msra.mxu0 %v7564_v30  ;;  %4761 = vmatpush.msrb.mxu1 %v7565_v13 }
 0x71c   :  { %4784 = vmatpush.msrb.mxu2 %v7566_v38  ;;  %4807 = vmatpush.msra.mxu3 %v7567_v14 }
 0x71d   :  { %4739 = vmatpush.msra.mxu0 %v7568_v4  ;;  %4762 = vmatpush.msrb.mxu1 %v7569_v58  ;;  %v12529_v4 = vld [vmem:[#allocation47_spill] sm:$0xff] }
 0x71e   :  { %4785 = vmatpush.msrb.mxu2 %v7570_v11  ;;  %4808 = vmatpush.msra.mxu3 %v7571_v45  ;;  %v504_v58 = vadd.f32 %v12529_v4, %v12341_v60  ;;  %v12530_v45 = vld [vmem:[#allocation28_spill] sm:$0xff] }
 0x71f   :  { %4740 = vmatpush.msra.mxu0 %v7572_v54  ;;  %4763 = vmatpush.msrb.mxu1 %v7573_v53  ;;  %v569_v54 = vadd.f32 %v12530_v45, %v8986_v43 }
 0x720   :  { %4786 = vmatpush.msrb.mxu2 %v7574_v16  ;;  %4809 = vmatpush.msra.mxu3 %v7575_v27 }
 0x721   :  { %4741 = vmatpush.msra.mxu0 %v7576_v50  ;;  %4764 = vmatpush.msrb.mxu1 %v7577_v5  ;;  %v12531_v5 = vld [vmem:[#allocation73_spill] sm:$0xff] }
 0x722   :  { %4787 = vmatpush.msrb.mxu2 %v7578_v56  ;;  %4810 = vmatpush.msra.mxu3 %v7579_v21  ;;  %v11136_v56 = vadd.f32 %v12531_v5, %v9042_v10  ;;  %v12532_v21 = vld [vmem:[#allocation58_spill] sm:$0xff] }
 0x734   :  { %v4099_v59 = vpop.f32.mrf.mxu0  ;;  %v4122_v33 = vpop.f32.mrf.mxu1 }
 0x73b   :  { %v4145_v32 = vpop.f32.mrf.mxu2  ;;  %v4168_v61 = vpop.f32.mrf.mxu3 }
 0x741   :  { %v4102_v41 = vpop.f32.mrf.mxu0  ;;  %v4125_v44 = vpop.f32.mrf.mxu1 }
 0x748   :  { %v4148_v23 = vpop.f32.mrf.mxu2  ;;  %v4171_v7 = vpop.f32.mrf.mxu3 }
 0x749   :  { %v4191_v63 = vpop.f32.mrf.mxu0  ;;  %v4214_v47 = vpop.f32.mrf.mxu1 }
 0x74a   :  { %v4192_v8 = vadd.f32 %v4191_v63, %v4099_v59  ;;  %v4215_v49 = vadd.f32 %v4214_v47, %v4122_v33  ;;  %v11140_v59 = vadd.f32 %v12532_v21, %v12341_v60  ;;  %v12533_v33 = vld [vmem:[#allocation29_spill] sm:$0xff]  ;;  %v11152_v63 = vadd.f32 %v9293_v25, %v12347_v22 }
 0x74c   :  { %v4266_v26 = vadd.f32 %v4192_v8, %v9304_v31  ;;  %v4267_v37 = vadd.f32 %v4215_v49, %v9306_v34 }
 0x74e   :  { %v5985_v17 = vmul.f32 -1.442695, %v4266_v26  ;;  %v5987_v19 = vmul.f32 -1.442695, %v4267_v37  ;;  %v11159_v26 = vadd.f32 %v9295_v40, %v12347_v22 }
 0x750   :  { %6402 = vpow2.f32 %v5985_v17  ;;  %v4260_v0 = vpop.f32.mrf.mxu3  ;;  %v4237_v2 = vpop.f32.mrf.mxu2 }
 0x751   :  { %6404 = vpow2.f32 %v5987_v19  ;;  %v4261_v52 = vadd.f32 %v4260_v0, %v4168_v61  ;;  %v4238_v20 = vadd.f32 %v4237_v2, %v4145_v32  ;;  %v11144_v32 = vadd.f32 %v12533_v33, %v8986_v43 }
 0x752   :  { %v4194_v1 = vpop.f32.mrf.mxu0  ;;  %v4217_v3 = vpop.f32.mrf.mxu1 }
 0x753   :  { %v4269_v62 = vadd.f32 %v4261_v52, %v9310_v35  ;;  %v4195_v9 = vadd.f32 %v4194_v1, %v4102_v41  ;;  %v4218_v28 = vadd.f32 %v4217_v3, %v4125_v44  ;;  %v4268_v11 = vadd.f32 %v4238_v20, %v9325_v42  ;;  %v12534_v44 = vld [vmem:[#allocation91_spill] sm:$0xff] }
 0x755   :  { %v5989_v29 = vmul.f32 -1.442695, %v4269_v62  ;;  %v4270_v15 = vadd.f32 %v4195_v9, %v9304_v31  ;;  %v4271_v39 = vadd.f32 %v4218_v28, %v9306_v34 }
 0x756   :  { %v6403_v6 = vpop.eup %6402 }
 0x757   :  { %v6405_v57 = vpop.eup %6404  ;;  %v11123_v51 = vadd.f32 1.0, %v6403_v6  ;;  %6406 = vpow2.f32 %v5989_v29  ;;  %v5986_v30 = vmul.f32 -1.442695, %v4270_v15  ;;  %v5988_v38 = vmul.f32 -1.442695, %v4271_v39 }
 0x758   :  { %v11125_v13 = vadd.f32 1.0, %v6405_v57 }
 0x759   :  { %6408 = vrcp.f32 %v11123_v51  ;;  %v4263_v14 = vpop.f32.mrf.mxu3  ;;  %v4240_v61 = vpop.f32.mrf.mxu2  ;;  %v4291_v52 = vand.u32 2147483647, %v11123_v51  ;;  %v4293_v25 = vand.u32 2147483648, %v11123_v51  ;;  %vm4287_vm0 = vweird.f32 %v11123_v51 }
 0x75a   :  { %6410 = vrcp.f32 %v11125_v13  ;;  %v4264_v53 = vadd.f32 %v4263_v14, %v4171_v7  ;;  %v11148_v7 = vadd.f32 %v12534_v44, %v9042_v10  ;;  %v4241_v1 = vadd.f32 %v4240_v61, %v4148_v23 }
 0x75b   :  { %6412 = vpow2.f32 %v5986_v30  ;;  %v4331_v62 = vand.u32 2147483648, %v11125_v13  ;;  %v4329_v29 = vand.u32 2147483647, %v11125_v13  ;;  %vm4325_vm15 = vweird.f32 %v11125_v13 }
 0x75c   :  { %6414 = vpow2.f32 %v5988_v38  ;;  %v4425_v16 = vpop.f32.mrf.mxu0  ;;  %v4448_v27 = vpop.f32.mrf.mxu1  ;;  %v4273_v8 = vadd.f32 %v4264_v53, %v9310_v35  ;;  %v4272_v20 = vadd.f32 %v4241_v1, %v9325_v42  ;;  %vm4292_vm2 = vcmp.eq.f32.partialorder %v4291_v52, 8.507059e+37 }
 0x75d   :  { %v6407_v50 = vpop.eup %6406  ;;  %v4500_v41 = vadd.f32 %v4425_v16, %v504_v58  ;;  %6416 = vtanh.f32 %v4268_v11  ;;  %v4501_v17 = vadd.f32 %v4448_v27, %v569_v54  ;;  %v4332_v11 = vor.u32 1.1754944e-38, %v4331_v62 }
 0x75e   :  { %v11154_v47 = vadd.f32 1.0, %v6407_v50  ;;  %v5990_v40 = vmul.f32 -1.442695, %v4273_v8  ;;  %v4294_v45 = vor.u32 1.1754944e-38, %v4293_v25  ;;  %vm4330_vm5 = vcmp.eq.f32.partialorder %v4329_v29, 8.507059e+37 }
 0x75f   :  { %v6409_v49 = vpop.eup %6408  ;;  %v5991_v37 = vmul.f32 -1.442695, %v4500_v41  ;;  %v5993_v23 = vmul.f32 -1.442695, %v4501_v17 }
 0x760   :  { %v6411_v19 = vpop.eup %6410  ;;  %v4283_v0 = vmul.f32 %v6409_v49, %v11123_v51  ;;  %6418 = vrcp.f32 %v11154_v47  ;;  %vm4288_vm13 = vweird.f32 %v6409_v49  ;;  %v4371_v14 = vand.u32 2147483648, %v11154_v47 }
 0x761   :  { %v6413_v3 = vpop.eup %6412  ;;  %v4321_v2 = vmul.f32 %v6411_v19, %v11125_v13  ;;  %6420 = vpow2.f32 %v5991_v37  ;;  %vm4326_vm14 = vweird.f32 %v6411_v19  ;;  %vm4289_vm1 = vmor %vm4287_vm0, %vm4288_vm13  ;;  %v4369_v27 = vand.u32 2147483647, %v11154_v47 }
 0x762   :  { %v6415_v9 = vpop.eup %6414  ;;  %v4284_v28 = vsub.f32 1.0, %v4283_v0  ;;  %v11168_v15 = vadd.f32 1.0, %v6413_v3  ;;  %6422 = vpow2.f32 %v5990_v40  ;;  %vm4327_vm4 = vmor %vm4325_vm15, %vm4326_vm14  ;;  %v11183_v51 = vor.u32 1.1754944e-38, %v4371_v14 }
 0x763   :  { %v4322_v39 = vsub.f32 1.0, %v4321_v2  ;;  %v11170_v6 = vadd.f32 1.0, %v6415_v9  ;;  %v6417_v30 = vpop.eup %6416  ;;  %v4494_v8 = vpop.f32.mrf.mxu3  ;;  %vm4365_vm9 = vweird.f32 %v11154_v47 }
 0x764   :  { %v4285_v57 = vmul.f32 %v6409_v49, %v4284_v28  ;;  %6424 = vrcp.f32 %v11168_v15  ;;  %vm4302_vm6 = vweird.f32 %v11168_v15  ;;  %v4306_v41 = vand.u32 2147483647, %v11168_v15  ;;  %v4471_v0 = vpop.f32.mrf.mxu2  ;;  %v4428_v3 = vpop.f32.mrf.mxu0 }
 0x765   :  { %v4323_v38 = vmul.f32 %v6411_v19, %v4322_v39  ;;  %6426 = vrcp.f32 %v11170_v6  ;;  %vm4340_vm7 = vweird.f32 %v11170_v6  ;;  %v4308_v40 = vand.u32 2147483648, %v11168_v15 }
 0x766   :  { %v4286_v4 = vadd.f32 %v6409_v49, %v4285_v57  ;;  %v11178_v58 = vpop.eup %6418  ;;  %6428 = vpow2.f32 %v5993_v23  ;;  %v4344_v9 = vand.u32 2147483647, %v11170_v6  ;;  %vm11208_vm8 = vcmp.eq.f32.partialorder %v4306_v41, 8.507059e+37 }
 0x767   :  { %v4324_v54 = vadd.f32 %v6411_v19, %v4323_v38  ;;  %v6421_v53 = vpop.eup %6420  ;;  %6430 = vtanh.f32 %v4272_v20  ;;  %v4361_v37 = vmul.f32 %v11178_v58, %v11154_v47  ;;  %v4502_v23 = vadd.f32 %v4471_v0, %v11136_v56 }
 0x768   :  { %v4290_v16 = vsel %vm4289_vm1, %v6409_v49, %v4286_v4  ;;  %v6423_v50 = vpop.eup %6422  ;;  %v11181_v21 = vadd.f32 1.0, %v6421_v53  ;;  %v4503_v57 = vadd.f32 %v4494_v8, %v11152_v63  ;;  %v4504_v14 = vadd.f32 %v4428_v3, %v11140_v59  ;;  %v4451_v4 = vpop.f32.mrf.mxu1 }
 0x769   :  { %v4295_v13 = vsel %vm4292_vm2, %v4294_v45, %v4290_v16  ;;  %v4328_v5 = vsel %vm4327_vm4, %v6411_v19, %v4324_v54  ;;  %v11189_v44 = vadd.f32 1.0, %v6423_v50  ;;  %v4346_v19 = vand.u32 2147483648, %v11170_v6 }
 0x76a   :  { %v11185_v33 = vpop.eup %6424  ;;  %v4333_v61 = vsel %vm4330_vm5, %v4332_v11, %v4328_v5  ;;  %v4392_v25 = vmul.f32 %v6417_v30, %v4295_v13  ;;  %v4362_v20 = vsub.f32 1.0, %v4361_v37  ;;  %v4309_v63 = vor.u32 1.1754944e-38, %v4308_v40 }
 0x76b   :  { %v11191_v49 = vpop.eup %6426  ;;  %v4298_v17 = vmul.f32 %v11185_v33, %v11168_v15  ;;  %v4390_v52 = vmul.f32 %v4333_v61, %v10897_v12  ;;  %6432 = vrcp.f32 %v11189_v44  ;;  %v4347_v30 = vor.u32 1.1754944e-38, %v4346_v19 }
 0x76c   :  { %v4336_v1 = vmul.f32 %v11191_v49, %v11170_v6  ;;  %v6429_v2 = vpop.eup %6428  ;;  %6434 = vrcp.f32 %v11181_v21  ;;  %vm4303_vm10 = vweird.f32 %v11185_v33  ;;  %vm4341_vm11 = vweird.f32 %v11191_v49 }
 0x76d   :  { %v4299_v62 = vsub.f32 1.0, %v4298_v17  ;;  %v11206_v28 = vpop.eup %6430  ;;  %v11212_v39 = vadd.f32 1.0, %v6429_v2  ;;  %v11218_v11 = vadd.f32 %v4392_v25, %v4390_v52  ;;  %v5995_v54 = vmul.f32 -1.442695, %v4503_v57  ;;  %vm11235_vm12 = vmor %vm4302_vm6, %vm4303_vm10  ;;  %v4497_v17 = vpop.f32.mrf.mxu3 }
 0x76e   :  { %v4337_v29 = vsub.f32 1.0, %v4336_v1  ;;  %v5992_v16 = vmul.f32 -1.442695, %v4504_v14  ;;  %v4505_v50 = vadd.f32 %v4451_v4, %v11144_v32  ;;  %v4363_v5 = vmul.f32 %v11178_v58, %v4362_v20  ;;  %vm11249_vm14 = vmor %vm4340_vm7, %vm4341_vm11 }
 0x76f   :  { %v4300_v38 = vmul.f32 %v11185_v33, %v4299_v62  ;;  %6436 = vrcp.f32 %v11212_v39  ;;  %vm11239_vm13 = vcmp.eq.f32.partialorder %v4344_v9, 8.507059e+37  ;;  %v4525_v8 = vand.u32 2147483647, %v11181_v21 }
 0x770   :  { %v4338_v45 = vmul.f32 %v11191_v49, %v4337_v29  ;;  %6438 = vtanh.f32 %v4502_v23  ;;  %vm4521_vm15 = vweird.f32 %v11181_v21  ;;  %vm4559_vm0 = vweird.f32 %v11212_v39 }
 0x771   :  { %v4301_v56 = vadd.f32 %v11185_v33, %v4300_v38  ;;  %v11226_v53 = vpop.eup %6432  ;;  %6440 = vpow2.f32 %v5995_v54  ;;  %v4527_v6 = vand.u32 2147483648, %v11181_v21  ;;  %v4565_v25 = vand.u32 2147483648, %v11212_v39 }
 0x772   :  { %v4339_v59 = vadd.f32 %v11191_v49, %v4338_v45  ;;  %v11230_v13 = vpop.eup %6434  ;;  %6442 = vtanh.f32 %v11218_v11  ;;  %v4376_v52 = vmul.f32 %v11226_v53, %v11189_v44  ;;  %v5994_v1 = vmul.f32 -1.442695, %v4505_v50 }
 0x773   :  { %v4305_v15 = vsel %vm11235_vm12, %v11185_v33, %v4301_v56  ;;  %v4517_v37 = vmul.f32 %v11230_v13, %v11181_v21  ;;  %6444 = vpow2.f32 %v5992_v16  ;;  %vm11270_vm2 = vcmp.eq.f32.partialorder %v4525_v8, 8.507059e+37  ;;  %v4474_v16 = vpop.f32.mrf.mxu2 }
 0x774   :  { %v4343_v19 = vsel %vm11249_vm14, %v11191_v49, %v4339_v59  ;;  %v4310_v3 = vsel %vm11208_vm8, %v4309_v63, %v4305_v15  ;;  %v4507_v62 = vadd.f32 %v4497_v17, %v11159_v26  ;;  %v4364_v40 = vadd.f32 %v11178_v58, %v4363_v5  ;;  %v7585_v49 = vld [vmem:[#allocation4 + $0x1c8] sm:$0xff] }
 0x775   :  { %v6437_v0 = vpop.eup %6436  ;;  %v4518_v33 = vsub.f32 1.0, %v4517_v37  ;;  %v4348_v29 = vsel %vm11239_vm13, %v4347_v30, %v4343_v19  ;;  %6446 = vpow2.f32 %v5994_v1  ;;  %vm4366_vm1 = vweird.f32 %v11178_v58  ;;  %v7582_v1 = vld [vmem:[#allocation4 + $0x1f0] sm:$0xff] }
 0x776   :  { %v4555_v2 = vmul.f32 %v6437_v0, %v11212_v39  ;;  %v6439_v9 = vpop.eup %6438  ;;  %vm4522_vm4 = vweird.f32 %v11230_v13  ;;  %v4563_v20 = vand.u32 2147483647, %v11212_v39  ;;  %v5996_v38 = vmul.f32 -1.442695, %v4507_v62  ;;  %vm11284_vm5 = vmor %vm4365_vm9, %vm4366_vm1 }
 0x777   :  { %v4519_v23 = vmul.f32 %v11230_v13, %v4518_v33  ;;  %v6441_v12 = vpop.eup %6440  ;;  %v4393_v30 = vmul.f32 %v11206_v28, %v4310_v3  ;;  %v4368_v56 = vsel %vm11284_vm5, %v11178_v58, %v4364_v40  ;;  %v4391_v54 = vmul.f32 %v4348_v29, %v10989_v48  ;;  %vm11300_vm7 = vmor %vm4521_vm15, %vm4522_vm4  ;;  %v7583_v3 = vld [vmem:[#allocation4 + $0x1f8] sm:$0xff] }
 0x778   :  { %v4556_v57 = vsub.f32 1.0, %v4555_v2  ;;  %v6443_v14 = vpop.eup %6442  ;;  %v11290_v45 = vadd.f32 1.0, %v6441_v12  ;;  %vm4560_vm6 = vweird.f32 %v6437_v0  ;;  %6448 = vpow2.f32 %v5996_v38  ;;  %v7584_v2 = vld [vmem:[#allocation4 + $0x1c0] sm:$0xff]  ;;  %v7589_v38 = vld [vmem:[#allocation4 + $0x1a8] sm:$0xff] }
 0x779   :  { %v4520_v4 = vadd.f32 %v11230_v13, %v4519_v23  ;;  %v6445_v63 = vpop.eup %6444  ;;  %v4377_v50 = vsub.f32 1.0, %v4376_v52  ;;  %v4528_v5 = vor.u32 1.1754944e-38, %v4527_v6  ;;  %vm4370_vm8 = vcmp.eq.f32.partialorder %v4369_v27, 8.507059e+37  ;;  %vm4561_vm9 = vmor %vm4559_vm0, %vm4560_vm6  ;;  %v7580_v6 = vld [vmem:[#allocation4 + $0x1e0] sm:$0xff] }
 0x77a   :  { %v4557_v59 = vmul.f32 %v6437_v0, %v4556_v57  ;;  %6450 = vrcp.f32 %v11290_v45  ;;  %v11310_v61 = vadd.f32 1.0, %v6445_v63  ;;  %v4373_v41 = vsel %vm4370_vm8, %v11183_v51, %v4368_v56 }
 0x77b   :  { %v4524_v48 = vsel %vm11300_vm7, %v11230_v13, %v4520_v4  ;;  %v6447_v21 = vpop.eup %6446  ;;  %v4566_v8 = vor.u32 1.1754944e-38, %v4565_v25  ;;  %vm4564_vm10 = vcmp.eq.f32.partialorder %v4563_v20, 8.507059e+37  ;;  %v4506_v32 = vadd.f32 %v4474_v16, %v11148_v7  ;;  %v7588_v20 = vld [vmem:[#allocation4 + $0x1a0] sm:$0xff]  ;;  %v7591_v4 = vld [vmem:[#allocation4 + $0x1b8] sm:$0xff] }
 0x77c   :  { %v4558_v58 = vadd.f32 %v6437_v0, %v4557_v59  ;;  %v4398_v15 = vmul.f32 %v6443_v14, %v4373_v41  ;;  %v11316_v47 = vadd.f32 %v4393_v30, %v4391_v54  ;;  %6452 = vrcp.f32 %v11310_v61  ;;  %v7590_v30 = vld [vmem:[#allocation4 + $0x1b0] sm:$0xff] }
 0x77d   :  { %v11319_v13 = vadd.f32 1.0, %v6447_v21  ;;  %v4529_v37 = vsel %vm11270_vm2, %v4528_v5, %v4524_v48  ;;  %v4378_v7 = vmul.f32 %v11226_v53, %v4377_v50  ;;  %vm4599_vm11 = vweird.f32 %v11290_v45  ;;  %v7592_v5 = vld [vmem:[#allocation4 + $0x180] sm:$0xff]  ;;  %v7593_v48 = vld [vmem:[#allocation4 + $0x188] sm:$0xff]  ;;  %v7594_v21 = vld [vmem:[#allocation4 + $0x190] sm:$0xff] }
 0x77e   :  { %v4562_v27 = vsel %vm4561_vm9, %v6437_v0, %v4558_v58  ;;  %4650 = vmatmul.f32.vlgmr.msrb.gmra.mxu0 %v4398_v15  ;;  %4673 = vmatmul.f32.vlgmr.msra.gmra.mxu1 %v4398_v15  ;;  %v6449_v39 = vpop.eup %6448  ;;  %v7581_v0 = vld [vmem:[#allocation4 + $0x1e8] sm:$0xff]  ;;  %v4626_v33 = vmul.f32 %v6439_v9, %v4529_v37  ;;  %vm4536_vm12 = vweird.f32 %v11310_v61  ;;  %v7587_v9 = vld [vmem:[#allocation4 + $0x1d8] sm:$0xff]  ;;  %v4540_v12 = vand.u32 2147483647, %v11310_v61  ;;  %v7608_v58 = vld [vmem:[#allocation4 + $0x100] sm:$0xff] }
 0x77f   :  { %v4567_v51 = vsel %vm4564_vm10, %v4566_v8, %v4562_v27  ;;  %6454 = vrcp.f32 %v11319_v13  ;;  %4696 = vmatmul.f32.vlgmr.msra.gmra.mxu2 %v4398_v15  ;;  %4719 = vmatmul.f32.vlgmr.msrb.gmra.mxu3 %v4398_v15  ;;  %v11327_v19 = vadd.f32 1.0, %v6449_v39  ;;  %v4379_v29 = vadd.f32 %v11226_v53, %v4378_v7  ;;  %v7595_v8 = vld [vmem:[#allocation4 + $0x198] sm:$0xff]  ;;  %v7596_v39 = vld [vmem:[#allocation4 + $0x160] sm:$0xff]  ;;  %v7597_v7 = vld [vmem:[#allocation4 + $0x168] sm:$0xff] }
 0x780   :  { %v11325_v17 = vpop.eup %6450  ;;  %6456 = vtanh.f32 %v4506_v32  ;;  %4960 = vmatpush.msrb.mxu0 %v7580_v6  ;;  %4983 = vmatpush.msra.mxu1 %v7581_v0  ;;  %v4624_v52 = vmul.f32 %v4567_v51, %v11022_v36  ;;  %v7586_v36 = vld [vmem:[#allocation4 + $0x1d0] sm:$0xff]  ;;  %v4542_v57 = vand.u32 2147483648, %v11310_v61  ;;  %vm4381_vm13 = vweird.f32 %v11226_v53 }
 0x781   :  { %6458 = vtanh.f32 %v11316_v47  ;;  %v4595_v25 = vmul.f32 %v11325_v17, %v11290_v45  ;;  %5006 = vmatpush.msra.mxu2 %v7582_v1  ;;  %5029 = vmatpush.msrb.mxu3 %v7583_v3  ;;  %vm4380_vm14 = vweird.f32 %v11189_v44  ;;  %v4384_v56 = vand.u32 2147483647, %v11189_v44  ;;  %v7598_v0 = vld [vmem:[#allocation4 + $0x170] sm:$0xff] }
 0x782   :  { %6460 = vrcp.f32 %v11327_v19  ;;  %4961 = vmatpush.msrb.mxu0 %v7584_v2  ;;  %4984 = vmatpush.msra.mxu1 %v7585_v49  ;;  %v11334_v62 = vpop.eup %6452  ;;  %v11346_v14 = vadd.f32 %v4626_v33, %v4624_v52  ;;  %v4386_v63 = vand.u32 2147483648, %v11189_v44  ;;  %v4580_v28 = vand.u32 2147483648, %v11319_v13  ;;  %vm11359_vm15 = vmor %vm4380_vm14, %vm4381_vm13  ;;  %v7599_v52 = vld [vmem:[#allocation4 + $0x178] sm:$0xff]  ;;  %v7600_v2 = vld [vmem:[#allocation4 + $0x140] sm:$0xff] }
 0x783   :  { %v4596_v40 = vsub.f32 1.0, %v4595_v25  ;;  %5007 = vmatpush.msra.mxu2 %v7586_v36  ;;  %5030 = vmatpush.msrb.mxu3 %v7587_v9  ;;  %v4532_v23 = vmul.f32 %v11334_v62, %v11310_v61  ;;  %vm4600_vm0 = vweird.f32 %v11325_v17  ;;  %v4578_v41 = vand.u32 2147483647, %v11319_v13 }
 0x784   :  { %4962 = vmatpush.msrb.mxu0 %v7588_v20  ;;  %4985 = vmatpush.msra.mxu1 %v7589_v38  ;;  %v4383_v32 = vsel %vm11359_vm15, %v11226_v53, %v4379_v29  ;;  %v4387_v15 = vor.u32 1.1754944e-38, %v4386_v63  ;;  %vm4537_vm2 = vweird.f32 %v11334_v62  ;;  %vm4385_vm1 = vcmp.eq.f32.partialorder %v4384_v56, 8.507059e+37  ;;  %v7602_v20 = vld [vmem:[#allocation4 + $0x150] sm:$0xff]  ;;  %vm11393_vm6 = vmor %vm4599_vm11, %vm4600_vm0  ;;  %v7604_v63 = vld [vmem:[#allocation4 + $0x120] sm:$0xff] }
 0x785   :  { %v11344_v26 = vpop.eup %6454  ;;  %5008 = vmatpush.msra.mxu2 %v7590_v30  ;;  %5031 = vmatpush.msrb.mxu3 %v7591_v4  ;;  %v4597_v59 = vmul.f32 %v11325_v17, %v4596_v40  ;;  %v4533_v16 = vsub.f32 1.0, %v4532_v23  ;;  %6462 = vtanh.f32 %v11346_v14  ;;  %v4603_v49 = vand.u32 2147483647, %v11290_v45  ;;  %vm11385_vm5 = vmor %vm4536_vm12, %vm4537_vm2  ;;  %v7601_v23 = vld [vmem:[#allocation4 + $0x148] sm:$0xff]  ;;  %v7627_v38 = vld [vmem:[#allocation4 + $0x98] sm:$0xff] }
 0x786   :  { %v11351_v54 = vpop.eup %6456  ;;  %v4570_v50 = vmul.f32 %v11344_v26, %v11319_v13  ;;  %4963 = vmatpush.msrb.mxu0 %v7592_v5  ;;  %4986 = vmatpush.msra.mxu1 %v7593_v48  ;;  %vm4575_vm4 = vweird.f32 %v11344_v26  ;;  %v4388_v6 = vsel %vm4385_vm1, %v4387_v15, %v4383_v32  ;;  %v4605_v40 = vand.u32 2147483648, %v11290_v45  ;;  %v7605_v5 = vld [vmem:[#allocation4 + $0x128] sm:$0xff]  ;;  %v7606_v48 = vld [vmem:[#allocation4 + $0x130] sm:$0xff]  ;;  %v7611_v32 = vld [vmem:[#allocation4 + $0x118] sm:$0xff] }
 0x787   :  { %v6459_v44 = vpop.eup %6458  ;;  %5009 = vmatpush.msra.mxu2 %v7594_v21  ;;  %5032 = vmatpush.msrb.mxu3 %v7595_v8  ;;  %v4534_v51 = vmul.f32 %v11334_v62, %v4533_v16  ;;  %v4598_v33 = vadd.f32 %v11325_v17, %v4597_v59  ;;  %v4543_v9 = vor.u32 1.1754944e-38, %v4542_v57  ;;  %vm4574_vm7 = vweird.f32 %v11319_v13  ;;  %v7612_v15 = vld [vmem:[#allocation4 + $0xe0] sm:$0xff]  ;;  %v7630_v45 = vld [vmem:[#allocation4 + $0x70] sm:$0xff] }
 0x788   :  { %v11368_v27 = vpop.eup %6460  ;;  %v4571_v37 = vsub.f32 1.0, %v4570_v50  ;;  %4964 = vmatpush.msrb.mxu0 %v7596_v39  ;;  %4987 = vmatpush.msra.mxu1 %v7597_v7  ;;  %v4399_v3 = vmul.f32 %v6459_v44, %v4388_v6  ;;  %vm4541_vm8 = vcmp.eq.f32.partialorder %v4540_v12, 8.507059e+37  ;;  %vm11406_vm9 = vmor %vm4574_vm7, %vm4575_vm4  ;;  %v4581_v4 = vor.u32 1.1754944e-38, %v4580_v28  ;;  %v7603_v12 = vld [vmem:[#allocation4 + $0x158] sm:$0xff]  ;;  %v7609_v44 = vld [vmem:[#allocation4 + $0x108] sm:$0xff] }
 0x789   :  { %v4610_v53 = vmul.f32 %v11368_v27, %v11327_v19  ;;  %5010 = vmatpush.msra.mxu2 %v7598_v0  ;;  %5033 = vmatpush.msrb.mxu3 %v7599_v52  ;;  %v4535_v1 = vadd.f32 %v11334_v62, %v4534_v51  ;;  %v4602_v13 = vsel %vm11393_vm6, %v11325_v17, %v4598_v33  ;;  %vm4579_vm10 = vcmp.eq.f32.partialorder %v4578_v41, 8.507059e+37  ;;  %v7610_v41 = vld [vmem:[#allocation4 + $0x110] sm:$0xff]  ;;  %v7615_v6 = vld [vmem:[#allocation4 + $0xf8] sm:$0xff]  ;;  %v7616_v0 = vld [vmem:[#allocation4 + $0xc0] sm:$0xff] }
 0x78a   :  { %v4572_v25 = vmul.f32 %v11344_v26, %v4571_v37  ;;  %4965 = vmatpush.msrb.mxu0 %v7600_v2  ;;  %4988 = vmatpush.msra.mxu1 %v7601_v23  ;;  %v4606_v16 = vor.u32 1.1754944e-38, %v4605_v40  ;;  %vm4604_vm11 = vcmp.eq.f32.partialorder %v4603_v49, 8.507059e+37  ;;  %vm4615_vm12 = vweird.f32 %v11368_v27  ;;  %v7614_v51 = vld [vmem:[#allocation4 + $0xf0] sm:$0xff]  ;;  %v7617_v33 = vld [vmem:[#allocation4 + $0xc8] sm:$0xff] }
 0x78b   :  { %v4611_v29 = vsub.f32 1.0, %v4610_v53  ;;  %5011 = vmatpush.msra.mxu2 %v7602_v20  ;;  %v4539_v30 = vsel %vm11385_vm5, %v11334_v62, %v4535_v1  ;;  %4653 = vmatmul.f32.gmra.mxu0 %v4399_v3  ;;  %v6463_v59 = vpop.eup %6462  ;;  %v4620_v39 = vand.u32 2147483648, %v11327_v19  ;;  %vm4614_vm13 = vweird.f32 %v11327_v19  ;;  %v7619_v1 = vld [vmem:[#allocation4 + $0xd8] sm:$0xff]  ;;  %v7621_v2 = vld [vmem:[#allocation4 + $0xa8] sm:$0xff]  ;;  %v7622_v49 = vld [vmem:[#allocation4 + $0xb0] sm:$0xff] }
 0x78c   :  { %v4573_v57 = vadd.f32 %v11344_v26, %v4572_v25  ;;  %4676 = vmatmul.f32.gmra.mxu1 %v4399_v3  ;;  %v4544_v56 = vsel %vm4541_vm8, %v4543_v9, %v4539_v30  ;;  %4699 = vmatmul.f32.gmra.mxu2 %v4399_v3  ;;  %v4618_v7 = vand.u32 2147483647, %v11327_v19  ;;  %vm11433_vm14 = vmor %vm4614_vm13, %vm4615_vm12  ;;  %v7618_v25 = vld [vmem:[#allocation4 + $0xd0] sm:$0xff]  ;;  %v7623_v9 = vld [vmem:[#allocation4 + $0xb8] sm:$0xff] }
 0x78d   :  { %4722 = vmatmul.f32.gmra.mxu3 %v4399_v3  ;;  %v4627_v62 = vmul.f32 %v11351_v54, %v4544_v56  ;;  %4966 = vmatpush.msrb.mxu0 %v7604_v63  ;;  %v4612_v28 = vmul.f32 %v11368_v27, %v4611_v29  ;;  %v4607_v54 = vsel %vm4604_vm11, %v4606_v16, %v4602_v13  ;;  %v4621_v19 = vor.u32 1.1754944e-38, %v4620_v39  ;;  %v7620_v3 = vld [vmem:[#allocation4 + $0xa0] sm:$0xff]  ;;  %v7625_v23 = vld [vmem:[#allocation4 + $0x88] sm:$0xff]  ;;  %v7626_v20 = vld [vmem:[#allocation4 + $0x90] sm:$0xff] }
 0x78e   :  { %v4577_v61 = vsel %vm11406_vm9, %v11344_v26, %v4573_v57  ;;  %5034 = vmatpush.msrb.mxu3 %v7603_v12  ;;  %4989 = vmatpush.msra.mxu1 %v7605_v5  ;;  %v7607_v26 = vld [vmem:[#allocation4 + $0x138] sm:$0xff]  ;;  %v11419_v21 = vmul.f32 %v6463_v59, %v4607_v54  ;;  %vm4619_vm15 = vcmp.eq.f32.partialorder %v4618_v7, 8.507059e+37  ;;  %v7624_v29 = vld [vmem:[#allocation4 + $0x80] sm:$0xff]  ;;  %v7629_v57 = vld [vmem:[#allocation4 + $0x68] sm:$0xff] }
 0x78f   :  { %v4582_v50 = vsel %vm4579_vm10, %v4581_v4, %v4577_v61  ;;  %5012 = vmatpush.msra.mxu2 %v7606_v48  ;;  %4967 = vmatpush.msrb.mxu0 %v7608_v58  ;;  %v4613_v37 = vadd.f32 %v11368_v27, %v4612_v28  ;;  %v7628_v30 = vld [vmem:[#allocation4 + $0x60] sm:$0xff]  ;;  %v7631_v4 = vld [vmem:[#allocation4 + $0x78] sm:$0xff]  ;;  %v7633_v13 = vld [vmem:[#allocation4 + $0x48] sm:$0xff] }
 0x790   :  { %v4625_v17 = vmul.f32 %v4582_v50, %v11085_v46  ;;  %5035 = vmatpush.msrb.mxu3 %v7607_v26  ;;  %4990 = vmatpush.msra.mxu1 %v7609_v44  ;;  %v7613_v46 = vld [vmem:[#allocation4 + $0xe8] sm:$0xff]  ;;  %v7632_v56 = vld [vmem:[#allocation4 + $0x40] sm:$0xff]  ;;  %v7634_v61 = vld [vmem:[#allocation4 + $0x50] sm:$0xff] }
 0x791   :  { %5013 = vmatpush.msra.mxu2 %v7610_v41  ;;  %4968 = vmatpush.msrb.mxu0 %v7612_v15  ;;  %v4617_v52 = vsel %vm11433_vm14, %v11368_v27, %v4613_v37  ;;  %v7636_v12 = vld [vmem:[#allocation4 + $0x20] sm:$0xff]  ;;  %v7637_v63 = vld [vmem:[#allocation4 + $0x28] sm:$0xff]  ;;  %v7638_v59 = vld [vmem:[#allocation4 + $0x30] sm:$0xff] }
 0x792   :  { %v11421_v8 = vadd.f32 %v4627_v62, %v4625_v17  ;;  %5036 = vmatpush.msrb.mxu3 %v7611_v32  ;;  %4991 = vmatpush.msra.mxu1 %v7613_v46  ;;  %v4622_v36 = vsel %vm4619_vm15, %v4621_v19, %v4617_v52  ;;  %v7635_v62 = vld [vmem:[#allocation4 + $0x58] sm:$0xff]  ;;  %v7640_v50 = vld [vmem:[#allocation4] sm:$0xff]  ;;  %v7641_v28 = vld [vmem:[#allocation4 + $0x8] sm:$0xff] }
 0x793   :  { %5014 = vmatpush.msra.mxu2 %v7614_v51  ;;  %4742 = vmatmul.f32.vlgmr.msra.gmra.mxu0 %v11419_v21  ;;  %v7639_v16 = vld [vmem:[#allocation4 + $0x38] sm:$0xff]  ;;  %v7642_v5 = vld [vmem:[#allocation4 + $0x10] sm:$0xff]  ;;  %v7646_v58 = vld [vmem:[#allocation8 + $0x1e0] sm:$0xff] }
 0x794   :  { %6464 = vtanh.f32 %v11421_v8  ;;  %4765 = vmatmul.f32.vlgmr.msrb.gmra.mxu1 %v11419_v21  ;;  %4788 = vmatmul.f32.vlgmr.msrb.gmra.mxu2 %v11419_v21  ;;  %v7643_v48 = vld [vmem:[#allocation4 + $0x18] sm:$0xff]  ;;  %v7644_v17 = vld [vmem:[#allocation8 + $0x1f0] sm:$0xff]  ;;  %v7648_v44 = vld [vmem:[#allocation8 + $0x1e8] sm:$0xff] }
 0x795   :  { %4811 = vmatmul.f32.vlgmr.msra.gmra.mxu3 %v11419_v21  ;;  %4969 = vmatpush.msrb.mxu0 %v7616_v0  ;;  %v7645_v26 = vld [vmem:[#allocation8 + $0x1f8] sm:$0xff]  ;;  %v7647_v54 = vld [vmem:[#allocation8 + $0x1d0] sm:$0xff]  ;;  %v7650_v32 = vld [vmem:[#allocation8 + $0x1c0] sm:$0xff] }
 0x796   :  { %5037 = vmatpush.msrb.mxu3 %v7615_v6  ;;  %4992 = vmatpush.msra.mxu1 %v7617_v33  ;;  %v7649_v41 = vld [vmem:[#allocation8 + $0x1d8] sm:$0xff]  ;;  %v7651_v15 = vld [vmem:[#allocation8 + $0x1b0] sm:$0xff]  ;;  %v7652_v37 = vld [vmem:[#allocation8 + $0x1c8] sm:$0xff] }
 0x797   :  { %5015 = vmatpush.msra.mxu2 %v7618_v25  ;;  %4970 = vmatpush.msrb.mxu0 %v7620_v3  ;;  %v7653_v46 = vld [vmem:[#allocation8 + $0x1b8] sm:$0xff]  ;;  %v7655_v51 = vld [vmem:[#allocation8 + $0x190] sm:$0xff]  ;;  %v7658_v53 = vld [vmem:[#allocation8 + $0x1a8] sm:$0xff] }
 0x798   :  { %5038 = vmatpush.msrb.mxu3 %v7619_v1  ;;  %4993 = vmatpush.msra.mxu1 %v7621_v2  ;;  %v7656_v39 = vld [vmem:[#allocation8 + $0x170] sm:$0xff]  ;;  %v7657_v7 = vld [vmem:[#allocation8 + $0x198] sm:$0xff]  ;;  %v7660_v0 = vld [vmem:[#allocation8 + $0x180] sm:$0xff] }
 0x799   :  { %5016 = vmatpush.msra.mxu2 %v7622_v49  ;;  %4971 = vmatpush.msrb.mxu0 %v7624_v29  ;;  %v7659_v6 = vld [vmem:[#allocation8 + $0x150] sm:$0xff]  ;;  %v7661_v52 = vld [vmem:[#allocation8 + $0x178] sm:$0xff]  ;;  %v7662_v33 = vld [vmem:[#allocation8 + $0x188] sm:$0xff] }
 0x79a   :  { %v6465_v40 = vpop.eup %6464  ;;  %5039 = vmatpush.msrb.mxu3 %v7623_v9  ;;  %4994 = vmatpush.msra.mxu1 %v7625_v23  ;;  %v7663_v25 = vld [vmem:[#allocation8 + $0x130] sm:$0xff]  ;;  %v7664_v19 = vld [vmem:[#allocation8 + $0x160] sm:$0xff]  ;;  %v7665_v1 = vld [vmem:[#allocation8 + $0x158] sm:$0xff] }
 0x79b   :  { %v11440_v27 = vmul.f32 %v6465_v40, %v4622_v36  ;;  %5017 = vmatpush.msra.mxu2 %v7626_v20  ;;  %4972 = vmatpush.msrb.mxu0 %v7628_v30  ;;  %v7666_v3 = vld [vmem:[#allocation8 + $0x168] sm:$0xff]  ;;  %v7667_v2 = vld [vmem:[#allocation8 + $0x110] sm:$0xff]  ;;  %v7668_v49 = vld [vmem:[#allocation8 + $0x140] sm:$0xff] }
 0x79c   :  { %5040 = vmatpush.msrb.mxu3 %v7627_v38  ;;  %4995 = vmatpush.msra.mxu1 %v7629_v57  ;;  %v7669_v40 = vld [vmem:[#allocation8 + $0x138] sm:$0xff]  ;;  %v7670_v36 = vld [vmem:[#allocation8 + $0x148] sm:$0xff]  ;;  %v7671_v9 = vld [vmem:[#allocation8 + $0xf0] sm:$0xff] }
 0x79d   :  { %4745 = vmatmul.f32.gmra.mxu0 %v11440_v27  ;;  %4768 = vmatmul.f32.gmra.mxu1 %v11440_v27  ;;  %v7672_v29 = vld [vmem:[#allocation8 + $0x120] sm:$0xff]  ;;  %v7674_v23 = vld [vmem:[#allocation8 + $0x128] sm:$0xff]  ;;  %v7675_v20 = vld [vmem:[#allocation8 + $0xd0] sm:$0xff] }
 0x79e   :  { %4791 = vmatmul.f32.gmra.mxu2 %v11440_v27  ;;  %4814 = vmatmul.f32.gmra.mxu3 %v11440_v27  ;;  %v7676_v38 = vld [vmem:[#allocation8 + $0x100] sm:$0xff]  ;;  %v7677_v30 = vld [vmem:[#allocation8 + $0xf8] sm:$0xff]  ;;  %v7678_v57 = vld [vmem:[#allocation8 + $0x108] sm:$0xff] }
 0x79f   :  { %5018 = vmatpush.msra.mxu2 %v7630_v45  ;;  %5041 = vmatpush.msrb.mxu3 %v7631_v4  ;;  %v7679_v45 = vld [vmem:[#allocation8 + $0xb0] sm:$0xff]  ;;  %v7680_v4 = vld [vmem:[#allocation8 + $0xe0] sm:$0xff] }
 0x7a0   :  { %4973 = vmatpush.msrb.mxu0 %v7632_v56  ;;  %4996 = vmatpush.msra.mxu1 %v7633_v13  ;;  %v7681_v56 = vld [vmem:[#allocation8 + $0xd8] sm:$0xff]  ;;  %v7682_v13 = vld [vmem:[#allocation8 + $0xe8] sm:$0xff] }
 0x7a1   :  { %5019 = vmatpush.msra.mxu2 %v7634_v61  ;;  %5042 = vmatpush.msrb.mxu3 %v7635_v62  ;;  %v7683_v61 = vld [vmem:[#allocation8 + $0x90] sm:$0xff]  ;;  %v7684_v62 = vld [vmem:[#allocation8 + $0xc0] sm:$0xff] }
 0x7a2   :  { %4974 = vmatpush.msrb.mxu0 %v7636_v12  ;;  %4997 = vmatpush.msra.mxu1 %v7637_v63  ;;  %v7685_v12 = vld [vmem:[#allocation8 + $0xb8] sm:$0xff]  ;;  %v7686_v63 = vld [vmem:[#allocation8 + $0xc8] sm:$0xff] }
 0x7a3   :  { %5020 = vmatpush.msra.mxu2 %v7638_v59  ;;  %5043 = vmatpush.msrb.mxu3 %v7639_v16  ;;  %v7687_v59 = vld [vmem:[#allocation8 + $0x70] sm:$0xff]  ;;  %v7688_v16 = vld [vmem:[#allocation8 + $0xa0] sm:$0xff] }
 0x7a4   :  { %4975 = vmatpush.msrb.mxu0 %v7640_v50  ;;  %4998 = vmatpush.msra.mxu1 %v7641_v28  ;;  %v7689_v50 = vld [vmem:[#allocation8 + $0x98] sm:$0xff]  ;;  %v7690_v28 = vld [vmem:[#allocation8 + $0xa8] sm:$0xff] }
 0x7a5   :  { %5021 = vmatpush.msra.mxu2 %v7642_v5  ;;  %5044 = vmatpush.msrb.mxu3 %v7643_v48  ;;  %v7691_v5 = vld [vmem:[#allocation8 + $0x50] sm:$0xff]  ;;  %v7692_v48 = vld [vmem:[#allocation8 + $0x80] sm:$0xff] }
 0x7a6   :  { %4976 = vmatmul.f32.vlgmr.msrb.gmra.mxu0 %v11419_v21  ;;  %4999 = vmatmul.f32.vlgmr.msra.gmra.mxu1 %v11419_v21 }
 0x7a7   :  { %5022 = vmatmul.f32.vlgmr.msra.gmra.mxu2 %v11419_v21  ;;  %5045 = vmatmul.f32.vlgmr.msrb.gmra.mxu3 %v11419_v21  ;;  %v7654_v21 = vld [vmem:[#allocation8 + $0x1a0] sm:$0xff] }
 0x7a8   :  { %5232 = vmatpush.msrb.mxu2 %v7644_v17  ;;  %5255 = vmatpush.msra.mxu3 %v7645_v26  ;;  %v7693_v17 = vld [vmem:[#allocation8 + $0x78] sm:$0xff]  ;;  %v7694_v26 = vld [vmem:[#allocation8 + $0x88] sm:$0xff] }
 0x7a9   :  { %5186 = vmatpush.msra.mxu0 %v7646_v58  ;;  %5209 = vmatpush.msrb.mxu1 %v7648_v44  ;;  %v7695_v58 = vld [vmem:[#allocation8 + $0x30] sm:$0xff]  ;;  %v7697_v44 = vld [vmem:[#allocation8 + $0x58] sm:$0xff] }
 0x7aa   :  { %5233 = vmatpush.msrb.mxu2 %v7647_v54  ;;  %5256 = vmatpush.msra.mxu3 %v7649_v41  ;;  %v7696_v54 = vld [vmem:[#allocation8 + $0x60] sm:$0xff]  ;;  %v7698_v41 = vld [vmem:[#allocation8 + $0x68] sm:$0xff] }
 0x7ab   :  { %5187 = vmatpush.msra.mxu0 %v7650_v32  ;;  %5210 = vmatpush.msrb.mxu1 %v7652_v37  ;;  %v7699_v32 = vld [vmem:[#allocation8 + $0x10] sm:$0xff]  ;;  %v7701_v37 = vld [vmem:[#allocation8 + $0x38] sm:$0xff] }
 0x7ac   :  { %5234 = vmatpush.msrb.mxu2 %v7651_v15  ;;  %5257 = vmatpush.msra.mxu3 %v7653_v46  ;;  %v7700_v15 = vld [vmem:[#allocation8 + $0x40] sm:$0xff]  ;;  %v7702_v46 = vld [vmem:[#allocation6 + $0x1f0] sm:$0xff] }
 0x7ad   :  { %5188 = vmatpush.msra.mxu0 %v7654_v21  ;;  %5211 = vmatpush.msrb.mxu1 %v7658_v53  ;;  %v7703_v21 = vld [vmem:[#allocation8 + $0x48] sm:$0xff]  ;;  %v7707_v53 = vld [vmem:[#allocation6 + $0x1f8] sm:$0xff] }
 0x7ae   :  { %4979 = vmatmul.f32.gmra.mxu0 %v11440_v27  ;;  %5235 = vmatpush.msrb.mxu2 %v7655_v51  ;;  %v7704_v51 = vld [vmem:[#allocation8 + $0x20] sm:$0xff] }
 0x7af   :  { %5002 = vmatmul.f32.gmra.mxu1 %v11440_v27  ;;  %5025 = vmatmul.f32.gmra.mxu2 %v11440_v27 }
 0x7b0   :  { %5048 = vmatmul.f32.gmra.mxu3 %v11440_v27  ;;  %5236 = vmatpush.msrb.mxu2 %v7656_v39  ;;  %v7673_v27 = vld [vmem:[#allocation8 + $0x118] sm:$0xff] }
 0x7b1   :  { %5258 = vmatpush.msra.mxu3 %v7657_v7  ;;  %5189 = vmatpush.msra.mxu0 %v7660_v0  ;;  %v7705_v39 = vld [vmem:[#allocation8 + $0x18] sm:$0xff]  ;;  %v7706_v7 = vld [vmem:[#allocation6 + $0x1d0] sm:$0xff] }
 0x7b2   :  { %5237 = vmatpush.msrb.mxu2 %v7659_v6  ;;  %5212 = vmatpush.msrb.mxu1 %v7662_v33  ;;  %v7708_v6 = vld [vmem:[#allocation8 + $0x28] sm:$0xff]  ;;  %v7709_v0 = vld [vmem:[#allocation6 + $0x1b0] sm:$0xff]  ;;  %v7711_v33 = vld [vmem:[#allocation6 + $0x1d8] sm:$0xff] }
 0x7b3   :  { %5259 = vmatpush.msra.mxu3 %v7661_v52  ;;  %5190 = vmatpush.msra.mxu0 %v7664_v19  ;;  %v7710_v52 = vld [vmem:[#allocation8] sm:$0xff]  ;;  %v7713_v19 = vld [vmem:[#allocation6 + $0x190] sm:$0xff] }
 0x7b4   :  { %5238 = vmatpush.msrb.mxu2 %v7663_v25  ;;  %5213 = vmatpush.msrb.mxu1 %v7666_v3  ;;  %v7712_v25 = vld [vmem:[#allocation8 + $0x8] sm:$0xff]  ;;  %v7715_v3 = vld [vmem:[#allocation6 + $0x1b8] sm:$0xff] }
 0x7b5   :  { %5260 = vmatpush.msra.mxu3 %v7665_v1  ;;  %5191 = vmatpush.msra.mxu0 %v7668_v49  ;;  %v7714_v1 = vld [vmem:[#allocation6 + $0x1e0] sm:$0xff]  ;;  %v7717_v49 = vld [vmem:[#allocation6 + $0x170] sm:$0xff] }
 0x7b6   :  { %5239 = vmatpush.msrb.mxu2 %v7667_v2  ;;  %5214 = vmatpush.msrb.mxu1 %v7670_v36  ;;  %v7716_v2 = vld [vmem:[#allocation6 + $0x1e8] sm:$0xff]  ;;  %v7719_v36 = vld [vmem:[#allocation6 + $0x198] sm:$0xff] }
 0x7b7   :  { %5261 = vmatpush.msra.mxu3 %v7669_v40  ;;  %5192 = vmatpush.msra.mxu0 %v7672_v29  ;;  %v7718_v40 = vld [vmem:[#allocation6 + $0x1c0] sm:$0xff]  ;;  %v7721_v29 = vld [vmem:[#allocation6 + $0x150] sm:$0xff] }
 0x7b8   :  { %5240 = vmatpush.msrb.mxu2 %v7671_v9  ;;  %5215 = vmatpush.msrb.mxu1 %v7674_v23  ;;  %v7720_v9 = vld [vmem:[#allocation6 + $0x1c8] sm:$0xff]  ;;  %v7723_v23 = vld [vmem:[#allocation6 + $0x178] sm:$0xff] }
 0x7b9   :  { %5262 = vmatpush.msra.mxu3 %v7673_v27  ;;  %5193 = vmatpush.msra.mxu0 %v7676_v38  ;;  %v7722_v27 = vld [vmem:[#allocation6 + $0x1a0] sm:$0xff]  ;;  %v7725_v38 = vld [vmem:[#allocation6 + $0x130] sm:$0xff] }
 0x7ba   :  { %5241 = vmatpush.msrb.mxu2 %v7675_v20  ;;  %5216 = vmatpush.msrb.mxu1 %v7678_v57  ;;  %v7724_v20 = vld [vmem:[#allocation6 + $0x1a8] sm:$0xff]  ;;  %v7727_v57 = vld [vmem:[#allocation6 + $0x158] sm:$0xff] }
 0x7bb   :  { %5263 = vmatpush.msra.mxu3 %v7677_v30  ;;  %5194 = vmatpush.msra.mxu0 %v7680_v4  ;;  %v7726_v30 = vld [vmem:[#allocation6 + $0x180] sm:$0xff]  ;;  %v7729_v4 = vld [vmem:[#allocation6 + $0x110] sm:$0xff] }
 0x7bc   :  { %5242 = vmatpush.msrb.mxu2 %v7679_v45  ;;  %5217 = vmatpush.msrb.mxu1 %v7682_v13  ;;  %v7728_v45 = vld [vmem:[#allocation6 + $0x188] sm:$0xff]  ;;  %v7731_v13 = vld [vmem:[#allocation6 + $0x138] sm:$0xff] }
 0x7bd   :  { %5264 = vmatpush.msra.mxu3 %v7681_v56  ;;  %5195 = vmatpush.msra.mxu0 %v7684_v62  ;;  %v7730_v56 = vld [vmem:[#allocation6 + $0x160] sm:$0xff]  ;;  %v7733_v62 = vld [vmem:[#allocation6 + $0xf0] sm:$0xff] }
 0x7be   :  { %5243 = vmatpush.msrb.mxu2 %v7683_v61  ;;  %5218 = vmatpush.msrb.mxu1 %v7686_v63  ;;  %v7732_v61 = vld [vmem:[#allocation6 + $0x168] sm:$0xff]  ;;  %v7735_v63 = vld [vmem:[#allocation6 + $0x118] sm:$0xff] }
 0x7bf   :  { %5265 = vmatpush.msra.mxu3 %v7685_v12  ;;  %5196 = vmatpush.msra.mxu0 %v7688_v16  ;;  %v7734_v12 = vld [vmem:[#allocation6 + $0x140] sm:$0xff]  ;;  %v7737_v16 = vld [vmem:[#allocation6 + $0xd0] sm:$0xff] }
 0x7c0   :  { %5244 = vmatpush.msrb.mxu2 %v7687_v59  ;;  %5219 = vmatpush.msrb.mxu1 %v7690_v28  ;;  %v7736_v59 = vld [vmem:[#allocation6 + $0x148] sm:$0xff]  ;;  %v7739_v28 = vld [vmem:[#allocation6 + $0xf8] sm:$0xff] }
 0x7c1   :  { %5266 = vmatpush.msra.mxu3 %v7689_v50  ;;  %5197 = vmatpush.msra.mxu0 %v7692_v48  ;;  %v7738_v50 = vld [vmem:[#allocation6 + $0x120] sm:$0xff]  ;;  %v7741_v48 = vld [vmem:[#allocation6 + $0xb0] sm:$0xff] }
 0x7c2   :  { %5245 = vmatpush.msrb.mxu2 %v7691_v5  ;;  %5220 = vmatpush.msrb.mxu1 %v7694_v26  ;;  %v7740_v5 = vld [vmem:[#allocation6 + $0x128] sm:$0xff]  ;;  %v7743_v26 = vld [vmem:[#allocation6 + $0xd8] sm:$0xff] }
 0x7c3   :  { %5267 = vmatpush.msra.mxu3 %v7693_v17  ;;  %5198 = vmatpush.msra.mxu0 %v7696_v54  ;;  %v7742_v17 = vld [vmem:[#allocation6 + $0x100] sm:$0xff]  ;;  %v7745_v54 = vld [vmem:[#allocation6 + $0x90] sm:$0xff] }
 0x7c4   :  { %5246 = vmatpush.msrb.mxu2 %v7695_v58  ;;  %5221 = vmatpush.msrb.mxu1 %v7698_v41  ;;  %v7744_v58 = vld [vmem:[#allocation6 + $0x108] sm:$0xff]  ;;  %v7747_v41 = vld [vmem:[#allocation6 + $0xb8] sm:$0xff] }
 0x7c5   :  { %5268 = vmatpush.msra.mxu3 %v7697_v44  ;;  %5199 = vmatpush.msra.mxu0 %v7700_v15  ;;  %v7746_v44 = vld [vmem:[#allocation6 + $0xe0] sm:$0xff]  ;;  %v7749_v15 = vld [vmem:[#allocation6 + $0x70] sm:$0xff] }
 0x7c6   :  { %5247 = vmatpush.msrb.mxu2 %v7699_v32  ;;  %5222 = vmatpush.msrb.mxu1 %v7703_v21  ;;  %v7748_v32 = vld [vmem:[#allocation6 + $0xe8] sm:$0xff] }
 0x7c7   :  { %5269 = vmatpush.msra.mxu3 %v7701_v37  ;;  %5200 = vmatpush.msra.mxu0 %v7704_v51  ;;  %v7750_v37 = vld [vmem:[#allocation6 + $0xc0] sm:$0xff]  ;;  %v7752_v21 = vld [vmem:[#allocation6 + $0xc8] sm:$0xff]  ;;  %v7753_v51 = vld [vmem:[#allocation6 + $0x50] sm:$0xff] }
 0x7c8   :  { %5324 = vmatpush.msra.mxu2 %v7702_v46  ;;  %5223 = vmatpush.msrb.mxu1 %v7708_v6  ;;  %v7751_v46 = vld [vmem:[#allocation6 + $0x98] sm:$0xff]  ;;  %v7757_v6 = vld [vmem:[#allocation6 + $0x30] sm:$0xff] }
 0x7c9   :  { %5270 = vmatpush.msra.mxu3 %v7705_v39  ;;  %5201 = vmatpush.msra.mxu0 %v7710_v52  ;;  %v7754_v39 = vld [vmem:[#allocation6 + $0xa0] sm:$0xff]  ;;  %v7759_v52 = vld [vmem:[#allocation6 + $0x58] sm:$0xff] }
 0x7ca   :  { %5325 = vmatpush.msra.mxu2 %v7706_v7  ;;  %5224 = vmatpush.msrb.mxu1 %v7712_v25  ;;  %v7755_v7 = vld [vmem:[#allocation6 + $0x78] sm:$0xff]  ;;  %v7761_v25 = vld [vmem:[#allocation6 + $0x10] sm:$0xff] }
 0x7cb   :  { %5347 = vmatpush.msrb.mxu3 %v7707_v53  ;;  %5278 = vmatpush.msrb.mxu0 %v7714_v1  ;;  %v7756_v53 = vld [vmem:[#allocation6 + $0xa8] sm:$0xff]  ;;  %v7763_v1 = vld [vmem:[#allocation6 + $0x38] sm:$0xff] }
 0x7cc   :  { %5326 = vmatpush.msra.mxu2 %v7709_v0  ;;  %5301 = vmatpush.msra.mxu1 %v7716_v2  ;;  %v7758_v0 = vld [vmem:[#allocation6 + $0x80] sm:$0xff] }
 0x7cd   :  { %5348 = vmatpush.msrb.mxu3 %v7711_v33  ;;  %5279 = vmatpush.msrb.mxu0 %v7718_v40  ;;  %v7760_v33 = vld [vmem:[#allocation6 + $0x88] sm:$0xff]  ;;  %v7765_v2 = vld [vmem:[#allocation6 + $0x40] sm:$0xff] }
 0x7ce   :  { %5327 = vmatpush.msra.mxu2 %v7713_v19  ;;  %5302 = vmatpush.msra.mxu1 %v7720_v9  ;;  %v7762_v19 = vld [vmem:[#allocation6 + $0x60] sm:$0xff]  ;;  %v7767_v40 = vld [vmem:[#allocation6 + $0x48] sm:$0xff] }
 0x7cf   :  { %5349 = vmatpush.msrb.mxu3 %v7715_v3  ;;  %5280 = vmatpush.msrb.mxu0 %v7722_v27  ;;  %v7764_v3 = vld [vmem:[#allocation6 + $0x68] sm:$0xff] }
 0x7d0   :  { %5328 = vmatpush.msra.mxu2 %v7717_v49  ;;  %5303 = vmatpush.msra.mxu1 %v7724_v20  ;;  %v7766_v49 = vld [vmem:[#allocation6 + $0x18] sm:$0xff]  ;;  %v7769_v9 = vld [vmem:[#allocation6 + $0x28] sm:$0xff] }
 0x7d1   :  { %5350 = vmatpush.msrb.mxu3 %v7719_v36  ;;  %5281 = vmatpush.msrb.mxu0 %v7726_v30  ;;  %v7768_v36 = vld [vmem:[#allocation6 + $0x20] sm:$0xff]  ;;  %v7771_v27 = vld [vmem:[#allocation6 + $0x8] sm:$0xff] }
 0x7d2   :  { %5329 = vmatpush.msra.mxu2 %v7721_v29  ;;  %5304 = vmatpush.msra.mxu1 %v7728_v45  ;;  %v7770_v29 = vld [vmem:[#allocation6] sm:$0xff] }
 0x7d3   :  { %5351 = vmatpush.msrb.mxu3 %v7723_v23  ;;  %5282 = vmatpush.msrb.mxu0 %v7730_v56 }
 0x7d4   :  { %5330 = vmatpush.msra.mxu2 %v7725_v38  ;;  %5305 = vmatpush.msra.mxu1 %v7732_v61 }
 0x7d5   :  { %5352 = vmatpush.msrb.mxu3 %v7727_v57  ;;  %5283 = vmatpush.msrb.mxu0 %v7734_v12 }
 0x7d6   :  { %5331 = vmatpush.msra.mxu2 %v7729_v4  ;;  %5306 = vmatpush.msra.mxu1 %v7736_v59 }
 0x7d7   :  { %5353 = vmatpush.msrb.mxu3 %v7731_v13  ;;  %5284 = vmatpush.msrb.mxu0 %v7738_v50 }
 0x7d8   :  { %5332 = vmatpush.msra.mxu2 %v7733_v62  ;;  %5307 = vmatpush.msra.mxu1 %v7740_v5 }
 0x7d9   :  { %5354 = vmatpush.msrb.mxu3 %v7735_v63  ;;  %5285 = vmatpush.msrb.mxu0 %v7742_v17 }
 0x7da   :  { %5333 = vmatpush.msra.mxu2 %v7737_v16  ;;  %5308 = vmatpush.msra.mxu1 %v7744_v58 }
 0x7db   :  { %5355 = vmatpush.msrb.mxu3 %v7739_v28  ;;  %5286 = vmatpush.msrb.mxu0 %v7746_v44 }
 0x7dc   :  { %5334 = vmatpush.msra.mxu2 %v7741_v48  ;;  %5309 = vmatpush.msra.mxu1 %v7748_v32 }
 0x7dd   :  { %5356 = vmatpush.msrb.mxu3 %v7743_v26  ;;  %5287 = vmatpush.msrb.mxu0 %v7750_v37 }
 0x7de   :  { %5335 = vmatpush.msra.mxu2 %v7745_v54  ;;  %5310 = vmatpush.msra.mxu1 %v7752_v21 }
 0x7df   :  { %5357 = vmatpush.msrb.mxu3 %v7747_v41  ;;  %5288 = vmatpush.msrb.mxu0 %v7754_v39 }
 0x7e0   :  { %5336 = vmatpush.msra.mxu2 %v7749_v15  ;;  %5311 = vmatpush.msra.mxu1 %v7756_v53 }
 0x7e1   :  { %5358 = vmatpush.msrb.mxu3 %v7751_v46  ;;  %5289 = vmatpush.msrb.mxu0 %v7758_v0  ;;  %v12559_v0 = vld [vmem:[#allocation74_spill] sm:$0xff] }
 0x7e2   :  { %5337 = vmatpush.msra.mxu2 %v7753_v51  ;;  %5312 = vmatpush.msra.mxu1 %v7760_v33 }
 0x7e3   :  { %5359 = vmatpush.msrb.mxu3 %v7755_v7  ;;  %5290 = vmatpush.msrb.mxu0 %v7762_v19 }
 0x7e4   :  { %5338 = vmatpush.msra.mxu2 %v7757_v6  ;;  %5313 = vmatpush.msra.mxu1 %v7764_v3 }
 0x7e5   :  { %5360 = vmatpush.msrb.mxu3 %v7759_v52  ;;  %5291 = vmatpush.msrb.mxu0 %v7765_v2  ;;  %v510_v52 = vadd.f32 %v12559_v0, %v12341_v60  ;;  %v12561_v2 = vld [vmem:[#allocation110_spill] sm:$0xff] }
 0x7e6   :  { %5339 = vmatpush.msra.mxu2 %v7761_v25  ;;  %5314 = vmatpush.msra.mxu1 %v7767_v40 }
 0x7e7   :  { %5361 = vmatpush.msrb.mxu3 %v7763_v1  ;;  %5292 = vmatpush.msrb.mxu0 %v7768_v36  ;;  %v12560_v1 = vld [vmem:[#allocation31_spill] sm:$0xff] }
 0x7e8   :  { %5315 = vmatpush.msra.mxu1 %v7769_v9  ;;  %v575_v3 = vadd.f32 %v12560_v1, %v8986_v43 }
 0x7e9   :  { %5362 = vmatpush.msrb.mxu3 %v7766_v49  ;;  %5293 = vmatpush.msrb.mxu0 %v7770_v29  ;;  %v640_v49 = vadd.f32 %v12561_v2, %v9042_v10  ;;  %v12562_v29 = vld [vmem:[#allocation92_spill] sm:$0xff] }
 0x7ea   :  { %5316 = vmatpush.msra.mxu1 %v7771_v27  ;;  %v11474_v27 = vadd.f32 %v12562_v29, %v12341_v60 }
 0x7fb   :  { %v4651_v23 = vpop.f32.mrf.mxu0  ;;  %v4674_v20 = vpop.f32.mrf.mxu1 }
 0x802   :  { %v4697_v38 = vpop.f32.mrf.mxu2  ;;  %v4720_v30 = vpop.f32.mrf.mxu3 }
 0x808   :  { %v4654_v57 = vpop.f32.mrf.mxu0 }
 0x809   :  { %v4677_v45 = vpop.f32.mrf.mxu1 }
 0x80f   :  { %v4700_v4 = vpop.f32.mrf.mxu2 }
 0x810   :  { %v4723_v56 = vpop.f32.mrf.mxu3  ;;  %v4743_v13 = vpop.f32.mrf.mxu0 }
 0x811   :  { %v4766_v61 = vpop.f32.mrf.mxu1  ;;  %v4744_v62 = vadd.f32 %v4743_v13, %v4651_v23  ;;  %v12563_v23 = vld [vmem:[#allocation33_spill] sm:$0xff] }
 0x812   :  { %v4767_v12 = vadd.f32 %v4766_v61, %v4674_v20  ;;  %v11478_v20 = vadd.f32 %v12563_v23, %v8986_v43 }
 0x813   :  { %v4818_v63 = vadd.f32 %v4744_v62, %v9304_v31 }
 0x814   :  { %v4819_v59 = vadd.f32 %v4767_v12, %v9306_v34 }
 0x815   :  { %v5997_v16 = vmul.f32 -1.442695, %v4818_v63 }
 0x816   :  { %v5999_v50 = vmul.f32 -1.442695, %v4819_v59 }
 0x817   :  { %6466 = vpow2.f32 %v5997_v16  ;;  %v4789_v5 = vpop.f32.mrf.mxu2 }
 0x818   :  { %v4812_v28 = vpop.f32.mrf.mxu3  ;;  %6468 = vpow2.f32 %v5999_v50  ;;  %v4790_v51 = vadd.f32 %v4789_v5, %v4697_v38  ;;  %v11482_v38 = vadd.f32 %v9297_v55, %v12347_v22 }
 0x819   :  { %v4813_v48 = vadd.f32 %v4812_v28, %v4720_v30 }
 0x81a   :  { %v4746_v17 = vpop.f32.mrf.mxu0  ;;  %v4769_v26 = vpop.f32.mrf.mxu1  ;;  %v4820_v33 = vadd.f32 %v4790_v51, %v9325_v42 }
 0x81b   :  { %v4821_v58 = vadd.f32 %v4813_v48, %v9310_v35  ;;  %v4747_v54 = vadd.f32 %v4746_v17, %v4654_v57  ;;  %v4770_v44 = vadd.f32 %v4769_v26, %v4677_v45  ;;  %v11486_v57 = vadd.f32 %v9299_v18, %v12347_v22 }
 0x81d   :  { %v6001_v41 = vmul.f32 -1.442695, %v4821_v58  ;;  %v4822_v32 = vadd.f32 %v4747_v54, %v9304_v31  ;;  %v4823_v15 = vadd.f32 %v4770_v44, %v9306_v34  ;;  %v6467_v37 = vpop.eup %6466 }
 0x81e   :  { %v6469_v46 = vpop.eup %6468  ;;  %v11459_v21 = vadd.f32 1.0, %v6467_v37 }
 0x81f   :  { %6470 = vpow2.f32 %v6001_v41  ;;  %v5998_v39 = vmul.f32 -1.442695, %v4822_v32  ;;  %v11461_v7 = vadd.f32 1.0, %v6469_v46  ;;  %v6000_v53 = vmul.f32 -1.442695, %v4823_v15 }
 0x820   :  { %6472 = vrcp.f32 %v11459_v21  ;;  %vm4839_vm0 = vweird.f32 %v11459_v21  ;;  %v4843_v63 = vand.u32 2147483647, %v11459_v21  ;;  %v4845_v18 = vand.u32 2147483648, %v11459_v21 }
 0x821   :  { %v4815_v6 = vpop.f32.mrf.mxu3  ;;  %6474 = vrcp.f32 %v11461_v7  ;;  %v4792_v25 = vpop.f32.mrf.mxu2  ;;  %v4883_v12 = vand.u32 2147483648, %v11461_v7  ;;  %v4881_v59 = vand.u32 2147483647, %v11461_v7  ;;  %vm4877_vm2 = vweird.f32 %v11461_v7 }
 0x822   :  { %6476 = vpow2.f32 %v5998_v39  ;;  %v4816_v40 = vadd.f32 %v4815_v6, %v4723_v56  ;;  %v4793_v56 = vadd.f32 %v4792_v25, %v4700_v4  ;;  %vm11506_vm5 = vcmp.eq.f32.partialorder %v4843_v63, 8.507059e+37 }
 0x823   :  { %v4977_v19 = vpop.f32.mrf.mxu0  ;;  %6478 = vpow2.f32 %v6000_v53  ;;  %v5000_v36 = vpop.f32.mrf.mxu1  ;;  %v4884_v37 = vor.u32 1.1754944e-38, %v4883_v12  ;;  %v4846_v51 = vor.u32 1.1754944e-38, %v4845_v18  ;;  %vm11515_vm7 = vcmp.eq.f32.partialorder %v4881_v59, 8.507059e+37 }
 0x824   :  { %v5052_v30 = vadd.f32 %v4977_v19, %v510_v52  ;;  %v4825_v13 = vadd.f32 %v4816_v40, %v9310_v35  ;;  %6480 = vtanh.f32 %v4820_v33  ;;  %v5053_v61 = vadd.f32 %v5000_v36, %v575_v3 }
 0x825   :  { %v6471_v9 = vpop.eup %6470  ;;  %v4824_v48 = vadd.f32 %v4793_v56, %v9325_v42 }
 0x826   :  { %v11488_v45 = vadd.f32 1.0, %v6471_v9  ;;  %v6473_v60 = vpop.eup %6472  ;;  %v6003_v43 = vmul.f32 -1.442695, %v5052_v30  ;;  %v6002_v16 = vmul.f32 -1.442695, %v4825_v13 }
 0x827   :  { %v6475_v62 = vpop.eup %6474  ;;  %v4835_v55 = vmul.f32 %v6473_v60, %v11459_v21  ;;  %v6005_v58 = vmul.f32 -1.442695, %v5053_v61  ;;  %vm4840_vm1 = vweird.f32 %v6473_v60 }
 0x828   :  { %v6477_v22 = vpop.eup %6476  ;;  %v4873_v4 = vmul.f32 %v6475_v62, %v11461_v7  ;;  %6482 = vrcp.f32 %v11488_v45  ;;  %vm4878_vm4 = vweird.f32 %v6475_v62  ;;  %vm4841_vm6 = vmor %vm4839_vm0, %vm4840_vm1  ;;  %v4923_v19 = vand.u32 2147483648, %v11488_v45 }
 0x829   :  { %v6479_v50 = vpop.eup %6478  ;;  %v4836_v28 = vsub.f32 1.0, %v4835_v55  ;;  %v11499_v5 = vadd.f32 1.0, %v6477_v22  ;;  %6484 = vpow2.f32 %v6003_v43  ;;  %vm4879_vm8 = vmor %vm4877_vm2, %vm4878_vm4  ;;  %v4921_v21 = vand.u32 2147483647, %v11488_v45 }
 0x82a   :  { %v4874_v17 = vsub.f32 1.0, %v4873_v4  ;;  %v11502_v26 = vadd.f32 1.0, %v6479_v50  ;;  %6486 = vpow2.f32 %v6002_v16  ;;  %v6481_v44 = vpop.eup %6480  ;;  %v5023_v15 = vpop.f32.mrf.mxu2  ;;  %vm4917_vm14 = vweird.f32 %v11488_v45 }
 0x82b   :  { %v4837_v54 = vmul.f32 %v6473_v60, %v4836_v28  ;;  %6488 = vrcp.f32 %v11499_v5  ;;  %v4858_v0 = vand.u32 2147483647, %v11499_v5  ;;  %v5046_v52 = vpop.f32.mrf.mxu3  ;;  %v5054_v1 = vadd.f32 %v5023_v15, %v640_v49 }
 0x82c   :  { %v4875_v41 = vmul.f32 %v6475_v62, %v4874_v17  ;;  %6490 = vrcp.f32 %v11502_v26  ;;  %v4898_v36 = vand.u32 2147483648, %v11502_v26  ;;  %vm4854_vm9 = vweird.f32 %v11499_v5 }
 0x82d   :  { %v4838_v46 = vadd.f32 %v6473_v60, %v4837_v54  ;;  %6492 = vtanh.f32 %v4824_v48  ;;  %v4860_v23 = vand.u32 2147483648, %v11499_v5  ;;  %v5055_v30 = vadd.f32 %v5046_v52, %v11482_v38  ;;  %v4980_v38 = vpop.f32.mrf.mxu0 }
 0x82e   :  { %v11511_v39 = vpop.eup %6482  ;;  %v4876_v53 = vadd.f32 %v6475_v62, %v4875_v41  ;;  %6494 = vpow2.f32 %v6005_v58  ;;  %vm4892_vm10 = vweird.f32 %v11502_v26  ;;  %vm11541_vm11 = vcmp.eq.f32.partialorder %v4858_v0, 8.507059e+37  ;;  %v5003_v58 = vpop.f32.mrf.mxu1 }
 0x82f   :  { %v6485_v33 = vpop.eup %6484  ;;  %v4842_v25 = vsel %vm4841_vm6, %v6473_v60, %v4838_v46  ;;  %v4913_v13 = vmul.f32 %v11511_v39, %v11488_v45  ;;  %v4899_v22 = vor.u32 1.1754944e-38, %v4898_v36  ;;  %v4896_v4 = vand.u32 2147483647, %v11502_v26  ;;  %v12576_v45 = vld [vmem:[#allocation126_spill] sm:$0xff] }
 0x830   :  { %v6487_v3 = vpop.eup %6486  ;;  %v4847_v2 = vsel %vm11506_vm5, %v4846_v51, %v4842_v25  ;;  %v4880_v40 = vsel %vm4879_vm8, %v6475_v62, %v4876_v53  ;;  %v11529_v9 = vadd.f32 1.0, %v6485_v33  ;;  %v4861_v16 = vor.u32 1.1754944e-38, %v4860_v23 }
 0x831   :  { %v6489_v29 = vpop.eup %6488  ;;  %v4885_v7 = vsel %vm11515_vm7, %v4884_v37, %v4880_v40  ;;  %v11534_v49 = vadd.f32 1.0, %v6487_v3  ;;  %v4944_v55 = vmul.f32 %v6481_v44, %v4847_v2  ;;  %v6007_v28 = vmul.f32 -1.442695, %v5055_v30 }
 0x832   :  { %v6491_v56 = vpop.eup %6490  ;;  %v4850_v60 = vmul.f32 %v6489_v29, %v11499_v5  ;;  %v4942_v62 = vmul.f32 %v4885_v7, %v11218_v11  ;;  %v4914_v48 = vsub.f32 1.0, %v4913_v13  ;;  %vm4855_vm12 = vweird.f32 %v6489_v29 }
 0x833   :  { %v6493_v61 = vpop.eup %6492  ;;  %v4888_v12 = vmul.f32 %v6491_v56, %v11502_v26  ;;  %6496 = vrcp.f32 %v11534_v49  ;;  %v5056_v17 = vadd.f32 %v4980_v38, %v11474_v27  ;;  %vm4893_vm13 = vweird.f32 %v6491_v56  ;;  %vm4856_vm0 = vmor %vm4854_vm9, %vm4855_vm12  ;;  %v5049_v25 = vpop.f32.mrf.mxu3 }
 0x834   :  { %v6495_v63 = vpop.eup %6494  ;;  %v4851_v18 = vsub.f32 1.0, %v4850_v60  ;;  %6498 = vrcp.f32 %v11529_v9  ;;  %v11553_v54 = vadd.f32 %v4944_v55, %v4942_v62  ;;  %vm11557_vm15 = vcmp.eq.f32.partialorder %v4896_v4, 8.507059e+37  ;;  %vm4894_vm2 = vmor %vm4892_vm10, %vm4893_vm13 }
 0x835   :  { %v4889_v59 = vsub.f32 1.0, %v4888_v12  ;;  %v11550_v50 = vadd.f32 1.0, %v6495_v63  ;;  %v5077_v15 = vand.u32 2147483647, %v11529_v9  ;;  %v6004_v46 = vmul.f32 -1.442695, %v5056_v17 }
 0x836   :  { %v4852_v11 = vmul.f32 %v6489_v29, %v4851_v18  ;;  %v5057_v51 = vadd.f32 %v5003_v58, %v11478_v20  ;;  %v4915_v6 = vmul.f32 %v11511_v39, %v4914_v48  ;;  %vm5073_vm1 = vweird.f32 %v11529_v9 }
 0x837   :  { %v4890_v44 = vmul.f32 %v6491_v56, %v4889_v59  ;;  %6500 = vrcp.f32 %v11550_v50  ;;  %v5079_v52 = vand.u32 2147483648, %v11529_v9  ;;  %vm11581_vm4 = vcmp.eq.f32.partialorder %v5077_v15, 8.507059e+37 }
 0x838   :  { %v4853_v41 = vadd.f32 %v6489_v29, %v4852_v11  ;;  %6502 = vpow2.f32 %v6007_v28  ;;  %v6006_v7 = vmul.f32 -1.442695, %v5057_v51  ;;  %v5059_v13 = vadd.f32 %v5049_v25, %v11486_v57  ;;  %v5605_v51 = vld [vmem:[#allocation9 + $0x78] sm:$0xff]  ;;  %v5620_v25 = vld [vmem:[#allocation9 + $0xf0] sm:$0xff] }
 0x839   :  { %v11562_v37 = vpop.eup %6496  ;;  %v4891_v27 = vadd.f32 %v6491_v56, %v4890_v44  ;;  %6504 = vtanh.f32 %v5054_v1  ;;  %v4916_v60 = vadd.f32 %v11511_v39, %v4915_v6  ;;  %vm4918_vm6 = vweird.f32 %v11511_v39 }
 0x83a   :  { %v6499_v53 = vpop.eup %6498  ;;  %v4857_v0 = vsel %vm4856_vm0, %v6489_v29, %v4853_v41  ;;  %6506 = vtanh.f32 %v11553_v54  ;;  %v4928_v26 = vmul.f32 %v11562_v37, %v11534_v49  ;;  %v5117_v29 = vand.u32 2147483648, %v11550_v50  ;;  %vm11596_vm8 = vmor %vm4917_vm14, %vm4918_vm6 }
 0x83b   :  { %v4862_v5 = vsel %vm11541_vm11, %v4861_v16, %v4857_v0  ;;  %v4895_v33 = vsel %vm4894_vm2, %v6491_v56, %v4891_v27  ;;  %v5069_v20 = vmul.f32 %v6499_v53, %v11529_v9  ;;  %6508 = vpow2.f32 %v6004_v46  ;;  %v5026_v46 = vpop.f32.mrf.mxu2 }
 0x83c   :  { %v4900_v1 = vsel %vm11557_vm15, %v4899_v22, %v4895_v33  ;;  %v4945_v40 = vmul.f32 %v6493_v61, %v4862_v5  ;;  %vm5074_vm5 = vweird.f32 %v6499_v53  ;;  %6510 = vpow2.f32 %v6006_v7 }
 0x83d   :  { %v6501_v2 = vpop.eup %6500  ;;  %v5070_v36 = vsub.f32 1.0, %v5069_v20  ;;  %v4943_v30 = vmul.f32 %v4900_v1, %v11316_v47  ;;  %v4929_v61 = vsub.f32 1.0, %v4928_v26  ;;  %v6008_v38 = vmul.f32 -1.442695, %v5059_v13  ;;  %vm5075_vm9 = vmor %vm5073_vm1, %vm5074_vm5  ;;  %v5604_v20 = vld [vmem:[#allocation9 + $0x70] sm:$0xff] }
 0x83e   :  { %v6503_v23 = vpop.eup %6502  ;;  %v5107_v56 = vmul.f32 %v6501_v2, %v11550_v50  ;;  %vm5112_vm7 = vweird.f32 %v6501_v2  ;;  %v5080_v18 = vor.u32 1.1754944e-38, %v5079_v52  ;;  %v5115_v22 = vand.u32 2147483647, %v11550_v50 }
 0x83f   :  { %v6505_v43 = vpop.eup %6504  ;;  %v5071_v62 = vmul.f32 %v6499_v53, %v5070_v36  ;;  %v11590_v55 = vadd.f32 1.0, %v6503_v23  ;;  %v11600_v59 = vadd.f32 %v4945_v40, %v4943_v30  ;;  %v4920_v28 = vsel %vm11596_vm8, %v11511_v39, %v4916_v60  ;;  %v5619_v40 = vld [vmem:[#allocation9 + $0xe8] sm:$0xff] }
 0x840   :  { %v5108_v12 = vsub.f32 1.0, %v5107_v56  ;;  %v6507_v63 = vpop.eup %6506  ;;  %v4924_v17 = vor.u32 1.1754944e-38, %v4923_v19  ;;  %vm5111_vm10 = vweird.f32 %v11550_v50  ;;  %vm4922_vm11 = vcmp.eq.f32.partialorder %v4921_v21, 8.507059e+37 }
 0x841   :  { %v5072_v47 = vadd.f32 %v6499_v53, %v5071_v62  ;;  %v6509_v4 = vpop.eup %6508  ;;  %6512 = vrcp.f32 %v11590_v55  ;;  %v4930_v9 = vmul.f32 %v11562_v37, %v4929_v61  ;;  %vm5113_vm12 = vmor %vm5111_vm10, %vm5112_vm7  ;;  %v5118_v41 = vor.u32 1.1754944e-38, %v5117_v29  ;;  %v5618_v62 = vld [vmem:[#allocation9 + $0xe0] sm:$0xff] }
 0x842   :  { %v5109_v16 = vmul.f32 %v6501_v2, %v5108_v12  ;;  %v11609_v11 = vadd.f32 1.0, %v6509_v4  ;;  %6514 = vpow2.f32 %v6008_v38  ;;  %v6511_v44 = vpop.eup %6510  ;;  %v4925_v32 = vsel %vm4922_vm11, %v4924_v17, %v4920_v28  ;;  %v5617_v28 = vld [vmem:[#allocation9 + $0xd8] sm:$0xff] }
 0x843   :  { %v5076_v48 = vsel %vm5075_vm9, %v6499_v53, %v5072_v47  ;;  %vm5116_vm13 = vcmp.eq.f32.partialorder %v5115_v22, 8.507059e+37  ;;  %v11621_v19 = vadd.f32 1.0, %v6511_v44  ;;  %v4950_v50 = vmul.f32 %v6507_v63, %v4925_v32  ;;  %v5621_v53 = vld [vmem:[#allocation9 + $0xf8] sm:$0xff] }
 0x844   :  { %v5110_v58 = vadd.f32 %v6501_v2, %v5109_v16  ;;  %v5081_v39 = vsel %vm11581_vm4, %v5080_v18, %v5076_v48  ;;  %6516 = vrcp.f32 %v11609_v11  ;;  %v643_v21 = vadd.f32 %v12576_v45, %v9042_v10  ;;  %v5601_v16 = vld [vmem:[#allocation9 + $0x58] sm:$0xff] }
 0x845   :  { %6518 = vtanh.f32 %v11600_v59  ;;  %v5178_v52 = vmul.f32 %v6505_v43, %v5081_v39  ;;  %5202 = vmatmul.f32.vlgmr.msra.gmra.mxu0 %v4950_v50  ;;  %5225 = vmatmul.f32.vlgmr.msrb.gmra.mxu1 %v4950_v50  ;;  %v4931_v5 = vadd.f32 %v11562_v37, %v4930_v9  ;;  %vm4932_vm14 = vweird.f32 %v11534_v49  ;;  %v5602_v43 = vld [vmem:[#allocation9 + $0x60] sm:$0xff] }
 0x846   :  { %v5114_v15 = vsel %vm5113_vm12, %v6501_v2, %v5110_v58  ;;  %6520 = vrcp.f32 %v11621_v19  ;;  %5248 = vmatmul.f32.vlgmr.msrb.gmra.mxu2 %v4950_v50  ;;  %5271 = vmatmul.f32.vlgmr.msra.gmra.mxu3 %v4950_v50  ;;  %v5058_v1 = vadd.f32 %v5026_v46, %v643_v21  ;;  %vm4933_vm15 = vweird.f32 %v11562_v37  ;;  %v5603_v2 = vld [vmem:[#allocation9 + $0x68] sm:$0xff] }
 0x847   :  { %v5119_v27 = vsel %vm5116_vm13, %v5118_v41, %v5114_v15  ;;  %v11626_v6 = vpop.eup %6512  ;;  %5626 = vmatpush.msrb.mxu2 %v5605_v51  ;;  %5646 = vmatpush.msra.mxu3 %v5621_v53  ;;  %vm11639_vm0 = vmor %vm4932_vm14, %vm4933_vm15  ;;  %v4936_v29 = vand.u32 2147483647, %v11534_v49  ;;  %v4938_v7 = vand.u32 2147483648, %v11534_v49  ;;  %v5094_v38 = vand.u32 2147483648, %v11609_v11  ;;  %v5616_v15 = vld [vmem:[#allocation9 + $0xd0] sm:$0xff] }
 0x848   :  { %v5176_v0 = vmul.f32 %v5119_v27, %v11346_v14  ;;  %v6515_v33 = vpop.eup %6514  ;;  %v5147_v10 = vmul.f32 %v11626_v6, %v11590_v55  ;;  %v4935_v56 = vsel %vm11639_vm0, %v11562_v37, %v4931_v5  ;;  %vm5151_vm1 = vweird.f32 %v11590_v55 }
 0x849   :  { %v11633_v26 = vadd.f32 1.0, %v6515_v33  ;;  %5627 = vmatpush.msrb.mxu2 %v5604_v20  ;;  %5647 = vmatpush.msra.mxu3 %v5620_v25  ;;  %v4939_v61 = vor.u32 1.1754944e-38, %v4938_v7  ;;  %vm4937_vm2 = vcmp.eq.f32.partialorder %v4936_v29, 8.507059e+37  ;;  %v5092_v63 = vand.u32 2147483647, %v11609_v11  ;;  %v5597_v29 = vld [vmem:[#allocation9 + $0x38] sm:$0xff] }
 0x84a   :  { %v11637_v14 = vpop.eup %6516  ;;  %v5148_v3 = vsub.f32 1.0, %v5147_v10  ;;  %v5180_v23 = vadd.f32 %v5178_v52, %v5176_v0  ;;  %vm5152_vm5 = vweird.f32 %v11626_v6  ;;  %v5157_v57 = vand.u32 2147483648, %v11590_v55  ;;  %v5615_v0 = vld [vmem:[#allocation9 + $0xc8] sm:$0xff]  ;;  %v5613_v7 = vld [vmem:[#allocation9 + $0xb8] sm:$0xff] }
 0x84b   :  { %v5084_v30 = vmul.f32 %v11637_v14, %v11609_v11  ;;  %v6519_v13 = vpop.eup %6518  ;;  %6522 = vrcp.f32 %v11633_v26  ;;  %5628 = vmatpush.msrb.mxu2 %v5603_v2  ;;  %5648 = vmatpush.msra.mxu3 %v5619_v40  ;;  %v4940_v47 = vsel %vm4937_vm2, %v4939_v61, %v4935_v56  ;;  %vm5089_vm4 = vweird.f32 %v11637_v14  ;;  %vm11683_vm9 = vmor %vm5151_vm1, %vm5152_vm5  ;;  %v5612_v56 = vld [vmem:[#allocation9 + $0xb0] sm:$0xff]  ;;  %v5594_v61 = vld [vmem:[#allocation9 + $0x20] sm:$0xff] }
 0x84c   :  { %v5149_v60 = vmul.f32 %v11626_v6, %v5148_v3  ;;  %v11652_v12 = vpop.eup %6520  ;;  %6524 = vtanh.f32 %v5058_v1  ;;  %v4951_v22 = vmul.f32 %v6519_v13, %v4940_v47  ;;  %v5132_v17 = vand.u32 2147483648, %v11621_v19  ;;  %v5598_v1 = vld [vmem:[#allocation9 + $0x40] sm:$0xff] }
 0x84d   :  { %v5085_v49 = vsub.f32 1.0, %v5084_v30  ;;  %v5122_v37 = vmul.f32 %v11652_v12, %v11621_v19  ;;  %6526 = vtanh.f32 %v5180_v23  ;;  %5629 = vmatpush.msrb.mxu2 %v5602_v43  ;;  %5649 = vmatpush.msra.mxu3 %v5618_v62  ;;  %vm5088_vm6 = vweird.f32 %v11609_v11  ;;  %v5600_v11 = vld [vmem:[#allocation9 + $0x50] sm:$0xff]  ;;  %v5611_v43 = vld [vmem:[#allocation9 + $0xa8] sm:$0xff] }
 0x84e   :  { %v5150_v48 = vadd.f32 %v11626_v6, %v5149_v60  ;;  %v5095_v9 = vor.u32 1.1754944e-38, %v5094_v38  ;;  %5205 = vmatmul.f32.gmra.mxu0 %v4951_v22  ;;  %5228 = vmatmul.f32.gmra.mxu1 %v4951_v22  ;;  %vm5127_vm7 = vweird.f32 %v11652_v12  ;;  %vm11673_vm8 = vmor %vm5088_vm6, %vm5089_vm4  ;;  %v5130_v32 = vand.u32 2147483647, %v11621_v19  ;;  %v5596_v30 = vld [vmem:[#allocation9 + $0x30] sm:$0xff]  ;;  %v5595_v60 = vld [vmem:[#allocation9 + $0x28] sm:$0xff] }
 0x84f   :  { %v5086_v18 = vmul.f32 %v11637_v14, %v5085_v49  ;;  %v5123_v4 = vsub.f32 1.0, %v5122_v37  ;;  %5251 = vmatmul.f32.gmra.mxu2 %v4951_v22  ;;  %5274 = vmatmul.f32.gmra.mxu3 %v4951_v22  ;;  %v5155_v50 = vand.u32 2147483647, %v11590_v55  ;;  %vm5093_vm10 = vcmp.eq.f32.partialorder %v5092_v63, 8.507059e+37  ;;  %v5599_v55 = vld [vmem:[#allocation9 + $0x48] sm:$0xff]  ;;  %v5593_v37 = vld [vmem:[#allocation9 + $0x18] sm:$0xff] }
 0x850   :  { %5630 = vmatpush.msrb.mxu2 %v5601_v16  ;;  %5650 = vmatpush.msra.mxu3 %v5617_v28  ;;  %vm5126_vm11 = vweird.f32 %v11621_v19  ;;  %v5154_v52 = vsel %vm11683_vm9, %v11626_v6, %v5150_v48  ;;  %v5158_v33 = vor.u32 1.1754944e-38, %v5157_v57  ;;  %v5133_v10 = vor.u32 1.1754944e-38, %v5132_v17  ;;  %v5609_v63 = vld [vmem:[#allocation9 + $0x98] sm:$0xff]  ;;  %v5608_v57 = vld [vmem:[#allocation9 + $0x90] sm:$0xff]  ;;  %v5591_v16 = vld [vmem:[#allocation9 + $0x8] sm:$0xff] }
 0x851   :  { %v5087_v58 = vadd.f32 %v11637_v14, %v5086_v18  ;;  %v11667_v44 = vpop.eup %6522  ;;  %v5124_v41 = vmul.f32 %v11652_v12, %v5123_v4  ;;  %vm5128_vm12 = vmor %vm5126_vm11, %vm5127_vm7  ;;  %vm5131_vm13 = vcmp.eq.f32.partialorder %v5130_v32, 8.507059e+37  ;;  %vm5156_vm14 = vcmp.eq.f32.partialorder %v5155_v50, 8.507059e+37  ;;  %v840_v4 = vld [vmem:[%s12583_s29] sm:$0x3]  ;;  %v5607_v28 = vld [vmem:[#allocation9 + $0x88] sm:$0xff] }
 0x852   :  { %v6525_v45 = vpop.eup %6524  ;;  %v5162_v46 = vmul.f32 %v11667_v44, %v11633_v26  ;;  %5631 = vmatpush.msrb.mxu2 %v5600_v11  ;;  %5651 = vmatpush.msra.mxu3 %v5616_v15  ;;  %v5159_v6 = vsel %vm5156_vm14, %v5158_v33, %v5154_v52  ;;  %vm5167_vm15 = vweird.f32 %v11667_v44  ;;  %vm5166_vm0 = vweird.f32 %v11633_v26  ;;  %v5517_v52 = vld [vmem:[%s11974_s13 + $0x68] sm:$0xff] }
 0x853   :  { %v5091_v27 = vsel %vm11673_vm8, %v11637_v14, %v5087_v58  ;;  %v5125_v53 = vadd.f32 %v11652_v12, %v5124_v41  ;;  %v6527_v5 = vpop.eup %6526  ;;  %v5614_v14 = vld [vmem:[#allocation9 + $0xc0] sm:$0xff]  ;;  %v5170_v62 = vand.u32 2147483647, %v11633_v26  ;;  %vm5168_vm2 = vmor %vm5166_vm0, %vm5167_vm15  ;;  %v843_v48 = vperm.slane %v840_v4, 1 }
 0x854   :  { %v5096_v51 = vsel %vm5093_vm10, %v5095_v9, %v5091_v27  ;;  %v5163_v20 = vsub.f32 1.0, %v5162_v46  ;;  %5632 = vmatpush.msrb.mxu2 %v5599_v55  ;;  %5652 = vmatpush.msra.mxu3 %v5615_v0  ;;  %v5184_v36 = vmul.f32 %v6527_v5, %v5159_v6  ;;  %v842_v17 = vperm.slane %v840_v4, 0  ;;  %v5590_v58 = vld [vmem:[#allocation9] sm:$0xff]  ;;  %v5519_v46 = vld [vmem:[%s11974_s13 + $0x78] sm:$0xff]  ;;  %v5514_v6 = vld [vmem:[%s11974_s13 + $0x50] sm:$0xff] }
 0x855   :  { %v5129_v19 = vsel %vm5128_vm12, %v11652_v12, %v5125_v53  ;;  %v5179_v25 = vmul.f32 %v6525_v45, %v5096_v51  ;;  %v5610_v12 = vld [vmem:[#allocation9 + $0xa0] sm:$0xff]  ;;  %vm5171_vm1 = vcmp.eq.f32.partialorder %v5170_v62, 8.507059e+37  ;;  %5524 = vmatpush.msra.mxu0 %v5519_v46 }
 0x856   :  { %v5134_v3 = vsel %vm5131_vm13, %v5133_v10, %v5129_v19  ;;  %v5164_v2 = vmul.f32 %v11667_v44, %v5163_v20  ;;  %5633 = vmatpush.msrb.mxu2 %v5598_v1  ;;  %5653 = vmatpush.msra.mxu3 %v5614_v14  ;;  %v5606_v9 = vld [vmem:[#allocation9 + $0x80] sm:$0xff]  ;;  %v5515_v1 = vld [vmem:[%s11974_s13 + $0x58] sm:$0xff] }
 0x857   :  { %v5177_v40 = vmul.f32 %v5134_v3, %v11421_v8  ;;  %5294 = vmatmul.f32.vlgmr.msrb.gmra.mxu0 %v5184_v36  ;;  %5317 = vmatmul.f32.vlgmr.msra.gmra.mxu1 %v5184_v36  ;;  %v5172_v8 = vand.u32 2147483648, %v11633_v26  ;;  %v5592_v26 = vld [vmem:[#allocation9 + $0x10] sm:$0xff]  ;;  %v12584_v41 = vld [vmem:[#allocation142_spill] sm:$0xff] }
 0x858   :  { %5340 = vmatmul.f32.vlgmr.msra.gmra.mxu2 %v5184_v36  ;;  %5363 = vmatmul.f32.vlgmr.msrb.gmra.mxu3 %v5184_v36  ;;  %v5165_v13 = vadd.f32 %v11667_v44, %v5164_v2  ;;  %v864_v39 = vadd.f32 %v12584_v41, %v842_v17  ;;  %v5516_v20 = vld [vmem:[%s11974_s13 + $0x60] sm:$0xff]  ;;  %v5506_v17 = vld [vmem:[%s11974_s13 + $0x10] sm:$0xff]  ;;  %v5505_v41 = vld [vmem:[%s11974_s13 + $0x8] sm:$0xff] }
 0x859   :  { %v5181_v23 = vadd.f32 %v5179_v25, %v5177_v40  ;;  %5634 = vmatpush.msrb.mxu2 %v5597_v29  ;;  %5654 = vmatpush.msra.mxu3 %v5613_v7  ;;  %v5173_v38 = vor.u32 1.1754944e-38, %v5172_v8  ;;  %v5513_v40 = vld [vmem:[%s11974_s13 + $0x48] sm:$0xff] }
 0x85a   :  { %v5169_v49 = vsel %vm5168_vm2, %v11667_v44, %v5165_v13  ;;  %v884_v44 = vadd.f32 %v9015_v24, %v843_v48  ;;  %v5518_v24 = vld [vmem:[%s11974_s13 + $0x70] sm:$0xff] }
 0x85b   :  { %6528 = vtanh.f32 %v5181_v23  ;;  %5635 = vmatpush.msrb.mxu2 %v5596_v30  ;;  %5655 = vmatpush.msra.mxu3 %v5612_v56  ;;  %v5174_v18 = vsel %vm5171_vm1, %v5173_v38, %v5169_v49  ;;  %v5512_v56 = vld [vmem:[%s11974_s13 + $0x40] sm:$0xff]  ;;  %v5510_v49 = vld [vmem:[%s11974_s13 + $0x30] sm:$0xff] }
 0x85c   :  { %5525 = vmatpush.msra.mxu0 %v5518_v24 }
 0x85d   :  { %5636 = vmatpush.msrb.mxu2 %v5595_v60  ;;  %5656 = vmatpush.msra.mxu3 %v5611_v43 }
 0x85e   :  { %5526 = vmatpush.msra.mxu0 %v5517_v52  ;;  %v5562_v52 = vld [vmem:[%s11976_s15 + $0x78] sm:$0xff] }
 0x85f   :  { %5637 = vmatpush.msrb.mxu2 %v5594_v61  ;;  %5657 = vmatpush.msra.mxu3 %v5610_v12  ;;  %v5511_v12 = vld [vmem:[%s11974_s13 + $0x38] sm:$0xff] }
 0x860   :  { %5527 = vmatpush.msra.mxu0 %v5516_v20  ;;  %5567 = vmatpush.msrb.mxu1 %v5562_v52 }
 0x861   :  { %v6529_v47 = vpop.eup %6528  ;;  %5638 = vmatpush.msrb.mxu2 %v5593_v37  ;;  %5658 = vmatpush.msra.mxu3 %v5609_v63  ;;  %v5509_v37 = vld [vmem:[%s11974_s13 + $0x28] sm:$0xff] }
 0x862   :  { %v5185_v22 = vmul.f32 %v6529_v47, %v5174_v18  ;;  %5528 = vmatpush.msra.mxu0 %v5515_v1  ;;  %v5508_v18 = vld [vmem:[%s11974_s13 + $0x20] sm:$0xff] }
 0x863   :  { %5639 = vmatpush.msrb.mxu2 %v5592_v26  ;;  %5659 = vmatpush.msra.mxu3 %v5608_v57  ;;  %v5507_v57 = vld [vmem:[%s11974_s13 + $0x18] sm:$0xff] }
 0x864   :  { %5297 = vmatmul.f32.gmra.mxu0 %v5185_v22  ;;  %5320 = vmatmul.f32.gmra.mxu1 %v5185_v22 }
 0x865   :  { %5343 = vmatmul.f32.gmra.mxu2 %v5185_v22  ;;  %5366 = vmatmul.f32.gmra.mxu3 %v5185_v22 }
 0x866   :  { %5640 = vmatpush.msrb.mxu2 %v5591_v16  ;;  %5660 = vmatpush.msra.mxu3 %v5607_v28 }
 0x867   :  { %5529 = vmatpush.msra.mxu0 %v5514_v6 }
 0x868   :  { %5641 = vmatpush.msrb.mxu2 %v5590_v58  ;;  %5661 = vmatpush.msra.mxu3 %v5606_v9 }
 0x869   :  { %5530 = vmatpush.msra.mxu0 %v5513_v40 }
 0x86b   :  { %5531 = vmatpush.msra.mxu0 %v5512_v56 }
 0x86d   :  { %5642 = vmatmul.f32.vlgmr.msrb.gmra.mxu2 %v864_v39  ;;  %5662 = vmatmul.f32.vlgmr.msra.gmra.mxu3 %v884_v44 }
 0x86e   :  { %5532 = vmatpush.msra.mxu0 %v5511_v12 }
 0x870   :  { %5533 = vmatpush.msra.mxu0 %v5510_v49 }
 0x872   :  { %5534 = vmatpush.msra.mxu0 %v5509_v37 }
 0x874   :  { %5535 = vmatpush.msra.mxu0 %v5508_v18 }
 0x876   :  { %5536 = vmatpush.msra.mxu0 %v5507_v57 }
 0x878   :  { %5537 = vmatpush.msra.mxu0 %v5506_v17 }
 0x87a   :  { %5538 = vmatpush.msra.mxu0 %v5505_v41 }
 0x8c2   :  { %v5203_v32 = vpop.f32.mrf.mxu0  ;;  %v5226_v11 = vpop.f32.mrf.mxu1 }
 0x8c9   :  { %v5272_v15 = vpop.f32.mrf.mxu3  ;;  %v5249_v21 = vpop.f32.mrf.mxu2 }
 0x8cb   :  { %v5206_v50 = vpop.f32.mrf.mxu0  ;;  %v5229_v45 = vpop.f32.mrf.mxu1 }
 0x8d2   :  { %v5275_v27 = vpop.f32.mrf.mxu3  ;;  %v11724_v10 = vpop.f32.mrf.mxu2 }
 0x8d4   :  { %v5295_v51 = vpop.f32.mrf.mxu0  ;;  %v5318_v53 = vpop.f32.mrf.mxu1 }
 0x8d5   :  { %v5296_v55 = vadd.f32 %v5295_v51, %v5203_v32  ;;  %v5319_v0 = vadd.f32 %v5318_v53, %v5226_v11 }
 0x8d7   :  { %v5370_v5 = vadd.f32 %v5296_v55, %v9304_v31  ;;  %v5371_v33 = vadd.f32 %v5319_v0, %v9306_v34 }
 0x8d9   :  { %v6009_v19 = vmul.f32 -1.442695, %v5370_v5  ;;  %v6011_v25 = vmul.f32 -1.442695, %v5371_v33  ;;  %v5561_v5 = vld [vmem:[%s11976_s15 + $0x70] sm:$0xff] }
 0x8da   :  { %5568 = vmatpush.msrb.mxu1 %v5561_v5  ;;  %v5552_v5 = vld [vmem:[%s11976_s15 + $0x28] sm:$0xff] }
 0x8db   :  { %6530 = vpow2.f32 %v6009_v19  ;;  %v5364_v14 = vpop.f32.mrf.mxu3  ;;  %v5341_v43 = vpop.f32.mrf.mxu2 }
 0x8dc   :  { %6532 = vpow2.f32 %v6011_v25  ;;  %v5365_v3 = vadd.f32 %v5364_v14, %v5272_v15  ;;  %v5560_v14 = vld [vmem:[%s11976_s15 + $0x68] sm:$0xff] }
 0x8dd   :  { %5569 = vmatpush.msrb.mxu1 %v5560_v14  ;;  %v5550_v14 = vld [vmem:[%s11976_s15 + $0x18] sm:$0xff] }
 0x8de   :  { %v5373_v2 = vadd.f32 %v5365_v3, %v9310_v35 }
 0x8e0   :  { %v6013_v7 = vmul.f32 -1.442695, %v5373_v2 }
 0x8e1   :  { %v5298_v36 = vpop.f32.mrf.mxu0  ;;  %v5321_v29 = vpop.f32.mrf.mxu1 }
 0x8e2   :  { %v5299_v23 = vadd.f32 %v5298_v36, %v5206_v50  ;;  %v5322_v30 = vadd.f32 %v5321_v29, %v5229_v45  ;;  %v6531_v13 = vpop.eup %6530  ;;  %6534 = vpow2.f32 %v6013_v7 }
 0x8e3   :  { %v6533_v8 = vpop.eup %6532  ;;  %v11742_v60 = vadd.f32 1.0, %v6531_v13 }
 0x8e4   :  { %v5374_v62 = vadd.f32 %v5299_v23, %v9304_v31  ;;  %v5375_v61 = vadd.f32 %v5322_v30, %v9306_v34  ;;  %v11752_v38 = vadd.f32 1.0, %v6533_v8  ;;  %v5342_v31 = vadd.f32 %v5341_v43, %v5249_v21  ;;  %v5504_v21 = vld [vmem:[%s11974_s13] sm:$0xff] }
 0x8e5   :  { %6536 = vrcp.f32 %v11742_v60  ;;  %v5395_v50 = vand.u32 2147483647, %v11742_v60  ;;  %v5397_v45 = vand.u32 2147483648, %v11742_v60  ;;  %vm5391_vm7 = vweird.f32 %v11742_v60  ;;  %5539 = vmatpush.msra.mxu0 %v5504_v21  ;;  %v5559_v23 = vld [vmem:[%s11976_s15 + $0x60] sm:$0xff] }
 0x8e6   :  { %6538 = vrcp.f32 %v11752_v38  ;;  %v6010_v34 = vmul.f32 -1.442695, %v5374_v62  ;;  %v6012_v63 = vmul.f32 -1.442695, %v5375_v61  ;;  %v5372_v4 = vadd.f32 %v5342_v31, %v9325_v42  ;;  %5570 = vmatpush.msrb.mxu1 %v5559_v23  ;;  %v5548_v23 = vld [vmem:[%s11976_s15 + $0x8] sm:$0xff] }
 0x8e7   :  { %v5435_v15 = vand.u32 2147483648, %v11752_v38  ;;  %v5433_v24 = vand.u32 2147483647, %v11752_v38  ;;  %vm5429_vm6 = vweird.f32 %v11752_v38  ;;  %v5398_v19 = vor.u32 1.1754944e-38, %v5397_v45 }
 0x8e8   :  { %v5367_v47 = vpop.f32.mrf.mxu3  ;;  %v6535_v26 = vpop.eup %6534  ;;  %6540 = vpow2.f32 %v6010_v34  ;;  %vm5396_vm10 = vcmp.eq.f32.partialorder %v5395_v50, 8.507059e+37 }
 0x8e9   :  { %v5368_v22 = vadd.f32 %v5367_v47, %v5275_v27  ;;  %v11766_v16 = vadd.f32 1.0, %v6535_v26  ;;  %6542 = vpow2.f32 %v6012_v63  ;;  %v5344_v0 = vpop.f32.mrf.mxu2  ;;  %v5436_v6 = vor.u32 1.1754944e-38, %v5435_v15  ;;  %v5556_v47 = vld [vmem:[%s11976_s15 + $0x48] sm:$0xff] }
 0x8ea   :  { %v5345_v40 = vadd.f32 %v5344_v0, %v11724_v10  ;;  %vm5434_vm11 = vcmp.eq.f32.partialorder %v5433_v24, 8.507059e+37  ;;  %v5558_v10 = vld [vmem:[%s11976_s15 + $0x58] sm:$0xff] }
 0x8eb   :  { %v5377_v28 = vadd.f32 %v5368_v22, %v9310_v35  ;;  %v6537_v48 = vpop.eup %6536  ;;  %6544 = vrcp.f32 %v11766_v16  ;;  %v5475_v37 = vand.u32 2147483648, %v11766_v16  ;;  %5571 = vmatpush.msrb.mxu1 %v5558_v10  ;;  %vm5469_vm13 = vweird.f32 %v11766_v16 }
 0x8ec   :  { %v6539_v58 = vpop.eup %6538  ;;  %v5387_v9 = vmul.f32 %v6537_v48, %v11742_v60  ;;  %6546 = vtanh.f32 %v5372_v4  ;;  %vm5392_vm4 = vweird.f32 %v6537_v48  ;;  %v5376_v61 = vadd.f32 %v5345_v40, %v9325_v42 }
 0x8ed   :  { %v5425_v44 = vmul.f32 %v6539_v58, %v11752_v38  ;;  %v6014_v35 = vmul.f32 -1.442695, %v5377_v28  ;;  %vm5430_vm5 = vweird.f32 %v6539_v58  ;;  %vm5393_vm8 = vmor %vm5391_vm7, %vm5392_vm4  ;;  %v5473_v63 = vand.u32 2147483647, %v11766_v16 }
 0x8ee   :  { %v5388_v39 = vsub.f32 1.0, %v5387_v9  ;;  %v6541_v32 = vpop.eup %6540  ;;  %vm5431_vm9 = vmor %vm5429_vm6, %vm5430_vm5  ;;  %v5476_v9 = vor.u32 1.1754944e-38, %v5475_v37  ;;  %v5694_v37 = vld [vmem:[#allocation9 + $0x120] sm:$0xff] }
 0x8ef   :  { %v5426_v11 = vsub.f32 1.0, %v5425_v44  ;;  %v6543_v27 = vpop.eup %6542  ;;  %v11784_v51 = vadd.f32 1.0, %v6541_v32  ;;  %6548 = vpow2.f32 %v6014_v35  ;;  %vm5474_vm4 = vcmp.eq.f32.partialorder %v5473_v63, 8.507059e+37  ;;  %v5737_v63 = vld [vmem:[%s11980_s19 + $0x78] sm:$0xff] }
 0x8f0   :  { %v5389_v46 = vmul.f32 %v6537_v48, %v5388_v39  ;;  %v11787_v55 = vadd.f32 1.0, %v6543_v27  ;;  %v5554_v39 = vld [vmem:[%s11976_s15 + $0x38] sm:$0xff]  ;;  %v5553_v27 = vld [vmem:[%s11976_s15 + $0x30] sm:$0xff] }
 0x8f1   :  { %v5427_v53 = vmul.f32 %v6539_v58, %v5426_v11  ;;  %v11795_v33 = vpop.eup %6544  ;;  %6550 = vrcp.f32 %v11784_v51  ;;  %v5410_v22 = vand.u32 2147483647, %v11784_v51  ;;  %v5412_v26 = vand.u32 2147483648, %v11784_v51 }
 0x8f2   :  { %v5390_v20 = vadd.f32 %v6537_v48, %v5389_v46  ;;  %v5465_v1 = vmul.f32 %v11795_v33, %v11766_v16  ;;  %6552 = vrcp.f32 %v11787_v55  ;;  %v6547_v3 = vpop.eup %6546  ;;  %vm5470_vm12 = vweird.f32 %v11795_v33 }
 0x8f3   :  { %v5428_v25 = vadd.f32 %v6539_v58, %v5427_v53  ;;  %v5450_v57 = vand.u32 2147483648, %v11787_v55  ;;  %vm11839_vm15 = vmor %vm5469_vm13, %vm5470_vm12  ;;  %v5448_v16 = vand.u32 2147483647, %v11787_v55  ;;  %vm5444_vm2 = vweird.f32 %v11787_v55 }
 0x8f4   :  { %v5394_v2 = vsel %vm5393_vm8, %v6537_v48, %v5390_v20  ;;  %v5466_v7 = vsub.f32 1.0, %v5465_v1  ;;  %v5555_v48 = vld [vmem:[%s11976_s15 + $0x40] sm:$0xff]  ;;  %vm5406_vm1 = vweird.f32 %v11784_v51  ;;  %vm5411_vm6 = vcmp.eq.f32.partialorder %v5410_v22, 8.507059e+37 }
 0x8f5   :  { %v5399_v36 = vsel %vm5396_vm10, %v5398_v19, %v5394_v2  ;;  %v5432_v29 = vsel %vm5431_vm9, %v6539_v58, %v5428_v25  ;;  %v6549_v30 = vpop.eup %6548  ;;  %v5413_v35 = vor.u32 1.1754944e-38, %v5412_v26  ;;  %v5451_v50 = vor.u32 1.1754944e-38, %v5450_v57  ;;  %v5551_v19 = vld [vmem:[%s11976_s15 + $0x20] sm:$0xff]  ;;  %v5733_v26 = vld [vmem:[%s11980_s19 + $0x58] sm:$0xff]  ;;  %v5732_v57 = vld [vmem:[%s11980_s19 + $0x50] sm:$0xff] }
 0x8f6   :  { %v5437_v56 = vsel %vm5434_vm11, %v5436_v6, %v5432_v29  ;;  %v5496_v13 = vmul.f32 %v6547_v3, %v5399_v36  ;;  %v5467_v60 = vmul.f32 %v11795_v33, %v5466_v7  ;;  %v11814_v43 = vadd.f32 1.0, %v6549_v30  ;;  %v5549_v6 = vld [vmem:[%s11976_s15 + $0x10] sm:$0xff]  ;;  %v5547_v30 = vld [vmem:[%s11976_s15] sm:$0xff] }
 0x8f7   :  { %v5494_v8 = vmul.f32 %v5437_v56, %v11553_v54  ;;  %v6551_v62 = vpop.eup %6550  ;;  %v5557_v54 = vld [vmem:[%s11976_s15 + $0x50] sm:$0xff]  ;;  %vm5449_vm8 = vcmp.eq.f32.partialorder %v5448_v16, 8.507059e+37  ;;  %v5669_v56 = vld [vmem:[#allocation9 + $0x118] sm:$0xff]  ;;  %v5731_v16 = vld [vmem:[%s11980_s19 + $0x48] sm:$0xff] }
 0x8f8   :  { %v6553_v12 = vpop.eup %6552  ;;  %v5402_v38 = vmul.f32 %v6551_v62, %v11784_v51  ;;  %6554 = vrcp.f32 %v11814_v43  ;;  %v5468_v34 = vadd.f32 %v11795_v33, %v5467_v60  ;;  %5572 = vmatpush.msrb.mxu1 %v5557_v54  ;;  %vm5407_vm14 = vweird.f32 %v6551_v62  ;;  %5685 = vmatpush.msrb.mxu0 %v5669_v56  ;;  %v5666_v60 = vld [vmem:[#allocation9 + $0x100] sm:$0xff]  ;;  %v5695_v54 = vld [vmem:[#allocation9 + $0x128] sm:$0xff] }
 0x8f9   :  { %v5498_v49 = vadd.f32 %v5496_v13, %v5494_v8  ;;  %v5440_v31 = vmul.f32 %v6553_v12, %v11787_v55  ;;  %vm5445_vm0 = vweird.f32 %v6553_v12  ;;  %vm5408_vm5 = vmor %vm5406_vm1, %vm5407_vm14  ;;  %v5490_v3 = vand.u32 2147483648, %v11814_v43  ;;  %v5668_v13 = vld [vmem:[#allocation9 + $0x110] sm:$0xff]  ;;  %v5667_v8 = vld [vmem:[#allocation9 + $0x108] sm:$0xff] }
 0x8fa   :  { %v5403_v42 = vsub.f32 1.0, %v5402_v38  ;;  %v5472_v58 = vsel %vm11839_vm15, %v11795_v33, %v5468_v34  ;;  %5573 = vmatpush.msrb.mxu1 %v5556_v47  ;;  %vm5446_vm7 = vmor %vm5444_vm2, %vm5445_vm0  ;;  %vm5484_vm10 = vweird.f32 %v11814_v43  ;;  %5686 = vmatpush.msrb.mxu0 %v5668_v13  ;;  %v5696_v38 = vld [vmem:[#allocation9 + $0x130] sm:$0xff]  ;;  %v5734_v22 = vld [vmem:[%s11980_s19 + $0x60] sm:$0xff] }
 0x8fb   :  { %6556 = vtanh.f32 %v5498_v49  ;;  %v5441_v18 = vsub.f32 1.0, %v5440_v31  ;;  %v5477_v21 = vsel %vm5474_vm4, %v5476_v9, %v5472_v58  ;;  %v5491_v40 = vor.u32 1.1754944e-38, %v5490_v3  ;;  %v5697_v49 = vld [vmem:[#allocation9 + $0x138] sm:$0xff]  ;;  %v5736_v47 = vld [vmem:[%s11980_s19 + $0x70] sm:$0xff]  ;;  %v5727_v9 = vld [vmem:[%s11980_s19 + $0x28] sm:$0xff] }
 0x8fc   :  { %6558 = vtanh.f32 %v5376_v61  ;;  %v5404_v4 = vmul.f32 %v6551_v62, %v5403_v42  ;;  %5574 = vmatpush.msrb.mxu1 %v5555_v48  ;;  %5687 = vmatpush.msrb.mxu0 %v5667_v8  ;;  %v6047_v31 = vld [vmem:[%s11977_s16] ss:$0 sm:$0xff]  ;;  %v5728_v58 = vld [vmem:[%s11980_s19 + $0x30] sm:$0xff] }
 0x8fd   :  { %v5442_v17 = vmul.f32 %v6553_v12, %v5441_v18  ;;  %v5735_v18 = vld [vmem:[%s11980_s19 + $0x68] sm:$0xff]  ;;  %v5730_v48 = vld [vmem:[%s11980_s19 + $0x40] sm:$0xff] }
 0x8fe   :  { %v6555_v44 = vpop.eup %6554  ;;  %v5405_v41 = vadd.f32 %v6551_v62, %v5404_v4  ;;  %5575 = vmatpush.msrb.mxu1 %v5554_v39  ;;  %5688 = vmatpush.msrb.mxu0 %v5666_v60  ;;  %v5724_v39 = vld [vmem:[%s11980_s19 + $0x10] sm:$0xff] }
 0x8ff   :  { %v5443_v32 = vadd.f32 %v6553_v12, %v5442_v17  ;;  %v5480_v11 = vmul.f32 %v6555_v44, %v11814_v43  ;;  %vm5485_vm9 = vweird.f32 %v6555_v44  ;;  %v5729_v17 = vld [vmem:[%s11980_s19 + $0x38] sm:$0xff] }
 0x900   :  { %v5409_v45 = vsel %vm5408_vm5, %v6551_v62, %v5405_v41  ;;  %5576 = vmatpush.msrb.mxu1 %v5553_v27  ;;  %vm5486_vm11 = vmor %vm5484_vm10, %vm5485_vm9  ;;  %v5725_v41 = vld [vmem:[%s11980_s19 + $0x18] sm:$0xff] }
 0x901   :  { %v6557_v15 = vpop.eup %6556  ;;  %v5414_v51 = vsel %vm5411_vm6, %v5413_v35, %v5409_v45  ;;  %v5447_v24 = vsel %vm5446_vm7, %v6553_v12, %v5443_v32  ;;  %v5481_v55 = vsub.f32 1.0, %v5480_v11  ;;  %v5723_v35 = vld [vmem:[%s11980_s19 + $0x8] sm:$0xff]  ;;  %v5722_v32 = vld [vmem:[%s11980_s19] sm:$0xff]  ;;  %v5765_v11 = vld [vmem:[%s11982_s21 + $0x18] sm:$0xff] }
 0x902   :  { %v6559_v46 = vpop.eup %6558  ;;  %v5502_v53 = vmul.f32 %v6557_v15, %v5477_v21  ;;  %v5452_v52 = vsel %vm5449_vm8, %v5451_v50, %v5447_v24  ;;  %5577 = vmatpush.msrb.mxu1 %v5552_v5  ;;  %v5764_v15 = vld [vmem:[%s11982_s21 + $0x10] sm:$0xff]  ;;  %5785 = vmatpush.msra.mxu2 %v5765_v11  ;;  %v5763_v50 = vld [vmem:[%s11982_s21 + $0x8] sm:$0xff]  ;;  %v6045_v45 = vld [vmem:[%s11979_s18] ss:$0 sm:$0xff]  ;;  %v5643_v21 = vpop.f32.mrf.mxu2 }
 0x903   :  { %v5497_v0 = vmul.f32 %v6559_v46, %v5414_v51  ;;  %v5482_v33 = vmul.f32 %v6555_v44, %v5481_v55  ;;  %v5495_v20 = vmul.f32 %v5452_v52, %v11600_v59  ;;  %v5488_v59 = vand.u32 2147483647, %v11814_v43  ;;  %v6046_v43 = vld [vmem:[%s11975_s14] ss:$0 sm:$0xff]  ;;  %v5663_v51 = vpop.f32.mrf.mxu3 }
 0x904   :  { %5540 = vmatmul.f32.vlgmr.msra.gmra.mxu0 %v5502_v53  ;;  %5578 = vmatpush.msrb.mxu1 %v5551_v19  ;;  %v5644_v46 = vadd.f32 %v6045_v45, %v5643_v21  ;;  %v5762_v52 = vld [vmem:[%s11982_s21] sm:$0xff] }
 0x905   :  { %v5499_v25 = vadd.f32 %v5497_v0, %v5495_v20  ;;  %v5483_v1 = vadd.f32 %v6555_v44, %v5482_v33  ;;  %vm5489_vm12 = vcmp.eq.f32.partialorder %v5488_v59, 8.507059e+37  ;;  %5713 = vmatpush.msra.mxu0 %v5697_v49  ;;  %5786 = vmatpush.msra.mxu2 %v5764_v15  ;;  %v6048_v5 = vld [vmem:[%s11981_s20] ss:$0 sm:$0xff] }
 0x906   :  { %5579 = vmatpush.msrb.mxu1 %v5550_v14  ;;  %v5664_v53 = vadd.f32 %v5663_v51, %v5644_v46  ;;  %v6049_v19 = vld [vmem:[#allocation3] ss:$0 sm:$0xff] }
 0x907   :  { %6560 = vtanh.f32 %v5499_v25  ;;  %v5487_v2 = vsel %vm5486_vm11, %v6555_v44, %v5483_v1  ;;  %5714 = vmatpush.msra.mxu0 %v5696_v38  ;;  %v5726_v44 = vld [vmem:[%s11980_s19 + $0x20] sm:$0xff]  ;;  %5787 = vmatpush.msra.mxu2 %v5763_v50 }
 0x908   :  { %5580 = vmatpush.msrb.mxu1 %v5549_v6  ;;  %v5492_v29 = vsel %vm5489_vm12, %v5491_v40, %v5487_v2 }
 0x909   :  { %5715 = vmatpush.msra.mxu0 %v5695_v54  ;;  %5788 = vmatpush.msra.mxu2 %v5762_v52 }
 0x90a   :  { %5581 = vmatpush.msrb.mxu1 %v5548_v23 }
 0x90b   :  { %5716 = vmatpush.msra.mxu0 %v5694_v37 }
 0x90c   :  { %5582 = vmatpush.msrb.mxu1 %v5547_v30 }
 0x90d   :  { %v6561_v36 = vpop.eup %6560 }
 0x90e   :  { %v5503_v7 = vmul.f32 %v6561_v36, %v5492_v29 }
 0x910   :  { %5543 = vmatmul.f32.gmra.mxu0 %v5503_v7 }
 0x981   :  { %v5541_v10 = vpop.f32.mrf.mxu0 }
 0x982   :  { %v5542_v62 = vadd.f32 %v6046_v43, %v5541_v10 }
 0x984   :  { %5583 = vmatmul.f32.vlgmr.msrb.gmra.mxu1 %v5542_v62 }
 0x98d   :  { %v5544_v61 = vpop.f32.mrf.mxu0 }
 0x98e   :  { %v5545_v12 = vadd.f32 %v6046_v43, %v5544_v61 }
 0x990   :  { %5586 = vmatmul.f32.gmra.mxu1 %v5545_v12 }
 0xa01   :  { %v5584_v34 = vpop.f32.mrf.mxu1 }
 0xa02   :  { %v5585_v42 = vadd.f32 %v6047_v31, %v5584_v34 }
 0xa04   :  { %6015 = vmatmul.msk.f32.vlgmr.msrb.gmra.mxu0 %vm401_vm3, %v5585_v42 }
 0xa05   :  { %5742 = vmatpush.msrb.mxu0 %v5737_v63 }
 0xa07   :  { %5743 = vmatpush.msrb.mxu0 %v5736_v47 }
 0xa09   :  { %5744 = vmatpush.msrb.mxu0 %v5735_v18 }
 0xa0b   :  { %5745 = vmatpush.msrb.mxu0 %v5734_v22 }
 0xa0d   :  { %5746 = vmatpush.msrb.mxu0 %v5733_v26  ;;  %v5587_v4 = vpop.f32.mrf.mxu1 }
 0xa0e   :  { %v5588_v28 = vadd.f32 %v6047_v31, %v5587_v4 }
 0xa0f   :  { %5747 = vmatpush.msrb.mxu0 %v5732_v57 }
 0xa10   :  { %6016 = vmatmul.msk.f32.vlgmr.msra.gmra.mxu0 %vm401_vm3, %v5588_v28 }
 0xa11   :  { %5748 = vmatpush.msrb.mxu0 %v5731_v16 }
 0xa13   :  { %5749 = vmatpush.msrb.mxu0 %v5730_v48 }
 0xa15   :  { %5750 = vmatpush.msrb.mxu0 %v5729_v17 }
 0xa17   :  { %5751 = vmatpush.msrb.mxu0 %v5728_v58 }
 0xa19   :  { %5752 = vmatpush.msrb.mxu0 %v5727_v9 }
 0xa1b   :  { %5753 = vmatpush.msrb.mxu0 %v5726_v44 }
 0xa1d   :  { %5754 = vmatpush.msrb.mxu0 %v5725_v41 }
 0xa1f   :  { %5755 = vmatpush.msrb.mxu0 %v5724_v39 }
 0xa21   :  { %5756 = vmatpush.msrb.mxu0 %v5723_v35 }
 0xa23   :  { %5757 = vmatpush.msrb.mxu0 %v5722_v32 }
 0xa81   :  { %v5690_v27 = vpop.f32.mrf.mxu0 }
 0xa82   :  { %v5693_v24 = vadd.f32 %v5690_v27, %v5664_v53 }
 0xa8d   :  { %v5718_v55 = vpop.f32.mrf.mxu0 }
 0xa8e   :  { %v5721_v0 = vadd.f32 %v5718_v55, %v5693_v24 }
 0xa90   :  { %5758 = vmatmul.f32.vlgmr.msrb.gmra.mxu0 %v5721_v0 }
 0xb0d   :  { %v5759_v33 = vpop.f32.mrf.mxu0 }
 0xb0e   :  { %v5760_v20 = vadd.f32 %v6048_v5, %v5759_v33 }
 0xb10   :  { %6017 = vmatmul.msk.f32.vlgmr.msra.gmra.mxu2 %vm401_vm3, %v5760_v20  ;;  %vm5812_vm3 = vcmask 7168  }
 0xb93   :  { %v5790_v25 = vpop.f32.mrf.mxu2 }
 0xb94   :  { %v5791_v1 = vadd.f32 %v6049_v19, %v5790_v25 }
 0xb96   :  { %v6018_v14 = vmul.f32 -1.442695, %v5791_v1 }
 0xb98   :  { %6562 = vpow2.f32 %v6018_v14 }
 0xb9e   :  { %v6563_v3 = vpop.eup %6562 }
 0xb9f   :  { %v5796_v59 = vadd.f32 1.0, %v6563_v3 }
 0xba1   :  { %6564 = vrcp.f32 %v5796_v59  ;;  %v5808_v36 = vand.u32 2147483648, %v5796_v59  ;;  %v5806_v7 = vand.u32 2147483647, %v5796_v59  ;;  %vm5802_vm14 = vweird.f32 %v5796_v59 }
 0xba3   :  { %v5809_v30 = vor.u32 1.1754944e-38, %v5808_v36  ;;  %vm5807_vm0 = vcmp.eq.f32.partialorder %v5806_v7, 8.507059e+37 }
 0xba7   :  { %v6565_v6 = vpop.eup %6564 }
 0xba8   :  { %v5798_v2 = vmul.f32 %v6565_v6, %v5796_v59  ;;  %vm5803_vm13 = vweird.f32 %v6565_v6 }
 0xba9   :  { %vm5804_vm15 = vmor %vm5802_vm14, %vm5803_vm13 }
 0xbaa   :  { %v5799_v40 = vsub.f32 1.0, %v5798_v2 }
 0xbac   :  { %v5800_v29 = vmul.f32 %v6565_v6, %v5799_v40 }
 0xbae   :  { %v5801_v23 = vadd.f32 %v6565_v6, %v5800_v29 }
 0xbb0   :  { %v5805_v56 = vsel %vm5804_vm15, %v6565_v6, %v5801_v23 }
 0xbb1   :  { %v5810_v13 = vsel %vm5807_vm0, %v5809_v30, %v5805_v56 }
 0xbb2   :  { %5813 = vst.msk [vmem:[%s11984_s23] sm:$0xff] %vm5812_vm3, %v5810_v13 }
 0xbb3   :  { %5818 = vsyncpa [#allocation5], 1 }
 0xbb4   :  { %5819 = vsyncpa [#allocation7], 1 }
 0xbb5   :  { %5820 = vsyncpa [#allocation10], 1 }

</bundles_post_ra>
